<compile_context>
chip_gen: v7x
topology: tpu7x:2x2x1
jax: 0.10.0
libtpu: 0.0.40
codegen_flags: <defaults>
</compile_context>

<pallas_src>
import numpy as np
import jax
import jax.numpy as jnp
from jax import lax
from jax.experimental import pallas as pl
from jax.experimental.pallas import tpu as pltpu

K = 7   # conv kernel size
P = 3   # spatial padding


def make_banded_weights(w_hwio, W):
    """Pack (7,7,Cin,Cout) HWIO weights into 7 per-kh banded matrices.

    band[kh] has shape ((W+6)*Cin, W*Cout) with
        band[kh][(x+kw)*Cin + ci, x*Cout + co] = w[kh, kw, ci, co]
    so that dot(xpad_flat[y+kh, :], band[kh]) contracts over (kw, ci) in one MXU pass.
    """
    w = np.asarray(w_hwio, dtype=np.float32)
    _, _, Cin, Cout = w.shape
    Wp = W + 2 * P
    band = np.zeros((K, Wp * Cin, W * Cout), np.float32)
    for kh in range(K):
        for kw in range(K):
            for x in range(W):
                xin = x + kw
                band[kh, xin * Cin:(xin + 1) * Cin, x * Cout:(x + 1) * Cout] = w[kh, kw]
    return jnp.asarray(band, dtype=jnp.bfloat16)


def make_model_kernel(H, W, C):
    WC = W * C

    def conv_banded(xp_ref, wb_ref, b_ref):
        # xp_ref: (H+6, (W+6)*C) bf16 zero-padded flattened input
        # wb_ref: (7, (W+6)*C, W*C) bf16 banded weights ; b_ref: (1, W*C) f32 bias
        acc = jnp.broadcast_to(b_ref[...], (H, WC)).astype(jnp.float32)  # bias folded in
        for kh in range(K):
            rows = xp_ref[kh:kh + H, :]                       # (H, (W+6)*C) bf16
            acc = acc + jnp.dot(rows, wb_ref[kh],
                                preferred_element_type=jnp.float32)
        return acc                                            # (H, W*C) f32, lane-dense

    def kernel(c_ref, x1p_ref, x2p_ref, x3_ref, x4_ref, x5_ref, x6_ref, x7_ref,
               w1_ref, w2_ref, w3_ref, w4_ref, w5_ref,
               b1_ref, b2_ref, b3_ref, b4_ref, b5_ref,
               o_ref, pad_ref):
        c1 = c_ref[0, 0]
        c2 = c_ref[0, 1]

        # Zero the padded scratch once; per-conv writes fully overwrite the interior.
        pad_ref[...] = jnp.zeros_like(pad_ref)

        def pad_and_conv(val, w_ref, b_ref):
            pad_ref[P:P + H, P * C:P * C + WC] = val.astype(jnp.bfloat16)
            return conv_banded(pad_ref, w_ref, b_ref)

        v1 = conv_banded(x1p_ref, w1_ref, b1_ref)                       # conv1(x1)
        v3 = jnp.maximum(v1 + x4_ref[...], 0.0)                         # relu(v1 + x4)
        v5 = jnp.maximum(v3 + conv_banded(x2p_ref, w2_ref, b2_ref), 0.0)
        v7 = jnp.maximum(v5 + x3_ref[...], 0.0)
        v10 = jnp.maximum(pad_and_conv(v7, w3_ref, b3_ref) + x5_ref[...], 0.0)
        v13 = jnp.maximum(pad_and_conv(v10, w4_ref, b4_ref) + c1, 0.0)
        # v14 = randint + v13 in the PyTorch code is dead (never used) -> omitted.
        v15 = jnp.maximum((c2 + v13) + v1, 0.0)
        v16 = pad_and_conv(v15, w5_ref, b5_ref)                         # conv5(v15)
        v18 = jnp.maximum(v16 + x6_ref[...], 0.0)
        o_ref[...] = jnp.maximum(v18 + x7_ref[...], 0.0)                # v20

    return kernel


def model_forward(xs_nchw, ws_hwio, bs, c1, c2):
    """xs_nchw: 7 arrays (1,C,H,W); ws_hwio: 5 arrays (7,7,C,C); bs: 5 arrays (C,)."""
    N, C, H, W = xs_nchw[0].shape
    assert N == 1
    WC = W * C
    WpC = (W + 2 * P) * C

    def to_flat(x):           # (1,C,H,W) -> (H, W*C) f32, lane-dense HWC flatten
        return jnp.transpose(x[0], (1, 2, 0)).reshape(H, WC)

    def to_padded_flat(x):    # (1,C,H,W) -> (H+6, (W+6)*C) bf16, zero-padded
        xh = jnp.transpose(x[0], (1, 2, 0))
        xp = jnp.pad(xh, ((P, P), (P, P), (0, 0)))
        return xp.reshape(H + 2 * P, WpC).astype(jnp.bfloat16)

    x1p = to_padded_flat(xs_nchw[0])
    x2p = to_padded_flat(xs_nchw[1])
    x_flat = [to_flat(x) for x in xs_nchw[2:]]

    wbs = [make_banded_weights(w, W) for w in ws_hwio]
    bfs = [jnp.tile(b.reshape(C), W).reshape(1, WC).astype(jnp.float32) for b in bs]
    c_arr = jnp.array([[c1, c2]], dtype=jnp.float32)

    kernel = make_model_kernel(H, W, C)
    out_flat = pl.pallas_call(
        kernel,
        out_shape=jax.ShapeDtypeStruct((H, WC), jnp.float32),
        in_specs=([pl.BlockSpec(memory_space=pltpu.MemorySpace.SMEM)]
                  + [pl.BlockSpec(memory_space=pltpu.MemorySpace.VMEM)] * 17),
        out_specs=pl.BlockSpec(memory_space=pltpu.MemorySpace.VMEM),
        scratch_shapes=[pltpu.VMEM((H + 2 * P, WpC), jnp.bfloat16)],
    )(c_arr, x1p, x2p, *x_flat, *wbs, *bfs)

    out_hwc = out_flat.reshape(H, W, C)
    return jnp.transpose(out_hwc, (2, 0, 1))[None]                     # (1, C, H, W)


def reference_forward(xs_nchw, ws_hwio, bs, c1, c2):
    """Pure-JAX NCHW reference. Conv operands bf16-rounded (like the kernel), f32 math."""
    C = xs_nchw[0].shape[1]

    def rnd(x):
        return x.astype(jnp.bfloat16).astype(jnp.float32)

    def conv(x, w, b):
        y = lax.conv_general_dilated(
            rnd(x), rnd(w), window_strides=(1, 1), padding=[(P, P), (P, P)],
            dimension_numbers=('NCHW', 'HWIO', 'NCHW'),
            precision=lax.Precision.HIGHEST)
        return y + b.reshape(C)[None, :, None, None]

    x1, x2, x3, x4, x5, x6, x7 = xs_nchw
    w1, w2, w3, w4, w5 = ws_hwio
    b1, b2, b3, b4, b5 = bs
    v1 = conv(x1, w1, b1)
    v3 = jax.nn.relu(v1 + x4)
    v5 = jax.nn.relu(v3 + conv(x2, w2, b2))
    v7 = jax.nn.relu(v5 + x3)
    v10 = jax.nn.relu(conv(v7, w3, b3) + x5)
    v13 = jax.nn.relu(conv(v10, w4, b4) + c1)
    v15 = jax.nn.relu((c2 + v13) + v1)
    v18 = jax.nn.relu(conv(v15, w5, b5) + x6)
    return jax.nn.relu(v18 + x7)


if __name__ == "__main__":
    # Small spatial size consistent with the module (C must be 16; 7x7 conv, pad 3).
    N, C, H, W = 1, 16, 16, 16

    key = jax.random.PRNGKey(0)
    keys = jax.random.split(key, 17)
    xs = [jax.random.normal(keys[i], (N, C, H, W), dtype=jnp.float32) for i in range(7)]
    ws = [0.05 * jax.random.normal(keys[7 + i], (K, K, C, C), dtype=jnp.float32)
          for i in range(5)]
    bs = [0.1 * jax.random.normal(keys[12 + i], (C,), dtype=jnp.float32) for i in range(5)]

    # The PyTorch code adds np.random.randint(1, 4) scalars; draw them deterministically.
    rng = np.random.default_rng(0)
    c1 = float(rng.integers(1, 4))
    c2 = float(rng.integers(1, 4))

    out = jax.block_until_ready(model_forward(xs, ws, bs, c1, c2))
    ref = reference_forward(xs, ws, bs, c1, c2)

    assert out.shape == (N, C, H, W), out.shape
    assert np.allclose(np.asarray(out), np.asarray(ref), atol=3e-2, rtol=1e-2), \
        "Pallas kernel output mismatch vs JAX reference"

    print("KERNEL_OK")
</pallas_src>

<mosaic_0001>
module attributes {stable_mosaic.version = 11 : i64} {
  func.func @kernel(%arg0: memref<1x2xf32, #tpu.memory_space<smem>>, %arg1: memref<22x352xbf16, #tpu.memory_space<vmem>>, %arg2: memref<22x352xbf16, #tpu.memory_space<vmem>>, %arg3: memref<16x256xf32, #tpu.memory_space<vmem>>, %arg4: memref<16x256xf32, #tpu.memory_space<vmem>>, %arg5: memref<16x256xf32, #tpu.memory_space<vmem>>, %arg6: memref<16x256xf32, #tpu.memory_space<vmem>>, %arg7: memref<16x256xf32, #tpu.memory_space<vmem>>, %arg8: memref<7x352x256xbf16, #tpu.memory_space<vmem>>, %arg9: memref<7x352x256xbf16, #tpu.memory_space<vmem>>, %arg10: memref<7x352x256xbf16, #tpu.memory_space<vmem>>, %arg11: memref<7x352x256xbf16, #tpu.memory_space<vmem>>, %arg12: memref<7x352x256xbf16, #tpu.memory_space<vmem>>, %arg13: memref<1x256xf32, #tpu.memory_space<vmem>>, %arg14: memref<1x256xf32, #tpu.memory_space<vmem>>, %arg15: memref<1x256xf32, #tpu.memory_space<vmem>>, %arg16: memref<1x256xf32, #tpu.memory_space<vmem>>, %arg17: memref<1x256xf32, #tpu.memory_space<vmem>>, %arg18: memref<16x256xf32, #tpu.memory_space<vmem>>, %arg19: memref<22x352xbf16, #tpu.memory_space<vmem>>) attributes {dimension_semantics = [], scalar_prefetch = 0 : i64, scratch_operands = 1 : i64, tpu.core_type = #tpu.core_type<tc>} {
    %c0 = arith.constant 0 : index
    %c0_0 = arith.constant 0 : index
    %0 = memref.load %arg0[%c0, %c0_0] : memref<1x2xf32, #tpu.memory_space<smem>>
    %c0_1 = arith.constant 0 : index
    %c1 = arith.constant 1 : index
    %1 = memref.load %arg0[%c0_1, %c1] : memref<1x2xf32, #tpu.memory_space<smem>>
    %cst = arith.constant 0.000000e+00 : bf16
    %2 = vector.broadcast %cst : bf16 to vector<22x352xbf16>
    %c0_2 = arith.constant 0 : index
    %c0_3 = arith.constant 0 : index
    %3 = vector.load %arg19[%c0_2, %c0_3] : memref<22x352xbf16, #tpu.memory_space<vmem>>, vector<22x352xbf16>
    tpu.vector_store %arg19[%c0_2, %c0_3], %2 {strides = array<i32>} : memref<22x352xbf16, #tpu.memory_space<vmem>>, vector<22x352xbf16>,
    %c0_4 = arith.constant 0 : index
    %c0_5 = arith.constant 0 : index
    %4 = vector.load %arg13[%c0_4, %c0_5] : memref<1x256xf32, #tpu.memory_space<vmem>>, vector<1x256xf32>
    %5 = vector.shape_cast %4 : vector<1x256xf32> to vector<1x256xf32>
    %6 = vector.broadcast %5 : vector<1x256xf32> to vector<16x256xf32>
    %c0_6 = arith.constant 0 : index
    %c0_7 = arith.constant 0 : index
    %7 = vector.load %arg1[%c0_6, %c0_7] : memref<22x352xbf16, #tpu.memory_space<vmem>>, vector<16x352xbf16>
    %c0_8 = arith.constant 0 : index
    %c0_9 = arith.constant 0 : index
    %c0_10 = arith.constant 0 : index
    %8 = vector.load %arg8[%c0_8, %c0_9, %c0_10] : memref<7x352x256xbf16, #tpu.memory_space<vmem>>, vector<1x352x256xbf16>
    %9 = vector.shape_cast %8 : vector<1x352x256xbf16> to vector<352x256xbf16>
    %cst_11 = arith.constant dense<0.000000e+00> : vector<16x256xf32>
    %10 = tpu.matmul %7, %9, %cst_11 {dimension_numbers = #tpu.dot_dimension_numbers<[1], [0], [0], [1], [0, 0, 1, 1], [], []>} : vector<16x352xbf16>, vector<352x256xbf16>, vector<16x256xf32> -> vector<16x256xf32>
    %11 = arith.addf %6, %10 : vector<16x256xf32>
    %c1_12 = arith.constant 1 : index
    %c0_13 = arith.constant 0 : index
    %12 = vector.load %arg1[%c1_12, %c0_13] : memref<22x352xbf16, #tpu.memory_space<vmem>>, vector<16x352xbf16>
    %c1_14 = arith.constant 1 : index
    %c0_15 = arith.constant 0 : index
    %c0_16 = arith.constant 0 : index
    %13 = vector.load %arg8[%c1_14, %c0_15, %c0_16] : memref<7x352x256xbf16, #tpu.memory_space<vmem>>, vector<1x352x256xbf16>
    %14 = vector.shape_cast %13 : vector<1x352x256xbf16> to vector<352x256xbf16>
    %cst_17 = arith.constant dense<0.000000e+00> : vector<16x256xf32>
    %15 = tpu.matmul %12, %14, %cst_17 {dimension_numbers = #tpu.dot_dimension_numbers<[1], [0], [0], [1], [0, 0, 1, 1], [], []>} : vector<16x352xbf16>, vector<352x256xbf16>, vector<16x256xf32> -> vector<16x256xf32>
    %16 = arith.addf %11, %15 : vector<16x256xf32>
    %c2 = arith.constant 2 : index
    %c0_18 = arith.constant 0 : index
    %17 = vector.load %arg1[%c2, %c0_18] : memref<22x352xbf16, #tpu.memory_space<vmem>>, vector<16x352xbf16>
    %c2_19 = arith.constant 2 : index
    %c0_20 = arith.constant 0 : index
    %c0_21 = arith.constant 0 : index
    %18 = vector.load %arg8[%c2_19, %c0_20, %c0_21] : memref<7x352x256xbf16, #tpu.memory_space<vmem>>, vector<1x352x256xbf16>
    %19 = vector.shape_cast %18 : vector<1x352x256xbf16> to vector<352x256xbf16>
    %cst_22 = arith.constant dense<0.000000e+00> : vector<16x256xf32>
    %20 = tpu.matmul %17, %19, %cst_22 {dimension_numbers = #tpu.dot_dimension_numbers<[1], [0], [0], [1], [0, 0, 1, 1], [], []>} : vector<16x352xbf16>, vector<352x256xbf16>, vector<16x256xf32> -> vector<16x256xf32>
    %21 = arith.addf %16, %20 : vector<16x256xf32>
    %c3 = arith.constant 3 : index
    %c0_23 = arith.constant 0 : index
    %22 = vector.load %arg1[%c3, %c0_23] : memref<22x352xbf16, #tpu.memory_space<vmem>>, vector<16x352xbf16>
    %c3_24 = arith.constant 3 : index
    %c0_25 = arith.constant 0 : index
    %c0_26 = arith.constant 0 : index
    %23 = vector.load %arg8[%c3_24, %c0_25, %c0_26] : memref<7x352x256xbf16, #tpu.memory_space<vmem>>, vector<1x352x256xbf16>
    %24 = vector.shape_cast %23 : vector<1x352x256xbf16> to vector<352x256xbf16>
    %cst_27 = arith.constant dense<0.000000e+00> : vector<16x256xf32>
    %25 = tpu.matmul %22, %24, %cst_27 {dimension_numbers = #tpu.dot_dimension_numbers<[1], [0], [0], [1], [0, 0, 1, 1], [], []>} : vector<16x352xbf16>, vector<352x256xbf16>, vector<16x256xf32> -> vector<16x256xf32>
    %26 = arith.addf %21, %25 : vector<16x256xf32>
    %c4 = arith.constant 4 : index
    %c0_28 = arith.constant 0 : index
    %27 = vector.load %arg1[%c4, %c0_28] : memref<22x352xbf16, #tpu.memory_space<vmem>>, vector<16x352xbf16>
    %c4_29 = arith.constant 4 : index
    %c0_30 = arith.constant 0 : index
    %c0_31 = arith.constant 0 : index
    %28 = vector.load %arg8[%c4_29, %c0_30, %c0_31] : memref<7x352x256xbf16, #tpu.memory_space<vmem>>, vector<1x352x256xbf16>
    %29 = vector.shape_cast %28 : vector<1x352x256xbf16> to vector<352x256xbf16>
    %cst_32 = arith.constant dense<0.000000e+00> : vector<16x256xf32>
    %30 = tpu.matmul %27, %29, %cst_32 {dimension_numbers = #tpu.dot_dimension_numbers<[1], [0], [0], [1], [0, 0, 1, 1], [], []>} : vector<16x352xbf16>, vector<352x256xbf16>, vector<16x256xf32> -> vector<16x256xf32>
    %31 = arith.addf %26, %30 : vector<16x256xf32>
    %c5 = arith.constant 5 : index
    %c0_33 = arith.constant 0 : index
    %32 = vector.load %arg1[%c5, %c0_33] : memref<22x352xbf16, #tpu.memory_space<vmem>>, vector<16x352xbf16>
    %c5_34 = arith.constant 5 : index
    %c0_35 = arith.constant 0 : index
    %c0_36 = arith.constant 0 : index
    %33 = vector.load %arg8[%c5_34, %c0_35, %c0_36] : memref<7x352x256xbf16, #tpu.memory_space<vmem>>, vector<1x352x256xbf16>
    %34 = vector.shape_cast %33 : vector<1x352x256xbf16> to vector<352x256xbf16>
    %cst_37 = arith.constant dense<0.000000e+00> : vector<16x256xf32>
    %35 = tpu.matmul %32, %34, %cst_37 {dimension_numbers = #tpu.dot_dimension_numbers<[1], [0], [0], [1], [0, 0, 1, 1], [], []>} : vector<16x352xbf16>, vector<352x256xbf16>, vector<16x256xf32> -> vector<16x256xf32>
    %36 = arith.addf %31, %35 : vector<16x256xf32>
    %c6 = arith.constant 6 : index
    %c0_38 = arith.constant 0 : index
    %37 = vector.load %arg1[%c6, %c0_38] : memref<22x352xbf16, #tpu.memory_space<vmem>>, vector<16x352xbf16>
    %c6_39 = arith.constant 6 : index
    %c0_40 = arith.constant 0 : index
    %c0_41 = arith.constant 0 : index
    %38 = vector.load %arg8[%c6_39, %c0_40, %c0_41] : memref<7x352x256xbf16, #tpu.memory_space<vmem>>, vector<1x352x256xbf16>
    %39 = vector.shape_cast %38 : vector<1x352x256xbf16> to vector<352x256xbf16>
    %cst_42 = arith.constant dense<0.000000e+00> : vector<16x256xf32>
    %40 = tpu.matmul %37, %39, %cst_42 {dimension_numbers = #tpu.dot_dimension_numbers<[1], [0], [0], [1], [0, 0, 1, 1], [], []>} : vector<16x352xbf16>, vector<352x256xbf16>, vector<16x256xf32> -> vector<16x256xf32>
    %41 = arith.addf %36, %40 : vector<16x256xf32>
    %c0_43 = arith.constant 0 : index
    %c0_44 = arith.constant 0 : index
    %42 = vector.load %arg4[%c0_43, %c0_44] : memref<16x256xf32, #tpu.memory_space<vmem>>, vector<16x256xf32>
    %43 = arith.addf %41, %42 : vector<16x256xf32>
    %cst_45 = arith.constant 0.000000e+00 : f32
    %44 = vector.broadcast %cst_45 : f32 to vector<16x256xf32>
    %45 = arith.maximumf %43, %44 : vector<16x256xf32>
    %c0_46 = arith.constant 0 : index
    %c0_47 = arith.constant 0 : index
    %46 = vector.load %arg14[%c0_46, %c0_47] : memref<1x256xf32, #tpu.memory_space<vmem>>, vector<1x256xf32>
    %47 = vector.shape_cast %46 : vector<1x256xf32> to vector<1x256xf32>
    %48 = vector.broadcast %47 : vector<1x256xf32> to vector<16x256xf32>
    %c0_48 = arith.constant 0 : index
    %c0_49 = arith.constant 0 : index
    %49 = vector.load %arg2[%c0_48, %c0_49] : memref<22x352xbf16, #tpu.memory_space<vmem>>, vector<16x352xbf16>
    %c0_50 = arith.constant 0 : index
    %c0_51 = arith.constant 0 : index
    %c0_52 = arith.constant 0 : index
    %50 = vector.load %arg9[%c0_50, %c0_51, %c0_52] : memref<7x352x256xbf16, #tpu.memory_space<vmem>>, vector<1x352x256xbf16>
    %51 = vector.shape_cast %50 : vector<1x352x256xbf16> to vector<352x256xbf16>
    %cst_53 = arith.constant dense<0.000000e+00> : vector<16x256xf32>
    %52 = tpu.matmul %49, %51, %cst_53 {dimension_numbers = #tpu.dot_dimension_numbers<[1], [0], [0], [1], [0, 0, 1, 1], [], []>} : vector<16x352xbf16>, vector<352x256xbf16>, vector<16x256xf32> -> vector<16x256xf32>
    %53 = arith.addf %48, %52 : vector<16x256xf32>
    %c1_54 = arith.constant 1 : index
    %c0_55 = arith.constant 0 : index
    %54 = vector.load %arg2[%c1_54, %c0_55] : memref<22x352xbf16, #tpu.memory_space<vmem>>, vector<16x352xbf16>
    %c1_56 = arith.constant 1 : index
    %c0_57 = arith.constant 0 : index
    %c0_58 = arith.constant 0 : index
    %55 = vector.load %arg9[%c1_56, %c0_57, %c0_58] : memref<7x352x256xbf16, #tpu.memory_space<vmem>>, vector<1x352x256xbf16>
    %56 = vector.shape_cast %55 : vector<1x352x256xbf16> to vector<352x256xbf16>
    %cst_59 = arith.constant dense<0.000000e+00> : vector<16x256xf32>
    %57 = tpu.matmul %54, %56, %cst_59 {dimension_numbers = #tpu.dot_dimension_numbers<[1], [0], [0], [1], [0, 0, 1, 1], [], []>} : vector<16x352xbf16>, vector<352x256xbf16>, vector<16x256xf32> -> vector<16x256xf32>
    %58 = arith.addf %53, %57 : vector<16x256xf32>
    %c2_60 = arith.constant 2 : index
    %c0_61 = arith.constant 0 : index
    %59 = vector.load %arg2[%c2_60, %c0_61] : memref<22x352xbf16, #tpu.memory_space<vmem>>, vector<16x352xbf16>
    %c2_62 = arith.constant 2 : index
    %c0_63 = arith.constant 0 : index
    %c0_64 = arith.constant 0 : index
    %60 = vector.load %arg9[%c2_62, %c0_63, %c0_64] : memref<7x352x256xbf16, #tpu.memory_space<vmem>>, vector<1x352x256xbf16>
    %61 = vector.shape_cast %60 : vector<1x352x256xbf16> to vector<352x256xbf16>
    %cst_65 = arith.constant dense<0.000000e+00> : vector<16x256xf32>
    %62 = tpu.matmul %59, %61, %cst_65 {dimension_numbers = #tpu.dot_dimension_numbers<[1], [0], [0], [1], [0, 0, 1, 1], [], []>} : vector<16x352xbf16>, vector<352x256xbf16>, vector<16x256xf32> -> vector<16x256xf32>
    %63 = arith.addf %58, %62 : vector<16x256xf32>
    %c3_66 = arith.constant 3 : index
    %c0_67 = arith.constant 0 : index
    %64 = vector.load %arg2[%c3_66, %c0_67] : memref<22x352xbf16, #tpu.memory_space<vmem>>, vector<16x352xbf16>
    %c3_68 = arith.constant 3 : index
    %c0_69 = arith.constant 0 : index
    %c0_70 = arith.constant 0 : index
    %65 = vector.load %arg9[%c3_68, %c0_69, %c0_70] : memref<7x352x256xbf16, #tpu.memory_space<vmem>>, vector<1x352x256xbf16>
    %66 = vector.shape_cast %65 : vector<1x352x256xbf16> to vector<352x256xbf16>
    %cst_71 = arith.constant dense<0.000000e+00> : vector<16x256xf32>
    %67 = tpu.matmul %64, %66, %cst_71 {dimension_numbers = #tpu.dot_dimension_numbers<[1], [0], [0], [1], [0, 0, 1, 1], [], []>} : vector<16x352xbf16>, vector<352x256xbf16>, vector<16x256xf32> -> vector<16x256xf32>
    %68 = arith.addf %63, %67 : vector<16x256xf32>
    %c4_72 = arith.constant 4 : index
    %c0_73 = arith.constant 0 : index
    %69 = vector.load %arg2[%c4_72, %c0_73] : memref<22x352xbf16, #tpu.memory_space<vmem>>, vector<16x352xbf16>
    %c4_74 = arith.constant 4 : index
    %c0_75 = arith.constant 0 : index
    %c0_76 = arith.constant 0 : index
    %70 = vector.load %arg9[%c4_74, %c0_75, %c0_76] : memref<7x352x256xbf16, #tpu.memory_space<vmem>>, vector<1x352x256xbf16>
    %71 = vector.shape_cast %70 : vector<1x352x256xbf16> to vector<352x256xbf16>
    %cst_77 = arith.constant dense<0.000000e+00> : vector<16x256xf32>
    %72 = tpu.matmul %69, %71, %cst_77 {dimension_numbers = #tpu.dot_dimension_numbers<[1], [0], [0], [1], [0, 0, 1, 1], [], []>} : vector<16x352xbf16>, vector<352x256xbf16>, vector<16x256xf32> -> vector<16x256xf32>
    %73 = arith.addf %68, %72 : vector<16x256xf32>
    %c5_78 = arith.constant 5 : index
    %c0_79 = arith.constant 0 : index
    %74 = vector.load %arg2[%c5_78, %c0_79] : memref<22x352xbf16, #tpu.memory_space<vmem>>, vector<16x352xbf16>
    %c5_80 = arith.constant 5 : index
    %c0_81 = arith.constant 0 : index
    %c0_82 = arith.constant 0 : index
    %75 = vector.load %arg9[%c5_80, %c0_81, %c0_82] : memref<7x352x256xbf16, #tpu.memory_space<vmem>>, vector<1x352x256xbf16>
    %76 = vector.shape_cast %75 : vector<1x352x256xbf16> to vector<352x256xbf16>
    %cst_83 = arith.constant dense<0.000000e+00> : vector<16x256xf32>
    %77 = tpu.matmul %74, %76, %cst_83 {dimension_numbers = #tpu.dot_dimension_numbers<[1], [0], [0], [1], [0, 0, 1, 1], [], []>} : vector<16x352xbf16>, vector<352x256xbf16>, vector<16x256xf32> -> vector<16x256xf32>
    %78 = arith.addf %73, %77 : vector<16x256xf32>
    %c6_84 = arith.constant 6 : index
    %c0_85 = arith.constant 0 : index
    %79 = vector.load %arg2[%c6_84, %c0_85] : memref<22x352xbf16, #tpu.memory_space<vmem>>, vector<16x352xbf16>
    %c6_86 = arith.constant 6 : index
    %c0_87 = arith.constant 0 : index
    %c0_88 = arith.constant 0 : index
    %80 = vector.load %arg9[%c6_86, %c0_87, %c0_88] : memref<7x352x256xbf16, #tpu.memory_space<vmem>>, vector<1x352x256xbf16>
    %81 = vector.shape_cast %80 : vector<1x352x256xbf16> to vector<352x256xbf16>
    %cst_89 = arith.constant dense<0.000000e+00> : vector<16x256xf32>
    %82 = tpu.matmul %79, %81, %cst_89 {dimension_numbers = #tpu.dot_dimension_numbers<[1], [0], [0], [1], [0, 0, 1, 1], [], []>} : vector<16x352xbf16>, vector<352x256xbf16>, vector<16x256xf32> -> vector<16x256xf32>
    %83 = arith.addf %78, %82 : vector<16x256xf32>
    %84 = arith.addf %45, %83 : vector<16x256xf32>
    %cst_90 = arith.constant 0.000000e+00 : f32
    %85 = vector.broadcast %cst_90 : f32 to vector<16x256xf32>
    %86 = arith.maximumf %84, %85 : vector<16x256xf32>
    %c0_91 = arith.constant 0 : index
    %c0_92 = arith.constant 0 : index
    %87 = vector.load %arg3[%c0_91, %c0_92] : memref<16x256xf32, #tpu.memory_space<vmem>>, vector<16x256xf32>
    %88 = arith.addf %86, %87 : vector<16x256xf32>
    %cst_93 = arith.constant 0.000000e+00 : f32
    %89 = vector.broadcast %cst_93 : f32 to vector<16x256xf32>
    %90 = arith.maximumf %88, %89 : vector<16x256xf32>
    %91 = arith.truncf %90 : vector<16x256xf32> to vector<16x256xbf16>
    %c3_94 = arith.constant 3 : index
    %c48 = arith.constant 48 : index
    %92 = vector.load %arg19[%c3_94, %c48] : memref<22x352xbf16, #tpu.memory_space<vmem>>, vector<16x256xbf16>
    tpu.vector_store %arg19[%c3_94, %c48], %91 {strides = array<i32>} : memref<22x352xbf16, #tpu.memory_space<vmem>>, vector<16x256xbf16>,
    %c0_95 = arith.constant 0 : index
    %c0_96 = arith.constant 0 : index
    %93 = vector.load %arg15[%c0_95, %c0_96] : memref<1x256xf32, #tpu.memory_space<vmem>>, vector<1x256xf32>
    %94 = vector.shape_cast %93 : vector<1x256xf32> to vector<1x256xf32>
    %95 = vector.broadcast %94 : vector<1x256xf32> to vector<16x256xf32>
    %c0_97 = arith.constant 0 : index
    %c0_98 = arith.constant 0 : index
    %96 = vector.load %arg19[%c0_97, %c0_98] : memref<22x352xbf16, #tpu.memory_space<vmem>>, vector<16x352xbf16>
    %c0_99 = arith.constant 0 : index
    %c0_100 = arith.constant 0 : index
    %c0_101 = arith.constant 0 : index
    %97 = vector.load %arg10[%c0_99, %c0_100, %c0_101] : memref<7x352x256xbf16, #tpu.memory_space<vmem>>, vector<1x352x256xbf16>
    %98 = vector.shape_cast %97 : vector<1x352x256xbf16> to vector<352x256xbf16>
    %cst_102 = arith.constant dense<0.000000e+00> : vector<16x256xf32>
    %99 = tpu.matmul %96, %98, %cst_102 {dimension_numbers = #tpu.dot_dimension_numbers<[1], [0], [0], [1], [0, 0, 1, 1], [], []>} : vector<16x352xbf16>, vector<352x256xbf16>, vector<16x256xf32> -> vector<16x256xf32>
    %100 = arith.addf %95, %99 : vector<16x256xf32>
    %c1_103 = arith.constant 1 : index
    %c0_104 = arith.constant 0 : index
    %101 = vector.load %arg19[%c1_103, %c0_104] : memref<22x352xbf16, #tpu.memory_space<vmem>>, vector<16x352xbf16>
    %c1_105 = arith.constant 1 : index
    %c0_106 = arith.constant 0 : index
    %c0_107 = arith.constant 0 : index
    %102 = vector.load %arg10[%c1_105, %c0_106, %c0_107] : memref<7x352x256xbf16, #tpu.memory_space<vmem>>, vector<1x352x256xbf16>
    %103 = vector.shape_cast %102 : vector<1x352x256xbf16> to vector<352x256xbf16>
    %cst_108 = arith.constant dense<0.000000e+00> : vector<16x256xf32>
    %104 = tpu.matmul %101, %103, %cst_108 {dimension_numbers = #tpu.dot_dimension_numbers<[1], [0], [0], [1], [0, 0, 1, 1], [], []>} : vector<16x352xbf16>, vector<352x256xbf16>, vector<16x256xf32> -> vector<16x256xf32>
    %105 = arith.addf %100, %104 : vector<16x256xf32>
    %c2_109 = arith.constant 2 : index
    %c0_110 = arith.constant 0 : index
    %106 = vector.load %arg19[%c2_109, %c0_110] : memref<22x352xbf16, #tpu.memory_space<vmem>>, vector<16x352xbf16>
    %c2_111 = arith.constant 2 : index
    %c0_112 = arith.constant 0 : index
    %c0_113 = arith.constant 0 : index
    %107 = vector.load %arg10[%c2_111, %c0_112, %c0_113] : memref<7x352x256xbf16, #tpu.memory_space<vmem>>, vector<1x352x256xbf16>
    %108 = vector.shape_cast %107 : vector<1x352x256xbf16> to vector<352x256xbf16>
    %cst_114 = arith.constant dense<0.000000e+00> : vector<16x256xf32>
    %109 = tpu.matmul %106, %108, %cst_114 {dimension_numbers = #tpu.dot_dimension_numbers<[1], [0], [0], [1], [0, 0, 1, 1], [], []>} : vector<16x352xbf16>, vector<352x256xbf16>, vector<16x256xf32> -> vector<16x256xf32>
    %110 = arith.addf %105, %109 : vector<16x256xf32>
    %c3_115 = arith.constant 3 : index
    %c0_116 = arith.constant 0 : index
    %111 = vector.load %arg19[%c3_115, %c0_116] : memref<22x352xbf16, #tpu.memory_space<vmem>>, vector<16x352xbf16>
    %c3_117 = arith.constant 3 : index
    %c0_118 = arith.constant 0 : index
    %c0_119 = arith.constant 0 : index
    %112 = vector.load %arg10[%c3_117, %c0_118, %c0_119] : memref<7x352x256xbf16, #tpu.memory_space<vmem>>, vector<1x352x256xbf16>
    %113 = vector.shape_cast %112 : vector<1x352x256xbf16> to vector<352x256xbf16>
    %cst_120 = arith.constant dense<0.000000e+00> : vector<16x256xf32>
    %114 = tpu.matmul %111, %113, %cst_120 {dimension_numbers = #tpu.dot_dimension_numbers<[1], [0], [0], [1], [0, 0, 1, 1], [], []>} : vector<16x352xbf16>, vector<352x256xbf16>, vector<16x256xf32> -> vector<16x256xf32>
    %115 = arith.addf %110, %114 : vector<16x256xf32>
    %c4_121 = arith.constant 4 : index
    %c0_122 = arith.constant 0 : index
    %116 = vector.load %arg19[%c4_121, %c0_122] : memref<22x352xbf16, #tpu.memory_space<vmem>>, vector<16x352xbf16>
    %c4_123 = arith.constant 4 : index
    %c0_124 = arith.constant 0 : index
    %c0_125 = arith.constant 0 : index
    %117 = vector.load %arg10[%c4_123, %c0_124, %c0_125] : memref<7x352x256xbf16, #tpu.memory_space<vmem>>, vector<1x352x256xbf16>
    %118 = vector.shape_cast %117 : vector<1x352x256xbf16> to vector<352x256xbf16>
    %cst_126 = arith.constant dense<0.000000e+00> : vector<16x256xf32>
    %119 = tpu.matmul %116, %118, %cst_126 {dimension_numbers = #tpu.dot_dimension_numbers<[1], [0], [0], [1], [0, 0, 1, 1], [], []>} : vector<16x352xbf16>, vector<352x256xbf16>, vector<16x256xf32> -> vector<16x256xf32>
    %120 = arith.addf %115, %119 : vector<16x256xf32>
    %c5_127 = arith.constant 5 : index
    %c0_128 = arith.constant 0 : index
    %121 = vector.load %arg19[%c5_127, %c0_128] : memref<22x352xbf16, #tpu.memory_space<vmem>>, vector<16x352xbf16>
    %c5_129 = arith.constant 5 : index
    %c0_130 = arith.constant 0 : index
    %c0_131 = arith.constant 0 : index
    %122 = vector.load %arg10[%c5_129, %c0_130, %c0_131] : memref<7x352x256xbf16, #tpu.memory_space<vmem>>, vector<1x352x256xbf16>
    %123 = vector.shape_cast %122 : vector<1x352x256xbf16> to vector<352x256xbf16>
    %cst_132 = arith.constant dense<0.000000e+00> : vector<16x256xf32>
    %124 = tpu.matmul %121, %123, %cst_132 {dimension_numbers = #tpu.dot_dimension_numbers<[1], [0], [0], [1], [0, 0, 1, 1], [], []>} : vector<16x352xbf16>, vector<352x256xbf16>, vector<16x256xf32> -> vector<16x256xf32>
    %125 = arith.addf %120, %124 : vector<16x256xf32>
    %c6_133 = arith.constant 6 : index
    %c0_134 = arith.constant 0 : index
    %126 = vector.load %arg19[%c6_133, %c0_134] : memref<22x352xbf16, #tpu.memory_space<vmem>>, vector<16x352xbf16>
    %c6_135 = arith.constant 6 : index
    %c0_136 = arith.constant 0 : index
    %c0_137 = arith.constant 0 : index
    %127 = vector.load %arg10[%c6_135, %c0_136, %c0_137] : memref<7x352x256xbf16, #tpu.memory_space<vmem>>, vector<1x352x256xbf16>
    %128 = vector.shape_cast %127 : vector<1x352x256xbf16> to vector<352x256xbf16>
    %cst_138 = arith.constant dense<0.000000e+00> : vector<16x256xf32>
    %129 = tpu.matmul %126, %128, %cst_138 {dimension_numbers = #tpu.dot_dimension_numbers<[1], [0], [0], [1], [0, 0, 1, 1], [], []>} : vector<16x352xbf16>, vector<352x256xbf16>, vector<16x256xf32> -> vector<16x256xf32>
    %130 = arith.addf %125, %129 : vector<16x256xf32>
    %c0_139 = arith.constant 0 : index
    %c0_140 = arith.constant 0 : index
    %131 = vector.load %arg5[%c0_139, %c0_140] : memref<16x256xf32, #tpu.memory_space<vmem>>, vector<16x256xf32>
    %132 = arith.addf %130, %131 : vector<16x256xf32>
    %cst_141 = arith.constant 0.000000e+00 : f32
    %133 = vector.broadcast %cst_141 : f32 to vector<16x256xf32>
    %134 = arith.maximumf %132, %133 : vector<16x256xf32>
    %135 = arith.truncf %134 : vector<16x256xf32> to vector<16x256xbf16>
    %c3_142 = arith.constant 3 : index
    %c48_143 = arith.constant 48 : index
    %136 = vector.load %arg19[%c3_142, %c48_143] : memref<22x352xbf16, #tpu.memory_space<vmem>>, vector<16x256xbf16>
    tpu.vector_store %arg19[%c3_142, %c48_143], %135 {strides = array<i32>} : memref<22x352xbf16, #tpu.memory_space<vmem>>, vector<16x256xbf16>,
    %c0_144 = arith.constant 0 : index
    %c0_145 = arith.constant 0 : index
    %137 = vector.load %arg16[%c0_144, %c0_145] : memref<1x256xf32, #tpu.memory_space<vmem>>, vector<1x256xf32>
    %138 = vector.shape_cast %137 : vector<1x256xf32> to vector<1x256xf32>
    %139 = vector.broadcast %138 : vector<1x256xf32> to vector<16x256xf32>
    %c0_146 = arith.constant 0 : index
    %c0_147 = arith.constant 0 : index
    %140 = vector.load %arg19[%c0_146, %c0_147] : memref<22x352xbf16, #tpu.memory_space<vmem>>, vector<16x352xbf16>
    %c0_148 = arith.constant 0 : index
    %c0_149 = arith.constant 0 : index
    %c0_150 = arith.constant 0 : index
    %141 = vector.load %arg11[%c0_148, %c0_149, %c0_150] : memref<7x352x256xbf16, #tpu.memory_space<vmem>>, vector<1x352x256xbf16>
    %142 = vector.shape_cast %141 : vector<1x352x256xbf16> to vector<352x256xbf16>
    %cst_151 = arith.constant dense<0.000000e+00> : vector<16x256xf32>
    %143 = tpu.matmul %140, %142, %cst_151 {dimension_numbers = #tpu.dot_dimension_numbers<[1], [0], [0], [1], [0, 0, 1, 1], [], []>} : vector<16x352xbf16>, vector<352x256xbf16>, vector<16x256xf32> -> vector<16x256xf32>
    %144 = arith.addf %139, %143 : vector<16x256xf32>
    %c1_152 = arith.constant 1 : index
    %c0_153 = arith.constant 0 : index
    %145 = vector.load %arg19[%c1_152, %c0_153] : memref<22x352xbf16, #tpu.memory_space<vmem>>, vector<16x352xbf16>
    %c1_154 = arith.constant 1 : index
    %c0_155 = arith.constant 0 : index
    %c0_156 = arith.constant 0 : index
    %146 = vector.load %arg11[%c1_154, %c0_155, %c0_156] : memref<7x352x256xbf16, #tpu.memory_space<vmem>>, vector<1x352x256xbf16>
    %147 = vector.shape_cast %146 : vector<1x352x256xbf16> to vector<352x256xbf16>
    %cst_157 = arith.constant dense<0.000000e+00> : vector<16x256xf32>
    %148 = tpu.matmul %145, %147, %cst_157 {dimension_numbers = #tpu.dot_dimension_numbers<[1], [0], [0], [1], [0, 0, 1, 1], [], []>} : vector<16x352xbf16>, vector<352x256xbf16>, vector<16x256xf32> -> vector<16x256xf32>
    %149 = arith.addf %144, %148 : vector<16x256xf32>
    %c2_158 = arith.constant 2 : index
    %c0_159 = arith.constant 0 : index
    %150 = vector.load %arg19[%c2_158, %c0_159] : memref<22x352xbf16, #tpu.memory_space<vmem>>, vector<16x352xbf16>
    %c2_160 = arith.constant 2 : index
    %c0_161 = arith.constant 0 : index
    %c0_162 = arith.constant 0 : index
    %151 = vector.load %arg11[%c2_160, %c0_161, %c0_162] : memref<7x352x256xbf16, #tpu.memory_space<vmem>>, vector<1x352x256xbf16>
    %152 = vector.shape_cast %151 : vector<1x352x256xbf16> to vector<352x256xbf16>
    %cst_163 = arith.constant dense<0.000000e+00> : vector<16x256xf32>
    %153 = tpu.matmul %150, %152, %cst_163 {dimension_numbers = #tpu.dot_dimension_numbers<[1], [0], [0], [1], [0, 0, 1, 1], [], []>} : vector<16x352xbf16>, vector<352x256xbf16>, vector<16x256xf32> -> vector<16x256xf32>
    %154 = arith.addf %149, %153 : vector<16x256xf32>
    %c3_164 = arith.constant 3 : index
    %c0_165 = arith.constant 0 : index
    %155 = vector.load %arg19[%c3_164, %c0_165] : memref<22x352xbf16, #tpu.memory_space<vmem>>, vector<16x352xbf16>
    %c3_166 = arith.constant 3 : index
    %c0_167 = arith.constant 0 : index
    %c0_168 = arith.constant 0 : index
    %156 = vector.load %arg11[%c3_166, %c0_167, %c0_168] : memref<7x352x256xbf16, #tpu.memory_space<vmem>>, vector<1x352x256xbf16>
    %157 = vector.shape_cast %156 : vector<1x352x256xbf16> to vector<352x256xbf16>
    %cst_169 = arith.constant dense<0.000000e+00> : vector<16x256xf32>
    %158 = tpu.matmul %155, %157, %cst_169 {dimension_numbers = #tpu.dot_dimension_numbers<[1], [0], [0], [1], [0, 0, 1, 1], [], []>} : vector<16x352xbf16>, vector<352x256xbf16>, vector<16x256xf32> -> vector<16x256xf32>
    %159 = arith.addf %154, %158 : vector<16x256xf32>
    %c4_170 = arith.constant 4 : index
    %c0_171 = arith.constant 0 : index
    %160 = vector.load %arg19[%c4_170, %c0_171] : memref<22x352xbf16, #tpu.memory_space<vmem>>, vector<16x352xbf16>
    %c4_172 = arith.constant 4 : index
    %c0_173 = arith.constant 0 : index
    %c0_174 = arith.constant 0 : index
    %161 = vector.load %arg11[%c4_172, %c0_173, %c0_174] : memref<7x352x256xbf16, #tpu.memory_space<vmem>>, vector<1x352x256xbf16>
    %162 = vector.shape_cast %161 : vector<1x352x256xbf16> to vector<352x256xbf16>
    %cst_175 = arith.constant dense<0.000000e+00> : vector<16x256xf32>
    %163 = tpu.matmul %160, %162, %cst_175 {dimension_numbers = #tpu.dot_dimension_numbers<[1], [0], [0], [1], [0, 0, 1, 1], [], []>} : vector<16x352xbf16>, vector<352x256xbf16>, vector<16x256xf32> -> vector<16x256xf32>
    %164 = arith.addf %159, %163 : vector<16x256xf32>
    %c5_176 = arith.constant 5 : index
    %c0_177 = arith.constant 0 : index
    %165 = vector.load %arg19[%c5_176, %c0_177] : memref<22x352xbf16, #tpu.memory_space<vmem>>, vector<16x352xbf16>
    %c5_178 = arith.constant 5 : index
    %c0_179 = arith.constant 0 : index
    %c0_180 = arith.constant 0 : index
    %166 = vector.load %arg11[%c5_178, %c0_179, %c0_180] : memref<7x352x256xbf16, #tpu.memory_space<vmem>>, vector<1x352x256xbf16>
    %167 = vector.shape_cast %166 : vector<1x352x256xbf16> to vector<352x256xbf16>
    %cst_181 = arith.constant dense<0.000000e+00> : vector<16x256xf32>
    %168 = tpu.matmul %165, %167, %cst_181 {dimension_numbers = #tpu.dot_dimension_numbers<[1], [0], [0], [1], [0, 0, 1, 1], [], []>} : vector<16x352xbf16>, vector<352x256xbf16>, vector<16x256xf32> -> vector<16x256xf32>
    %169 = arith.addf %164, %168 : vector<16x256xf32>
    %c6_182 = arith.constant 6 : index
    %c0_183 = arith.constant 0 : index
    %170 = vector.load %arg19[%c6_182, %c0_183] : memref<22x352xbf16, #tpu.memory_space<vmem>>, vector<16x352xbf16>
    %c6_184 = arith.constant 6 : index
    %c0_185 = arith.constant 0 : index
    %c0_186 = arith.constant 0 : index
    %171 = vector.load %arg11[%c6_184, %c0_185, %c0_186] : memref<7x352x256xbf16, #tpu.memory_space<vmem>>, vector<1x352x256xbf16>
    %172 = vector.shape_cast %171 : vector<1x352x256xbf16> to vector<352x256xbf16>
    %cst_187 = arith.constant dense<0.000000e+00> : vector<16x256xf32>
    %173 = tpu.matmul %170, %172, %cst_187 {dimension_numbers = #tpu.dot_dimension_numbers<[1], [0], [0], [1], [0, 0, 1, 1], [], []>} : vector<16x352xbf16>, vector<352x256xbf16>, vector<16x256xf32> -> vector<16x256xf32>
    %174 = arith.addf %169, %173 : vector<16x256xf32>
    %175 = vector.broadcast %0 : f32 to vector<16x256xf32>
    %176 = arith.addf %174, %175 : vector<16x256xf32>
    %cst_188 = arith.constant 0.000000e+00 : f32
    %177 = vector.broadcast %cst_188 : f32 to vector<16x256xf32>
    %178 = arith.maximumf %176, %177 : vector<16x256xf32>
    %179 = vector.broadcast %1 : f32 to vector<16x256xf32>
    %180 = arith.addf %179, %178 : vector<16x256xf32>
    %181 = arith.addf %180, %41 : vector<16x256xf32>
    %cst_189 = arith.constant 0.000000e+00 : f32
    %182 = vector.broadcast %cst_189 : f32 to vector<16x256xf32>
    %183 = arith.maximumf %181, %182 : vector<16x256xf32>
    %184 = arith.truncf %183 : vector<16x256xf32> to vector<16x256xbf16>
    %c3_190 = arith.constant 3 : index
    %c48_191 = arith.constant 48 : index
    %185 = vector.load %arg19[%c3_190, %c48_191] : memref<22x352xbf16, #tpu.memory_space<vmem>>, vector<16x256xbf16>
    tpu.vector_store %arg19[%c3_190, %c48_191], %184 {strides = array<i32>} : memref<22x352xbf16, #tpu.memory_space<vmem>>, vector<16x256xbf16>,
    %c0_192 = arith.constant 0 : index
    %c0_193 = arith.constant 0 : index
    %186 = vector.load %arg17[%c0_192, %c0_193] : memref<1x256xf32, #tpu.memory_space<vmem>>, vector<1x256xf32>
    %187 = vector.shape_cast %186 : vector<1x256xf32> to vector<1x256xf32>
    %188 = vector.broadcast %187 : vector<1x256xf32> to vector<16x256xf32>
    %c0_194 = arith.constant 0 : index
    %c0_195 = arith.constant 0 : index
    %189 = vector.load %arg19[%c0_194, %c0_195] : memref<22x352xbf16, #tpu.memory_space<vmem>>, vector<16x352xbf16>
    %c0_196 = arith.constant 0 : index
    %c0_197 = arith.constant 0 : index
    %c0_198 = arith.constant 0 : index
    %190 = vector.load %arg12[%c0_196, %c0_197, %c0_198] : memref<7x352x256xbf16, #tpu.memory_space<vmem>>, vector<1x352x256xbf16>
    %191 = vector.shape_cast %190 : vector<1x352x256xbf16> to vector<352x256xbf16>
    %cst_199 = arith.constant dense<0.000000e+00> : vector<16x256xf32>
    %192 = tpu.matmul %189, %191, %cst_199 {dimension_numbers = #tpu.dot_dimension_numbers<[1], [0], [0], [1], [0, 0, 1, 1], [], []>} : vector<16x352xbf16>, vector<352x256xbf16>, vector<16x256xf32> -> vector<16x256xf32>
    %193 = arith.addf %188, %192 : vector<16x256xf32>
    %c1_200 = arith.constant 1 : index
    %c0_201 = arith.constant 0 : index
    %194 = vector.load %arg19[%c1_200, %c0_201] : memref<22x352xbf16, #tpu.memory_space<vmem>>, vector<16x352xbf16>
    %c1_202 = arith.constant 1 : index
    %c0_203 = arith.constant 0 : index
    %c0_204 = arith.constant 0 : index
    %195 = vector.load %arg12[%c1_202, %c0_203, %c0_204] : memref<7x352x256xbf16, #tpu.memory_space<vmem>>, vector<1x352x256xbf16>
    %196 = vector.shape_cast %195 : vector<1x352x256xbf16> to vector<352x256xbf16>
    %cst_205 = arith.constant dense<0.000000e+00> : vector<16x256xf32>
    %197 = tpu.matmul %194, %196, %cst_205 {dimension_numbers = #tpu.dot_dimension_numbers<[1], [0], [0], [1], [0, 0, 1, 1], [], []>} : vector<16x352xbf16>, vector<352x256xbf16>, vector<16x256xf32> -> vector<16x256xf32>
    %198 = arith.addf %193, %197 : vector<16x256xf32>
    %c2_206 = arith.constant 2 : index
    %c0_207 = arith.constant 0 : index
    %199 = vector.load %arg19[%c2_206, %c0_207] : memref<22x352xbf16, #tpu.memory_space<vmem>>, vector<16x352xbf16>
    %c2_208 = arith.constant 2 : index
    %c0_209 = arith.constant 0 : index
    %c0_210 = arith.constant 0 : index
    %200 = vector.load %arg12[%c2_208, %c0_209, %c0_210] : memref<7x352x256xbf16, #tpu.memory_space<vmem>>, vector<1x352x256xbf16>
    %201 = vector.shape_cast %200 : vector<1x352x256xbf16> to vector<352x256xbf16>
    %cst_211 = arith.constant dense<0.000000e+00> : vector<16x256xf32>
    %202 = tpu.matmul %199, %201, %cst_211 {dimension_numbers = #tpu.dot_dimension_numbers<[1], [0], [0], [1], [0, 0, 1, 1], [], []>} : vector<16x352xbf16>, vector<352x256xbf16>, vector<16x256xf32> -> vector<16x256xf32>
    %203 = arith.addf %198, %202 : vector<16x256xf32>
    %c3_212 = arith.constant 3 : index
    %c0_213 = arith.constant 0 : index
    %204 = vector.load %arg19[%c3_212, %c0_213] : memref<22x352xbf16, #tpu.memory_space<vmem>>, vector<16x352xbf16>
    %c3_214 = arith.constant 3 : index
    %c0_215 = arith.constant 0 : index
    %c0_216 = arith.constant 0 : index
    %205 = vector.load %arg12[%c3_214, %c0_215, %c0_216] : memref<7x352x256xbf16, #tpu.memory_space<vmem>>, vector<1x352x256xbf16>
    %206 = vector.shape_cast %205 : vector<1x352x256xbf16> to vector<352x256xbf16>
    %cst_217 = arith.constant dense<0.000000e+00> : vector<16x256xf32>
    %207 = tpu.matmul %204, %206, %cst_217 {dimension_numbers = #tpu.dot_dimension_numbers<[1], [0], [0], [1], [0, 0, 1, 1], [], []>} : vector<16x352xbf16>, vector<352x256xbf16>, vector<16x256xf32> -> vector<16x256xf32>
    %208 = arith.addf %203, %207 : vector<16x256xf32>
    %c4_218 = arith.constant 4 : index
    %c0_219 = arith.constant 0 : index
    %209 = vector.load %arg19[%c4_218, %c0_219] : memref<22x352xbf16, #tpu.memory_space<vmem>>, vector<16x352xbf16>
    %c4_220 = arith.constant 4 : index
    %c0_221 = arith.constant 0 : index
    %c0_222 = arith.constant 0 : index
    %210 = vector.load %arg12[%c4_220, %c0_221, %c0_222] : memref<7x352x256xbf16, #tpu.memory_space<vmem>>, vector<1x352x256xbf16>
    %211 = vector.shape_cast %210 : vector<1x352x256xbf16> to vector<352x256xbf16>
    %cst_223 = arith.constant dense<0.000000e+00> : vector<16x256xf32>
    %212 = tpu.matmul %209, %211, %cst_223 {dimension_numbers = #tpu.dot_dimension_numbers<[1], [0], [0], [1], [0, 0, 1, 1], [], []>} : vector<16x352xbf16>, vector<352x256xbf16>, vector<16x256xf32> -> vector<16x256xf32>
    %213 = arith.addf %208, %212 : vector<16x256xf32>
    %c5_224 = arith.constant 5 : index
    %c0_225 = arith.constant 0 : index
    %214 = vector.load %arg19[%c5_224, %c0_225] : memref<22x352xbf16, #tpu.memory_space<vmem>>, vector<16x352xbf16>
    %c5_226 = arith.constant 5 : index
    %c0_227 = arith.constant 0 : index
    %c0_228 = arith.constant 0 : index
    %215 = vector.load %arg12[%c5_226, %c0_227, %c0_228] : memref<7x352x256xbf16, #tpu.memory_space<vmem>>, vector<1x352x256xbf16>
    %216 = vector.shape_cast %215 : vector<1x352x256xbf16> to vector<352x256xbf16>
    %cst_229 = arith.constant dense<0.000000e+00> : vector<16x256xf32>
    %217 = tpu.matmul %214, %216, %cst_229 {dimension_numbers = #tpu.dot_dimension_numbers<[1], [0], [0], [1], [0, 0, 1, 1], [], []>} : vector<16x352xbf16>, vector<352x256xbf16>, vector<16x256xf32> -> vector<16x256xf32>
    %218 = arith.addf %213, %217 : vector<16x256xf32>
    %c6_230 = arith.constant 6 : index
    %c0_231 = arith.constant 0 : index
    %219 = vector.load %arg19[%c6_230, %c0_231] : memref<22x352xbf16, #tpu.memory_space<vmem>>, vector<16x352xbf16>
    %c6_232 = arith.constant 6 : index
    %c0_233 = arith.constant 0 : index
    %c0_234 = arith.constant 0 : index
    %220 = vector.load %arg12[%c6_232, %c0_233, %c0_234] : memref<7x352x256xbf16, #tpu.memory_space<vmem>>, vector<1x352x256xbf16>
    %221 = vector.shape_cast %220 : vector<1x352x256xbf16> to vector<352x256xbf16>
    %cst_235 = arith.constant dense<0.000000e+00> : vector<16x256xf32>
    %222 = tpu.matmul %219, %221, %cst_235 {dimension_numbers = #tpu.dot_dimension_numbers<[1], [0], [0], [1], [0, 0, 1, 1], [], []>} : vector<16x352xbf16>, vector<352x256xbf16>, vector<16x256xf32> -> vector<16x256xf32>
    %223 = arith.addf %218, %222 : vector<16x256xf32>
    %c0_236 = arith.constant 0 : index
    %c0_237 = arith.constant 0 : index
    %224 = vector.load %arg6[%c0_236, %c0_237] : memref<16x256xf32, #tpu.memory_space<vmem>>, vector<16x256xf32>
    %225 = arith.addf %223, %224 : vector<16x256xf32>
    %cst_238 = arith.constant 0.000000e+00 : f32
    %226 = vector.broadcast %cst_238 : f32 to vector<16x256xf32>
    %227 = arith.maximumf %225, %226 : vector<16x256xf32>
    %c0_239 = arith.constant 0 : index
    %c0_240 = arith.constant 0 : index
    %228 = vector.load %arg7[%c0_239, %c0_240] : memref<16x256xf32, #tpu.memory_space<vmem>>, vector<16x256xf32>
    %229 = arith.addf %227, %228 : vector<16x256xf32>
    %cst_241 = arith.constant 0.000000e+00 : f32
    %230 = vector.broadcast %cst_241 : f32 to vector<16x256xf32>
    %231 = arith.maximumf %229, %230 : vector<16x256xf32>
    %c0_242 = arith.constant 0 : index
    %c0_243 = arith.constant 0 : index
    %232 = vector.load %arg18[%c0_242, %c0_243] : memref<16x256xf32, #tpu.memory_space<vmem>>, vector<16x256xf32>
    tpu.vector_store %arg18[%c0_242, %c0_243], %231 {strides = array<i32>} : memref<16x256xf32, #tpu.memory_space<vmem>>, vector<16x256xf32>,
    return
  }
}

</mosaic_0001>

<bundles_post_ra>
// kernel: tpu_custom_call.1
= control target key start
LH: loop header
LB: loop body
LE: loop exit
PB: predicated region body
PF: predicated region fallthrough
CT: control target
= control target key end

     0   :  { %s20880_s0 = inlined_call_operand.hbm [shape: f32[1,2], index: 0, kind: input, shape index: {}]   ;;  %s20881_s1 = inlined_call_operand.hbm [shape: bf16[22,352], index: 1, kind: input, shape index: {}]   ;;  %s20882_s2 = inlined_call_operand.hbm [shape: bf16[22,352], index: 2, kind: input, shape index: {}]   ;;  %s20883_s3 = inlined_call_operand.hbm [shape: f32[16,256], index: 3, kind: input, shape index: {}]   ;;  %s20884_s4 = inlined_call_operand.hbm [shape: f32[16,256], index: 4, kind: input, shape index: {}]   ;;  %s20885_s5 = inlined_call_operand.hbm [shape: f32[16,256], index: 5, kind: input, shape index: {}]   ;;  %s20886_s6 = inlined_call_operand.hbm [shape: f32[16,256], index: 6, kind: input, shape index: {}]   ;;  %s20887_s7 = inlined_call_operand.hbm [shape: f32[16,256], index: 7, kind: input, shape index: {}]   ;;  %s20888_s8 = inlined_call_operand.hbm [shape: bf16[7,352,256], index: 8, kind: input, shape index: {}]   ;;  %s20889_s9 = inlined_call_operand.hbm [shape: bf16[7,352,256], index: 9, kind: input, shape index: {}]   ;;  %s20890_s10 = inlined_call_operand.hbm [shape: bf16[7,352,256], index: 10, kind: input, shape index: {}]   ;;  %s20891_s11 = inlined_call_operand.hbm [shape: bf16[7,352,256], index: 11, kind: input, shape index: {}]   ;;  %s20892_s12 = inlined_call_operand.hbm [shape: bf16[7,352,256], index: 12, kind: input, shape index: {}]   ;;  %s20893_s13 = inlined_call_operand.hbm [shape: f32[1,256], index: 13, kind: input, shape index: {}]   ;;  %s20894_s14 = inlined_call_operand.hbm [shape: f32[1,256], index: 14, kind: input, shape index: {}]   ;;  %s20895_s15 = inlined_call_operand.hbm [shape: f32[1,256], index: 15, kind: input, shape index: {}]   ;;  %s20896_s16 = inlined_call_operand.hbm [shape: f32[1,256], index: 16, kind: input, shape index: {}]   ;;  %s20897_s17 = inlined_call_operand.hbm [shape: f32[1,256], index: 17, kind: input, shape index: {}]   ;;  %s20898_s18 = inlined_call_operand.hbm [shape: f32[16,256], index: 18, kind: output, shape index: {}]  }
   0x1   :  { %20914 = sst [smem:[#allocation44_spill]] %s20880_s0 }
   0x2   :  { %20915 = sst [smem:[#allocation45_spill]] %s20881_s1 }
   0x3   :  { %20916 = sst [smem:[#allocation46_spill]] %s20882_s2 }
   0x4   :  { %20917 = sst [smem:[#allocation47_spill]] %s20897_s17 }
   0x5   :  { %20918 = sst [smem:[#allocation48_spill]] %s20898_s18 }
   0x6   :  { %23 = vsyncpa [#allocation6], 0 }
   0x7   :  { %24 = vsyncpa [#allocation4], 0 }
   0x8   :  { %25 = vsyncpa [#allocation9], 0 }
   0x9   :  { %26 = vsyncpa [#allocation12], 0 }
   0xa   :  { %27 = vsyncpa [#allocation15], 0 }
   0xb   :  { %28 = vsyncpa [#allocation18], 0 }
   0xc   :  { %29 = vsyncpa [#allocation21], 0 }
   0xd   :  { %30 = vsyncpa [#allocation24], 0 }
   0xe   :  { %31 = vsyncpa [#allocation27], 0 }
   0xf   :  { %32 = vsyncpa [#allocation30], 0 }
  0x10   :  { %33 = vsyncpa [#allocation5], 0  ;;  %s19463_s27 = smov [#allocation8]   ;;  %s20919_s0 = sld [smem:[#allocation46_spill]] }
  0x11   :  { %s59_s28 = sshll.u32 %s19463_s27, 4  ;;  %s60_s28 = int_to_ptr.vmem [resolvable:$true] %s59_s28 }
  0x16   :  { %s19035_s19 = scalar_lea.hbm %s20919_s0, 576 }
  0x17   :  { %p19036_p0 = scmp.ne.s32.totalorder %s20919_s0, %s19035_s19  ;;  %p19039_p1 = scmp.lt.u32.totalorder %s19035_s19, %s20919_s0 }
  0x19   :  { %p19041_p2 = pnand %p19039_p1, %p19036_p0 }
  0x1b   :  { %19044 = shalt.err (!%p19041_p2)
}
  0x1c   :  { %s19045_s2 = scalar_lea.vmem %s60_s28, 576  ;;  %p19050_p4 = scmp.lt.s32.totalorder %s60_s28, %s60_s28 }
  0x1d   :  { %p19046_p3 = scmp.ne.s32.totalorder %s60_s28, %s19045_s2  ;;  %p19051_p5 = scmp.lt.s32.totalorder %s19045_s2, %s19045_s2 }
  0x1f   :  { %p19052_p6 = por %p19051_p5, %p19050_p4 }
  0x21   :  { %p19053_p7 = pnand %p19052_p6, %p19046_p3 }
  0x23   :  { %19056 = shalt.err (!%p19053_p7)
}
  0x24   :  { %s19464_s23 = smov 192   ;;  %s19465_s24 = smov 12  }
  0x25   :  { %65 = dma.hbm_to_vmem [thread:$0]  %s20919_s0, 576, %s60_s28, [#allocation9], %s19464_s23, %s19464_s23, %s19465_s24  }
  0x26   :  { %s19466_s27 = smov [#allocation11]   ;;  %s19467_s30 = smov [#allocation14]  }
  0x27   :  { %s83_s29 = sshll.u32 %s19466_s27, 4  ;;  %s107_s19 = sshll.u32 %s19467_s30, 4  ;;  %s84_s29 = int_to_ptr.vmem [resolvable:$true] %s83_s29  ;;  %s108_s19 = int_to_ptr.vmem [resolvable:$true] %s107_s19 }
  0x28   :  { %s19057_s21 = scalar_lea.hbm %s20884_s4, 512 }
  0x29   :  { %p19058_p8 = scmp.ne.s32.totalorder %s20884_s4, %s19057_s21  ;;  %p19061_p9 = scmp.lt.u32.totalorder %s19057_s21, %s20884_s4 }
  0x2b   :  { %p19063_p10 = pnand %p19061_p9, %p19058_p8 }
  0x2d   :  { %19066 = shalt.err (!%p19063_p10)
}
  0x2e   :  { %s19067_s28 = scalar_lea.vmem %s84_s29, 512  ;;  %p19072_p12 = scmp.lt.s32.totalorder %s84_s29, %s84_s29 }
  0x2f   :  { %p19068_p11 = scmp.ne.s32.totalorder %s84_s29, %s19067_s28  ;;  %p19073_p13 = scmp.lt.s32.totalorder %s19067_s28, %s19067_s28 }
  0x31   :  { %p19074_p0 = por %p19073_p13, %p19072_p12 }
  0x33   :  { %p19075_p1 = pnand %p19074_p0, %p19068_p11 }
  0x35   :  { %19078 = shalt.err (!%p19075_p1)
}
  0x36   :  { %s20904_s0 = smov 256   ;;  %s19469_s25 = smov 16  }
  0x37   :  { %89 = dma.hbm_to_vmem [thread:$0]  %s20884_s4, 512, %s84_s29, [#allocation12], %s20904_s0, %s20904_s0, %s19469_s25  }
  0x38   :  { %s19079_s30 = scalar_lea.hbm %s20886_s6, 512 }
  0x39   :  { %p19080_p2 = scmp.ne.s32.totalorder %s20886_s6, %s19079_s30  ;;  %p19083_p3 = scmp.lt.u32.totalorder %s19079_s30, %s20886_s6 }
  0x3b   :  { %p19085_p4 = pnand %p19083_p3, %p19080_p2 }
  0x3d   :  { %19088 = shalt.err (!%p19085_p4)
}
  0x3e   :  { %s19089_s2 = scalar_lea.vmem %s108_s19, 512  ;;  %p19094_p6 = scmp.lt.s32.totalorder %s108_s19, %s108_s19 }
  0x3f   :  { %p19090_p5 = scmp.ne.s32.totalorder %s108_s19, %s19089_s2  ;;  %p19095_p7 = scmp.lt.s32.totalorder %s19089_s2, %s19089_s2 }
  0x41   :  { %p19096_p8 = por %p19095_p7, %p19094_p6 }
  0x43   :  { %p19097_p9 = pnand %p19096_p8, %p19090_p5 }
  0x45   :  { %19100 = shalt.err (!%p19097_p9)
}
  0x46   :  { %113 = dma.hbm_to_vmem [thread:$0]  %s20886_s6, 512, %s108_s19, [#allocation15], %s20904_s0, %s20904_s0, %s19469_s25  }
  0x47   :  { %s19470_s28 = smov [#allocation17]   ;;  %s19101_s18 = scalar_lea.hbm %s20888_s8, 39424 }
  0x48   :  { %s131_s26 = sshll.u32 %s19470_s28, 4  ;;  %p19102_p10 = scmp.ne.s32.totalorder %s20888_s8, %s19101_s18  ;;  %s132_s26 = int_to_ptr.vmem [resolvable:$true] %s131_s26 }
  0x49   :  { %p19105_p11 = scmp.lt.u32.totalorder %s19101_s18, %s20888_s8 }
  0x4b   :  { %p19107_p12 = pnand %p19105_p11, %p19102_p10 }
  0x4d   :  { %19110 = shalt.err (!%p19107_p12)
}
  0x4e   :  { %s19111_s22 = scalar_lea.vmem %s132_s26, 39424  ;;  %p19116_p0 = scmp.lt.s32.totalorder %s132_s26, %s132_s26 }
  0x4f   :  { %p19112_p13 = scmp.ne.s32.totalorder %s132_s26, %s19111_s22  ;;  %p19117_p1 = scmp.lt.s32.totalorder %s19111_s22, %s19111_s22 }
  0x51   :  { %p19118_p2 = por %p19117_p1, %p19116_p0 }
  0x53   :  { %p19119_p3 = pnand %p19118_p2, %p19112_p13 }
  0x55   :  { %19122 = shalt.err (!%p19119_p3)
}
  0x56   :  { %s19471_s6 = smov 128   ;;  %s19472_s19 = smov 8  }
  0x57   :  { %137 = dma.hbm_to_vmem [thread:$0]  %s20888_s8, 39424, %s132_s26, [#allocation18], %s19471_s6, %s19471_s6, %s19472_s19  }
  0x58   :  { %s19473_s29 = smov [#allocation20]   ;;  %s19474_s27 = smov [#allocation23]  }
  0x59   :  { %s155_s28 = sshll.u32 %s19473_s29, 4  ;;  %s179_s17 = sshll.u32 %s19474_s27, 4  ;;  %s156_s28 = int_to_ptr.vmem [resolvable:$true] %s155_s28  ;;  %s19645_s17 = int_to_ptr.vmem [resolvable:$true] %s179_s17 }
  0x5a   :  { %s19123_s1 = scalar_lea.hbm %s20890_s10, 39424 }
  0x5b   :  { %p19124_p4 = scmp.ne.s32.totalorder %s20890_s10, %s19123_s1  ;;  %p19127_p5 = scmp.lt.u32.totalorder %s19123_s1, %s20890_s10 }
  0x5d   :  { %p19129_p6 = pnand %p19127_p5, %p19124_p4 }
  0x5f   :  { %19132 = shalt.err (!%p19129_p6)
}
  0x60   :  { %s19133_s8 = scalar_lea.vmem %s156_s28, 39424  ;;  %p19138_p8 = scmp.lt.s32.totalorder %s156_s28, %s156_s28 }
  0x61   :  { %p19134_p7 = scmp.ne.s32.totalorder %s156_s28, %s19133_s8  ;;  %p19139_p9 = scmp.lt.s32.totalorder %s19133_s8, %s19133_s8 }
  0x63   :  { %p19140_p10 = por %p19139_p9, %p19138_p8 }
  0x65   :  { %p19141_p11 = pnand %p19140_p10, %p19134_p7 }
  0x67   :  { %19144 = shalt.err (!%p19141_p11)
}
  0x68   :  { %161 = dma.hbm_to_vmem [thread:$0]  %s20890_s10, 39424, %s156_s28, [#allocation21], %s19471_s6, %s19471_s6, %s19472_s19  }
  0x69   :  { %s19145_s0 = scalar_lea.hbm %s20892_s12, 39424 }
  0x6a   :  { %p19146_p12 = scmp.ne.s32.totalorder %s20892_s12, %s19145_s0  ;;  %p19149_p13 = scmp.lt.u32.totalorder %s19145_s0, %s20892_s12 }
  0x6c   :  { %p19151_p0 = pnand %p19149_p13, %p19146_p12 }
  0x6e   :  { %19154 = shalt.err (!%p19151_p0)
}
  0x6f   :  { %s19155_s20 = scalar_lea.vmem %s19645_s17, 39424  ;;  %p19160_p2 = scmp.lt.s32.totalorder %s19645_s17, %s19645_s17 }
  0x70   :  { %p19156_p1 = scmp.ne.s32.totalorder %s19645_s17, %s19155_s20  ;;  %p19161_p3 = scmp.lt.s32.totalorder %s19155_s20, %s19155_s20 }
  0x72   :  { %p19162_p4 = por %p19161_p3, %p19160_p2 }
  0x74   :  { %p19163_p5 = pnand %p19162_p4, %p19156_p1 }
  0x76   :  { %19166 = shalt.err (!%p19163_p5)
}
  0x77   :  { %185 = dma.hbm_to_vmem [thread:$0]  %s20892_s12, 39424, %s19645_s17, [#allocation24], %s19471_s6, %s19471_s6, %s19472_s19  }
  0x78   :  { %s19475_s21 = smov [#allocation26]   ;;  %s19476_s8 = smov [#allocation29]  }
  0x79   :  { %s202_s22 = sshll.u32 %s19475_s21, 4  ;;  %s222_s26 = sshll.u32 %s19476_s8, 4  ;;  %s203_s22 = int_to_ptr.vmem [resolvable:$true] %s202_s22  ;;  %s223_s26 = int_to_ptr.vmem [resolvable:$true] %s222_s26 }
  0x7a   :  { %s19167_s29 = scalar_lea.hbm %s20894_s14, 32 }
  0x7b   :  { %p19168_p6 = scmp.ne.s32.totalorder %s20894_s14, %s19167_s29  ;;  %p19171_p7 = scmp.lt.u32.totalorder %s19167_s29, %s20894_s14 }
  0x7d   :  { %p19173_p8 = pnand %p19171_p7, %p19168_p6 }
  0x7f   :  { %19176 = shalt.err (!%p19173_p8)
}
  0x80   :  { %s19177_s12 = scalar_lea.vmem %s203_s22, 32  ;;  %p19182_p10 = scmp.lt.s32.totalorder %s203_s22, %s203_s22 }
  0x81   :  { %p19178_p9 = scmp.ne.s32.totalorder %s203_s22, %s19177_s12  ;;  %p19183_p11 = scmp.lt.s32.totalorder %s19177_s12, %s19177_s12 }
  0x83   :  { %p19184_p12 = por %p19183_p11, %p19182_p10 }
  0x85   :  { %p19185_p13 = pnand %p19184_p12, %p19178_p9 }
  0x87   :  { %19188 = shalt.err (!%p19185_p13)
}
  0x88   :  { %205 = dma.hbm_to_vmem [thread:$0]  %s20894_s14, 32, %s203_s22, [#allocation27]  }
  0x89   :  { %s19189_s28 = scalar_lea.hbm %s20896_s16, 32 }
  0x8a   :  { %p19190_p0 = scmp.ne.s32.totalorder %s20896_s16, %s19189_s28  ;;  %p19193_p1 = scmp.lt.u32.totalorder %s19189_s28, %s20896_s16 }
  0x8c   :  { %p19195_p2 = pnand %p19193_p1, %p19190_p0 }
  0x8e   :  { %19198 = shalt.err (!%p19195_p2)
}
  0x8f   :  { %s19199_s29 = scalar_lea.vmem %s223_s26, 32  ;;  %p19204_p4 = scmp.lt.s32.totalorder %s223_s26, %s223_s26 }
  0x90   :  { %p19200_p3 = scmp.ne.s32.totalorder %s223_s26, %s19199_s29  ;;  %p19205_p5 = scmp.lt.s32.totalorder %s19199_s29, %s19199_s29 }
  0x92   :  { %p19206_p6 = por %p19205_p5, %p19204_p4 }
  0x94   :  { %p19207_p7 = pnand %p19206_p6, %p19200_p3 }
  0x96   :  { %19210 = shalt.err (!%p19207_p7)
}
  0x97   :  { %225 = dma.hbm_to_vmem [thread:$0]  %s20896_s16, 32, %s223_s26, [#allocation30]  }
  0x98   :  { %s20920_s18 = sld [smem:[#allocation44_spill]] }
  0x9e   :  { %s19211_s30 = scalar_lea.hbm %s20920_s18, 16 }
  0x9f   :  { %p19212_p8 = scmp.ne.s32.totalorder %s20920_s18, %s19211_s30  ;;  %p19215_p9 = scmp.lt.u32.totalorder %s19211_s30, %s20920_s18 }
  0xa1   :  { %p19217_p10 = pnand %p19215_p9, %p19212_p8 }
  0xa3   :  { %19220 = shalt.err (!%p19217_p10)
}
  0xa4   :  { %s19477_s10 = smov [#allocation3]   ;;  %s19478_s16 = smov [#allocation7]  }
  0xa5   :  { %41 = dma.hbm_to_smem %s20920_s18, 16, %s19477_s10, [#allocation6]  }
  0xa6   :  { %s47_s26 = sshll.u32 %s19478_s16, 4  ;;  %s19479_s8 = smov [#allocation10]   ;;  %s48_s26 = int_to_ptr.vmem [resolvable:$true] %s47_s26 }
  0xa7   :  { %s71_s2 = sshll.u32 %s19479_s8, 4  ;;  %s20921_s14 = sld [smem:[#allocation45_spill]]  ;;  %s72_s2 = int_to_ptr.vmem [resolvable:$true] %s71_s2 }
  0xad   :  { %s19221_s22 = scalar_lea.hbm %s20921_s14, 576 }
  0xae   :  { %p19222_p11 = scmp.ne.s32.totalorder %s20921_s14, %s19221_s22  ;;  %p19225_p12 = scmp.lt.u32.totalorder %s19221_s22, %s20921_s14 }
  0xb0   :  { %p19227_p13 = pnand %p19225_p12, %p19222_p11 }
  0xb2   :  { %19230 = shalt.err (!%p19227_p13)
}
  0xb3   :  { %s19231_s18 = scalar_lea.vmem %s48_s26, 576  ;;  %p19236_p1 = scmp.lt.s32.totalorder %s48_s26, %s48_s26 }
  0xb4   :  { %p19232_p0 = scmp.ne.s32.totalorder %s48_s26, %s19231_s18  ;;  %p19237_p2 = scmp.lt.s32.totalorder %s19231_s18, %s19231_s18 }
  0xb6   :  { %p19238_p3 = por %p19237_p2, %p19236_p1 }
  0xb8   :  { %p19239_p4 = pnand %p19238_p3, %p19232_p0 }
  0xba   :  { %19242 = shalt.err (!%p19239_p4)
}
  0xbb   :  { %53 = dma.hbm_to_vmem [thread:$0]  %s20921_s14, 576, %s48_s26, [#allocation4], %s19464_s23, %s19464_s23, %s19465_s24  }
  0xbc   :  { %s19243_s28 = scalar_lea.hbm %s20883_s3, 512 }
  0xbd   :  { %p19244_p5 = scmp.ne.s32.totalorder %s20883_s3, %s19243_s28  ;;  %p19247_p6 = scmp.lt.u32.totalorder %s19243_s28, %s20883_s3 }
  0xbf   :  { %p19249_p7 = pnand %p19247_p6, %p19244_p5 }
  0xc1   :  { %19252 = shalt.err (!%p19249_p7)
}
  0xc2   :  { %s19253_s29 = scalar_lea.vmem %s72_s2, 512  ;;  %p19258_p9 = scmp.lt.s32.totalorder %s72_s2, %s72_s2 }
  0xc3   :  { %p19254_p8 = scmp.ne.s32.totalorder %s72_s2, %s19253_s29  ;;  %p19259_p10 = scmp.lt.s32.totalorder %s19253_s29, %s19253_s29 }
  0xc5   :  { %p19260_p11 = por %p19259_p10, %p19258_p9 }
  0xc7   :  { %p19261_p12 = pnand %p19260_p11, %p19254_p8 }
  0xc9   :  { %19264 = shalt.err (!%p19261_p12)
}
  0xca   :  { %s20922_s23 = smov 256   ;;  %s19480_s14 = smov [#allocation13]  }
  0xcb   :  { %77 = dma.hbm_to_vmem [thread:$0]  %s20883_s3, 512, %s72_s2, [#allocation9], %s20922_s23, %s20922_s23, %s19469_s25  }
  0xcc   :  { %s95_s22 = sshll.u32 %s19480_s14, 4  ;;  %s19481_s0 = smov [#allocation16]   ;;  %s96_s22 = int_to_ptr.vmem [resolvable:$true] %s95_s22 }
  0xcd   :  { %s119_s27 = sshll.u32 %s19481_s0, 4  ;;  %s19265_s18 = scalar_lea.hbm %s20885_s5, 512  ;;  %s120_s27 = int_to_ptr.vmem [resolvable:$true] %s119_s27 }
  0xce   :  { %p19266_p13 = scmp.ne.s32.totalorder %s20885_s5, %s19265_s18  ;;  %p19269_p0 = scmp.lt.u32.totalorder %s19265_s18, %s20885_s5 }
  0xd0   :  { %p19271_p1 = pnand %p19269_p0, %p19266_p13 }
  0xd2   :  { %19274 = shalt.err (!%p19271_p1)
}
  0xd3   :  { %s19275_s3 = scalar_lea.vmem %s96_s22, 512  ;;  %p19280_p3 = scmp.lt.s32.totalorder %s96_s22, %s96_s22 }
  0xd4   :  { %p19276_p2 = scmp.ne.s32.totalorder %s96_s22, %s19275_s3  ;;  %p19281_p4 = scmp.lt.s32.totalorder %s19275_s3, %s19275_s3 }
  0xd6   :  { %p19282_p5 = por %p19281_p4, %p19280_p3 }
  0xd8   :  { %p19283_p6 = pnand %p19282_p5, %p19276_p2 }
  0xda   :  { %19286 = shalt.err (!%p19283_p6)
}
  0xdb   :  { %101 = dma.hbm_to_vmem [thread:$0]  %s20885_s5, 512, %s96_s22, [#allocation12], %s20922_s23, %s20922_s23, %s19469_s25  }
  0xdc   :  { %s19287_s8 = scalar_lea.hbm %s20887_s7, 512 }
  0xdd   :  { %p19288_p7 = scmp.ne.s32.totalorder %s20887_s7, %s19287_s8  ;;  %p19291_p8 = scmp.lt.u32.totalorder %s19287_s8, %s20887_s7 }
  0xdf   :  { %p19293_p9 = pnand %p19291_p8, %p19288_p7 }
  0xe1   :  { %19296 = shalt.err (!%p19293_p9)
}
  0xe2   :  { %s19297_s14 = scalar_lea.vmem %s120_s27, 512  ;;  %p19302_p11 = scmp.lt.s32.totalorder %s120_s27, %s120_s27 }
  0xe3   :  { %p19298_p10 = scmp.ne.s32.totalorder %s120_s27, %s19297_s14  ;;  %p19303_p12 = scmp.lt.s32.totalorder %s19297_s14, %s19297_s14 }
  0xe5   :  { %p19304_p13 = por %p19303_p12, %p19302_p11 }
  0xe7   :  { %p19305_p0 = pnand %p19304_p13, %p19298_p10 }
  0xe9   :  { %19308 = shalt.err (!%p19305_p0)
}
  0xea   :  { %125 = dma.hbm_to_vmem [thread:$0]  %s20887_s7, 512, %s120_s27, [#allocation15], %s20922_s23, %s20922_s23, %s19469_s25  }
  0xeb   :  { %s19482_s0 = smov [#allocation19]   ;;  %s19483_s12 = smov [#allocation22]  }
  0xec   :  { %s143_s30 = sshll.u32 %s19482_s0, 4  ;;  %s167_s18 = sshll.u32 %s19483_s12, 4  ;;  %s144_s30 = int_to_ptr.vmem [resolvable:$true] %s143_s30  ;;  %s168_s18 = int_to_ptr.vmem [resolvable:$true] %s167_s18 }
  0xed   :  { %s19309_s20 = scalar_lea.hbm %s20889_s9, 39424 }
  0xee   :  { %p19310_p1 = scmp.ne.s32.totalorder %s20889_s9, %s19309_s20  ;;  %p19313_p2 = scmp.lt.u32.totalorder %s19309_s20, %s20889_s9 }
  0xf0   :  { %p19315_p3 = pnand %p19313_p2, %p19310_p1 }
  0xf2   :  { %19318 = shalt.err (!%p19315_p3)
}
  0xf3   :  { %s19319_s7 = scalar_lea.vmem %s144_s30, 39424  ;;  %p19324_p5 = scmp.lt.s32.totalorder %s144_s30, %s144_s30 }
  0xf4   :  { %p19320_p4 = scmp.ne.s32.totalorder %s144_s30, %s19319_s7  ;;  %p19325_p6 = scmp.lt.s32.totalorder %s19319_s7, %s19319_s7 }
  0xf6   :  { %p19326_p7 = por %p19325_p6, %p19324_p5 }
  0xf8   :  { %p19327_p8 = pnand %p19326_p7, %p19320_p4 }
  0xfa   :  { %19330 = shalt.err (!%p19327_p8)
}
  0xfb   :  { %149 = dma.hbm_to_vmem [thread:$0]  %s20889_s9, 39424, %s144_s30, [#allocation18], %s19471_s6, %s19471_s6, %s19472_s19  }
  0xfc   :  { %s19331_s4 = scalar_lea.hbm %s20891_s11, 39424 }
  0xfd   :  { %p19332_p9 = scmp.ne.s32.totalorder %s20891_s11, %s19331_s4  ;;  %p19335_p10 = scmp.lt.u32.totalorder %s19331_s4, %s20891_s11 }
  0xff   :  { %p19337_p11 = pnand %p19335_p10, %p19332_p9 }
 0x101   :  { %19340 = shalt.err (!%p19337_p11)
}
 0x102   :  { %s19341_s5 = scalar_lea.vmem %s168_s18, 39424  ;;  %p19346_p13 = scmp.lt.s32.totalorder %s168_s18, %s168_s18 }
 0x103   :  { %p19342_p12 = scmp.ne.s32.totalorder %s168_s18, %s19341_s5  ;;  %p19347_p0 = scmp.lt.s32.totalorder %s19341_s5, %s19341_s5 }
 0x105   :  { %p19348_p1 = por %p19347_p0, %p19346_p13 }
 0x107   :  { %p19349_p2 = pnand %p19348_p1, %p19342_p12 }
 0x109   :  { %19352 = shalt.err (!%p19349_p2)
}
 0x10a   :  { %173 = dma.hbm_to_vmem [thread:$0]  %s20891_s11, 39424, %s168_s18, [#allocation21], %s19471_s6, %s19471_s6, %s19472_s19  }
 0x10b   :  { %s19484_s0 = smov [#allocation25]   ;;  %s19485_s12 = smov [#allocation28]  }
 0x10c   :  { %s192_s30 = sshll.u32 %s19484_s0, 4  ;;  %s212_s17 = sshll.u32 %s19485_s12, 4  ;;  %s193_s30 = int_to_ptr.vmem [resolvable:$true] %s192_s30  ;;  %s213_s17 = int_to_ptr.vmem [resolvable:$true] %s212_s17 }
 0x10d   :  { %s19353_s10 = scalar_lea.hbm %s20893_s13, 32 }
 0x10e   :  { %p19354_p3 = scmp.ne.s32.totalorder %s20893_s13, %s19353_s10  ;;  %p19357_p4 = scmp.lt.u32.totalorder %s19353_s10, %s20893_s13 }
 0x110   :  { %p19359_p5 = pnand %p19357_p4, %p19354_p3 }
 0x112   :  { %19362 = shalt.err (!%p19359_p5)
}
 0x113   :  { %s19363_s11 = scalar_lea.vmem %s193_s30, 32  ;;  %p19368_p7 = scmp.lt.s32.totalorder %s193_s30, %s193_s30 }
 0x114   :  { %p19364_p6 = scmp.ne.s32.totalorder %s193_s30, %s19363_s11  ;;  %p19369_p8 = scmp.lt.s32.totalorder %s19363_s11, %s19363_s11 }
 0x116   :  { %p19370_p9 = por %p19369_p8, %p19368_p7 }
 0x118   :  { %p19371_p10 = pnand %p19370_p9, %p19364_p6 }
 0x11a   :  { %19374 = shalt.err (!%p19371_p10)
}
 0x11b   :  { %195 = dma.hbm_to_vmem [thread:$0]  %s20893_s13, 32, %s193_s30, [#allocation24]  }
 0x11c   :  { %s19375_s21 = scalar_lea.hbm %s20895_s15, 32 }
 0x11d   :  { %p19376_p11 = scmp.ne.s32.totalorder %s20895_s15, %s19375_s21  ;;  %p19379_p12 = scmp.lt.u32.totalorder %s19375_s21, %s20895_s15 }
 0x11f   :  { %p19381_p13 = pnand %p19379_p12, %p19376_p11 }
 0x121   :  { %19384 = shalt.err (!%p19381_p13)
}
 0x122   :  { %s19385_s24 = scalar_lea.vmem %s213_s17, 32  ;;  %p19390_p1 = scmp.lt.s32.totalorder %s213_s17, %s213_s17 }
 0x123   :  { %p19386_p0 = scmp.ne.s32.totalorder %s213_s17, %s19385_s24  ;;  %p19391_p2 = scmp.lt.s32.totalorder %s19385_s24, %s19385_s24 }
 0x125   :  { %p19392_p3 = por %p19391_p2, %p19390_p1 }
 0x127   :  { %p19393_p4 = pnand %p19392_p3, %p19386_p0 }
 0x129   :  { %19396 = shalt.err (!%p19393_p4)
}
 0x12a   :  { %215 = dma.hbm_to_vmem [thread:$0]  %s20895_s15, 32, %s213_s17, [#allocation27]  }
 0x12b   :  { %s19486_s14 = smov [#allocation31]   ;;  %s20923_s0 = sld [smem:[#allocation47_spill]] }
 0x12c   :  { %s232_s5 = sshll.u32 %s19486_s14, 4  ;;  %s233_s5 = int_to_ptr.vmem [resolvable:$true] %s232_s5 }
 0x131   :  { %s19397_s30 = scalar_lea.hbm %s20923_s0, 32 }
 0x132   :  { %p19398_p5 = scmp.ne.s32.totalorder %s20923_s0, %s19397_s30  ;;  %p19401_p6 = scmp.lt.u32.totalorder %s19397_s30, %s20923_s0 }
 0x134   :  { %p19403_p7 = pnand %p19401_p6, %p19398_p5 }
 0x136   :  { %19406 = shalt.err (!%p19403_p7)
}
 0x137   :  { %s19407_s3 = scalar_lea.vmem %s233_s5, 32  ;;  %p19412_p9 = scmp.lt.s32.totalorder %s233_s5, %s233_s5 }
 0x138   :  { %p19408_p8 = scmp.ne.s32.totalorder %s233_s5, %s19407_s3  ;;  %p19413_p10 = scmp.lt.s32.totalorder %s19407_s3, %s19407_s3 }
 0x13a   :  { %p19414_p11 = por %p19413_p10, %p19412_p9 }
 0x13c   :  { %p19415_p12 = pnand %p19414_p11, %p19408_p8 }
 0x13e   :  { %19418 = shalt.err (!%p19415_p12)
}
 0x13f   :  { %235 = dma.hbm_to_vmem [thread:$0]  %s20923_s0, 32, %s233_s5, [#allocation30]  }
 0x140   :  { %19441 = dma.done.wait [#allocation6], 16  }
 0x141   :  { %19442 = vsyncadd [#allocation6], 4294967280 }
 0x142   :  { %19443 = dma.done.wait [#allocation4], 576  }
 0x143   :  { %19444 = vsyncadd [#allocation4], 4294966720 }
 0x144   :  { %19445 = dma.done.wait [#allocation9], 1088  }
 0x145   :  { %19446 = vsyncadd [#allocation9], 4294966208 }
 0x146   :  { %19447 = dma.done.wait [#allocation12], 1024  }
 0x147   :  { %19448 = vsyncadd [#allocation12], 4294966272 }
 0x148   :  { %19449 = dma.done.wait [#allocation15], 1024  }
 0x149   :  { %19450 = vsyncadd [#allocation15], 4294966272 }
 0x14a   :  { %19451 = dma.done.wait [#allocation18], 78848  }
 0x14b   :  { %19452 = vsyncadd [#allocation18], 4294888448 }
 0x14c   :  { %19453 = dma.done.wait [#allocation21], 78848  }
 0x14d   :  { %19454 = vsyncadd [#allocation21], 4294888448 }
 0x14e   :  { %19455 = dma.done.wait [#allocation24], 39456  }
 0x14f   :  { %19456 = vsyncadd [#allocation24], 4294927840 }
 0x150   :  { %19457 = dma.done.wait [#allocation27], 64  }
 0x151   :  { %19458 = vsyncadd [#allocation27], 4294967232 }
 0x152   :  { %19459 = dma.done.wait [#allocation30], 64  }
 0x153   :  { %19460 = vsyncadd [#allocation30], 4294967232 }
 0x154   :  { %290 = sfence }
 0x155   :  { %v16599_v0 = vld [vmem:[#allocation17 + $0x4] ss:$8 sps:$4 sm:$0xff]   ;;  %v16601_v1 = vld [vmem:[#allocation17] ss:$8 sps:$4 sm:$0xff]   ;;  %v19487_v2 = vmov 0   ;;  %vm20911_vm0 = vcmask 785408  }
 0x156   :  { %676 = vmatprep.mubr.bf16.mxu0 %v19487_v2  ;;  %294 = vst [vmem:[#allocation2] sm:$0xff] %v19487_v2  ;;  %297 = vst [vmem:[#allocation2 + $0xc] sm:$0xff] %v19487_v2  ;;  %601 = vmatprep.subr.bf16.mxu1 %v16599_v0  ;;  %v16602_v3 = vld [vmem:[#allocation17 + $0x14] ss:$8 sps:$4 sm:$0xff]   ;;  %v16604_v4 = vld [vmem:[#allocation17 + $0x10] ss:$8 sps:$4 sm:$0xff]  }
 0x157   :  { %299 = vst [vmem:[#allocation2 + $0x18] sm:$0x77] %v19487_v2  ;;  %602 = vmatpush1.bf16.msra.mxu1 %v16601_v1  ;;  %v16605_v5 = vld [vmem:[#allocation17 + $0x24] ss:$8 sps:$4 sm:$0xff]   ;;  %v16607_v6 = vld [vmem:[#allocation17 + $0x20] ss:$8 sps:$4 sm:$0xff]  }
 0x158   :  { %603 = vmatprep.subr.bf16.mxu1 %v16602_v3  ;;  %v16608_v7 = vld [vmem:[#allocation17 + $0x34] ss:$8 sps:$4 sm:$0xff]   ;;  %v16620_v8 = vld [vmem:[#allocation17 + $0x104] ss:$8 sps:$4 sm:$0xff]   ;;  %v16622_v9 = vld [vmem:[#allocation17 + $0x100] ss:$8 sps:$4 sm:$0xff]  }
 0x159   :  { %v16610_v10 = vld [vmem:[#allocation17 + $0x30] ss:$8 sps:$4 sm:$0xff]   ;;  %v16611_v11 = vld [vmem:[#allocation17 + $0x44] ss:$8 sps:$4 sm:$0xff]   ;;  %644 = vmatprep.subr.bf16.mxu0 %v16620_v8  ;;  %v16626_v12 = vld [vmem:[#allocation17 + $0x114] ss:$8 sps:$4 sm:$0xff]  }
 0x15a   :  { %645 = vmatpush1.bf16.msra.mxu0 %v16622_v9  ;;  %v16628_v13 = vld [vmem:[#allocation17 + $0x110] ss:$8 sps:$4 sm:$0xff]   ;;  %v16613_v14 = vld [vmem:[#allocation17 + $0x40] ss:$8 sps:$4 sm:$0xff]   ;;  %v16632_v15 = vld [vmem:[#allocation17 + $0x124] ss:$8 sps:$4 sm:$0xff]  }
 0x15b   :  { %604 = vmatpush1.bf16.msra.mxu1 %v16604_v4  ;;  %646 = vmatprep.subr.bf16.mxu0 %v16626_v12  ;;  %v16614_v16 = vld [vmem:[#allocation17 + $0x54] ss:$8 sps:$4 sm:$0xff]   ;;  %v16634_v17 = vld [vmem:[#allocation17 + $0x120] ss:$8 sps:$4 sm:$0xff]   ;;  %v16616_v19 = vld [vmem:[#allocation17 + $0x50] ss:$8 sps:$4 sm:$0xff]  }
 0x15c   :  { %605 = vmatprep.subr.bf16.mxu1 %v16605_v5  ;;  %v16638_v18 = vld [vmem:[#allocation17 + $0x134] ss:$8 sps:$4 sm:$0xff]   ;;  %v16617_v20 = vld [vmem:[#allocation17 + $0x64] ss:$8 sps:$4 sm:$0xff]   ;;  %v16640_v21 = vld [vmem:[#allocation17 + $0x130] ss:$8 sps:$4 sm:$0xff]  }
 0x15d   :  { %v16644_v22 = vld [vmem:[#allocation17 + $0x144] ss:$8 sps:$4 sm:$0xff]   ;;  %v16619_v23 = vld [vmem:[#allocation17 + $0x60] ss:$8 sps:$4 sm:$0xff]   ;;  %v16623_v24 = vld [vmem:[#allocation17 + $0x74] ss:$8 sps:$4 sm:$0xff]  }
 0x15e   :  { %647 = vmatpush1.bf16.msra.mxu0 %v16628_v13  ;;  %v16646_v25 = vld [vmem:[#allocation17 + $0x140] ss:$8 sps:$4 sm:$0xff]   ;;  %v16650_v26 = vld [vmem:[#allocation17 + $0x154] ss:$8 sps:$4 sm:$0xff]   ;;  %v16625_v27 = vld [vmem:[#allocation17 + $0x70] ss:$8 sps:$4 sm:$0xff]  }
 0x15f   :  { %606 = vmatpush1.bf16.msra.mxu1 %v16607_v6  ;;  %648 = vmatprep.subr.bf16.mxu0 %v16632_v15  ;;  %v16629_v28 = vld [vmem:[#allocation17 + $0x84] ss:$8 sps:$4 sm:$0xff]   ;;  %v16652_v29 = vld [vmem:[#allocation17 + $0x150] ss:$8 sps:$4 sm:$0xff]   ;;  %v16631_v31 = vld [vmem:[#allocation17 + $0x80] ss:$8 sps:$4 sm:$0xff]  }
 0x160   :  { %607 = vmatprep.subr.bf16.mxu1 %v16608_v7  ;;  %v16658_v30 = vld [vmem:[#allocation17 + $0x264] ss:$8 sps:$4 sm:$0xff]   ;;  %v16635_v32 = vld [vmem:[#allocation17 + $0x94] ss:$8 sps:$4 sm:$0xff]   ;;  %v16656_v34 = vld [vmem:[#allocation17 + $0x260] ss:$8 sps:$4 sm:$0xff]  }
 0x161   :  { %v16659_v33 = vld [vmem:[#allocation7 + $0x8] ss:$12 sps:$4 sm:$0xff]   ;;  %v16665_v35 = vld [vmem:[#allocation17 + $0x274] ss:$8 sps:$4 sm:$0xff]   ;;  %v16637_v36 = vld [vmem:[#allocation17 + $0x90] ss:$8 sps:$4 sm:$0xff]  }
 0x162   :  { %649 = vmatpush1.bf16.msra.mxu0 %v16634_v17  ;;  %v16641_v37 = vld [vmem:[#allocation17 + $0xa4] ss:$8 sps:$4 sm:$0xff]   ;;  %v19848_v38 = vld [vmem:[#allocation7] sm:$0xff]  ;;  %v16643_v43 = vld [vmem:[#allocation17 + $0xa0] ss:$8 sps:$4 sm:$0xff]   ;;  %vm20909_vm2 = vcmask 1046528  }
 0x163   :  { %608 = vmatpush1.bf16.msra.mxu1 %v16610_v10  ;;  %650 = vmatprep.subr.bf16.mxu0 %v16638_v18  ;;  %v19851_v39 = vld [vmem:[#allocation7 + $0xc] sm:$0xff]  ;;  %v16663_v40 = vld [vmem:[#allocation17 + $0x270] ss:$8 sps:$4 sm:$0xff]   ;;  %v16647_v44 = vld [vmem:[#allocation17 + $0xb4] ss:$8 sps:$4 sm:$0xff]   ;;  %vm20907_vm4 = vcmask 1045504  }
 0x164   :  { %609 = vmatprep.subr.bf16.mxu1 %v16611_v11  ;;  %v19855_v41 = vcombine.high %v19848_v38, %v19851_v39  ;;  %v16671_v42 = vld [vmem:[#allocation17 + $0x284] ss:$8 sps:$4 sm:$0xff]   ;;  %v16669_v45 = vld [vmem:[#allocation17 + $0x280] ss:$8 sps:$4 sm:$0xff]   ;;  %v16649_v46 = vld [vmem:[#allocation17 + $0xb0] ss:$8 sps:$4 sm:$0xff]  }
 0x165   :  { %v16677_v47 = vld [vmem:[#allocation17 + $0x294] ss:$8 sps:$4 sm:$0xff]   ;;  %v16653_v48 = vld [vmem:[#allocation17 + $0xc4] ss:$8 sps:$4 sm:$0xff]   ;;  %v16675_v49 = vld [vmem:[#allocation17 + $0x290] ss:$8 sps:$4 sm:$0xff]  }
 0x166   :  { %651 = vmatpush1.bf16.msra.mxu0 %v16640_v21  ;;  %633 = vmatprep.mubr.bf16.mxu1 %v19855_v41  ;;  %v692_v50 = vld [vmem:[#allocation7 + $0x8] sm:$0xf]  ;;  %v19859_v51 = vld [vmem:[#allocation7 + $0x14] sm:$0xf]  ;;  %v16660_v57 = vld [vmem:[#allocation17 + $0xd4] ss:$8 sps:$4 sm:$0xff]  }
 0x167   :  { %610 = vmatpush1.bf16.msra.mxu1 %v16613_v14  ;;  %652 = vmatprep.subr.bf16.mxu0 %v16644_v22  ;;  %v14635_v52 = vcombine.low %v692_v50, %v19859_v51  ;;  %v19862_v53 = vld [vmem:[#allocation7 + $0x20] ss:$0 sps:$4 sm:$0x11]   ;;  %v16655_v54 = vld [vmem:[#allocation17 + $0xc0] ss:$8 sps:$4 sm:$0xff]   ;;  %v19870_v14 = vcombine.low %v19848_v38, %v19851_v39  ;;  %vm20906_vm6 = vcmask 1044480  }
 0x168   :  { %611 = vmatprep.subr.bf16.mxu1 %v16614_v16  ;;  %v16685_v55 = vld [vmem:[#allocation17 + $0x2a4] ss:$8 sps:$4 sm:$0xff]   ;;  %v16683_v58 = vld [vmem:[#allocation17 + $0x2a0] ss:$8 sps:$4 sm:$0xff]   ;;  %v796_v61 = vshll.u32 %v19862_v53, 16  ;;  %vm295_vm7 = vcmask 781312  }
 0x169   :  { %v791_v56 = vshll.u32 %v14635_v52, 16  ;;  %v789_v59 = vshrl.u32 %v14635_v52, 16  ;;  %v16691_v62 = vld [vmem:[#allocation17 + $0x2b4] ss:$8 sps:$4 sm:$0xff]   ;;  %v16662_v63 = vld [vmem:[#allocation17 + $0xd0] ss:$8 sps:$4 sm:$0xff]  }
 0x16a   :  { %653 = vmatpush1.bf16.msra.mxu0 %v16646_v25  ;;  %v16666_v0 = vld [vmem:[#allocation17 + $0xe4] ss:$8 sps:$4 sm:$0xff]   ;;  %v16689_v1 = vld [vmem:[#allocation17 + $0x2b0] ss:$8 sps:$4 sm:$0xff]   ;;  %v798_v4 = vrot.slane %v796_v61, 1  ;;  %vm300_vm8 = vcmask 780288  }
 0x16b   :  { %612 = vmatpush1.bf16.msra.mxu1 %v16616_v19  ;;  %654 = vmatprep.subr.bf16.mxu0 %v16650_v26  ;;  %v793_v60 = vrot.slane %v791_v56, 1  ;;  %v16697_v5 = vld [vmem:[#allocation17 + $0x3c4] ss:$8 sps:$4 sm:$0xff]   ;;  %vm20910_vm1 = vsmask.f32 7424  ;;  %s19488_s2 = smov 48  }
 0x16c   :  { %613 = vmatprep.subr.bf16.mxu1 %v16617_v20  ;;  %v16668_v6 = vld [vmem:[#allocation17 + $0xe0] ss:$8 sps:$4 sm:$0xff]   ;;  %v16672_v7 = vld [vmem:[#allocation17 + $0xf4] ss:$8 sps:$4 sm:$0xff]   ;;  %v16674_v11 = vld [vmem:[#allocation17 + $0xf0] ss:$8 sps:$4 sm:$0xff]  }
 0x16d   :  { %v794_v3 = vor.u32 %v793_v60, %v789_v59  ;;  %v16695_v8 = vld [vmem:[#allocation17 + $0x3c0] ss:$8 sps:$4 sm:$0xff]   ;;  %v16705_v10 = vld [vmem:[#allocation17 + $0x3d4] ss:$8 sps:$4 sm:$0xff]   ;;  %v16682_v12 = vld [vmem:[#allocation17 + $0x164] ss:$8 sps:$4 sm:$0xff]  }
 0x16e   :  { %655 = vmatpush1.bf16.msra.mxu0 %v16652_v29  ;;  %v16703_v13 = vld [vmem:[#allocation17 + $0x3d0] ss:$8 sps:$4 sm:$0xff]   ;;  %v16711_v15 = vld [vmem:[#allocation17 + $0x3e4] ss:$8 sps:$4 sm:$0xff]   ;;  %v16680_v16 = vld [vmem:[#allocation17 + $0x160] ss:$8 sps:$4 sm:$0xff]  }
 0x16f   :  { %614 = vmatpush1.bf16.msra.mxu1 %v16619_v23  ;;  %1068 = vmatprep.subr.bf16.mxu0 %v16658_v30  ;;  %v799_v9 = vsel %vm20910_vm1, %v794_v3, %v798_v4  ;;  %v16688_v17 = vld [vmem:[#allocation17 + $0x174] ss:$8 sps:$4 sm:$0xff]   ;;  %v16709_v18 = vld [vmem:[#allocation17 + $0x3e0] ss:$8 sps:$4 sm:$0xff]   ;;  %v16686_v20 = vld [vmem:[#allocation17 + $0x170] ss:$8 sps:$4 sm:$0xff]  }
 0x170   :  { %615 = vmatprep.subr.bf16.mxu1 %v16623_v24  ;;  %v16717_v19 = vld [vmem:[#allocation17 + $0x3f4] ss:$8 sps:$4 sm:$0xff]   ;;  %v16694_v21 = vld [vmem:[#allocation17 + $0x184] ss:$8 sps:$4 sm:$0xff]   ;;  %v16715_v22 = vld [vmem:[#allocation17 + $0x3f0] ss:$8 sps:$4 sm:$0xff]  }
 0x171   :  { %14632 = vmatmul.mubr.msk.bf16.vlgmr.msra.gmra.mrb[0].mxu0 %vm20911_vm0, %v16659_v33  ;;  %v16723_v23 = vld [vmem:[#allocation17 + $0x404] ss:$8 sps:$4 sm:$0xff]   ;;  %v1116_v24 = vld [vmem:[#allocation7 + $0x8] sm:$0xe]  ;;  %v16702_v26 = vld [vmem:[#allocation17 + $0x194] ss:$8 sps:$4 sm:$0xff]  }
 0x172   :  { %1069 = vmatpush1.bf16.msra.mxu0 %v16656_v34  ;;  %1100 = vmatprep.mubr.bf16.mxu0 %v19487_v2  ;;  %v16692_v25 = vld [vmem:[#allocation17 + $0x180] ss:$8 sps:$4 sm:$0xff]   ;;  %v16729_v29 = vld [vmem:[#allocation17 + $0x414] ss:$8 sps:$4 sm:$0xff]   ;;  %v16700_v30 = vld [vmem:[#allocation17 + $0x190] ss:$8 sps:$4 sm:$0xff]  }
 0x173   :  { %616 = vmatpush1.bf16.msra.mxu1 %v16625_v27  ;;  %1070 = vmatprep.subr.bf16.mxu0 %v16665_v35  ;;  %v16721_v27 = vld [vmem:[#allocation17 + $0x400] ss:$8 sps:$4 sm:$0xff]   ;;  %v16727_v33 = vld [vmem:[#allocation17 + $0x410] ss:$8 sps:$4 sm:$0xff]   ;;  %v1178_v35 = vrot.slane %v19862_v53, 1  ;;  %vm5972_vm12 = vcmask 1043841  }
 0x174   :  { %617 = vmatprep.subr.bf16.mxu1 %v16629_v28  ;;  %v19874_v28 = vcombine.low %v1116_v24, %v19859_v51  ;;  %v16714_v38 = vld [vmem:[#allocation17 + $0x1b4] ss:$8 sps:$4 sm:$0xff]   ;;  %v16740_v50 = vld [vmem:[#allocation17 + $0x530] ss:$8 sps:$4 sm:$0xff]   ;;  %v16748_v53 = vld [vmem:[#allocation17 + $0x544] ss:$8 sps:$4 sm:$0xff]  }
 0x175   :  { %v16726_v56 = vld [vmem:[#allocation17 + $0x1d4] ss:$8 sps:$4 sm:$0xff]   ;;  %v16724_v61 = vld [vmem:[#allocation17 + $0x1d0] ss:$8 sps:$4 sm:$0xff]   ;;  %vm20908_vm3 = vsmask.f32 6400 }
 0x176   :  { %1071 = vmatpush1.bf16.msra.mxu0 %v16663_v40  ;;  %v1177_v34 = vrot.slane %v19874_v28, 1  ;;  %v16733_v40 = vld [vmem:[#allocation17 + $0x520] ss:$8 sps:$4 sm:$0xff]   ;;  %v16754_v60 = vld [vmem:[#allocation17 + $0x554] ss:$8 sps:$4 sm:$0xff]   ;;  %vm5975_vm14 = vcmask 1047557  }
 0x177   :  { %618 = vmatpush1.bf16.msra.mxu1 %v16631_v31  ;;  %1072 = vmatprep.subr.bf16.mxu0 %v16671_v42  ;;  %v16708_v31 = vld [vmem:[#allocation17 + $0x1a4] ss:$8 sps:$4 sm:$0xff]   ;;  %vm2352_vm5 = vsmask.f32 5376  ;;  %vm5931_vm9 = vsmask.f32 1280 }
 0x178   :  { %619 = vmatprep.subr.bf16.mxu1 %v16635_v32  ;;  %v779_v32 = vshll.u32 %v19855_v41, 16  ;;  %v1179_v42 = vsel %vm20909_vm2, %v1177_v34, %v1178_v35  ;;  %v16761_v34 = vld [vmem:[#allocation17 + $0x230] ss:$8 sps:$4 sm:$0xff]   ;;  %vm5932_vm10 = vsmask.f32 5392  ;;  %s292_s28 = sld [smem:[#allocation3]] }
 0x179   :  { %vm20310_vm11 = vmor %vm5931_vm9, %vm5932_vm10  ;;  %vm5973_vm13 = vsmask.f32 7942  ;;  %vm5976_vm15 = vsmask.f32 7958  ;;  %vm5993_vm10 = vcmask 1041792   ;;  %s14584_s7 = sld [smem:[#allocation3 + $0x1]] }
 0x17a   :  { %1073 = vmatpush1.bf16.msra.mxu0 %v16669_v45  ;;  %v781_v45 = vrot.slane %v779_v32, 1  ;;  %v16785_v32 = vld [vmem:[#allocation17 + $0x6a0] ss:$8 sps:$4 sm:$0xff]   ;;  %s19489_s11 = smov [#allocation32]  }
 0x17b   :  { %620 = vmatpush1.bf16.msra.mxu1 %v16637_v36  ;;  %1074 = vmatprep.subr.bf16.mxu0 %v16677_v47  ;;  %v16735_v36 = vld [vmem:[#allocation17 + $0x524] ss:$8 sps:$4 sm:$0xff]   ;;  %v16712_v47 = vld [vmem:[#allocation17 + $0x1b0] ss:$8 sps:$4 sm:$0xff]   ;;  %s14563_s6 = sshll.u32 %s19489_s11, 4  ;;  %s14564_s6 = int_to_ptr.vmem [resolvable:$true] %s14563_s6 }
 0x17c   :  { %621 = vmatprep.subr.bf16.mxu1 %v16641_v37  ;;  %v16706_v37 = vld [vmem:[#allocation17 + $0x1a0] ss:$8 sps:$4 sm:$0xff]   ;;  %s19419_s19 = scalar_lea.vmem %s14564_s6, 512  ;;  %p19424_p0 = scmp.lt.s32.totalorder %s14564_s6, %s14564_s6 }
 0x17d   :  { %p19420_p13 = scmp.ne.s32.totalorder %s14564_s6, %s19419_s19  ;;  %p19425_p1 = scmp.lt.s32.totalorder %s19419_s19, %s19419_s19 }
 0x17e   :  { %1075 = vmatpush1.bf16.msra.mxu0 %v16675_v49  ;;  %v16720_v49 = vld [vmem:[#allocation17 + $0x1c4] ss:$8 sps:$4 sm:$0xff]  }
 0x17f   :  { %622 = vmatpush1.bf16.msra.mxu1 %v16643_v43  ;;  %1076 = vmatprep.subr.bf16.mxu0 %v16685_v55  ;;  %v16742_v43 = vld [vmem:[#allocation17 + $0x534] ss:$8 sps:$4 sm:$0xff]   ;;  %p19426_p2 = por %p19425_p1, %p19424_p0 }
 0x180   :  { %623 = vmatprep.subr.bf16.mxu1 %v16647_v44  ;;  %v777_v44 = vshrl.u32 %v19855_v41, 16 }
 0x181   :  { %p19427_p3 = pnand %p19426_p2, %p19420_p13 }
 0x182   :  { %1077 = vmatpush1.bf16.msra.mxu0 %v16683_v58  ;;  %v782_v52 = vor.u32 %v781_v45, %v777_v44  ;;  %v19890_v58 = vld [vmem:[#allocation7 + $0x20] ss:$0 sps:$4 sm:$0x33]  }
 0x183   :  { %624 = vmatpush1.bf16.msra.mxu1 %v16649_v46  ;;  %1078 = vmatprep.subr.bf16.mxu0 %v16691_v62  ;;  %v19881_v46 = vld [vmem:[#allocation7 + $0x18] sm:$0x11]  ;;  %v16732_v62 = vld [vmem:[#allocation17 + $0x1e4] ss:$8 sps:$4 sm:$0xff]   ;;  %v1594_v3 = vshrl.u32 %v19890_v58, 16  ;;  %v1597_v4 = vshll.u32 %v19890_v58, 16 }
 0x184   :  { %625 = vmatprep.subr.bf16.mxu1 %v16653_v48  ;;  %v19885_v48 = vcombine.high %v19881_v46, %v19881_v46  ;;  %v19902_v35 = vcombine.low %v19881_v46, %v19881_v46  ;;  %v16797_v46 = vld [vmem:[#allocation17 + $0x6c0] ss:$8 sps:$4 sm:$0xff]  }
 0x186   :  { %1079 = vmatpush1.bf16.msra.mxu0 %v16689_v1  ;;  %v784_v41 = vshll.u32 %v19885_v48, 16  ;;  %v16752_v1 = vld [vmem:[#allocation17 + $0x550] ss:$8 sps:$4 sm:$0xff]   ;;  %v772_v45 = vshll.u32 %v19902_v35, 16 }
 0x187   :  { %626 = vmatpush1.bf16.msra.mxu1 %v16655_v54  ;;  %1448 = vmatprep.subr.bf16.mxu0 %v16697_v5  ;;  %v16718_v54 = vld [vmem:[#allocation17 + $0x1c0] ss:$8 sps:$4 sm:$0xff]   ;;  %v16760_v5 = vld [vmem:[#allocation17 + $0x564] ss:$8 sps:$4 sm:$0xff]  }
 0x188   :  { %627 = vmatprep.subr.bf16.mxu1 %v16660_v57  ;;  %v786_v55 = vrot.slane %v784_v41, 1  ;;  %v16746_v57 = vld [vmem:[#allocation17 + $0x540] ss:$8 sps:$4 sm:$0xff]   ;;  %v774_v41 = vrot.slane %v772_v45, 1  ;;  %v16825_v45 = vld [vmem:[#allocation17 + $0x330] ss:$8 sps:$4 sm:$0xff]  }
 0x189   :  { %14683 = vmatmul.mubr.msk.bf16.vlgmr.msra.gmra.mrb[4].mxu0 %vm20911_vm0, %v799_v9  ;;  %v16758_v9 = vld [vmem:[#allocation17 + $0x560] ss:$8 sps:$4 sm:$0xff]  }
 0x18a   :  { %1449 = vmatpush1.bf16.msra.mxu0 %v16695_v8  ;;  %1480 = vmatprep.mubr.bf16.mxu0 %v19487_v2  ;;  %v787_v59 = vsel %vm20910_vm1, %v782_v52, %v786_v55  ;;  %v16774_v52 = vld [vmem:[#allocation17 + $0x250] ss:$8 sps:$4 sm:$0xff]  }
 0x18b   :  { %628 = vmatpush1.bf16.msra.mxu1 %v16662_v63  ;;  %1450 = vmatprep.subr.bf16.mxu0 %v16705_v10  ;;  %v1586_v63 = vshrl.u32 %v19874_v28, 16 }
 0x18c   :  { %629 = vmatprep.subr.bf16.mxu1 %v16666_v0  ;;  %v1589_v0 = vshll.u32 %v19874_v28, 16  ;;  %v16777_v28 = vld [vmem:[#allocation17 + $0x690] ss:$8 sps:$4 sm:$0xff]  }
 0x18d   :  { %v1588_v8 = vrot.slane %v1586_v63, 1  ;;  %v16790_v63 = vld [vmem:[#allocation17 + $0x2d4] ss:$8 sps:$4 sm:$0xff]  }
 0x18e   :  { %1451 = vmatpush1.bf16.msra.mxu0 %v16703_v13  ;;  %v1591_v10 = vrot.slane %v1589_v0, 2  ;;  %v16766_v13 = vld [vmem:[#allocation17 + $0x574] ss:$8 sps:$4 sm:$0xff]  }
 0x18f   :  { %630 = vmatpush1.bf16.msra.mxu1 %v16668_v6  ;;  %1452 = vmatprep.subr.bf16.mxu0 %v16711_v15  ;;  %v16730_v6 = vld [vmem:[#allocation17 + $0x1e0] ss:$8 sps:$4 sm:$0xff]   ;;  %v16737_v15 = vld [vmem:[#allocation17 + $0x1f0] ss:$8 sps:$4 sm:$0xff]  }
 0x190   :  { %631 = vmatprep.subr.bf16.mxu1 %v16672_v7  ;;  %v16739_v7 = vld [vmem:[#allocation17 + $0x1f4] ss:$8 sps:$4 sm:$0xff]  }
 0x192   :  { %1453 = vmatpush1.bf16.msra.mxu0 %v16709_v18  ;;  %v1592_v18 = vor.u32 %v1591_v10, %v1588_v8  ;;  %v16794_v8 = vld [vmem:[#allocation17 + $0x2e0] ss:$8 sps:$4 sm:$0xff]  }
 0x193   :  { %632 = vmatpush1.bf16.msra.mxu1 %v16674_v11  ;;  %1454 = vmatprep.subr.bf16.mxu0 %v16717_v19  ;;  %v1596_v11 = vrot.slane %v1594_v3, 1  ;;  %v16818_v3 = vld [vmem:[#allocation17 + $0x6f4] ss:$8 sps:$4 sm:$0xff]   ;;  %v16822_v10 = vld [vmem:[#allocation17 + $0x700] ss:$8 sps:$4 sm:$0xff]  }
 0x194   :  { %1025 = vmatprep.subr.bf16.mxu1 %v16682_v12  ;;  %v1599_v12 = vrot.slane %v1597_v4, 2 }
 0x196   :  { %634 = vmatmul.mubr.bf16.vlgmr.msra.gmra.mrb[0].mxu1 %v19870_v14  ;;  %1455 = vmatpush1.bf16.msra.mxu0 %v16715_v22  ;;  %v1600_v19 = vor.u32 %v1599_v12, %v1596_v11  ;;  %v16751_v22 = vld [vmem:[#allocation17 + $0x214] ss:$8 sps:$4 sm:$0xff]  }
 0x197   :  { %1026 = vmatpush1.bf16.msra.mxu1 %v16680_v16  ;;  %1456 = vmatprep.subr.bf16.mxu0 %v16723_v23  ;;  %v16745_v16 = vld [vmem:[#allocation17 + $0x204] ss:$8 sps:$4 sm:$0xff]   ;;  %v16770_v23 = vld [vmem:[#allocation17 + $0x680] ss:$8 sps:$4 sm:$0xff]   ;;  %v16830_v11 = vld [vmem:[#allocation17 + $0x714] ss:$8 sps:$4 sm:$0xff]  }
 0x198   :  { %1027 = vmatprep.subr.bf16.mxu1 %v16688_v17  ;;  %1057 = vmatprep.mubr.bf16.mxu1 %v787_v59  ;;  %v16764_v17 = vld [vmem:[#allocation17 + $0x570] ss:$8 sps:$4 sm:$0xff]   ;;  %v1601_v24 = vsel %vm20908_vm3, %v1592_v18, %v1600_v19  ;;  %v16811_v59 = vld [vmem:[#allocation17 + $0x6e4] ss:$8 sps:$4 sm:$0xff]  }
 0x199   :  { %v19924_v12 = vld [vmem:[#allocation7] sm:$0xcc]  ;;  %v16808_v18 = vld [vmem:[#allocation17 + $0x304] ss:$8 sps:$4 sm:$0xff]  }
 0x19a   :  { %1457 = vmatpush1.bf16.msra.mxu0 %v16721_v27  ;;  %v16757_v27 = vld [vmem:[#allocation17 + $0x224] ss:$8 sps:$4 sm:$0xff]   ;;  %v16828_v19 = vld [vmem:[#allocation17 + $0x710] ss:$8 sps:$4 sm:$0xff]  }
 0x19b   :  { %1028 = vmatpush1.bf16.msra.mxu1 %v16686_v20  ;;  %1458 = vmatprep.subr.bf16.mxu0 %v16729_v29  ;;  %v16772_v20 = vld [vmem:[#allocation17 + $0x684] ss:$8 sps:$4 sm:$0xff]  }
 0x19c   :  { %1029 = vmatprep.subr.bf16.mxu1 %v16694_v21  ;;  %v16743_v21 = vld [vmem:[#allocation17 + $0x200] ss:$8 sps:$4 sm:$0xff]   ;;  %v16787_v29 = vld [vmem:[#allocation17 + $0x6a4] ss:$8 sps:$4 sm:$0xff]  }
 0x19e   :  { %1459 = vmatpush1.bf16.msra.mxu0 %v16727_v33  ;;  %v16793_v33 = vld [vmem:[#allocation17 + $0x6b4] ss:$8 sps:$4 sm:$0xff]  }
 0x19f   :  { %1030 = vmatpush1.bf16.msra.mxu1 %v16692_v25  ;;  %1870 = vmatprep.subr.bf16.mxu0 %v16735_v36  ;;  %v16779_v25 = vld [vmem:[#allocation17 + $0x694] ss:$8 sps:$4 sm:$0xff]   ;;  %v767_v36 = vshll.u32 %v19870_v14, 16 }
 0x1a0   :  { %1031 = vmatprep.subr.bf16.mxu1 %v16702_v26  ;;  %v16749_v26 = vld [vmem:[#allocation17 + $0x210] ss:$8 sps:$4 sm:$0xff]  }
 0x1a1   :  { %14731 = vmatmul.mubr.msk.bf16.vlgmr.msra.gmra.mrb[8].mxu0 %vm20911_vm0, %v1179_v42  ;;  %v1918_v42 = vld [vmem:[#allocation7 + $0x8] sm:$0xc]  ;;  %v769_v44 = vrot.slane %v767_v36, 1 }
 0x1a2   :  { %1871 = vmatpush1.bf16.msra.mxu0 %v16733_v40  ;;  %1902 = vmatprep.mubr.bf16.mxu0 %v19487_v2  ;;  %v16799_v40 = vld [vmem:[#allocation17 + $0x6c4] ss:$8 sps:$4 sm:$0xff]  }
 0x1a3   :  { %1032 = vmatpush1.bf16.msra.mxu1 %v16700_v30  ;;  %1872 = vmatprep.subr.bf16.mxu0 %v16742_v43  ;;  %v16755_v30 = vld [vmem:[#allocation17 + $0x220] ss:$8 sps:$4 sm:$0xff]  }
 0x1a4   :  { %1033 = vmatprep.subr.bf16.mxu1 %v16708_v31  ;;  %v16763_v31 = vld [vmem:[#allocation17 + $0x234] ss:$8 sps:$4 sm:$0xff]   ;;  %v16767_v43 = vld [vmem:[#allocation17 + $0x240] ss:$8 sps:$4 sm:$0xff]  }
 0x1a6   :  { %1873 = vmatpush1.bf16.msra.mxu0 %v16740_v50  ;;  %v16805_v50 = vld [vmem:[#allocation17 + $0x6d4] ss:$8 sps:$4 sm:$0xff]  }
 0x1a7   :  { %1034 = vmatpush1.bf16.msra.mxu1 %v16706_v37  ;;  %1874 = vmatprep.subr.bf16.mxu0 %v16748_v53  ;;  %v16791_v37 = vld [vmem:[#allocation17 + $0x6b0] ss:$8 sps:$4 sm:$0xff]   ;;  %v16784_v53 = vld [vmem:[#allocation17 + $0x2c4] ss:$8 sps:$4 sm:$0xff]  }
 0x1a8   :  { %1035 = vmatprep.subr.bf16.mxu1 %v16714_v38  ;;  %v765_v38 = vshrl.u32 %v19870_v14, 16 }
 0x1aa   :  { %1875 = vmatpush1.bf16.msra.mxu0 %v16746_v57  ;;  %v770_v14 = vor.u32 %v769_v44, %v765_v38  ;;  %v19912_v57 = vld [vmem:[#allocation7] sm:$0xee]  ;;  %v16848_v38 = vld [vmem:[#allocation17 + $0x744] ss:$8 sps:$4 sm:$0xff]  }
 0x1ab   :  { %1036 = vmatpush1.bf16.msra.mxu1 %v16712_v47  ;;  %1876 = vmatprep.subr.bf16.mxu0 %v16754_v60  ;;  %v16776_v47 = vld [vmem:[#allocation17 + $0x254] ss:$8 sps:$4 sm:$0xff]   ;;  %v1175_v60 = vrot.slane %v19885_v48, 1  ;;  %v16796_v48 = vld [vmem:[#allocation17 + $0x2e4] ss:$8 sps:$4 sm:$0xff]  }
 0x1ac   :  { %1037 = vmatprep.subr.bf16.mxu1 %v16720_v49  ;;  %v19908_v49 = vcombine.low %v1918_v42, %v19859_v51  ;;  %v19916_v51 = vcombine.high %v19912_v57, %v19851_v39  ;;  %v16827_v42 = vld [vmem:[#allocation17 + $0x334] ss:$8 sps:$4 sm:$0xff]  }
 0x1ad   :  { %v16854_v44 = vld [vmem:[#allocation17 + $0x754] ss:$8 sps:$4 sm:$0xff]  }
 0x1ae   :  { %1877 = vmatpush1.bf16.msra.mxu0 %v16752_v1  ;;  %v1979_v55 = vrot.slane %v19908_v49, 2  ;;  %v1174_v0 = vrot.slane %v19916_v51, 1 }
 0x1af   :  { %1038 = vmatpush1.bf16.msra.mxu1 %v16718_v54  ;;  %1878 = vmatprep.subr.bf16.mxu0 %v16760_v5  ;;  %v16803_v54 = vld [vmem:[#allocation17 + $0x6d0] ss:$8 sps:$4 sm:$0xff]  }
 0x1b0   :  { %1039 = vmatprep.subr.bf16.mxu1 %v16726_v56  ;;  %v1980_v56 = vrot.slane %v19890_v58, 2  ;;  %v16809_v58 = vld [vmem:[#allocation17 + $0x6e0] ss:$8 sps:$4 sm:$0xff]   ;;  %v1176_v4 = vsel %vm20909_vm2, %v1174_v0, %v1175_v60  ;;  %v16788_v5 = vld [vmem:[#allocation17 + $0x2d0] ss:$8 sps:$4 sm:$0xff]  }
 0x1b1   :  { %v16843_v60 = vld [vmem:[#allocation17 + $0x360] ss:$8 sps:$4 sm:$0xff]   ;;  %v16849_v0 = vld [vmem:[#allocation17 + $0x370] ss:$8 sps:$4 sm:$0xff]  }
 0x1b2   :  { %1879 = vmatpush1.bf16.msra.mxu0 %v16758_v9  ;;  %v1981_v1 = vsel %vm20907_vm4, %v1979_v55, %v1980_v56  ;;  %v16802_v9 = vld [vmem:[#allocation17 + $0x2f4] ss:$8 sps:$4 sm:$0xff]   ;;  %v16845_v55 = vld [vmem:[#allocation17 + $0x364] ss:$8 sps:$4 sm:$0xff]   ;;  %v16864_v56 = vld [vmem:[#allocation17 + $0x770] ss:$8 sps:$4 sm:$0xff]  }
 0x1b3   :  { %1040 = vmatpush1.bf16.msra.mxu1 %v16724_v61  ;;  %1880 = vmatprep.subr.bf16.mxu0 %v16766_v13  ;;  %v775_v61 = vsel %vm20910_vm1, %v770_v14, %v774_v41  ;;  %v19926_v13 = vld [vmem:[#allocation7 + $0x18] sm:$0x77]  ;;  %v16858_v41 = vld [vmem:[#allocation17 + $0x760] ss:$8 sps:$4 sm:$0xff]  }
 0x1b4   :  { %1041 = vmatprep.subr.bf16.mxu1 %v16732_v62  ;;  %v16782_v62 = vld [vmem:[#allocation17 + $0x2c0] ss:$8 sps:$4 sm:$0xff]   ;;  %v16839_v14 = vld [vmem:[#allocation17 + $0x354] ss:$8 sps:$4 sm:$0xff]  }
 0x1b6   :  { %1881 = vmatpush1.bf16.msra.mxu0 %v16764_v17  ;;  %v19934_v17 = vcombine.high %v19926_v13, %v19926_v13 }
 0x1b7   :  { %1042 = vmatpush1.bf16.msra.mxu1 %v16730_v6  ;;  %2250 = vmatprep.subr.bf16.mxu0 %v16772_v20  ;;  %v16816_v6 = vld [vmem:[#allocation17 + $0x6f0] ss:$8 sps:$4 sm:$0xff]  }
 0x1b8   :  { %1043 = vmatprep.subr.bf16.mxu1 %v16739_v7  ;;  %v16824_v7 = vld [vmem:[#allocation17 + $0x704] ss:$8 sps:$4 sm:$0xff]  }
 0x1b9   :  { %14779 = vmatmul.mubr.msk.bf16.vlgmr.msra.gmra.mrb[12].mxu0 %vm20911_vm0, %v1601_v24  ;;  %v16806_v24 = vld [vmem:[#allocation17 + $0x300] ss:$8 sps:$4 sm:$0xff]  }
 0x1ba   :  { %2251 = vmatpush1.bf16.msra.mxu0 %v16770_v23  ;;  %2282 = vmatprep.mubr.bf16.mxu0 %v19487_v2  ;;  %v16769_v2 = vld [vmem:[#allocation17 + $0x244] ss:$8 sps:$4 sm:$0xff]   ;;  %v2382_v23 = vshll.u32 %v19934_v17, 16 }
 0x1bb   :  { %1044 = vmatpush1.bf16.msra.mxu1 %v16737_v15  ;;  %2252 = vmatprep.subr.bf16.mxu0 %v16779_v25  ;;  %v16800_v15 = vld [vmem:[#allocation17 + $0x2f0] ss:$8 sps:$4 sm:$0xff]  }
 0x1bc   :  { %1045 = vmatprep.subr.bf16.mxu1 %v16745_v16  ;;  %v19930_v16 = vcombine.high %v19924_v12, %v19851_v39  ;;  %v16836_v39 = vld [vmem:[#allocation17 + $0x724] ss:$8 sps:$4 sm:$0xff]  }
 0x1be   :  { %2253 = vmatpush1.bf16.msra.mxu0 %v16777_v28  ;;  %v2371_v20 = vshrl.u32 %v19930_v16, 16  ;;  %v2384_v28 = vrot.slane %v2382_v23, 3 }
 0x1bf   :  { %1046 = vmatpush1.bf16.msra.mxu1 %v16743_v21  ;;  %2254 = vmatprep.subr.bf16.mxu0 %v16787_v29  ;;  %v2374_v21 = vshll.u32 %v19930_v16, 16  ;;  %v16815_v29 = vld [vmem:[#allocation17 + $0x314] ss:$8 sps:$4 sm:$0xff]  }
 0x1c0   :  { %1047 = vmatprep.subr.bf16.mxu1 %v16751_v22  ;;  %v2379_v22 = vshrl.u32 %v19934_v17, 16  ;;  %v2373_v25 = vrot.slane %v2371_v20, 2  ;;  %v16890_v20 = vld [vmem:[#allocation17 + $0x7b0] ss:$8 sps:$4 sm:$0xff]  }
 0x1c2   :  { %2255 = vmatpush1.bf16.msra.mxu0 %v16785_v32 }
 0x1c3   :  { %1048 = vmatpush1.bf16.msra.mxu1 %v16749_v26  ;;  %2256 = vmatprep.subr.bf16.mxu0 %v16793_v33  ;;  %v2376_v26 = vrot.slane %v2374_v21, 3  ;;  %v16842_v33 = vld [vmem:[#allocation17 + $0x734] ss:$8 sps:$4 sm:$0xff]   ;;  %v1572_v21 = vshll.u32 %v19916_v51, 16 }
 0x1c4   :  { %1049 = vmatprep.subr.bf16.mxu1 %v16757_v27  ;;  %v2381_v27 = vrot.slane %v2379_v22, 2 }
 0x1c6   :  { %2257 = vmatpush1.bf16.msra.mxu0 %v16791_v37  ;;  %v2385_v32 = vor.u32 %v2384_v28, %v2381_v27  ;;  %v16840_v37 = vld [vmem:[#allocation17 + $0x730] ss:$8 sps:$4 sm:$0xff]   ;;  %v16875_v27 = vld [vmem:[#allocation17 + $0x3b4] ss:$8 sps:$4 sm:$0xff]  }
 0x1c7   :  { %1050 = vmatpush1.bf16.msra.mxu1 %v16755_v30  ;;  %2258 = vmatprep.subr.bf16.mxu0 %v16799_v40  ;;  %v16834_v30 = vld [vmem:[#allocation17 + $0x720] ss:$8 sps:$4 sm:$0xff]  }
 0x1c8   :  { %1051 = vmatprep.subr.bf16.mxu1 %v16763_v31  ;;  %v2377_v31 = vor.u32 %v2376_v26, %v2373_v25  ;;  %v16819_v40 = vld [vmem:[#allocation17 + $0x320] ss:$8 sps:$4 sm:$0xff]   ;;  %v16898_v25 = vld [vmem:[#allocation17 + $0x7c4] ss:$8 sps:$4 sm:$0xff]  }
 0x1c9   :  { %v16867_v26 = vld [vmem:[#allocation17 + $0x3a0] ss:$8 sps:$4 sm:$0xff]  }
 0x1ca   :  { %2259 = vmatpush1.bf16.msra.mxu0 %v16797_v46  ;;  %v2386_v36 = vsel %vm2352_vm5, %v2377_v31, %v2385_v32  ;;  %v16852_v46 = vld [vmem:[#allocation17 + $0x750] ss:$8 sps:$4 sm:$0xff]  }
 0x1cb   :  { %1052 = vmatpush1.bf16.msra.mxu1 %v16761_v34  ;;  %2260 = vmatprep.subr.bf16.mxu0 %v16805_v50  ;;  %v16813_v34 = vld [vmem:[#allocation17 + $0x310] ss:$8 sps:$4 sm:$0xff]   ;;  %v16860_v50 = vld [vmem:[#allocation17 + $0x764] ss:$8 sps:$4 sm:$0xff]  }
 0x1cc   :  { %1053 = vmatprep.subr.bf16.mxu1 %v16769_v2  ;;  %v16821_v2 = vld [vmem:[#allocation17 + $0x324] ss:$8 sps:$4 sm:$0xff]  }
 0x1ce   :  { %2261 = vmatpush1.bf16.msra.mxu0 %v16803_v54  ;;  %v16837_v54 = vld [vmem:[#allocation17 + $0x350] ss:$8 sps:$4 sm:$0xff]  }
 0x1cf   :  { %1054 = vmatpush1.bf16.msra.mxu1 %v16767_v43  ;;  %2629 = vmatprep.subr.bf16.mxu0 %v16811_v59  ;;  %v16846_v43 = vld [vmem:[#allocation17 + $0x740] ss:$8 sps:$4 sm:$0xff]   ;;  %v16872_v59 = vld [vmem:[#allocation17 + $0x784] ss:$8 sps:$4 sm:$0xff]  }
 0x1d0   :  { %1055 = vmatprep.subr.bf16.mxu1 %v16776_v47  ;;  %v16833_v47 = vld [vmem:[#allocation17 + $0x344] ss:$8 sps:$4 sm:$0xff]  }
 0x1d1   :  { %14827 = vmatmul.mubr.msk.bf16.vlgmr.msra.gmra.mrb[16].mxu0 %vm20911_vm0, %v1981_v1  ;;  %v16876_v1 = vld [vmem:[#allocation17 + $0x790] ss:$8 sps:$4 sm:$0xff]  }
 0x1d2   :  { %2630 = vmatpush1.bf16.msra.mxu0 %v16809_v58  ;;  %2661 = vmatprep.mubr.bf16.mxu0 %v2386_v36  ;;  %v16857_v58 = vld [vmem:[#allocation17 + $0x384] ss:$8 sps:$4 sm:$0xff]  }
 0x1d3   :  { %1056 = vmatpush1.bf16.msra.mxu1 %v16774_v52  ;;  %2631 = vmatprep.subr.bf16.mxu0 %v16818_v3  ;;  %v16831_v52 = vld [vmem:[#allocation17 + $0x340] ss:$8 sps:$4 sm:$0xff]   ;;  %v1495_v3 = vld [vmem:[#allocation7 + $0x18] sm:$0x33] }
 0x1d4   :  { %1405 = vmatprep.subr.bf16.mxu1 %v16784_v53  ;;  %v16866_v53 = vld [vmem:[#allocation17 + $0x774] ss:$8 sps:$4 sm:$0xff]  }
 0x1d6   :  { %1058 = vmatmul.mubr.bf16.vlgmr.msra.gmra.mrb[4].mxu1 %v775_v61  ;;  %2632 = vmatpush1.bf16.msra.mxu0 %v16816_v6  ;;  %v16851_v61 = vld [vmem:[#allocation17 + $0x374] ss:$8 sps:$4 sm:$0xff]   ;;  %v19941_v6 = vcombine.high %v1495_v3, %v1495_v3 }
 0x1d7   :  { %1406 = vmatpush1.bf16.msra.mxu1 %v16782_v62  ;;  %1437 = vmatprep.mubr.bf16.mxu1 %v1176_v4  ;;  %v16870_v62 = vld [vmem:[#allocation17 + $0x780] ss:$8 sps:$4 sm:$0xff]   ;;  %v16886_v4 = vld [vmem:[#allocation17 + $0x7a4] ss:$8 sps:$4 sm:$0xff]  }
 0x1d8   :  { %1407 = vmatprep.subr.bf16.mxu1 %v16790_v63  ;;  %2633 = vmatprep.subr.bf16.mxu0 %v16824_v7  ;;  %v16878_v63 = vld [vmem:[#allocation17 + $0x794] ss:$8 sps:$4 sm:$0xff]   ;;  %v16884_v7 = vld [vmem:[#allocation17 + $0x7a0] ss:$8 sps:$4 sm:$0xff]   ;;  %v1577_v22 = vshrl.u32 %v19941_v6, 16 }
 0x1da   :  { %2634 = vmatpush1.bf16.msra.mxu0 %v16822_v10  ;;  %v19951_v10 = vcombine.low %v19926_v13, %v19926_v13  ;;  %v1579_v31 = vrot.slane %v1577_v22, 1 }
 0x1db   :  { %1408 = vmatpush1.bf16.msra.mxu1 %v16788_v5  ;;  %2635 = vmatprep.subr.bf16.mxu0 %v16830_v11  ;;  %v16855_v5 = vld [vmem:[#allocation17 + $0x380] ss:$8 sps:$4 sm:$0xff]   ;;  %v16892_v11 = vld [vmem:[#allocation17 + $0x7b4] ss:$8 sps:$4 sm:$0xff]  }
 0x1dc   :  { %1409 = vmatprep.subr.bf16.mxu1 %v16796_v48  ;;  %v16863_v48 = vld [vmem:[#allocation17 + $0x394] ss:$8 sps:$4 sm:$0xff]  }
 0x1de   :  { %2636 = vmatpush1.bf16.msra.mxu0 %v16828_v19  ;;  %v1569_v19 = vshrl.u32 %v19916_v51, 16 }
 0x1df   :  { %1410 = vmatpush1.bf16.msra.mxu1 %v16794_v8  ;;  %2637 = vmatprep.subr.bf16.mxu0 %v16836_v39  ;;  %v19943_v8 = vld [vmem:[#allocation7 + $0xc] sm:$0xff]  ;;  %v2365_v39 = vshll.u32 %v19951_v10, 16 }
 0x1e0   :  { %1411 = vmatprep.subr.bf16.mxu1 %v16802_v9  ;;  %v19947_v9 = vcombine.low %v19924_v12, %v19943_v8  ;;  %v1580_v12 = vshll.u32 %v19941_v6, 16  ;;  %v19963_v51 = vcombine.low %v19912_v57, %v19943_v8  ;;  %v1571_v28 = vrot.slane %v1569_v19, 1 }
 0x1e1   :  { %v1172_v57 = vrot.slane %v19902_v35, 1  ;;  %v1977_v35 = vrot.slane %v19941_v6, 2  ;;  %v16924_v6 = vld [vmem:[#allocation17 + $0x800] ss:$8 sps:$4 sm:$0xff]   ;;  %v2391_v19 = vshll.u32 %v19908_v49, 16 }
 0x1e2   :  { %2638 = vmatpush1.bf16.msra.mxu0 %v16834_v30  ;;  %v2354_v23 = vshrl.u32 %v19947_v9, 16  ;;  %v2357_v13 = vshll.u32 %v19947_v9, 16  ;;  %v1574_v30 = vrot.slane %v1572_v21, 2  ;;  %v1582_v32 = vrot.slane %v1580_v12, 2  ;;  %v16930_v21 = vld [vmem:[#allocation17 + $0x810] ss:$8 sps:$4 sm:$0xff]  }
 0x1e3   :  { %1412 = vmatpush1.bf16.msra.mxu1 %v16800_v15  ;;  %2639 = vmatprep.subr.bf16.mxu0 %v16842_v33  ;;  %v16861_v15 = vld [vmem:[#allocation17 + $0x390] ss:$8 sps:$4 sm:$0xff]  }
 0x1e4   :  { %1413 = vmatprep.subr.bf16.mxu1 %v16808_v18  ;;  %v16869_v18 = vld [vmem:[#allocation17 + $0x3a4] ss:$8 sps:$4 sm:$0xff]   ;;  %v2356_v33 = vrot.slane %v2354_v23, 2 }
 0x1e5   :  { %v16938_v23 = vld [vmem:[#allocation17 + $0x824] ss:$8 sps:$4 sm:$0xff]  }
 0x1e6   :  { %2640 = vmatpush1.bf16.msra.mxu0 %v16840_v37  ;;  %v16904_v37 = vld [vmem:[#allocation17 + $0x7d4] ss:$8 sps:$4 sm:$0xff]  }
 0x1e7   :  { %1414 = vmatpush1.bf16.msra.mxu1 %v16806_v24  ;;  %2641 = vmatprep.subr.bf16.mxu0 %v16848_v38  ;;  %v2362_v24 = vshrl.u32 %v19951_v10, 16  ;;  %v16873_v38 = vld [vmem:[#allocation17 + $0x3b0] ss:$8 sps:$4 sm:$0xff]  }
 0x1e8   :  { %1415 = vmatprep.subr.bf16.mxu1 %v16815_v29  ;;  %v16896_v29 = vld [vmem:[#allocation17 + $0x7c0] ss:$8 sps:$4 sm:$0xff]  }
 0x1e9   :  { %v2364_v36 = vrot.slane %v2362_v24, 2  ;;  %v16917_v24 = vld [vmem:[#allocation17 + $0x474] ss:$8 sps:$4 sm:$0xff]  }
 0x1ea   :  { %2642 = vmatpush1.bf16.msra.mxu0 %v16846_v43  ;;  %v1575_v43 = vor.u32 %v1574_v30, %v1571_v28  ;;  %v16944_v28 = vld [vmem:[#allocation17 + $0x834] ss:$8 sps:$4 sm:$0xff]   ;;  %v16915_v30 = vld [vmem:[#allocation17 + $0x470] ss:$8 sps:$4 sm:$0xff]  }
 0x1eb   :  { %1416 = vmatpush1.bf16.msra.mxu1 %v16813_v34  ;;  %2643 = vmatprep.subr.bf16.mxu0 %v16854_v44  ;;  %v2359_v34 = vrot.slane %v2357_v13, 3  ;;  %v1583_v44 = vor.u32 %v1582_v32, %v1579_v31  ;;  %v19991_v13 = vld [vmem:[#allocation7] sm:$0x88]  ;;  %v16923_v31 = vld [vmem:[#allocation17 + $0x484] ss:$8 sps:$4 sm:$0xff]  }
 0x1ec   :  { %1417 = vmatprep.subr.bf16.mxu1 %v16821_v2  ;;  %v2367_v2 = vrot.slane %v2365_v39, 3  ;;  %v16942_v32 = vld [vmem:[#allocation17 + $0x830] ss:$8 sps:$4 sm:$0xff]  }
 0x1ee   :  { %2644 = vmatpush1.bf16.msra.mxu0 %v16852_v46  ;;  %v2368_v46 = vor.u32 %v2367_v2, %v2364_v36  ;;  %v16950_v36 = vld [vmem:[#allocation17 + $0x844] ss:$8 sps:$4 sm:$0xff]  }
 0x1ef   :  { %1418 = vmatpush1.bf16.msra.mxu1 %v16819_v40  ;;  %2645 = vmatprep.subr.bf16.mxu0 %v16860_v50  ;;  %v1171_v40 = vrot.slane %v19963_v51, 1  ;;  %v16912_v50 = vld [vmem:[#allocation17 + $0x7e4] ss:$8 sps:$4 sm:$0xff]  }
 0x1f0   :  { %1419 = vmatprep.subr.bf16.mxu1 %v16827_v42  ;;  %v16883_v42 = vld [vmem:[#allocation17 + $0x424] ss:$8 sps:$4 sm:$0xff]  }
 0x1f2   :  { %2646 = vmatpush1.bf16.msra.mxu0 %v16858_v41  ;;  %v1173_v41 = vsel %vm20909_vm2, %v1171_v40, %v1172_v57  ;;  %v16929_v40 = vld [vmem:[#allocation17 + $0x494] ss:$8 sps:$4 sm:$0xff]   ;;  %v16948_v57 = vld [vmem:[#allocation17 + $0x840] ss:$8 sps:$4 sm:$0xff]  }
 0x1f3   :  { %1420 = vmatpush1.bf16.msra.mxu1 %v16825_v45  ;;  %2647 = vmatprep.subr.bf16.mxu0 %v16866_v53  ;;  %v16902_v45 = vld [vmem:[#allocation17 + $0x7d0] ss:$8 sps:$4 sm:$0xff]   ;;  %v16881_v53 = vld [vmem:[#allocation17 + $0x420] ss:$8 sps:$4 sm:$0xff]  }
 0x1f4   :  { %1421 = vmatprep.subr.bf16.mxu1 %v16833_v47  ;;  %v2360_v47 = vor.u32 %v2359_v34, %v2356_v33 }
 0x1f6   :  { %2648 = vmatpush1.bf16.msra.mxu0 %v16864_v56  ;;  %v1973_v56 = vrot.slane %v19947_v9, 2  ;;  %v16932_v9 = vld [vmem:[#allocation17 + $0x814] ss:$8 sps:$4 sm:$0xff]  }
 0x1f7   :  { %1422 = vmatpush1.bf16.msra.mxu1 %v16831_v52  ;;  %2649 = vmatprep.subr.bf16.mxu0 %v16872_v59  ;;  %v19967_v52 = vcombine.low %v1495_v3, %v1495_v3  ;;  %v19982_v3 = vld [vmem:[#allocation2] sm:$0xff] }
 0x1f8   :  { %1423 = vmatprep.subr.bf16.mxu1 %v16839_v14  ;;  %v1976_v14 = vrot.slane %v19930_v16, 2 }
 0x1f9   :  { %v1974_v59 = vrot.slane %v19967_v52, 2 }
 0x1fa   :  { %2650 = vmatpush1.bf16.msra.mxu0 %v16870_v62  ;;  %v19977_v16 = vsel %vm20907_vm4, %v1976_v14, %v1977_v35  ;;  %v16920_v62 = vld [vmem:[#allocation17 + $0x7f4] ss:$8 sps:$4 sm:$0xff]   ;;  %v16939_v35 = vld [vmem:[#allocation17 + $0x4b0] ss:$8 sps:$4 sm:$0xff]  }
 0x1fb   :  { %1424 = vmatpush1.bf16.msra.mxu1 %v16837_v54  ;;  %2651 = vmatprep.subr.bf16.mxu0 %v16878_v63  ;;  %v16889_v54 = vld [vmem:[#allocation17 + $0x434] ss:$8 sps:$4 sm:$0xff]   ;;  %v19980_v63 = vsel %vm20907_vm4, %v1973_v56, %v1974_v59  ;;  %v16975_v56 = vld [vmem:[#allocation17 + $0x884] ss:$8 sps:$4 sm:$0xff]   ;;  %v16945_v59 = vld [vmem:[#allocation17 + $0x4c0] ss:$8 sps:$4 sm:$0xff]  }
 0x1fc   :  { %1425 = vmatprep.subr.bf16.mxu1 %v16845_v55  ;;  %v1584_v55 = vsel %vm20908_vm3, %v1575_v43, %v1583_v44  ;;  %v16957_v43 = vld [vmem:[#allocation17 + $0x854] ss:$8 sps:$4 sm:$0xff]  }
 0x1fd   :  { %v16941_v14 = vld [vmem:[#allocation17 + $0x4b4] ss:$8 sps:$4 sm:$0xff]  }
 0x1fe   :  { %2652 = vmatpush1.bf16.msra.mxu0 %v16876_v1  ;;  %v16918_v1 = vld [vmem:[#allocation17 + $0x7f0] ss:$8 sps:$4 sm:$0xff]  }
 0x1ff   :  { %1426 = vmatpush1.bf16.msra.mxu1 %v16843_v60  ;;  %2653 = vmatprep.subr.bf16.mxu0 %v16886_v4  ;;  %v16910_v60 = vld [vmem:[#allocation17 + $0x7e0] ss:$8 sps:$4 sm:$0xff]   ;;  %v16926_v4 = vld [vmem:[#allocation17 + $0x804] ss:$8 sps:$4 sm:$0xff]  }
 0x200   :  { %1427 = vmatprep.subr.bf16.mxu1 %v16851_v61  ;;  %v2369_v61 = vsel %vm2352_vm5, %v2360_v47, %v2368_v46  ;;  %v16935_v47 = vld [vmem:[#allocation17 + $0x4a4] ss:$8 sps:$4 sm:$0xff]  }
 0x201   :  { %v16963_v46 = vld [vmem:[#allocation17 + $0x864] ss:$8 sps:$4 sm:$0xff]  }
 0x202   :  { %2654 = vmatpush1.bf16.msra.mxu0 %v16884_v7  ;;  %v19985_v7 = vld [vmem:[#allocation7 + $0x20] ss:$0 sps:$4 sm:$0x77]  }
 0x203   :  { %1428 = vmatpush1.bf16.msra.mxu1 %v16849_v0  ;;  %2655 = vmatprep.subr.bf16.mxu0 %v16892_v11  ;;  %v16887_v0 = vld [vmem:[#allocation17 + $0x430] ss:$8 sps:$4 sm:$0xff]   ;;  %v2396_v22 = vshrl.u32 %v19985_v7, 16  ;;  %v2399_v12 = vshll.u32 %v19985_v7, 16 }
 0x204   :  { %1429 = vmatprep.subr.bf16.mxu1 %v16857_v58  ;;  %v16895_v58 = vld [vmem:[#allocation17 + $0x444] ss:$8 sps:$4 sm:$0xff]   ;;  %v16899_v11 = vld [vmem:[#allocation17 + $0x450] ss:$8 sps:$4 sm:$0xff]  }
 0x206   :  { %2656 = vmatpush1.bf16.msra.mxu0 %v16890_v20  ;;  %v16905_v20 = vld [vmem:[#allocation17 + $0x460] ss:$8 sps:$4 sm:$0xff]  }
 0x207   :  { %1430 = vmatpush1.bf16.msra.mxu1 %v16855_v5  ;;  %2657 = vmatprep.subr.bf16.mxu0 %v16898_v25  ;;  %v16893_v5 = vld [vmem:[#allocation17 + $0x440] ss:$8 sps:$4 sm:$0xff]  }
 0x208   :  { %1431 = vmatprep.subr.bf16.mxu1 %v16863_v48  ;;  %v16901_v48 = vld [vmem:[#allocation17 + $0x454] ss:$8 sps:$4 sm:$0xff]   ;;  %v16936_v25 = vld [vmem:[#allocation17 + $0x820] ss:$8 sps:$4 sm:$0xff]  }
 0x20a   :  { %2658 = vmatpush1.bf16.msra.mxu0 %v16896_v29  ;;  %v14877_v29 = vcombine.high %v19991_v13, %v19943_v8 }
 0x20b   :  { %1432 = vmatpush1.bf16.msra.mxu1 %v16861_v15  ;;  %2659 = vmatprep.subr.bf16.mxu0 %v16904_v37  ;;  %v16907_v15 = vld [vmem:[#allocation17 + $0x464] ss:$8 sps:$4 sm:$0xff]   ;;  %v2779_v37 = vrot.slane %v19934_v17, 3  ;;  %v16955_v17 = vld [vmem:[#allocation17 + $0x850] ss:$8 sps:$4 sm:$0xff]  }
 0x20c   :  { %1433 = vmatprep.subr.bf16.mxu1 %v16869_v18  ;;  %v2388_v18 = vshrl.u32 %v19908_v49, 16  ;;  %v2401_v49 = vrot.slane %v2399_v12, 3  ;;  %v2778_v2 = vrot.slane %v14877_v29, 3  ;;  %v17001_v12 = vld [vmem:[#allocation17 + $0x8c4] ss:$8 sps:$4 sm:$0xff]  }
 0x20e   :  { %2660 = vmatpush1.bf16.msra.mxu0 %v16902_v45  ;;  %v2390_v39 = vrot.slane %v2388_v18, 2  ;;  %v2780_v44 = vsel %vm20906_vm6, %v2778_v2, %v2779_v37  ;;  %v16927_v45 = vld [vmem:[#allocation17 + $0x490] ss:$8 sps:$4 sm:$0xff]   ;;  %v16972_v18 = vld [vmem:[#allocation17 + $0x504] ss:$8 sps:$4 sm:$0xff]  }
 0x20f   :  { %1434 = vmatpush1.bf16.msra.mxu1 %v16867_v26  ;;  %2672 = vmatprep.subr.bf16.mxu0 %v16912_v50  ;;  %v2393_v26 = vrot.slane %v2391_v19, 3  ;;  %v16933_v50 = vld [vmem:[#allocation17 + $0x4a0] ss:$8 sps:$4 sm:$0xff]   ;;  %v1555_v19 = vshll.u32 %v19963_v51, 16  ;;  %v17013_v2 = vld [vmem:[#allocation17 + $0x8e4] ss:$8 sps:$4 sm:$0xff]  }
 0x210   :  { %1435 = vmatprep.subr.bf16.mxu1 %v16875_v27  ;;  %v2398_v27 = vrot.slane %v2396_v22, 2  ;;  %v16993_v22 = vld [vmem:[#allocation17 + $0x8b0] ss:$8 sps:$4 sm:$0xff]  }
 0x211   :  { %2662 = vmatmul.mubr.bf16.vlgmr.msra.gmra.mrb[16].mxu0 %v2369_v61  ;;  %v2394_v33 = vor.u32 %v2393_v26, %v2390_v39  ;;  %v16973_v61 = vld [vmem:[#allocation17 + $0x880] ss:$8 sps:$4 sm:$0xff]  }
 0x212   :  { %2673 = vmatpush1.bf16.msra.mxu0 %v16910_v60  ;;  %2704 = vmatprep.mubr.bf16.mxu0 %v19982_v3  ;;  %v2402_v34 = vor.u32 %v2401_v49, %v2398_v27  ;;  %v16954_v60 = vld [vmem:[#allocation17 + $0x4d4] ss:$8 sps:$4 sm:$0xff]   ;;  %v16999_v49 = vld [vmem:[#allocation17 + $0x8c0] ss:$8 sps:$4 sm:$0xff]  }
 0x213   :  { %1436 = vmatpush1.bf16.msra.mxu1 %v16873_v38  ;;  %2674 = vmatprep.subr.bf16.mxu0 %v16920_v62  ;;  %v16921_v38 = vld [vmem:[#allocation17 + $0x480] ss:$8 sps:$4 sm:$0xff]   ;;  %v16981_v62 = vld [vmem:[#allocation17 + $0x894] ss:$8 sps:$4 sm:$0xff]  }
 0x214   :  { %1827 = vmatprep.subr.bf16.mxu1 %v16883_v42  ;;  %v2403_v42 = vsel %vm2352_vm5, %v2394_v33, %v2402_v34  ;;  %v16986_v34 = vld [vmem:[#allocation17 + $0x584] ss:$8 sps:$4 sm:$0xff]  }
 0x216   :  { %1438 = vmatmul.mubr.bf16.vlgmr.msra.gmra.mrb[8].mxu1 %v1173_v41  ;;  %2675 = vmatpush1.bf16.msra.mxu0 %v16918_v1  ;;  %v16961_v41 = vld [vmem:[#allocation17 + $0x860] ss:$8 sps:$4 sm:$0xff]   ;;  %v16979_v1 = vld [vmem:[#allocation17 + $0x890] ss:$8 sps:$4 sm:$0xff]  }
 0x217   :  { %1828 = vmatpush1.bf16.msra.mxu1 %v16881_v53  ;;  %1859 = vmatprep.mubr.bf16.mxu1 %v1584_v55  ;;  %v16969_v53 = vld [vmem:[#allocation17 + $0x874] ss:$8 sps:$4 sm:$0xff]   ;;  %v16967_v55 = vld [vmem:[#allocation17 + $0x870] ss:$8 sps:$4 sm:$0xff]  }
 0x218   :  { %1829 = vmatprep.subr.bf16.mxu1 %v16889_v54  ;;  %2676 = vmatprep.subr.bf16.mxu0 %v16926_v4  ;;  %v16947_v54 = vld [vmem:[#allocation17 + $0x4c4] ss:$8 sps:$4 sm:$0xff]  }
 0x219   :  { %v16989_v4 = vld [vmem:[#allocation17 + $0x8a4] ss:$8 sps:$4 sm:$0xff]  }
 0x21a   :  { %2677 = vmatpush1.bf16.msra.mxu0 %v16924_v6  ;;  %v16987_v6 = vld [vmem:[#allocation17 + $0x8a0] ss:$8 sps:$4 sm:$0xff]  }
 0x21b   :  { %1830 = vmatpush1.bf16.msra.mxu1 %v16887_v0  ;;  %2678 = vmatprep.subr.bf16.mxu0 %v16932_v9  ;;  %v16952_v0 = vld [vmem:[#allocation17 + $0x4d0] ss:$8 sps:$4 sm:$0xff]   ;;  %v16995_v9 = vld [vmem:[#allocation17 + $0x8b4] ss:$8 sps:$4 sm:$0xff]  }
 0x21c   :  { %1831 = vmatprep.subr.bf16.mxu1 %v16895_v58  ;;  %v16960_v58 = vld [vmem:[#allocation17 + $0x4e4] ss:$8 sps:$4 sm:$0xff]  }
 0x21e   :  { %2679 = vmatpush1.bf16.msra.mxu0 %v16930_v21  ;;  %v1563_v21 = vshll.u32 %v19967_v52, 16 }
 0x21f   :  { %1832 = vmatpush1.bf16.msra.mxu1 %v16893_v5  ;;  %2680 = vmatprep.subr.bf16.mxu0 %v16938_v23  ;;  %v16958_v5 = vld [vmem:[#allocation17 + $0x4e0] ss:$8 sps:$4 sm:$0xff]  }
 0x220   :  { %1833 = vmatprep.subr.bf16.mxu1 %v16901_v48  ;;  %v16966_v48 = vld [vmem:[#allocation17 + $0x4f4] ss:$8 sps:$4 sm:$0xff]   ;;  %v16970_v23 = vld [vmem:[#allocation17 + $0x500] ss:$8 sps:$4 sm:$0xff]   ;;  %v1565_v27 = vrot.slane %v1563_v21, 2 }
 0x222   :  { %2681 = vmatpush1.bf16.msra.mxu0 %v16936_v25  ;;  %v1557_v25 = vrot.slane %v1555_v19, 2  ;;  %v17041_v19 = vld [vmem:[#allocation17 + $0x930] ss:$8 sps:$4 sm:$0xff]  }
 0x223   :  { %1834 = vmatpush1.bf16.msra.mxu1 %v16899_v11  ;;  %2682 = vmatprep.subr.bf16.mxu0 %v16944_v28  ;;  %v16964_v11 = vld [vmem:[#allocation17 + $0x4f0] ss:$8 sps:$4 sm:$0xff]   ;;  %v17007_v28 = vld [vmem:[#allocation17 + $0x8d4] ss:$8 sps:$4 sm:$0xff]  }
 0x224   :  { %1835 = vmatprep.subr.bf16.mxu1 %v16907_v15  ;;  %v1552_v15 = vshrl.u32 %v19963_v51, 16 }
 0x226   :  { %2683 = vmatpush1.bf16.msra.mxu0 %v16942_v32  ;;  %v1554_v39 = vrot.slane %v1552_v15, 1 }
 0x227   :  { %1836 = vmatpush1.bf16.msra.mxu1 %v16905_v20  ;;  %3009 = vmatprep.subr.bf16.mxu0 %v16950_v36  ;;  %v1560_v20 = vshrl.u32 %v19967_v52, 16  ;;  %v16976_v52 = vld [vmem:[#allocation17 + $0x510] ss:$8 sps:$4 sm:$0xff]  }
 0x228   :  { %1837 = vmatprep.subr.bf16.mxu1 %v16917_v24  ;;  %v16978_v24 = vld [vmem:[#allocation17 + $0x514] ss:$8 sps:$4 sm:$0xff]   ;;  %v1558_v32 = vor.u32 %v1557_v25, %v1554_v39  ;;  %v17005_v36 = vld [vmem:[#allocation17 + $0x8d0] ss:$8 sps:$4 sm:$0xff]  }
 0x229   :  { %14875 = vmatmul.mubr.msk.bf16.vlgmr.msra.gmra.mrb[16].mxu0 %vm20911_vm0, %v2403_v42  ;;  %v1562_v26 = vrot.slane %v1560_v20, 1  ;;  %v17019_v42 = vld [vmem:[#allocation17 + $0x8f4] ss:$8 sps:$4 sm:$0xff]   ;;  %v2776_v20 = vrot.slane %v19951_v10, 3 }
 0x22a   :  { %3010 = vmatpush1.bf16.msra.mxu0 %v16948_v57  ;;  %3041 = vmatprep.mubr.bf16.mxu0 %v2780_v44  ;;  %v17011_v57 = vld [vmem:[#allocation17 + $0x8e0] ss:$8 sps:$4 sm:$0xff]   ;;  %v16998_v44 = vld [vmem:[#allocation17 + $0x5a4] ss:$8 sps:$4 sm:$0xff]  }
 0x22b   :  { %1838 = vmatpush1.bf16.msra.mxu1 %v16915_v30  ;;  %3011 = vmatprep.subr.bf16.mxu0 %v16957_v43  ;;  %v1566_v33 = vor.u32 %v1565_v27, %v1562_v26  ;;  %v16990_v43 = vld [vmem:[#allocation17 + $0x590] ss:$8 sps:$4 sm:$0xff]  }
 0x22c   :  { %1839 = vmatprep.subr.bf16.mxu1 %v16923_v31 }
 0x22d   :  { %v1567_v37 = vsel %vm20908_vm3, %v1558_v32, %v1566_v33  ;;  %v17048_v32 = vld [vmem:[#allocation17 + $0x940] ss:$8 sps:$4 sm:$0xff]  }
 0x22e   :  { %3012 = vmatpush1.bf16.msra.mxu0 %v16955_v17  ;;  %v16996_v17 = vld [vmem:[#allocation17 + $0x5a0] ss:$8 sps:$4 sm:$0xff]  }
 0x22f   :  { %1840 = vmatpush1.bf16.msra.mxu1 %v16921_v38  ;;  %3013 = vmatprep.subr.bf16.mxu0 %v16963_v46  ;;  %v16984_v38 = vld [vmem:[#allocation17 + $0x580] ss:$8 sps:$4 sm:$0xff]   ;;  %v304_v46 = vlaneseq }
 0x230   :  { %1841 = vmatprep.subr.bf16.mxu1 %v16929_v40  ;;  %v16992_v40 = vld [vmem:[#allocation17 + $0x594] ss:$8 sps:$4 sm:$0xff]  }
 0x232   :  { %3014 = vmatpush1.bf16.msra.mxu0 %v16961_v41  ;;  %v17031_v41 = vld [vmem:[#allocation17 + $0x914] ss:$8 sps:$4 sm:$0xff]  }
 0x233   :  { %1842 = vmatpush1.bf16.msra.mxu1 %v16927_v45  ;;  %3015 = vmatprep.subr.bf16.mxu0 %v16969_v53  ;;  %v17017_v45 = vld [vmem:[#allocation17 + $0x8f0] ss:$8 sps:$4 sm:$0xff]  }
 0x234   :  { %1843 = vmatprep.subr.bf16.mxu1 %v16935_v47  ;;  %v17025_v47 = vld [vmem:[#allocation17 + $0x904] ss:$8 sps:$4 sm:$0xff]   ;;  %v17002_v53 = vld [vmem:[#allocation17 + $0x5b0] ss:$8 sps:$4 sm:$0xff]  }
 0x236   :  { %3016 = vmatpush1.bf16.msra.mxu0 %v16967_v55  ;;  %v17029_v55 = vld [vmem:[#allocation17 + $0x910] ss:$8 sps:$4 sm:$0xff]  }
 0x237   :  { %1844 = vmatpush1.bf16.msra.mxu1 %v16933_v50  ;;  %3017 = vmatprep.subr.bf16.mxu0 %v16975_v56  ;;  %v17004_v50 = vld [vmem:[#allocation17 + $0x5b4] ss:$8 sps:$4 sm:$0xff]   ;;  %v17008_v56 = vld [vmem:[#allocation17 + $0x5c0] ss:$8 sps:$4 sm:$0xff]  }
 0x238   :  { %1845 = vmatprep.subr.bf16.mxu1 %v16941_v14  ;;  %v17023_v14 = vld [vmem:[#allocation17 + $0x900] ss:$8 sps:$4 sm:$0xff]  }
 0x23a   :  { %3018 = vmatpush1.bf16.msra.mxu0 %v16973_v61 }
 0x23b   :  { %1846 = vmatpush1.bf16.msra.mxu1 %v16939_v35  ;;  %3019 = vmatprep.subr.bf16.mxu0 %v16981_v62  ;;  %v305_v35 = vshrl.u32 %v304_v46, 7  ;;  %v17016_v62 = vld [vmem:[#allocation17 + $0x5d4] ss:$8 sps:$4 sm:$0xff]  }
 0x23c   :  { %1847 = vmatprep.subr.bf16.mxu1 %v16947_v54  ;;  %v17010_v54 = vld [vmem:[#allocation17 + $0x5c4] ss:$8 sps:$4 sm:$0xff]  }
 0x23d   :  { %v20015_v61 = vsub.s32 1, %v305_v35 }
 0x23e   :  { %3020 = vmatpush1.bf16.msra.mxu0 %v16979_v1  ;;  %v17043_v1 = vld [vmem:[#allocation17 + $0x934] ss:$8 sps:$4 sm:$0xff]  }
 0x23f   :  { %1848 = vmatpush1.bf16.msra.mxu1 %v16945_v59  ;;  %3021 = vmatprep.subr.bf16.mxu0 %v16989_v4  ;;  %v302_v59 = vld [vmem:[#allocation25] sm:$0x3] }
 0x240   :  { %1849 = vmatprep.subr.bf16.mxu1 %v16954_v60  ;;  %v20013_v60 = vsub.s32 0, %v305_v35 }
 0x242   :  { %3022 = vmatpush1.bf16.msra.mxu0 %v16987_v6 }
 0x243   :  { %1850 = vmatpush1.bf16.msra.mxu1 %v16952_v0  ;;  %3023 = vmatprep.subr.bf16.mxu0 %v16995_v9  ;;  %v17035_v0 = vld [vmem:[#allocation17 + $0x920] ss:$8 sps:$4 sm:$0xff]   ;;  %v307_v9 = vrot.slane %v302_v59, %v20013_v60 }
 0x244   :  { %1851 = vmatprep.subr.bf16.mxu1 %v16960_v58  ;;  %v20003_v51 = vpop.f32.mrb[0].mxu0 }
 0x245   :  { %v20005_v29 = vpop.f32.mrb[1].mxu0 }
 0x246   :  { %3024 = vmatpush1.bf16.msra.mxu0 %v16993_v22  ;;  %v20007_v30 = vpop.f32.mrb[2].mxu0  ;;  %v17020_v22 = vld [vmem:[#allocation17 + $0x5e0] ss:$8 sps:$4 sm:$0xff]  }
 0x247   :  { %1852 = vmatpush1.bf16.msra.mxu1 %v16958_v5  ;;  %3025 = vmatprep.subr.bf16.mxu0 %v17001_v12  ;;  %v20009_v31 = vpop.f32.mrb[3].mxu0  ;;  %v17014_v5 = vld [vmem:[#allocation17 + $0x5d0] ss:$8 sps:$4 sm:$0xff]   ;;  %v17050_v12 = vld [vmem:[#allocation17 + $0x944] ss:$8 sps:$4 sm:$0xff]  }
 0x248   :  { %1853 = vmatprep.subr.bf16.mxu1 %v16966_v48  ;;  %v14876_v48 = vcombine.low %v19991_v13, %v19943_v8 }
 0x24a   :  { %3026 = vmatpush1.bf16.msra.mxu0 %v16999_v49  ;;  %v2775_v8 = vrot.slane %v14876_v48, 3  ;;  %v17028_v49 = vld [vmem:[#allocation17 + $0x5f4] ss:$8 sps:$4 sm:$0xff]   ;;  %v17064_v48 = vld [vmem:[#allocation17 + $0x650] ss:$8 sps:$4 sm:$0xff]  }
 0x24b   :  { %1854 = vmatpush1.bf16.msra.mxu1 %v16964_v11  ;;  %3027 = vmatprep.subr.bf16.mxu0 %v17007_v28  ;;  %v17022_v11 = vld [vmem:[#allocation17 + $0x5e4] ss:$8 sps:$4 sm:$0xff]  }
 0x24c   :  { %1855 = vmatprep.subr.bf16.mxu1 %v16972_v18  ;;  %v311_v18 = vrot.slane %v302_v59, %v20015_v61  ;;  %v2777_v33 = vsel %vm20906_vm6, %v2775_v8, %v2776_v20  ;;  %v20055_v20 = vld [vmem:[#allocation8] sm:$0xff] }
 0x24e   :  { %3028 = vmatpush1.bf16.msra.mxu0 %v17005_v36 }
 0x24f   :  { %1856 = vmatpush1.bf16.msra.mxu1 %v16970_v23  ;;  %3029 = vmatprep.subr.bf16.mxu0 %v17013_v2  ;;  %v17034_v2 = vld [vmem:[#allocation17 + $0x604] ss:$8 sps:$4 sm:$0xff]  }
 0x250   :  { %1857 = vmatprep.subr.bf16.mxu1 %v16978_v24 }
 0x252   :  { %3030 = vmatpush1.bf16.msra.mxu0 %v17011_v57  ;;  %v17061_v57 = vld [vmem:[#allocation17 + $0x960] ss:$8 sps:$4 sm:$0xff]  }
 0x253   :  { %1858 = vmatpush1.bf16.msra.mxu1 %v16976_v52  ;;  %3031 = vmatprep.subr.bf16.mxu0 %v17019_v42  ;;  %v17026_v52 = vld [vmem:[#allocation17 + $0x5f0] ss:$8 sps:$4 sm:$0xff]  }
 0x254   :  { %2207 = vmatprep.subr.bf16.mxu1 %v16986_v34  ;;  %v17057_v34 = vld [vmem:[#allocation17 + $0x954] ss:$8 sps:$4 sm:$0xff]   ;;  %v17038_v42 = vld [vmem:[#allocation17 + $0x610] ss:$8 sps:$4 sm:$0xff]  }
 0x256   :  { %1860 = vmatmul.mubr.bf16.vlgmr.msra.gmra.mrb[12].mxu1 %v1567_v37  ;;  %3032 = vmatpush1.bf16.msra.mxu0 %v17017_v45  ;;  %v17055_v37 = vld [vmem:[#allocation17 + $0x950] ss:$8 sps:$4 sm:$0xff]   ;;  %v2720_v45 = vld [vmem:[#allocation7 + $0x8] sm:$0x8] }
 0x257   :  { %2208 = vmatpush1.bf16.msra.mxu1 %v16984_v38  ;;  %2239 = vmatprep.mubr.bf16.mxu1 %v19977_v16  ;;  %v17037_v16 = vld [vmem:[#allocation17 + $0x924] ss:$8 sps:$4 sm:$0xff]   ;;  %v17032_v38 = vld [vmem:[#allocation17 + $0x600] ss:$8 sps:$4 sm:$0xff]  }
 0x258   :  { %2209 = vmatprep.subr.bf16.mxu1 %v16992_v40  ;;  %3033 = vmatprep.subr.bf16.mxu0 %v17025_v47  ;;  %v17040_v40 = vld [vmem:[#allocation17 + $0x614] ss:$8 sps:$4 sm:$0xff]   ;;  %v17044_v47 = vld [vmem:[#allocation17 + $0x620] ss:$8 sps:$4 sm:$0xff]  }
 0x25a   :  { %3034 = vmatpush1.bf16.msra.mxu0 %v17023_v14 }
 0x25b   :  { %2210 = vmatpush1.bf16.msra.mxu1 %v16990_v43  ;;  %3035 = vmatprep.subr.bf16.mxu0 %v17031_v41  ;;  %v17067_v43 = vld [vmem:[#allocation17 + $0x970] ss:$8 sps:$4 sm:$0xff]  }
 0x25c   :  { %2211 = vmatprep.subr.bf16.mxu1 %v16998_v44  ;;  %v20017_v58 = vpop.f32.mrb[4].mxu0  ;;  %v17075_v44 = vld [vmem:[#allocation17 + $0x984] ss:$8 sps:$4 sm:$0xff]   ;;  %v17052_v41 = vld [vmem:[#allocation17 + $0x630] ss:$8 sps:$4 sm:$0xff]  }
 0x25d   :  { %v20019_v4 = vpop.f32.mrb[5].mxu0 }
 0x25e   :  { %3036 = vmatpush1.bf16.msra.mxu0 %v17029_v55  ;;  %v20023_v6 = vpop.f32.mrb[6].mxu0 }
 0x25f   :  { %2212 = vmatpush1.bf16.msra.mxu1 %v16996_v17  ;;  %3037 = vmatprep.subr.bf16.mxu0 %v17037_v16  ;;  %v20026_v15 = vpop.f32.mrb[7].mxu0  ;;  %v17073_v17 = vld [vmem:[#allocation17 + $0x980] ss:$8 sps:$4 sm:$0xff]   ;;  %v17060_v16 = vld [vmem:[#allocation17 + $0x644] ss:$8 sps:$4 sm:$0xff]  }
 0x260   :  { %2213 = vmatprep.subr.bf16.mxu1 %v17004_v50  ;;  %v17081_v50 = vld [vmem:[#allocation17 + $0x994] ss:$8 sps:$4 sm:$0xff]  }
 0x262   :  { %3038 = vmatpush1.bf16.msra.mxu0 %v17035_v0  ;;  %v17058_v0 = vld [vmem:[#allocation17 + $0x640] ss:$8 sps:$4 sm:$0xff]  }
 0x263   :  { %2214 = vmatpush1.bf16.msra.mxu1 %v17002_v53  ;;  %3039 = vmatprep.subr.bf16.mxu0 %v17043_v1  ;;  %v19021_v53 = vld [vmem:[#allocation7 + $0x14] sm:$0xf]  ;;  %v17066_v1 = vld [vmem:[#allocation17 + $0x654] ss:$8 sps:$4 sm:$0xff]  }
 0x264   :  { %2215 = vmatprep.subr.bf16.mxu1 %v17010_v54  ;;  %v14878_v35 = vcombine.low %v2720_v45, %v19021_v53  ;;  %v17119_v53 = vld [vmem:[#allocation19 + $0xc0] ss:$8 sps:$4 sm:$0xff]  }
 0x266   :  { %3040 = vmatpush1.bf16.msra.mxu0 %v17041_v19  ;;  %v2781_v59 = vrot.slane %v14878_v35, 3  ;;  %v17076_v19 = vld [vmem:[#allocation17 + $0x670] ss:$8 sps:$4 sm:$0xff]   ;;  %v17124_v35 = vld [vmem:[#allocation19 + $0xd4] ss:$8 sps:$4 sm:$0xff]  }
 0x267   :  { %2216 = vmatpush1.bf16.msra.mxu1 %v17008_v56  ;;  %3052 = vmatprep.subr.bf16.mxu0 %v17050_v12  ;;  %v17079_v56 = vld [vmem:[#allocation17 + $0x990] ss:$8 sps:$4 sm:$0xff]   ;;  %v17088_v12 = vld [vmem:[#allocation19 + $0x14] ss:$8 sps:$4 sm:$0xff]  }
 0x268   :  { %2217 = vmatprep.subr.bf16.mxu1 %v17016_v62  ;;  %v2782_v62 = vrot.slane %v19985_v7, 3  ;;  %v17084_v7 = vld [vmem:[#allocation19 + $0x4] ss:$8 sps:$4 sm:$0xff]  }
 0x269   :  { %v635_v21 = vpop.f32.mrb[0].mxu1  ;;  %3042 = vmatmul.mubr.bf16.vlgmr.msra.gmra.mrb[16].mxu0 %v2777_v33 }
 0x26a   :  { %v16292_v13 = vadd.f32 %v635_v21, %v307_v9  ;;  %v637_v23 = vpop.f32.mrb[1].mxu1  ;;  %3053 = vmatpush1.bf16.msra.mxu0 %v17048_v32  ;;  %3084 = vmatprep.mubr.bf16.mxu0 %v19982_v3  ;;  %v17054_v3 = vld [vmem:[#allocation17 + $0x634] ss:$8 sps:$4 sm:$0xff]   ;;  %v20057_v21 = vld [vmem:[#allocation8 + $0xc] sm:$0xff] }
 0x26b   :  { %v16302_v24 = vadd.f32 %v637_v23, %v311_v18  ;;  %v639_v39 = vpop.f32.mrb[2].mxu1  ;;  %2218 = vmatpush1.bf16.msra.mxu1 %v17014_v5  ;;  %3054 = vmatprep.subr.bf16.mxu0 %v17057_v34  ;;  %v2783_v5 = vsel %vm20906_vm6, %v2781_v59, %v2782_v62  ;;  %v20061_v8 = vcombine.high %v20055_v20, %v20057_v21  ;;  %v17091_v23 = vld [vmem:[#allocation19 + $0x24] ss:$8 sps:$4 sm:$0xff]   ;;  %v17125_v59 = vld [vmem:[#allocation19 + $0xe0] ss:$8 sps:$4 sm:$0xff]  }
 0x26c   :  { %v16312_v25 = vadd.f32 %v639_v39, %v307_v9  ;;  %v20031_v26 = vadd.f32 %v16292_v13, %v20003_v51  ;;  %v641_v27 = vpop.f32.mrb[3].mxu1  ;;  %2219 = vmatprep.subr.bf16.mxu1 %v17022_v11  ;;  %v17072_v9 = vld [vmem:[#allocation17 + $0x664] ss:$8 sps:$4 sm:$0xff]   ;;  %v17070_v11 = vld [vmem:[#allocation17 + $0x660] ss:$8 sps:$4 sm:$0xff]  }
 0x26d   :  { %v16322_v28 = vadd.f32 %v641_v27, %v311_v18  ;;  %v20034_v10 = vadd.f32 %v16302_v24, %v20005_v29  ;;  %v17063_v29 = vld [vmem:[#allocation17 + $0x964] ss:$8 sps:$4 sm:$0xff]   ;;  %v17078_v18 = vld [vmem:[#allocation17 + $0x674] ss:$8 sps:$4 sm:$0xff]   ;;  %v17086_v13 = vld [vmem:[#allocation19 + $0x10] ss:$8 sps:$4 sm:$0xff]  }
 0x26e   :  { %v20038_v36 = vadd.f32 %v16312_v25, %v20007_v30  ;;  %v17069_v30 = vld [vmem:[#allocation17 + $0x974] ss:$8 sps:$4 sm:$0xff]   ;;  %3055 = vmatpush1.bf16.msra.mxu0 %v17055_v37  ;;  %v17089_v24 = vld [vmem:[#allocation19 + $0x20] ss:$8 sps:$4 sm:$0xff]   ;;  %v17092_v25 = vld [vmem:[#allocation19 + $0x30] ss:$8 sps:$4 sm:$0xff]  }
 0x26f   :  { %v20041_v51 = vadd.f32 %v16322_v28, %v20009_v31  ;;  %2220 = vmatpush1.bf16.msra.mxu1 %v17020_v22  ;;  %3056 = vmatprep.subr.bf16.mxu0 %v17063_v29  ;;  %v17046_v31 = vld [vmem:[#allocation17 + $0x624] ss:$8 sps:$4 sm:$0xff]   ;;  %v17082_v22 = vld [vmem:[#allocation19] ss:$8 sps:$4 sm:$0xff]   ;;  %v17094_v39 = vld [vmem:[#allocation19 + $0x34] ss:$8 sps:$4 sm:$0xff]  }
 0x270   :  { %2221 = vmatprep.subr.bf16.mxu1 %v17028_v49  ;;  %v17097_v27 = vld [vmem:[#allocation19 + $0x44] ss:$8 sps:$4 sm:$0xff]   ;;  %v17095_v49 = vld [vmem:[#allocation19 + $0x40] ss:$8 sps:$4 sm:$0xff]   ;;  %v17100_v28 = vld [vmem:[#allocation19 + $0x54] ss:$8 sps:$4 sm:$0xff]  }
 0x271   :  { %v17130_v62 = vld [vmem:[#allocation19 + $0xf4] ss:$8 sps:$4 sm:$0xff]  }
 0x272   :  { %3057 = vmatpush1.bf16.msra.mxu0 %v17061_v57 }
 0x273   :  { %2222 = vmatpush1.bf16.msra.mxu1 %v17026_v52  ;;  %3058 = vmatprep.subr.bf16.mxu0 %v17069_v30  ;;  %v17098_v52 = vld [vmem:[#allocation19 + $0x50] ss:$8 sps:$4 sm:$0xff]  }
 0x274   :  { %2223 = vmatprep.subr.bf16.mxu1 %v17034_v2  ;;  %v20044_v46 = vpop.f32.mrb[8].mxu0  ;;  %v17101_v2 = vld [vmem:[#allocation19 + $0x60] ss:$8 sps:$4 sm:$0xff]  }
 0x275   :  { %v20046_v14 = vpop.f32.mrb[9].mxu0 }
 0x276   :  { %3059 = vmatpush1.bf16.msra.mxu0 %v17067_v43  ;;  %v20048_v54 = vpop.f32.mrb[10].mxu0 }
 0x277   :  { %2224 = vmatpush1.bf16.msra.mxu1 %v17032_v38  ;;  %3060 = vmatprep.subr.bf16.mxu0 %v17075_v44  ;;  %v20050_v55 = vpop.f32.mrb[11].mxu0 }
 0x278   :  { %2225 = vmatprep.subr.bf16.mxu1 %v17040_v40 }
 0x27a   :  { %3061 = vmatpush1.bf16.msra.mxu0 %v17073_v17  ;;  %v17115_v17 = vld [vmem:[#allocation19 + $0xa4] ss:$8 sps:$4 sm:$0xff]  }
 0x27b   :  { %2226 = vmatpush1.bf16.msra.mxu1 %v17038_v42  ;;  %3062 = vmatprep.subr.bf16.mxu0 %v17081_v50  ;;  %v17106_v42 = vld [vmem:[#allocation19 + $0x74] ss:$8 sps:$4 sm:$0xff]  }
 0x27c   :  { %2227 = vmatprep.subr.bf16.mxu1 %v17046_v31  ;;  %v17118_v50 = vld [vmem:[#allocation19 + $0xb4] ss:$8 sps:$4 sm:$0xff]  }
 0x27e   :  { %3063 = vmatpush1.bf16.msra.mxu0 %v17079_v56  ;;  %v17127_v56 = vld [vmem:[#allocation19 + $0xe4] ss:$8 sps:$4 sm:$0xff]  }
 0x27f   :  { %2228 = vmatpush1.bf16.msra.mxu1 %v17044_v47  ;;  %v17109_v47 = vld [vmem:[#allocation19 + $0x84] ss:$8 sps:$4 sm:$0xff]  }
 0x280   :  { %2229 = vmatprep.subr.bf16.mxu1 %v17054_v3  ;;  %v17107_v3 = vld [vmem:[#allocation19 + $0x80] ss:$8 sps:$4 sm:$0xff]  }
 0x281   :  { %14923 = vmatmul.mubr.msk.bf16.vlgmr.msra.gmra.mrb[16].mxu0 %vm20911_vm0, %v2783_v5  ;;  %v20091_v5 = vcombine.low %v20055_v20, %v20057_v21  ;;  %v17142_v20 = vld [vmem:[#allocation19 + $0x130] ss:$8 sps:$4 sm:$0xff]   ;;  %v17147_v21 = vld [vmem:[#allocation19 + $0x144] ss:$8 sps:$4 sm:$0xff]  }
 0x283   :  { %2230 = vmatpush1.bf16.msra.mxu1 %v17052_v41  ;;  %v17116_v41 = vld [vmem:[#allocation19 + $0xb0] ss:$8 sps:$4 sm:$0xff]  }
 0x284   :  { %2231 = vmatprep.subr.bf16.mxu1 %v17060_v16  ;;  %v17122_v16 = vld [vmem:[#allocation19 + $0xd0] ss:$8 sps:$4 sm:$0xff]  }
 0x287   :  { %2232 = vmatpush1.bf16.msra.mxu1 %v17058_v0  ;;  %v17128_v0 = vld [vmem:[#allocation19 + $0xf0] ss:$8 sps:$4 sm:$0xff]  }
 0x288   :  { %2233 = vmatprep.subr.bf16.mxu1 %v17066_v1  ;;  %v17135_v1 = vld [vmem:[#allocation19 + $0x104] ss:$8 sps:$4 sm:$0xff]  }
 0x28b   :  { %2234 = vmatpush1.bf16.msra.mxu1 %v17064_v48  ;;  %v17133_v48 = vld [vmem:[#allocation19 + $0x100] ss:$8 sps:$4 sm:$0xff]  }
 0x28c   :  { %2235 = vmatprep.subr.bf16.mxu1 %v17072_v9  ;;  %v20067_v38 = vpop.f32.mrb[12].mxu0  ;;  %v17138_v9 = vld [vmem:[#allocation19 + $0x114] ss:$8 sps:$4 sm:$0xff]  }
 0x28d   :  { %v20073_v31 = vpop.f32.mrb[13].mxu0 }
 0x28f   :  { %2236 = vmatpush1.bf16.msra.mxu1 %v17070_v11  ;;  %v17136_v11 = vld [vmem:[#allocation19 + $0x110] ss:$8 sps:$4 sm:$0xff]  }
 0x290   :  { %2237 = vmatprep.subr.bf16.mxu1 %v17078_v18  ;;  %v17141_v18 = vld [vmem:[#allocation19 + $0x124] ss:$8 sps:$4 sm:$0xff]  }
 0x293   :  { %2238 = vmatpush1.bf16.msra.mxu1 %v17076_v19  ;;  %v20094_v19 = vld [vmem:[#allocation2] sm:$0xff] }
 0x294   :  { %3409 = vmatprep.subr.bf16.mxu1 %v17084_v7  ;;  %v17139_v7 = vld [vmem:[#allocation19 + $0x120] ss:$8 sps:$4 sm:$0xff]  }
 0x296   :  { %2240 = vmatmul.mubr.bf16.vlgmr.msra.gmra.mrb[16].mxu1 %v19980_v63  ;;  %v17103_v63 = vld [vmem:[#allocation19 + $0x64] ss:$8 sps:$4 sm:$0xff]  }
 0x297   :  { %3410 = vmatpush1.bf16.msra.mxu1 %v17082_v22  ;;  %3441 = vmatprep.mubr.bf16.mxu1 %v20061_v8  ;;  %v17144_v22 = vld [vmem:[#allocation19 + $0x134] ss:$8 sps:$4 sm:$0xff]  }
 0x298   :  { %3411 = vmatprep.subr.bf16.mxu1 %v17088_v12  ;;  %v20097_v12 = vld [vmem:[#allocation8 + $0x18] sm:$0x11] }
 0x29b   :  { %3412 = vmatpush1.bf16.msra.mxu1 %v17086_v13  ;;  %v20101_v13 = vcombine.high %v20097_v12, %v20097_v12 }
 0x29c   :  { %3413 = vmatprep.subr.bf16.mxu1 %v17091_v23  ;;  %v3586_v23 = vshll.u32 %v20061_v8, 16 }
 0x29f   :  { %3414 = vmatpush1.bf16.msra.mxu1 %v17089_v24  ;;  %v17145_v24 = vld [vmem:[#allocation19 + $0x140] ss:$8 sps:$4 sm:$0xff]  }
 0x2a0   :  { %3415 = vmatprep.subr.bf16.mxu1 %v17094_v39  ;;  %v17150_v39 = vld [vmem:[#allocation19 + $0x154] ss:$8 sps:$4 sm:$0xff]  }
 0x2a3   :  { %3416 = vmatpush1.bf16.msra.mxu1 %v17092_v25  ;;  %v3584_v25 = vshrl.u32 %v20061_v8, 16 }
 0x2a4   :  { %3417 = vmatprep.subr.bf16.mxu1 %v17097_v27  ;;  %v3588_v27 = vrot.slane %v3586_v23, 1  ;;  %v17194_v23 = vld [vmem:[#allocation19 + $0x240] ss:$8 sps:$4 sm:$0xff]  }
 0x2a7   :  { %3418 = vmatpush1.bf16.msra.mxu1 %v17095_v49  ;;  %v3591_v49 = vshll.u32 %v20101_v13, 16 }
 0x2a8   :  { %3419 = vmatprep.subr.bf16.mxu1 %v17100_v28  ;;  %v17148_v28 = vld [vmem:[#allocation19 + $0x150] ss:$8 sps:$4 sm:$0xff]  }
 0x2a9   :  { %v1059_v32 = vpop.f32.mrb[4].mxu1 }
 0x2aa   :  { %v16294_v33 = vadd.f32 %v20031_v26, %v1059_v32  ;;  %v1061_v34 = vpop.f32.mrb[5].mxu1  ;;  %v3593_v32 = vrot.slane %v3591_v49, 1  ;;  %v17197_v49 = vld [vmem:[#allocation19 + $0x250] ss:$8 sps:$4 sm:$0xff]  }
 0x2ab   :  { %v16304_v37 = vadd.f32 %v20034_v10, %v1061_v34  ;;  %v1063_v29 = vpop.f32.mrb[6].mxu1  ;;  %3420 = vmatpush1.bf16.msra.mxu1 %v17098_v52  ;;  %v20079_v10 = vpop.f32.mrb[14].mxu0  ;;  %v17153_v52 = vld [vmem:[#allocation19 + $0x164] ss:$8 sps:$4 sm:$0xff]   ;;  %v17151_v34 = vld [vmem:[#allocation19 + $0x160] ss:$8 sps:$4 sm:$0xff]  }
 0x2ac   :  { %v16314_v40 = vadd.f32 %v20038_v36, %v1063_v29  ;;  %v20071_v57 = vadd.f32 %v16294_v33, %v20017_v58  ;;  %v1065_v30 = vpop.f32.mrb[7].mxu1  ;;  %3421 = vmatprep.subr.bf16.mxu1 %v17103_v63  ;;  %v20084_v45 = vpop.f32.mrb[15].mxu0  ;;  %v17104_v36 = vld [vmem:[#allocation19 + $0x70] ss:$8 sps:$4 sm:$0xff]   ;;  %v3589_v63 = vor.u32 %v3588_v27, %v3584_v25 }
 0x2ad   :  { %v16324_v26 = vadd.f32 %v20041_v51, %v1065_v30  ;;  %v20077_v43 = vadd.f32 %v16304_v37, %v20019_v4  ;;  %v17112_v51 = vld [vmem:[#allocation19 + $0x94] ss:$8 sps:$4 sm:$0xff]   ;;  %v17110_v4 = vld [vmem:[#allocation19 + $0x90] ss:$8 sps:$4 sm:$0xff]  }
 0x2ae   :  { %v20082_v44 = vadd.f32 %v16314_v40, %v20023_v6  ;;  %v17113_v6 = vld [vmem:[#allocation19 + $0xa0] ss:$8 sps:$4 sm:$0xff]  }
 0x2af   :  { %v20087_v58 = vadd.f32 %v16324_v26, %v20026_v15  ;;  %3422 = vmatpush1.bf16.msra.mxu1 %v17101_v2  ;;  %v17121_v15 = vld [vmem:[#allocation19 + $0xc4] ss:$8 sps:$4 sm:$0xff]  }
 0x2b0   :  { %3423 = vmatprep.subr.bf16.mxu1 %v17106_v42  ;;  %v17154_v2 = vld [vmem:[#allocation8 + $0x8] ss:$12 sps:$4 sm:$0xff]  }
 0x2b3   :  { %3424 = vmatpush1.bf16.msra.mxu1 %v17104_v36  ;;  %v17157_v36 = vld [vmem:[#allocation19 + $0x174] ss:$8 sps:$4 sm:$0xff]  }
 0x2b4   :  { %3425 = vmatprep.subr.bf16.mxu1 %v17109_v47  ;;  %v3594_v47 = vsel %vm20910_vm1, %v3589_v63, %v3593_v32 }
 0x2b7   :  { %3426 = vmatpush1.bf16.msra.mxu1 %v17107_v3 }
 0x2b8   :  { %3427 = vmatprep.subr.bf16.mxu1 %v17112_v51 }
 0x2bb   :  { %3428 = vmatpush1.bf16.msra.mxu1 %v17110_v4  ;;  %v17158_v4 = vld [vmem:[#allocation19 + $0x180] ss:$8 sps:$4 sm:$0xff]  }
 0x2bc   :  { %3429 = vmatprep.subr.bf16.mxu1 %v17115_v17  ;;  %v17163_v17 = vld [vmem:[#allocation19 + $0x194] ss:$8 sps:$4 sm:$0xff]  }
 0x2bf   :  { %3430 = vmatpush1.bf16.msra.mxu1 %v17113_v6  ;;  %v17169_v6 = vld [vmem:[#allocation19 + $0x1b4] ss:$8 sps:$4 sm:$0xff]  }
 0x2c0   :  { %3431 = vmatprep.subr.bf16.mxu1 %v17118_v50  ;;  %v17172_v50 = vld [vmem:[#allocation19 + $0x1c4] ss:$8 sps:$4 sm:$0xff]  }
 0x2c3   :  { %3432 = vmatpush1.bf16.msra.mxu1 %v17116_v41  ;;  %v17170_v41 = vld [vmem:[#allocation19 + $0x1c0] ss:$8 sps:$4 sm:$0xff]  }
 0x2c4   :  { %3433 = vmatprep.subr.bf16.mxu1 %v17121_v15  ;;  %v17175_v15 = vld [vmem:[#allocation19 + $0x1d4] ss:$8 sps:$4 sm:$0xff]  }
 0x2c7   :  { %3434 = vmatpush1.bf16.msra.mxu1 %v17119_v53  ;;  %v17173_v53 = vld [vmem:[#allocation19 + $0x1d0] ss:$8 sps:$4 sm:$0xff]  }
 0x2c8   :  { %3435 = vmatprep.subr.bf16.mxu1 %v17124_v35  ;;  %v17178_v35 = vld [vmem:[#allocation19 + $0x1e4] ss:$8 sps:$4 sm:$0xff]  }
 0x2cb   :  { %3436 = vmatpush1.bf16.msra.mxu1 %v17122_v16  ;;  %v17176_v16 = vld [vmem:[#allocation19 + $0x1e0] ss:$8 sps:$4 sm:$0xff]  }
 0x2cc   :  { %3437 = vmatprep.subr.bf16.mxu1 %v17127_v56  ;;  %v17181_v56 = vld [vmem:[#allocation19 + $0x1f4] ss:$8 sps:$4 sm:$0xff]  }
 0x2cf   :  { %3438 = vmatpush1.bf16.msra.mxu1 %v17125_v59  ;;  %v17179_v59 = vld [vmem:[#allocation19 + $0x1f0] ss:$8 sps:$4 sm:$0xff]  }
 0x2d0   :  { %3439 = vmatprep.subr.bf16.mxu1 %v17130_v62  ;;  %v17184_v62 = vld [vmem:[#allocation19 + $0x204] ss:$8 sps:$4 sm:$0xff]  }
 0x2d3   :  { %3440 = vmatpush1.bf16.msra.mxu1 %v17128_v0  ;;  %v17182_v0 = vld [vmem:[#allocation19 + $0x200] ss:$8 sps:$4 sm:$0xff]  }
 0x2d4   :  { %3452 = vmatprep.subr.bf16.mxu1 %v17135_v1  ;;  %v17187_v1 = vld [vmem:[#allocation19 + $0x214] ss:$8 sps:$4 sm:$0xff]  }
 0x2d6   :  { %3442 = vmatmul.mubr.bf16.vlgmr.msra.gmra.mrb[20].mxu1 %v20091_v5 }
 0x2d7   :  { %3453 = vmatpush1.bf16.msra.mxu1 %v17133_v48  ;;  %3484 = vmatprep.mubr.bf16.mxu1 %v20094_v19  ;;  %v17185_v48 = vld [vmem:[#allocation19 + $0x210] ss:$8 sps:$4 sm:$0xff]  }
 0x2d8   :  { %3454 = vmatprep.subr.bf16.mxu1 %v17138_v9  ;;  %v17190_v9 = vld [vmem:[#allocation19 + $0x224] ss:$8 sps:$4 sm:$0xff]  }
 0x2db   :  { %3455 = vmatpush1.bf16.msra.mxu1 %v17136_v11  ;;  %v17188_v11 = vld [vmem:[#allocation19 + $0x220] ss:$8 sps:$4 sm:$0xff]  }
 0x2dc   :  { %3456 = vmatprep.subr.bf16.mxu1 %v17141_v18  ;;  %v17193_v18 = vld [vmem:[#allocation19 + $0x234] ss:$8 sps:$4 sm:$0xff]  }
 0x2df   :  { %3457 = vmatpush1.bf16.msra.mxu1 %v17139_v7  ;;  %v17191_v7 = vld [vmem:[#allocation19 + $0x230] ss:$8 sps:$4 sm:$0xff]  }
 0x2e0   :  { %3458 = vmatprep.subr.bf16.mxu1 %v17144_v22  ;;  %v17196_v22 = vld [vmem:[#allocation19 + $0x244] ss:$8 sps:$4 sm:$0xff]  }
 0x2e3   :  { %3459 = vmatpush1.bf16.msra.mxu1 %v17142_v20  ;;  %v20126_v20 = vcombine.low %v20097_v12, %v20097_v12 }
 0x2e4   :  { %3460 = vmatprep.subr.bf16.mxu1 %v17147_v21  ;;  %v3574_v21 = vshll.u32 %v20091_v5, 16 }
 0x2e5   :  { %v3579_v27 = vshll.u32 %v20126_v20, 16 }
 0x2e6   :  { %v3576_v25 = vrot.slane %v3574_v21, 1  ;;  %v17239_v21 = vld [vmem:[#allocation19 + $0x314] ss:$8 sps:$4 sm:$0xff]  }
 0x2e7   :  { %3461 = vmatpush1.bf16.msra.mxu1 %v17145_v24  ;;  %v17199_v24 = vld [vmem:[#allocation19 + $0x254] ss:$8 sps:$4 sm:$0xff]   ;;  %v3581_v63 = vrot.slane %v3579_v27, 1 }
 0x2e8   :  { %3462 = vmatprep.subr.bf16.mxu1 %v17150_v39  ;;  %v3572_v39 = vshrl.u32 %v20091_v5, 16 }
 0x2e9   :  { %v1439_v33 = vpop.f32.mrb[8].mxu1 }
 0x2ea   :  { %v16296_v37 = vadd.f32 %v20071_v57, %v1439_v33  ;;  %v1441_v29 = vpop.f32.mrb[9].mxu1 }
 0x2eb   :  { %v16306_v40 = vadd.f32 %v20077_v43, %v1441_v29  ;;  %v1443_v30 = vpop.f32.mrb[10].mxu1  ;;  %3463 = vmatpush1.bf16.msra.mxu1 %v17148_v28  ;;  %v17203_v28 = vld [vmem:[#allocation19 + $0x264] ss:$8 sps:$4 sm:$0xff]   ;;  %v17207_v29 = vld [vmem:[#allocation19 + $0x274] ss:$8 sps:$4 sm:$0xff]  }
 0x2ec   :  { %v16316_v8 = vadd.f32 %v20082_v44, %v1443_v30  ;;  %v20110_v42 = vadd.f32 %v16296_v37, %v20044_v46  ;;  %v1445_v26 = vpop.f32.mrb[11].mxu1  ;;  %3832 = vmatprep.subr.bf16.mxu1 %v17153_v52  ;;  %v17155_v46 = vld [vmem:[#allocation19 + $0x170] ss:$8 sps:$4 sm:$0xff]   ;;  %v17160_v44 = vld [vmem:[#allocation19 + $0x184] ss:$8 sps:$4 sm:$0xff]   ;;  %v3577_v52 = vor.u32 %v3576_v25, %v3572_v39 }
 0x2ed   :  { %v16326_v3 = vadd.f32 %v20087_v58, %v1445_v26  ;;  %v20115_v51 = vadd.f32 %v16306_v40, %v20046_v14  ;;  %v17161_v14 = vld [vmem:[#allocation19 + $0x190] ss:$8 sps:$4 sm:$0xff]   ;;  %v17166_v58 = vld [vmem:[#allocation19 + $0x1a4] ss:$8 sps:$4 sm:$0xff]   ;;  %v17201_v37 = vld [vmem:[#allocation19 + $0x260] ss:$8 sps:$4 sm:$0xff]  }
 0x2ee   :  { %v20118_v57 = vadd.f32 %v16316_v8, %v20048_v54  ;;  %14971 = vmatmul.mubr.msk.bf16.vlgmr.msra.gmra.mrb[20].mxu1 %vm20911_vm0, %v17154_v2  ;;  %v17164_v54 = vld [vmem:[#allocation19 + $0x1a0] ss:$8 sps:$4 sm:$0xff]   ;;  %v3582_v5 = vsel %vm20910_vm1, %v3577_v52, %v3581_v63  ;;  %v17245_v25 = vld [vmem:[#allocation19 + $0x334] ss:$8 sps:$4 sm:$0xff]   ;;  %v17243_v63 = vld [vmem:[#allocation19 + $0x330] ss:$8 sps:$4 sm:$0xff]  }
 0x2ef   :  { %v20122_v43 = vadd.f32 %v16326_v3, %v20050_v55  ;;  %3833 = vmatpush1.bf16.msra.mxu1 %v17151_v34  ;;  %3864 = vmatprep.mubr.bf16.mxu1 %v3594_v47  ;;  %v17167_v55 = vld [vmem:[#allocation19 + $0x1b0] ss:$8 sps:$4 sm:$0xff]   ;;  %v17210_v3 = vld [vmem:[#allocation19 + $0x284] ss:$8 sps:$4 sm:$0xff]   ;;  %v17240_v39 = vld [vmem:[#allocation19 + $0x320] ss:$8 sps:$4 sm:$0xff]  }
 0x2f0   :  { %3834 = vmatprep.subr.bf16.mxu1 %v17157_v36  ;;  %v17205_v36 = vld [vmem:[#allocation19 + $0x270] ss:$8 sps:$4 sm:$0xff]  }
 0x2f3   :  { %3835 = vmatpush1.bf16.msra.mxu1 %v17155_v46 }
 0x2f4   :  { %3836 = vmatprep.subr.bf16.mxu1 %v17160_v44  ;;  %v20152_v44 = vld [vmem:[#allocation8 + $0x20] ss:$0 sps:$4 sm:$0x11]  }
 0x2f7   :  { %3837 = vmatpush1.bf16.msra.mxu1 %v17158_v4  ;;  %v17216_v4 = vld [vmem:[#allocation19 + $0x2a4] ss:$8 sps:$4 sm:$0xff]  }
 0x2f8   :  { %3838 = vmatprep.subr.bf16.mxu1 %v17163_v17  ;;  %v20154_v17 = vld [vmem:[#allocation8] sm:$0xee] }
 0x2fb   :  { %3839 = vmatpush1.bf16.msra.mxu1 %v17161_v14  ;;  %v17219_v14 = vld [vmem:[#allocation19 + $0x2b4] ss:$8 sps:$4 sm:$0xff]  }
 0x2fc   :  { %3840 = vmatprep.subr.bf16.mxu1 %v17166_v58 }
 0x2ff   :  { %3841 = vmatpush1.bf16.msra.mxu1 %v17164_v54 }
 0x300   :  { %3842 = vmatprep.subr.bf16.mxu1 %v17169_v6  ;;  %v3603_v6 = vshll.u32 %v20152_v44, 16 }
 0x303   :  { %3843 = vmatpush1.bf16.msra.mxu1 %v17167_v55  ;;  %v20157_v55 = vld [vmem:[#allocation8 + $0xc] sm:$0xff] }
 0x304   :  { %3844 = vmatprep.subr.bf16.mxu1 %v17172_v50  ;;  %v20161_v50 = vcombine.high %v20154_v17, %v20157_v55 }
 0x307   :  { %3845 = vmatpush1.bf16.msra.mxu1 %v17170_v41  ;;  %v17217_v41 = vld [vmem:[#allocation19 + $0x2b0] ss:$8 sps:$4 sm:$0xff]  }
 0x308   :  { %3846 = vmatprep.subr.bf16.mxu1 %v17175_v15  ;;  %v17222_v15 = vld [vmem:[#allocation19 + $0x2c4] ss:$8 sps:$4 sm:$0xff]  }
 0x30b   :  { %3847 = vmatpush1.bf16.msra.mxu1 %v17173_v53 }
 0x30c   :  { %3848 = vmatprep.subr.bf16.mxu1 %v17178_v35  ;;  %v3605_v35 = vrot.slane %v3603_v6, 1  ;;  %v17267_v6 = vld [vmem:[#allocation19 + $0x3b0] ss:$8 sps:$4 sm:$0xff]  }
 0x30f   :  { %3849 = vmatpush1.bf16.msra.mxu1 %v17176_v16  ;;  %v3980_v16 = vrot.slane %v20161_v50, 1 }
 0x310   :  { %3850 = vmatprep.subr.bf16.mxu1 %v17181_v56  ;;  %v3981_v56 = vrot.slane %v20101_v13, 1  ;;  %v17231_v13 = vld [vmem:[#allocation19 + $0x2f0] ss:$8 sps:$4 sm:$0xff]  }
 0x313   :  { %3851 = vmatpush1.bf16.msra.mxu1 %v17179_v59  ;;  %v17220_v59 = vld [vmem:[#allocation19 + $0x2c0] ss:$8 sps:$4 sm:$0xff]  }
 0x314   :  { %3852 = vmatprep.subr.bf16.mxu1 %v17184_v62 }
 0x317   :  { %3853 = vmatpush1.bf16.msra.mxu1 %v17182_v0  ;;  %v17227_v0 = vld [vmem:[#allocation19 + $0x2d4] ss:$8 sps:$4 sm:$0xff]  }
 0x318   :  { %3854 = vmatprep.subr.bf16.mxu1 %v17187_v1  ;;  %v3982_v1 = vsel %vm20909_vm2, %v3980_v16, %v3981_v56  ;;  %v17277_v56 = vld [vmem:[#allocation19 + $0x3d4] ss:$8 sps:$4 sm:$0xff]  }
 0x31b   :  { %3855 = vmatpush1.bf16.msra.mxu1 %v17185_v48  ;;  %v17225_v48 = vld [vmem:[#allocation19 + $0x2d0] ss:$8 sps:$4 sm:$0xff]  }
 0x31c   :  { %3856 = vmatprep.subr.bf16.mxu1 %v17190_v9  ;;  %v17230_v9 = vld [vmem:[#allocation19 + $0x2e4] ss:$8 sps:$4 sm:$0xff]  }
 0x31f   :  { %3857 = vmatpush1.bf16.msra.mxu1 %v17188_v11  ;;  %v17228_v11 = vld [vmem:[#allocation19 + $0x2e0] ss:$8 sps:$4 sm:$0xff]  }
 0x320   :  { %3858 = vmatprep.subr.bf16.mxu1 %v17193_v18  ;;  %v17233_v18 = vld [vmem:[#allocation19 + $0x2f4] ss:$8 sps:$4 sm:$0xff]  }
 0x323   :  { %3859 = vmatpush1.bf16.msra.mxu1 %v17191_v7  ;;  %v17236_v7 = vld [vmem:[#allocation19 + $0x304] ss:$8 sps:$4 sm:$0xff]  }
 0x324   :  { %3860 = vmatprep.subr.bf16.mxu1 %v17196_v22  ;;  %v17234_v22 = vld [vmem:[#allocation19 + $0x300] ss:$8 sps:$4 sm:$0xff]  }
 0x327   :  { %3861 = vmatpush1.bf16.msra.mxu1 %v17194_v23  ;;  %v17237_v23 = vld [vmem:[#allocation19 + $0x310] ss:$8 sps:$4 sm:$0xff]  }
 0x328   :  { %3862 = vmatprep.subr.bf16.mxu1 %v17199_v24  ;;  %v17242_v24 = vld [vmem:[#allocation19 + $0x324] ss:$8 sps:$4 sm:$0xff]  }
 0x329   :  { %v1861_v12 = vpop.f32.mrb[12].mxu1 }
 0x32a   :  { %v16298_v32 = vadd.f32 %v20110_v42, %v1861_v12  ;;  %v1863_v33 = vpop.f32.mrb[13].mxu1  ;;  %v17248_v12 = vld [vmem:[#allocation19 + $0x344] ss:$8 sps:$4 sm:$0xff]  }
 0x32b   :  { %v16308_v34 = vadd.f32 %v20115_v51, %v1863_v33  ;;  %v1865_v2 = vpop.f32.mrb[14].mxu1  ;;  %3863 = vmatpush1.bf16.msra.mxu1 %v17197_v49  ;;  %v17251_v33 = vld [vmem:[#allocation19 + $0x354] ss:$8 sps:$4 sm:$0xff]  }
 0x32c   :  { %v16318_v40 = vadd.f32 %v20118_v57, %v1865_v2  ;;  %v20136_v30 = vadd.f32 %v16298_v32, %v20067_v38  ;;  %v1867_v8 = vpop.f32.mrb[15].mxu1  ;;  %3875 = vmatprep.subr.bf16.mxu1 %v17203_v28  ;;  %v3500_v38 = vld [vmem:[#allocation8 + $0x8] sm:$0xf]  ;;  %v20149_v57 = vld [vmem:[#allocation8 + $0x14] sm:$0xf] }
 0x32d   :  { %v16328_v26 = vadd.f32 %v20122_v43, %v1867_v8  ;;  %v20140_v42 = vadd.f32 %v16308_v34, %v20073_v31  ;;  %v17208_v43 = vld [vmem:[#allocation19 + $0x280] ss:$8 sps:$4 sm:$0xff]   ;;  %v17213_v31 = vld [vmem:[#allocation19 + $0x294] ss:$8 sps:$4 sm:$0xff]   ;;  %v14974_v46 = vcombine.low %v3500_v38, %v20149_v57  ;;  %v17249_v34 = vld [vmem:[#allocation19 + $0x350] ss:$8 sps:$4 sm:$0xff]  }
 0x32e   :  { %v20143_v47 = vadd.f32 %v16318_v40, %v20079_v10  ;;  %3865 = vmatmul.mubr.bf16.vlgmr.msra.gmra.mrb[20].mxu1 %v3582_v5  ;;  %v17211_v10 = vld [vmem:[#allocation19 + $0x290] ss:$8 sps:$4 sm:$0xff]   ;;  %v17246_v32 = vld [vmem:[#allocation19 + $0x340] ss:$8 sps:$4 sm:$0xff]   ;;  %v17254_v2 = vld [vmem:[#allocation19 + $0x364] ss:$8 sps:$4 sm:$0xff]  }
 0x32f   :  { %v20146_v51 = vadd.f32 %v16328_v26, %v20084_v45  ;;  %3876 = vmatpush1.bf16.msra.mxu1 %v17201_v37  ;;  %3907 = vmatprep.mubr.bf16.mxu1 %v20094_v19  ;;  %v3598_v45 = vshll.u32 %v14974_v46, 16  ;;  %v17214_v19 = vld [vmem:[#allocation19 + $0x2a0] ss:$8 sps:$4 sm:$0xff]   ;;  %v3596_v58 = vshrl.u32 %v14974_v46, 16 }
 0x330   :  { %3877 = vmatprep.subr.bf16.mxu1 %v17207_v29  ;;  %v17252_v26 = vld [vmem:[#allocation19 + $0x360] ss:$8 sps:$4 sm:$0xff]  }
 0x331   :  { %v3600_v54 = vrot.slane %v3598_v45, 1  ;;  %v17258_v45 = vld [vmem:[#allocation19 + $0x380] ss:$8 sps:$4 sm:$0xff]  }
 0x333   :  { %3878 = vmatpush1.bf16.msra.mxu1 %v17205_v36  ;;  %v3601_v53 = vor.u32 %v3600_v54, %v3596_v58  ;;  %v17257_v36 = vld [vmem:[#allocation19 + $0x374] ss:$8 sps:$4 sm:$0xff]   ;;  %v20182_v54 = vcombine.low %v20154_v17, %v20157_v55  ;;  %v17280_v17 = vld [vmem:[#allocation19 + $0x3e4] ss:$8 sps:$4 sm:$0xff]  }
 0x334   :  { %3879 = vmatprep.subr.bf16.mxu1 %v17210_v3  ;;  %v17269_v58 = vld [vmem:[#allocation19 + $0x3b4] ss:$8 sps:$4 sm:$0xff]  }
 0x335   :  { %v3606_v62 = vsel %vm20910_vm1, %v3601_v53, %v3605_v35  ;;  %v3978_v53 = vrot.slane %v20126_v20, 1  ;;  %v17271_v35 = vld [vmem:[#allocation19 + $0x3c0] ss:$8 sps:$4 sm:$0xff]   ;;  %v20187_v55 = vld [vmem:[#allocation2] sm:$0xff]  ;;  %vm5962_vm1 = vcmask 392192  }
 0x336   :  { %v17278_v20 = vld [vmem:[#allocation19 + $0x3e0] ss:$8 sps:$4 sm:$0xff]  }
 0x337   :  { %3880 = vmatpush1.bf16.msra.mxu1 %v17208_v43 }
 0x338   :  { %3881 = vmatprep.subr.bf16.mxu1 %v17213_v31 }
 0x33b   :  { %3882 = vmatpush1.bf16.msra.mxu1 %v17211_v10 }
 0x33c   :  { %3883 = vmatprep.subr.bf16.mxu1 %v17216_v4  ;;  %v17260_v4 = vld [vmem:[#allocation19 + $0x384] ss:$8 sps:$4 sm:$0xff]  }
 0x33f   :  { %3884 = vmatpush1.bf16.msra.mxu1 %v17214_v19  ;;  %v17263_v19 = vld [vmem:[#allocation19 + $0x394] ss:$8 sps:$4 sm:$0xff]  }
 0x340   :  { %3885 = vmatprep.subr.bf16.mxu1 %v17219_v14  ;;  %v17266_v14 = vld [vmem:[#allocation19 + $0x3a4] ss:$8 sps:$4 sm:$0xff]  }
 0x343   :  { %3886 = vmatpush1.bf16.msra.mxu1 %v17217_v41  ;;  %v17273_v41 = vld [vmem:[#allocation19 + $0x3c4] ss:$8 sps:$4 sm:$0xff]  }
 0x344   :  { %4211 = vmatprep.subr.bf16.mxu1 %v17222_v15  ;;  %v3977_v15 = vrot.slane %v20182_v54, 1 }
 0x346   :  { %15022 = vmatmul.mubr.msk.bf16.vlgmr.msra.gmra.mrb[20].mxu1 %vm20911_vm0, %v3606_v62  ;;  %v3979_v16 = vsel %vm20909_vm2, %v3977_v15, %v3978_v53  ;;  %v20190_v62 = vld [vmem:[#allocation8 + $0x18] sm:$0x33]  ;;  %v17329_v15 = vld [vmem:[#allocation19 + $0x4e4] ss:$8 sps:$4 sm:$0xff]   ;;  %v17327_v53 = vld [vmem:[#allocation19 + $0x4e0] ss:$8 sps:$4 sm:$0xff]  }
 0x347   :  { %4212 = vmatpush1.bf16.msra.mxu1 %v17220_v59  ;;  %4243 = vmatprep.mubr.bf16.mxu1 %v3982_v1  ;;  %v17275_v59 = vld [vmem:[#allocation19 + $0x3d0] ss:$8 sps:$4 sm:$0xff]   ;;  %v20194_v1 = vcombine.high %v20190_v62, %v20190_v62 }
 0x348   :  { %4213 = vmatprep.subr.bf16.mxu1 %v17227_v0  ;;  %v17283_v0 = vld [vmem:[#allocation19 + $0x3f4] ss:$8 sps:$4 sm:$0xff]  }
 0x34b   :  { %4214 = vmatpush1.bf16.msra.mxu1 %v17225_v48  ;;  %v17281_v48 = vld [vmem:[#allocation19 + $0x3f0] ss:$8 sps:$4 sm:$0xff]  }
 0x34c   :  { %4215 = vmatprep.subr.bf16.mxu1 %v17230_v9  ;;  %v17286_v9 = vld [vmem:[#allocation19 + $0x404] ss:$8 sps:$4 sm:$0xff]  }
 0x34f   :  { %4216 = vmatpush1.bf16.msra.mxu1 %v17228_v11  ;;  %v3923_v11 = vld [vmem:[#allocation8 + $0x8] sm:$0xe] }
 0x350   :  { %4217 = vmatprep.subr.bf16.mxu1 %v17233_v18  ;;  %v4374_v18 = vshrl.u32 %v20161_v50, 16 }
 0x353   :  { %4218 = vmatpush1.bf16.msra.mxu1 %v17231_v13  ;;  %v4377_v13 = vshll.u32 %v20161_v50, 16 }
 0x354   :  { %4219 = vmatprep.subr.bf16.mxu1 %v17236_v7  ;;  %v3086_v27 = vpop.f32.mrb[16].mxu0  ;;  %v4382_v7 = vshrl.u32 %v20194_v1, 16 }
 0x355   :  { %v3088_v49 = vpop.f32.mrb[17].mxu0 }
 0x356   :  { %v3090_v28 = vpop.f32.mrb[18].mxu0 }
 0x357   :  { %4220 = vmatpush1.bf16.msra.mxu1 %v17234_v22  ;;  %v3092_v52 = vpop.f32.mrb[19].mxu0  ;;  %v4385_v22 = vshll.u32 %v20194_v1, 16 }
 0x358   :  { %4221 = vmatprep.subr.bf16.mxu1 %v17239_v21  ;;  %v17284_v21 = vld [vmem:[#allocation19 + $0x400] ss:$8 sps:$4 sm:$0xff]  }
 0x35b   :  { %4222 = vmatpush1.bf16.msra.mxu1 %v17237_v23  ;;  %v17289_v23 = vld [vmem:[#allocation19 + $0x414] ss:$8 sps:$4 sm:$0xff]  }
 0x35c   :  { %4223 = vmatprep.subr.bf16.mxu1 %v17242_v24  ;;  %v20201_v24 = vcombine.low %v3923_v11, %v20149_v57  ;;  %v17338_v11 = vld [vmem:[#allocation19 + $0x514] ss:$8 sps:$4 sm:$0xff]  }
 0x35e   :  { %v3983_v50 = vrot.slane %v20201_v24, 1 }
 0x35f   :  { %4224 = vmatpush1.bf16.msra.mxu1 %v17240_v39  ;;  %v4376_v39 = vrot.slane %v4374_v18, 1 }
 0x360   :  { %4225 = vmatprep.subr.bf16.mxu1 %v17245_v25  ;;  %v4379_v25 = vrot.slane %v4377_v13, 2 }
 0x363   :  { %4226 = vmatpush1.bf16.msra.mxu1 %v17243_v63  ;;  %v3984_v63 = vrot.slane %v20152_v44, 1  ;;  %v17297_v44 = vld [vmem:[#allocation19 + $0x440] ss:$8 sps:$4 sm:$0xff]  }
 0x364   :  { %4227 = vmatprep.subr.bf16.mxu1 %v17248_v12  ;;  %v4380_v12 = vor.u32 %v4379_v25, %v4376_v39 }
 0x365   :  { %v3985_v57 = vsel %vm20909_vm2, %v3983_v50, %v3984_v63  ;;  %v17352_v50 = vld [vmem:[#allocation19 + $0x554] ss:$8 sps:$4 sm:$0xff]   ;;  %vm5994_vm2 = vmand %vm5993_vm10, %vm5931_vm9 }
 0x366   :  { %v20218_v63 = vld [vmem:[#allocation8 + $0x20] ss:$0 sps:$4 sm:$0x33]  }
 0x367   :  { %4228 = vmatpush1.bf16.msra.mxu1 %v17246_v32 }
 0x368   :  { %4229 = vmatprep.subr.bf16.mxu1 %v17251_v33  ;;  %v17290_v33 = vld [vmem:[#allocation19 + $0x420] ss:$8 sps:$4 sm:$0xff]  }
 0x369   :  { %v2241_v37 = vpop.f32.mrb[16].mxu1 }
 0x36a   :  { %v16300_v5 = vadd.f32 %v20136_v30, %v2241_v37  ;;  %v2243_v29 = vpop.f32.mrb[17].mxu1  ;;  %v17294_v37 = vld [vmem:[#allocation19 + $0x430] ss:$8 sps:$4 sm:$0xff]  }
 0x36b   :  { %v16310_v40 = vadd.f32 %v20140_v42, %v2243_v29  ;;  %v2245_v8 = vpop.f32.mrb[18].mxu1  ;;  %4230 = vmatpush1.bf16.msra.mxu1 %v17249_v34  ;;  %v17255_v42 = vld [vmem:[#allocation19 + $0x370] ss:$8 sps:$4 sm:$0xff]   ;;  %v17296_v34 = vld [vmem:[#allocation19 + $0x434] ss:$8 sps:$4 sm:$0xff]  }
 0x36c   :  { %v16320_v3 = vadd.f32 %v20143_v47, %v2245_v8  ;;  %v20171_v38 = vadd.f32 %v16300_v5, %v3086_v27  ;;  %v2247_v43 = vpop.f32.mrb[19].mxu1  ;;  %4231 = vmatprep.subr.bf16.mxu1 %v17254_v2  ;;  %v17261_v47 = vld [vmem:[#allocation19 + $0x390] ss:$8 sps:$4 sm:$0xff]   ;;  %v4384_v27 = vrot.slane %v4382_v7, 1  ;;  %v17299_v5 = vld [vmem:[#allocation19 + $0x444] ss:$8 sps:$4 sm:$0xff]  }
 0x36d   :  { %v16330_v31 = vadd.f32 %v20146_v51, %v2247_v43  ;;  %v20174_v46 = vadd.f32 %v16310_v40, %v3088_v49  ;;  %v17264_v51 = vld [vmem:[#allocation19 + $0x3a0] ss:$8 sps:$4 sm:$0xff]   ;;  %v4387_v49 = vrot.slane %v4385_v22, 2  ;;  %v17302_v29 = vld [vmem:[#allocation19 + $0x454] ss:$8 sps:$4 sm:$0xff]  }
 0x36e   :  { %v20176_v10 = vadd.f32 %v16320_v3, %v3090_v28  ;;  %v17287_v28 = vld [vmem:[#allocation19 + $0x410] ss:$8 sps:$4 sm:$0xff]   ;;  %v17305_v8 = vld [vmem:[#allocation19 + $0x464] ss:$8 sps:$4 sm:$0xff]  }
 0x36f   :  { %v20178_v30 = vadd.f32 %v16330_v31, %v3092_v52  ;;  %4232 = vmatpush1.bf16.msra.mxu1 %v17252_v26  ;;  %v17292_v52 = vld [vmem:[#allocation19 + $0x424] ss:$8 sps:$4 sm:$0xff]   ;;  %v4388_v32 = vor.u32 %v4387_v49, %v4384_v27  ;;  %v17300_v40 = vld [vmem:[#allocation19 + $0x450] ss:$8 sps:$4 sm:$0xff]   ;;  %v17303_v26 = vld [vmem:[#allocation19 + $0x460] ss:$8 sps:$4 sm:$0xff]  }
 0x370   :  { %4233 = vmatprep.subr.bf16.mxu1 %v17257_v36  ;;  %v17308_v36 = vld [vmem:[#allocation19 + $0x474] ss:$8 sps:$4 sm:$0xff]   ;;  %v17306_v3 = vld [vmem:[#allocation19 + $0x470] ss:$8 sps:$4 sm:$0xff]   ;;  %v17311_v43 = vld [vmem:[#allocation19 + $0x484] ss:$8 sps:$4 sm:$0xff]  }
 0x371   :  { %v4389_v2 = vsel %vm20908_vm3, %v4380_v12, %v4388_v32  ;;  %v17309_v31 = vld [vmem:[#allocation19 + $0x480] ss:$8 sps:$4 sm:$0xff]   ;;  %v17336_v22 = vld [vmem:[#allocation19 + $0x510] ss:$8 sps:$4 sm:$0xff]   ;;  %v17346_v27 = vld [vmem:[#allocation19 + $0x534] ss:$8 sps:$4 sm:$0xff]  }
 0x372   :  { %v17344_v49 = vld [vmem:[#allocation19 + $0x530] ss:$8 sps:$4 sm:$0xff]   ;;  %v17355_v32 = vld [vmem:[#allocation19 + $0x564] ss:$8 sps:$4 sm:$0xff]  }
 0x373   :  { %4234 = vmatpush1.bf16.msra.mxu1 %v17255_v42  ;;  %v17314_v42 = vld [vmem:[#allocation19 + $0x494] ss:$8 sps:$4 sm:$0xff]   ;;  %v17350_v12 = vld [vmem:[#allocation19 + $0x550] ss:$8 sps:$4 sm:$0xff]  }
 0x374   :  { %4235 = vmatprep.subr.bf16.mxu1 %v17260_v4  ;;  %v17312_v4 = vld [vmem:[#allocation19 + $0x490] ss:$8 sps:$4 sm:$0xff]  }
 0x377   :  { %4236 = vmatpush1.bf16.msra.mxu1 %v17258_v45  ;;  %v17317_v45 = vld [vmem:[#allocation19 + $0x4a4] ss:$8 sps:$4 sm:$0xff]  }
 0x378   :  { %4237 = vmatprep.subr.bf16.mxu1 %v17263_v19  ;;  %v17315_v19 = vld [vmem:[#allocation19 + $0x4a0] ss:$8 sps:$4 sm:$0xff]  }
 0x37b   :  { %4238 = vmatpush1.bf16.msra.mxu1 %v17261_v47  ;;  %v17320_v47 = vld [vmem:[#allocation19 + $0x4b4] ss:$8 sps:$4 sm:$0xff]  }
 0x37c   :  { %4239 = vmatprep.subr.bf16.mxu1 %v17266_v14  ;;  %v17318_v14 = vld [vmem:[#allocation19 + $0x4b0] ss:$8 sps:$4 sm:$0xff]  }
 0x37f   :  { %4240 = vmatpush1.bf16.msra.mxu1 %v17264_v51  ;;  %v17323_v51 = vld [vmem:[#allocation19 + $0x4c4] ss:$8 sps:$4 sm:$0xff]  }
 0x380   :  { %4241 = vmatprep.subr.bf16.mxu1 %v17269_v58  ;;  %v17321_v58 = vld [vmem:[#allocation19 + $0x4c0] ss:$8 sps:$4 sm:$0xff]  }
 0x383   :  { %4242 = vmatpush1.bf16.msra.mxu1 %v17267_v6  ;;  %v17326_v6 = vld [vmem:[#allocation19 + $0x4d4] ss:$8 sps:$4 sm:$0xff]  }
 0x384   :  { %4254 = vmatprep.subr.bf16.mxu1 %v17273_v41  ;;  %v17324_v41 = vld [vmem:[#allocation19 + $0x4d0] ss:$8 sps:$4 sm:$0xff]  }
 0x386   :  { %4244 = vmatmul.mubr.bf16.vlgmr.msra.gmra.mrb[20].mxu1 %v3979_v16  ;;  %v20210_v16 = vcombine.low %v20190_v62, %v20190_v62 }
 0x387   :  { %4255 = vmatpush1.bf16.msra.mxu1 %v17271_v35  ;;  %4286 = vmatprep.mubr.bf16.mxu1 %v20187_v55  ;;  %v17332_v35 = vld [vmem:[#allocation19 + $0x4f4] ss:$8 sps:$4 sm:$0xff]  }
 0x388   :  { %4256 = vmatprep.subr.bf16.mxu1 %v17277_v56  ;;  %v17330_v56 = vld [vmem:[#allocation19 + $0x4f0] ss:$8 sps:$4 sm:$0xff]  }
 0x38b   :  { %4257 = vmatpush1.bf16.msra.mxu1 %v17275_v59  ;;  %v17335_v59 = vld [vmem:[#allocation19 + $0x504] ss:$8 sps:$4 sm:$0xff]  }
 0x38c   :  { %4258 = vmatprep.subr.bf16.mxu1 %v17280_v17  ;;  %v4357_v17 = vshrl.u32 %v20182_v54, 16 }
 0x38e   :  { %v4359_v18 = vrot.slane %v4357_v17, 1  ;;  %v17378_v17 = vld [vmem:[#allocation19 + $0x5e0] ss:$8 sps:$4 sm:$0xff]  }
 0x38f   :  { %4259 = vmatpush1.bf16.msra.mxu1 %v17278_v20  ;;  %v4360_v20 = vshll.u32 %v20182_v54, 16  ;;  %v17340_v54 = vld [vmem:[#allocation19 + $0x520] ss:$8 sps:$4 sm:$0xff]  }
 0x390   :  { %4260 = vmatprep.subr.bf16.mxu1 %v17283_v0  ;;  %v4365_v0 = vshrl.u32 %v20210_v16, 16 }
 0x391   :  { %v4362_v13 = vrot.slane %v4360_v20, 2  ;;  %v17383_v20 = vld [vmem:[#allocation19 + $0x5f4] ss:$8 sps:$4 sm:$0xff]  }
 0x392   :  { %v4367_v62 = vrot.slane %v4365_v0, 1  ;;  %v17381_v0 = vld [vmem:[#allocation19 + $0x5f0] ss:$8 sps:$4 sm:$0xff]  }
 0x393   :  { %4261 = vmatpush1.bf16.msra.mxu1 %v17281_v48  ;;  %v4368_v48 = vshll.u32 %v20210_v16, 16 }
 0x394   :  { %4262 = vmatprep.subr.bf16.mxu1 %v17286_v9  ;;  %v17333_v9 = vld [vmem:[#allocation19 + $0x500] ss:$8 sps:$4 sm:$0xff]  }
 0x395   :  { %v4370_v7 = vrot.slane %v4368_v48, 2  ;;  %v17386_v48 = vld [vmem:[#allocation19 + $0x604] ss:$8 sps:$4 sm:$0xff]  }
 0x397   :  { %4263 = vmatpush1.bf16.msra.mxu1 %v17284_v21  ;;  %v17342_v21 = vld [vmem:[#allocation19 + $0x524] ss:$8 sps:$4 sm:$0xff]   ;;  %v4371_v39 = vor.u32 %v4370_v7, %v4367_v62  ;;  %v17390_v62 = vld [vmem:[#allocation19 + $0x620] ss:$8 sps:$4 sm:$0xff]   ;;  %v17395_v7 = vld [vmem:[#allocation19 + $0x634] ss:$8 sps:$4 sm:$0xff]  }
 0x398   :  { %4264 = vmatprep.subr.bf16.mxu1 %v17289_v23  ;;  %v4363_v23 = vor.u32 %v4362_v13, %v4359_v18  ;;  %v17387_v18 = vld [vmem:[#allocation19 + $0x610] ss:$8 sps:$4 sm:$0xff]   ;;  %v17392_v13 = vld [vmem:[#allocation19 + $0x624] ss:$8 sps:$4 sm:$0xff]  }
 0x39a   :  { %v4372_v25 = vsel %vm20908_vm3, %v4363_v23, %v4371_v39  ;;  %v17396_v23 = vld [vmem:[#allocation19 + $0x640] ss:$8 sps:$4 sm:$0xff]   ;;  %v17401_v39 = vld [vmem:[#allocation19 + $0x654] ss:$8 sps:$4 sm:$0xff]  }
 0x39b   :  { %4265 = vmatpush1.bf16.msra.mxu1 %v17287_v28  ;;  %v17349_v28 = vld [vmem:[#allocation19 + $0x544] ss:$8 sps:$4 sm:$0xff]  }
 0x39c   :  { %4632 = vmatprep.subr.bf16.mxu1 %v17292_v52  ;;  %v17347_v52 = vld [vmem:[#allocation19 + $0x540] ss:$8 sps:$4 sm:$0xff]  }
 0x39e   :  { %15070 = vmatmul.mubr.msk.bf16.vlgmr.msra.gmra.mrb[20].mxu1 %vm20911_vm0, %v3985_v57  ;;  %v4394_v57 = vshll.u32 %v20201_v24, 16 }
 0x39f   :  { %4633 = vmatpush1.bf16.msra.mxu1 %v17290_v33  ;;  %4664 = vmatprep.mubr.bf16.mxu1 %v4389_v2  ;;  %v4391_v33 = vshrl.u32 %v20201_v24, 16  ;;  %v4402_v2 = vshll.u32 %v20218_v63, 16 }
 0x3a0   :  { %4634 = vmatprep.subr.bf16.mxu1 %v17296_v34  ;;  %v4399_v34 = vshrl.u32 %v20218_v63, 16 }
 0x3a3   :  { %4635 = vmatpush1.bf16.msra.mxu1 %v17294_v37  ;;  %v20224_v37 = vld [vmem:[#allocation8] sm:$0xcc] }
 0x3a4   :  { %4636 = vmatprep.subr.bf16.mxu1 %v17299_v5  ;;  %v17358_v5 = vld [vmem:[#allocation19 + $0x574] ss:$8 sps:$4 sm:$0xff]  }
 0x3a7   :  { %4637 = vmatpush1.bf16.msra.mxu1 %v17297_v44  ;;  %v4393_v44 = vrot.slane %v4391_v33, 1  ;;  %v17409_v33 = vld [vmem:[#allocation19 + $0x680] ss:$8 sps:$4 sm:$0xff]  }
 0x3a8   :  { %4638 = vmatprep.subr.bf16.mxu1 %v17302_v29  ;;  %v4396_v29 = vrot.slane %v4394_v57, 2 }
 0x3ab   :  { %4639 = vmatpush1.bf16.msra.mxu1 %v17300_v40  ;;  %v4401_v40 = vrot.slane %v4399_v34, 1  ;;  %v17415_v34 = vld [vmem:[#allocation19 + $0x694] ss:$8 sps:$4 sm:$0xff]  }
 0x3ac   :  { %4640 = vmatprep.subr.bf16.mxu1 %v17305_v8  ;;  %v4404_v8 = vrot.slane %v4402_v2, 2  ;;  %v17413_v2 = vld [vmem:[#allocation19 + $0x690] ss:$8 sps:$4 sm:$0xff]  }
 0x3af   :  { %4641 = vmatpush1.bf16.msra.mxu1 %v17303_v26  ;;  %v20226_v26 = vld [vmem:[#allocation8 + $0xc] sm:$0xff] }
 0x3b0   :  { %4642 = vmatprep.subr.bf16.mxu1 %v17308_v36  ;;  %v20230_v24 = vcombine.high %v20224_v37, %v20226_v26  ;;  %v17356_v36 = vld [vmem:[#allocation19 + $0x570] ss:$8 sps:$4 sm:$0xff]  }
 0x3b3   :  { %4643 = vmatpush1.bf16.msra.mxu1 %v17306_v3  ;;  %v17361_v3 = vld [vmem:[#allocation19 + $0x584] ss:$8 sps:$4 sm:$0xff]  }
 0x3b4   :  { %4644 = vmatprep.subr.bf16.mxu1 %v17311_v43  ;;  %v4397_v43 = vor.u32 %v4396_v29, %v4393_v44  ;;  %v17421_v44 = vld [vmem:[#allocation19 + $0x6b4] ss:$8 sps:$4 sm:$0xff]  }
 0x3b7   :  { %4645 = vmatpush1.bf16.msra.mxu1 %v17309_v31  ;;  %v4405_v31 = vor.u32 %v4404_v8, %v4401_v40  ;;  %v17419_v40 = vld [vmem:[#allocation19 + $0x6b0] ss:$8 sps:$4 sm:$0xff]   ;;  %v17424_v8 = vld [vmem:[#allocation19 + $0x6c4] ss:$8 sps:$4 sm:$0xff]  }
 0x3b8   :  { %4646 = vmatprep.subr.bf16.mxu1 %v17314_v42  ;;  %v4780_v42 = vrot.slane %v20230_v24, 2 }
 0x3bb   :  { %4647 = vmatpush1.bf16.msra.mxu1 %v17312_v4  ;;  %v4781_v4 = vrot.slane %v20194_v1, 2  ;;  %v17369_v1 = vld [vmem:[#allocation19 + $0x5b0] ss:$8 sps:$4 sm:$0xff]  }
 0x3bc   :  { %4648 = vmatprep.subr.bf16.mxu1 %v17317_v45  ;;  %v17359_v45 = vld [vmem:[#allocation19 + $0x580] ss:$8 sps:$4 sm:$0xff]  }
 0x3bf   :  { %4649 = vmatpush1.bf16.msra.mxu1 %v17315_v19  ;;  %v4406_v19 = vsel %vm20908_vm3, %v4397_v43, %v4405_v31  ;;  %v5177_v43 = vshll.u32 %v20230_v24, 16 }
 0x3c0   :  { %4650 = vmatprep.subr.bf16.mxu1 %v17320_v47  ;;  %v17365_v47 = vld [vmem:[#allocation19 + $0x594] ss:$8 sps:$4 sm:$0xff]  }
 0x3c3   :  { %4651 = vmatpush1.bf16.msra.mxu1 %v17318_v14  ;;  %v4782_v14 = vsel %vm20907_vm4, %v4780_v42, %v4781_v4  ;;  %v17422_v4 = vld [vmem:[#allocation19 + $0x6c0] ss:$8 sps:$4 sm:$0xff]  }
 0x3c4   :  { %4652 = vmatprep.subr.bf16.mxu1 %v17323_v51  ;;  %v17363_v51 = vld [vmem:[#allocation19 + $0x590] ss:$8 sps:$4 sm:$0xff]  }
 0x3c7   :  { %4653 = vmatpush1.bf16.msra.mxu1 %v17321_v58  ;;  %v17368_v58 = vld [vmem:[#allocation19 + $0x5a4] ss:$8 sps:$4 sm:$0xff]  }
 0x3c8   :  { %4654 = vmatprep.subr.bf16.mxu1 %v17326_v6  ;;  %v17366_v6 = vld [vmem:[#allocation19 + $0x5a0] ss:$8 sps:$4 sm:$0xff]  }
 0x3cb   :  { %4655 = vmatpush1.bf16.msra.mxu1 %v17324_v41  ;;  %v17371_v41 = vld [vmem:[#allocation19 + $0x5b4] ss:$8 sps:$4 sm:$0xff]  }
 0x3cc   :  { %4656 = vmatprep.subr.bf16.mxu1 %v17329_v15  ;;  %v17374_v15 = vld [vmem:[#allocation19 + $0x5c4] ss:$8 sps:$4 sm:$0xff]  }
 0x3cf   :  { %4657 = vmatpush1.bf16.msra.mxu1 %v17327_v53  ;;  %v17372_v53 = vld [vmem:[#allocation19 + $0x5c0] ss:$8 sps:$4 sm:$0xff]  }
 0x3d0   :  { %4658 = vmatprep.subr.bf16.mxu1 %v17332_v35  ;;  %v17377_v35 = vld [vmem:[#allocation19 + $0x5d4] ss:$8 sps:$4 sm:$0xff]  }
 0x3d3   :  { %4659 = vmatpush1.bf16.msra.mxu1 %v17330_v56  ;;  %v17375_v56 = vld [vmem:[#allocation19 + $0x5d0] ss:$8 sps:$4 sm:$0xff]  }
 0x3d4   :  { %4660 = vmatprep.subr.bf16.mxu1 %v17335_v59  ;;  %v17380_v59 = vld [vmem:[#allocation19 + $0x5e4] ss:$8 sps:$4 sm:$0xff]  }
 0x3d7   :  { %4661 = vmatpush1.bf16.msra.mxu1 %v17333_v9  ;;  %v17384_v9 = vld [vmem:[#allocation19 + $0x600] ss:$8 sps:$4 sm:$0xff]  }
 0x3d8   :  { %4662 = vmatprep.subr.bf16.mxu1 %v17338_v11  ;;  %v17389_v11 = vld [vmem:[#allocation19 + $0x614] ss:$8 sps:$4 sm:$0xff]  }
 0x3db   :  { %4663 = vmatpush1.bf16.msra.mxu1 %v17336_v22  ;;  %v17393_v22 = vld [vmem:[#allocation19 + $0x630] ss:$8 sps:$4 sm:$0xff]  }
 0x3dc   :  { %4675 = vmatprep.subr.bf16.mxu1 %v17342_v21  ;;  %v17398_v21 = vld [vmem:[#allocation19 + $0x644] ss:$8 sps:$4 sm:$0xff]  }
 0x3de   :  { %4665 = vmatmul.mubr.bf16.vlgmr.msra.gmra.mrb[20].mxu1 %v4372_v25  ;;  %v17404_v25 = vld [vmem:[#allocation19 + $0x664] ss:$8 sps:$4 sm:$0xff]  }
 0x3df   :  { %4676 = vmatpush1.bf16.msra.mxu1 %v17340_v54  ;;  %4707 = vmatprep.mubr.bf16.mxu1 %v20187_v55  ;;  %v17353_v55 = vld [vmem:[#allocation19 + $0x560] ss:$8 sps:$4 sm:$0xff]   ;;  %v17399_v54 = vld [vmem:[#allocation19 + $0x650] ss:$8 sps:$4 sm:$0xff]  }
 0x3e0   :  { %4677 = vmatprep.subr.bf16.mxu1 %v17346_v27  ;;  %v17402_v27 = vld [vmem:[#allocation19 + $0x660] ss:$8 sps:$4 sm:$0xff]  }
 0x3e3   :  { %4678 = vmatpush1.bf16.msra.mxu1 %v17344_v49  ;;  %v17407_v49 = vld [vmem:[#allocation19 + $0x674] ss:$8 sps:$4 sm:$0xff]  }
 0x3e4   :  { %4679 = vmatprep.subr.bf16.mxu1 %v17349_v28  ;;  %v20239_v28 = vcombine.low %v20224_v37, %v20226_v26  ;;  %v20244_v37 = vld [vmem:[#allocation2] sm:$0xff] }
 0x3e5   :  { %296 = vst.msk [vmem:[#allocation2 + $0x8] sm:$0xf] %vm295_vm7, %v20244_v37  ;;  %298 = vst.msk [vmem:[#allocation2 + $0x14] sm:$0xf] %vm295_vm7, %v20244_v37  ;;  %vm5982_vm7 = vcmask 388097  }
 0x3e6   :  { %301 = vst.msk [vmem:[#allocation2 + $0x20] sm:$0x7] %vm300_vm8, %v20244_v37  ;;  %vm5974_vm8 = vmand %vm5972_vm12, %vm5973_vm13  ;;  %vm6001_vm12 = vcmask 386048  }
 0x3e7   :  { %4680 = vmatpush1.bf16.msra.mxu1 %v17347_v52  ;;  %v17405_v52 = vld [vmem:[#allocation19 + $0x670] ss:$8 sps:$4 sm:$0xff]   ;;  %vm20319_vm3 = vmand %vm5982_vm7, %vm5973_vm13 }
 0x3e8   :  { %4681 = vmatprep.subr.bf16.mxu1 %v17352_v50  ;;  %v17411_v50 = vld [vmem:[#allocation19 + $0x684] ss:$8 sps:$4 sm:$0xff]  }
 0x3eb   :  { %4682 = vmatpush1.bf16.msra.mxu1 %v17350_v12  ;;  %v4777_v12 = vrot.slane %v20239_v28, 2 }
 0x3ec   :  { %4683 = vmatprep.subr.bf16.mxu1 %v17355_v32  ;;  %v4778_v32 = vrot.slane %v20210_v16, 2  ;;  %v17416_v16 = vld [vmem:[#allocation19 + $0x6a0] ss:$8 sps:$4 sm:$0xff]  }
 0x3ee   :  { %v4779_v57 = vsel %vm20907_vm4, %v4777_v12, %v4778_v32  ;;  %v17464_v12 = vld [vmem:[#allocation19 + $0x794] ss:$8 sps:$4 sm:$0xff]   ;;  %v17462_v32 = vld [vmem:[#allocation19 + $0x790] ss:$8 sps:$4 sm:$0xff]  }
 0x3ef   :  { %4684 = vmatpush1.bf16.msra.mxu1 %v17353_v55  ;;  %v17418_v55 = vld [vmem:[#allocation19 + $0x6a4] ss:$8 sps:$4 sm:$0xff]  }
 0x3f0   :  { %4685 = vmatprep.subr.bf16.mxu1 %v17358_v5  ;;  %v20247_v5 = vld [vmem:[#allocation8 + $0x18] sm:$0x77] }
 0x3f1   :  { %v20251_v29 = vcombine.high %v20247_v5, %v20247_v5 }
 0x3f3   :  { %4686 = vmatpush1.bf16.msra.mxu1 %v17356_v36  ;;  %v4723_v36 = vld [vmem:[#allocation8 + $0x8] sm:$0xc]  ;;  %v5182_v31 = vshrl.u32 %v20251_v29, 16  ;;  %v5185_v42 = vshll.u32 %v20251_v29, 16 }
 0x3f4   :  { %5011 = vmatprep.subr.bf16.mxu1 %v17361_v3  ;;  %v5174_v3 = vshrl.u32 %v20230_v24, 16 }
 0x3f6   :  { %15118 = vmatmul.mubr.msk.bf16.vlgmr.msra.gmra.mrb[20].mxu1 %vm20911_vm0, %v4406_v19 }
 0x3f7   :  { %5012 = vmatpush1.bf16.msra.mxu1 %v17359_v45  ;;  %5043 = vmatprep.mubr.bf16.mxu1 %v4782_v14  ;;  %v20257_v45 = vld [vmem:[#allocation8 + $0x14] sm:$0xf]  ;;  %v5176_v14 = vrot.slane %v5174_v3, 2  ;;  %v17471_v3 = vld [vmem:[#allocation19 + $0x7c0] ss:$8 sps:$4 sm:$0xff]  }
 0x3f8   :  { %5013 = vmatprep.subr.bf16.mxu1 %v17365_v47  ;;  %v20260_v19 = vcombine.low %v4723_v36, %v20257_v45  ;;  %v17427_v47 = vld [vmem:[#allocation19 + $0x6d4] ss:$8 sps:$4 sm:$0xff]   ;;  %v17473_v36 = vld [vmem:[#allocation19 + $0x7c4] ss:$8 sps:$4 sm:$0xff]  }
 0x3fa   :  { %v4783_v24 = vrot.slane %v20260_v19, 2 }
 0x3fb   :  { %5014 = vmatpush1.bf16.msra.mxu1 %v17363_v51  ;;  %v5179_v51 = vrot.slane %v5177_v43, 3 }
 0x3fc   :  { %5015 = vmatprep.subr.bf16.mxu1 %v17368_v58  ;;  %v5184_v58 = vrot.slane %v5182_v31, 2 }
 0x3ff   :  { %5016 = vmatpush1.bf16.msra.mxu1 %v17366_v6  ;;  %v5187_v6 = vrot.slane %v5185_v42, 3 }
 0x400   :  { %5017 = vmatprep.subr.bf16.mxu1 %v17371_v41  ;;  %v17425_v41 = vld [vmem:[#allocation19 + $0x6d0] ss:$8 sps:$4 sm:$0xff]  }
 0x403   :  { %5018 = vmatpush1.bf16.msra.mxu1 %v17369_v1  ;;  %v4784_v1 = vrot.slane %v20218_v63, 2  ;;  %v17435_v63 = vld [vmem:[#allocation19 + $0x700] ss:$8 sps:$4 sm:$0xff]  }
 0x404   :  { %5019 = vmatprep.subr.bf16.mxu1 %v17374_v15  ;;  %v17430_v15 = vld [vmem:[#allocation19 + $0x6e4] ss:$8 sps:$4 sm:$0xff]  }
 0x407   :  { %5020 = vmatpush1.bf16.msra.mxu1 %v17372_v53  ;;  %v5180_v53 = vor.u32 %v5179_v51, %v5176_v14 }
 0x408   :  { %5021 = vmatprep.subr.bf16.mxu1 %v17377_v35  ;;  %v5188_v35 = vor.u32 %v5187_v6, %v5184_v58  ;;  %v17478_v58 = vld [vmem:[#allocation19 + $0x7e0] ss:$8 sps:$4 sm:$0xff]  }
 0x40b   :  { %5022 = vmatpush1.bf16.msra.mxu1 %v17375_v56  ;;  %v17428_v56 = vld [vmem:[#allocation19 + $0x6e0] ss:$8 sps:$4 sm:$0xff]  }
 0x40c   :  { %5023 = vmatprep.subr.bf16.mxu1 %v17380_v59  ;;  %v4785_v59 = vsel %vm20907_vm4, %v4783_v24, %v4784_v1  ;;  %v17482_v24 = vld [vmem:[#allocation19 + $0x7f0] ss:$8 sps:$4 sm:$0xff]   ;;  %v17487_v1 = vld [vmem:[#allocation19 + $0x804] ss:$8 sps:$4 sm:$0xff]   ;;  %vm5995_vm4 = vcmask 1045508  }
 0x40f   :  { %5024 = vmatpush1.bf16.msra.mxu1 %v17378_v17  ;;  %v17434_v17 = vld [vmem:[#allocation19 + $0x6f4] ss:$8 sps:$4 sm:$0xff]  }
 0x410   :  { %5025 = vmatprep.subr.bf16.mxu1 %v17383_v20  ;;  %v5189_v20 = vsel %vm2352_vm5, %v5180_v53, %v5188_v35  ;;  %v20277_v53 = vld [vmem:[#allocation8 + $0x20] ss:$0 sps:$4 sm:$0x77]  }
 0x411   :  { %v17490_v35 = vld [vmem:[#allocation19 + $0x814] ss:$8 sps:$4 sm:$0xff]  }
 0x413   :  { %5026 = vmatpush1.bf16.msra.mxu1 %v17381_v0  ;;  %v17432_v0 = vld [vmem:[#allocation19 + $0x6f0] ss:$8 sps:$4 sm:$0xff]  }
 0x414   :  { %5027 = vmatprep.subr.bf16.mxu1 %v17386_v48  ;;  %v17437_v48 = vld [vmem:[#allocation19 + $0x704] ss:$8 sps:$4 sm:$0xff]  }
 0x417   :  { %5028 = vmatpush1.bf16.msra.mxu1 %v17384_v9  ;;  %v17440_v9 = vld [vmem:[#allocation19 + $0x714] ss:$8 sps:$4 sm:$0xff]  }
 0x418   :  { %5029 = vmatprep.subr.bf16.mxu1 %v17389_v11  ;;  %v17438_v11 = vld [vmem:[#allocation19 + $0x710] ss:$8 sps:$4 sm:$0xff]  }
 0x41b   :  { %5030 = vmatpush1.bf16.msra.mxu1 %v17387_v18  ;;  %v17443_v18 = vld [vmem:[#allocation19 + $0x724] ss:$8 sps:$4 sm:$0xff]  }
 0x41c   :  { %5031 = vmatprep.subr.bf16.mxu1 %v17392_v13  ;;  %v17441_v13 = vld [vmem:[#allocation19 + $0x720] ss:$8 sps:$4 sm:$0xff]  }
 0x41f   :  { %5032 = vmatpush1.bf16.msra.mxu1 %v17390_v62  ;;  %v17446_v62 = vld [vmem:[#allocation19 + $0x734] ss:$8 sps:$4 sm:$0xff]  }
 0x420   :  { %5033 = vmatprep.subr.bf16.mxu1 %v17395_v7  ;;  %v17444_v7 = vld [vmem:[#allocation19 + $0x730] ss:$8 sps:$4 sm:$0xff]  }
 0x423   :  { %5034 = vmatpush1.bf16.msra.mxu1 %v17393_v22  ;;  %v17449_v22 = vld [vmem:[#allocation19 + $0x744] ss:$8 sps:$4 sm:$0xff]  }
 0x424   :  { %5035 = vmatprep.subr.bf16.mxu1 %v17398_v21  ;;  %v17447_v21 = vld [vmem:[#allocation19 + $0x740] ss:$8 sps:$4 sm:$0xff]  }
 0x427   :  { %5036 = vmatpush1.bf16.msra.mxu1 %v17396_v23  ;;  %v17452_v23 = vld [vmem:[#allocation19 + $0x754] ss:$8 sps:$4 sm:$0xff]  }
 0x428   :  { %5037 = vmatprep.subr.bf16.mxu1 %v17401_v39  ;;  %v17450_v39 = vld [vmem:[#allocation19 + $0x750] ss:$8 sps:$4 sm:$0xff]  }
 0x42b   :  { %5038 = vmatpush1.bf16.msra.mxu1 %v17399_v54  ;;  %v17455_v54 = vld [vmem:[#allocation19 + $0x764] ss:$8 sps:$4 sm:$0xff]  }
 0x42c   :  { %5039 = vmatprep.subr.bf16.mxu1 %v17404_v25  ;;  %v17453_v25 = vld [vmem:[#allocation19 + $0x760] ss:$8 sps:$4 sm:$0xff]  }
 0x42f   :  { %5040 = vmatpush1.bf16.msra.mxu1 %v17402_v27  ;;  %v17458_v27 = vld [vmem:[#allocation19 + $0x774] ss:$8 sps:$4 sm:$0xff]  }
 0x430   :  { %5041 = vmatprep.subr.bf16.mxu1 %v17407_v49  ;;  %v17456_v49 = vld [vmem:[#allocation19 + $0x770] ss:$8 sps:$4 sm:$0xff]  }
 0x433   :  { %5042 = vmatpush1.bf16.msra.mxu1 %v17405_v52  ;;  %v17461_v52 = vld [vmem:[#allocation19 + $0x784] ss:$8 sps:$4 sm:$0xff]  }
 0x434   :  { %5054 = vmatprep.subr.bf16.mxu1 %v17411_v50  ;;  %v17459_v50 = vld [vmem:[#allocation19 + $0x780] ss:$8 sps:$4 sm:$0xff]  }
 0x436   :  { %5044 = vmatmul.mubr.bf16.vlgmr.msra.gmra.mrb[20].mxu1 %v4779_v57  ;;  %v17465_v57 = vld [vmem:[#allocation19 + $0x7a0] ss:$8 sps:$4 sm:$0xff]  }
 0x437   :  { %5055 = vmatpush1.bf16.msra.mxu1 %v17409_v33  ;;  %5086 = vmatprep.mubr.bf16.mxu1 %v20244_v37  ;;  %v17467_v33 = vld [vmem:[#allocation19 + $0x7a4] ss:$8 sps:$4 sm:$0xff]  }
 0x438   :  { %5056 = vmatprep.subr.bf16.mxu1 %v17415_v34  ;;  %v20269_v34 = vcombine.low %v20247_v5, %v20247_v5 }
 0x43b   :  { %5057 = vmatpush1.bf16.msra.mxu1 %v17413_v2  ;;  %v17470_v2 = vld [vmem:[#allocation19 + $0x7b4] ss:$8 sps:$4 sm:$0xff]  }
 0x43c   :  { %5058 = vmatprep.subr.bf16.mxu1 %v17418_v55  ;;  %v17468_v55 = vld [vmem:[#allocation19 + $0x7b0] ss:$8 sps:$4 sm:$0xff]  }
 0x43f   :  { %5059 = vmatpush1.bf16.msra.mxu1 %v17416_v16  ;;  %v5157_v16 = vshrl.u32 %v20239_v28, 16 }
 0x440   :  { %5060 = vmatprep.subr.bf16.mxu1 %v17421_v44  ;;  %v5160_v44 = vshll.u32 %v20239_v28, 16  ;;  %v17480_v28 = vld [vmem:[#allocation19 + $0x7e4] ss:$8 sps:$4 sm:$0xff]  }
 0x441   :  { %v5159_v43 = vrot.slane %v5157_v16, 2  ;;  %v17515_v16 = vld [vmem:[#allocation19 + $0x894] ss:$8 sps:$4 sm:$0xff]  }
 0x442   :  { %v5162_v31 = vrot.slane %v5160_v44, 3  ;;  %v17513_v44 = vld [vmem:[#allocation19 + $0x890] ss:$8 sps:$4 sm:$0xff]  }
 0x443   :  { %5061 = vmatpush1.bf16.msra.mxu1 %v17419_v40  ;;  %v5165_v40 = vshrl.u32 %v20269_v34, 16 }
 0x444   :  { %5062 = vmatprep.subr.bf16.mxu1 %v17424_v8  ;;  %v5168_v8 = vshll.u32 %v20269_v34, 16  ;;  %v5163_v14 = vor.u32 %v5162_v31, %v5159_v43  ;;  %v17524_v43 = vld [vmem:[#allocation19 + $0x8c4] ss:$8 sps:$4 sm:$0xff]   ;;  %v17522_v31 = vld [vmem:[#allocation19 + $0x8c0] ss:$8 sps:$4 sm:$0xff]  }
 0x445   :  { %v5167_v5 = vrot.slane %v5165_v40, 2  ;;  %v17518_v40 = vld [vmem:[#allocation19 + $0x8a4] ss:$8 sps:$4 sm:$0xff]  }
 0x446   :  { %v5170_v42 = vrot.slane %v5168_v8, 3  ;;  %v17516_v8 = vld [vmem:[#allocation19 + $0x8a0] ss:$8 sps:$4 sm:$0xff]  }
 0x447   :  { %5063 = vmatpush1.bf16.msra.mxu1 %v17422_v4  ;;  %v17476_v4 = vld [vmem:[#allocation19 + $0x7d4] ss:$8 sps:$4 sm:$0xff]  }
 0x448   :  { %5064 = vmatprep.subr.bf16.mxu1 %v17427_v47  ;;  %v17474_v47 = vld [vmem:[#allocation19 + $0x7d0] ss:$8 sps:$4 sm:$0xff]   ;;  %v5171_v51 = vor.u32 %v5170_v42, %v5167_v5  ;;  %v17527_v5 = vld [vmem:[#allocation19 + $0x8d4] ss:$8 sps:$4 sm:$0xff]  }
 0x449   :  { %v17525_v42 = vld [vmem:[#allocation19 + $0x8d0] ss:$8 sps:$4 sm:$0xff]  }
 0x44a   :  { %v5172_v6 = vsel %vm2352_vm5, %v5163_v14, %v5171_v51  ;;  %v17533_v14 = vld [vmem:[#allocation19 + $0x8f4] ss:$8 sps:$4 sm:$0xff]   ;;  %v17531_v51 = vld [vmem:[#allocation19 + $0x8f0] ss:$8 sps:$4 sm:$0xff]  }
 0x44b   :  { %5065 = vmatpush1.bf16.msra.mxu1 %v17425_v41  ;;  %v17484_v41 = vld [vmem:[#allocation19 + $0x7f4] ss:$8 sps:$4 sm:$0xff]  }
 0x44c   :  { %5432 = vmatprep.subr.bf16.mxu1 %v17430_v15  ;;  %v17485_v15 = vld [vmem:[#allocation19 + $0x800] ss:$8 sps:$4 sm:$0xff]  }
 0x44e   :  { %15166 = vmatmul.mubr.msk.bf16.vlgmr.msra.gmra.mrb[20].mxu1 %vm20911_vm0, %v4785_v59  ;;  %v5191_v59 = vshrl.u32 %v20260_v19, 16 }
 0x44f   :  { %5433 = vmatpush1.bf16.msra.mxu1 %v17428_v56  ;;  %5464 = vmatprep.mubr.bf16.mxu1 %v5189_v20  ;;  %v17488_v56 = vld [vmem:[#allocation19 + $0x810] ss:$8 sps:$4 sm:$0xff]   ;;  %v5199_v20 = vshrl.u32 %v20277_v53, 16 }
 0x450   :  { %5434 = vmatprep.subr.bf16.mxu1 %v17434_v17  ;;  %v5194_v17 = vshll.u32 %v20260_v19, 16  ;;  %v17494_v19 = vld [vmem:[#allocation19 + $0x830] ss:$8 sps:$4 sm:$0xff]  }
 0x453   :  { %5435 = vmatpush1.bf16.msra.mxu1 %v17432_v0  ;;  %v5202_v0 = vshll.u32 %v20277_v53, 16 }
 0x454   :  { %5436 = vmatprep.subr.bf16.mxu1 %v17437_v48  ;;  %v17493_v48 = vld [vmem:[#allocation19 + $0x824] ss:$8 sps:$4 sm:$0xff]  }
 0x457   :  { %5437 = vmatpush1.bf16.msra.mxu1 %v17435_v63  ;;  %v20283_v63 = vld [vmem:[#allocation8] sm:$0x88] }
 0x458   :  { %5438 = vmatprep.subr.bf16.mxu1 %v17440_v9  ;;  %v17491_v9 = vld [vmem:[#allocation19 + $0x820] ss:$8 sps:$4 sm:$0xff]  }
 0x45b   :  { %5439 = vmatpush1.bf16.msra.mxu1 %v17438_v11  ;;  %v5193_v11 = vrot.slane %v5191_v59, 2 }
 0x45c   :  { %5440 = vmatprep.subr.bf16.mxu1 %v17443_v18  ;;  %v5196_v18 = vrot.slane %v5194_v17, 3  ;;  %v5578_v17 = vrot.slane %v20269_v34, 3  ;;  %v17557_v34 = vld [vmem:[#allocation19 + $0x970] ss:$8 sps:$4 sm:$0xff]  }
 0x45f   :  { %5441 = vmatpush1.bf16.msra.mxu1 %v17441_v13  ;;  %v5201_v13 = vrot.slane %v5199_v20, 2  ;;  %v17549_v20 = vld [vmem:[#allocation19 + $0x944] ss:$8 sps:$4 sm:$0xff]  }
 0x460   :  { %5442 = vmatprep.subr.bf16.mxu1 %v17446_v62  ;;  %v5204_v62 = vrot.slane %v5202_v0, 3  ;;  %v17547_v0 = vld [vmem:[#allocation19 + $0x940] ss:$8 sps:$4 sm:$0xff]  }
 0x463   :  { %5443 = vmatpush1.bf16.msra.mxu1 %v17444_v7  ;;  %v17496_v7 = vld [vmem:[#allocation19 + $0x834] ss:$8 sps:$4 sm:$0xff]  }
 0x464   :  { %5444 = vmatprep.subr.bf16.mxu1 %v17449_v22  ;;  %v15216_v22 = vcombine.high %v20283_v63, %v20226_v26 }
 0x467   :  { %5445 = vmatpush1.bf16.msra.mxu1 %v17447_v21  ;;  %v5197_v21 = vor.u32 %v5196_v18, %v5193_v11  ;;  %v17551_v11 = vld [vmem:[#allocation19 + $0x950] ss:$8 sps:$4 sm:$0xff]   ;;  %v17559_v18 = vld [vmem:[#allocation19 + $0x974] ss:$8 sps:$4 sm:$0xff]  }
 0x468   :  { %5446 = vmatprep.subr.bf16.mxu1 %v17452_v23  ;;  %v5205_v23 = vor.u32 %v5204_v62, %v5201_v13  ;;  %v17562_v13 = vld [vmem:[#allocation19 + $0x984] ss:$8 sps:$4 sm:$0xff]  }
 0x469   :  { %v5523_v62 = vld [vmem:[#allocation8 + $0x8] sm:$0x8] }
 0x46b   :  { %5447 = vmatpush1.bf16.msra.mxu1 %v17450_v39  ;;  %v17499_v39 = vld [vmem:[#allocation19 + $0x844] ss:$8 sps:$4 sm:$0xff]  }
 0x46c   :  { %5448 = vmatprep.subr.bf16.mxu1 %v17455_v54  ;;  %v5580_v54 = vrot.slane %v15216_v22, 3  ;;  %v15217_v22 = vcombine.low %v5523_v62, %v20257_v45  ;;  %v17575_v45 = vld [vmem:[#allocation20 + $0x24] ss:$8 sps:$4 sm:$0xff]  }
 0x46f   :  { %5449 = vmatpush1.bf16.msra.mxu1 %v17453_v25  ;;  %v5581_v25 = vrot.slane %v20251_v29, 3  ;;  %v17507_v29 = vld [vmem:[#allocation19 + $0x870] ss:$8 sps:$4 sm:$0xff]  }
 0x470   :  { %5450 = vmatprep.subr.bf16.mxu1 %v17458_v27  ;;  %v17497_v27 = vld [vmem:[#allocation19 + $0x840] ss:$8 sps:$4 sm:$0xff]  }
 0x473   :  { %5451 = vmatpush1.bf16.msra.mxu1 %v17456_v49  ;;  %v5206_v49 = vsel %vm2352_vm5, %v5197_v21, %v5205_v23  ;;  %v17563_v21 = vld [vmem:[#allocation19 + $0x990] ss:$8 sps:$4 sm:$0xff]   ;;  %v5583_v23 = vrot.slane %v15217_v22, 3  ;;  %v5910_v22 = vld [vmem:[#allocation10 + $0x8] sm:$0xff] }
 0x474   :  { %5452 = vmatprep.subr.bf16.mxu1 %v17461_v52  ;;  %v17503_v52 = vld [vmem:[#allocation19 + $0x854] ss:$8 sps:$4 sm:$0xff]  }
 0x477   :  { %5453 = vmatpush1.bf16.msra.mxu1 %v17459_v50  ;;  %v5582_v50 = vsel %vm20906_vm6, %v5580_v54, %v5581_v25  ;;  %v17567_v25 = vld [vmem:[#allocation20] ss:$8 sps:$4 sm:$0xff]  }
 0x478   :  { %5454 = vmatprep.subr.bf16.mxu1 %v17464_v12  ;;  %v17501_v12 = vld [vmem:[#allocation19 + $0x850] ss:$8 sps:$4 sm:$0xff]  }
 0x47b   :  { %5455 = vmatpush1.bf16.msra.mxu1 %v17462_v32  ;;  %v17506_v32 = vld [vmem:[#allocation19 + $0x864] ss:$8 sps:$4 sm:$0xff]  }
 0x47c   :  { %5456 = vmatprep.subr.bf16.mxu1 %v17467_v33  ;;  %v17504_v33 = vld [vmem:[#allocation19 + $0x860] ss:$8 sps:$4 sm:$0xff]  }
 0x47f   :  { %5457 = vmatpush1.bf16.msra.mxu1 %v17465_v57  ;;  %v17509_v57 = vld [vmem:[#allocation19 + $0x874] ss:$8 sps:$4 sm:$0xff]  }
 0x480   :  { %5458 = vmatprep.subr.bf16.mxu1 %v17470_v2  ;;  %v17512_v2 = vld [vmem:[#allocation19 + $0x884] ss:$8 sps:$4 sm:$0xff]  }
 0x483   :  { %5459 = vmatpush1.bf16.msra.mxu1 %v17468_v55  ;;  %v17510_v55 = vld [vmem:[#allocation19 + $0x880] ss:$8 sps:$4 sm:$0xff]  }
 0x484   :  { %5460 = vmatprep.subr.bf16.mxu1 %v17473_v36  ;;  %v17521_v36 = vld [vmem:[#allocation19 + $0x8b4] ss:$8 sps:$4 sm:$0xff]  }
 0x487   :  { %5461 = vmatpush1.bf16.msra.mxu1 %v17471_v3  ;;  %v17519_v3 = vld [vmem:[#allocation19 + $0x8b0] ss:$8 sps:$4 sm:$0xff]  }
 0x488   :  { %5462 = vmatprep.subr.bf16.mxu1 %v17476_v4  ;;  %v17530_v4 = vld [vmem:[#allocation19 + $0x8e4] ss:$8 sps:$4 sm:$0xff]  }
 0x48b   :  { %5463 = vmatpush1.bf16.msra.mxu1 %v17474_v47  ;;  %v17528_v47 = vld [vmem:[#allocation19 + $0x8e0] ss:$8 sps:$4 sm:$0xff]  }
 0x48c   :  { %5475 = vmatprep.subr.bf16.mxu1 %v17480_v28  ;;  %v17536_v28 = vld [vmem:[#allocation19 + $0x904] ss:$8 sps:$4 sm:$0xff]  }
 0x48e   :  { %5465 = vmatmul.mubr.bf16.vlgmr.msra.gmra.mrb[20].mxu1 %v5172_v6  ;;  %v17539_v6 = vld [vmem:[#allocation19 + $0x914] ss:$8 sps:$4 sm:$0xff]  }
 0x48f   :  { %5476 = vmatpush1.bf16.msra.mxu1 %v17478_v58  ;;  %5507 = vmatprep.mubr.bf16.mxu1 %v20244_v37  ;;  %v17534_v58 = vld [vmem:[#allocation19 + $0x900] ss:$8 sps:$4 sm:$0xff]  }
 0x490   :  { %5477 = vmatprep.subr.bf16.mxu1 %v17484_v41  ;;  %v17537_v41 = vld [vmem:[#allocation19 + $0x910] ss:$8 sps:$4 sm:$0xff]  }
 0x493   :  { %5478 = vmatpush1.bf16.msra.mxu1 %v17482_v24  ;;  %v17542_v24 = vld [vmem:[#allocation19 + $0x924] ss:$8 sps:$4 sm:$0xff]  }
 0x494   :  { %5479 = vmatprep.subr.bf16.mxu1 %v17487_v1  ;;  %v17540_v1 = vld [vmem:[#allocation19 + $0x920] ss:$8 sps:$4 sm:$0xff]  }
 0x497   :  { %5480 = vmatpush1.bf16.msra.mxu1 %v17485_v15  ;;  %v15215_v15 = vcombine.low %v20283_v63, %v20226_v26  ;;  %v17556_v26 = vld [vmem:[#allocation19 + $0x964] ss:$8 sps:$4 sm:$0xff]   ;;  %v17554_v63 = vld [vmem:[#allocation19 + $0x960] ss:$8 sps:$4 sm:$0xff]  }
 0x498   :  { %5481 = vmatprep.subr.bf16.mxu1 %v17490_v35  ;;  %v17545_v35 = vld [vmem:[#allocation19 + $0x934] ss:$8 sps:$4 sm:$0xff]  }
 0x499   :  { %v5577_v59 = vrot.slane %v15215_v15, 3 }
 0x49b   :  { %5482 = vmatpush1.bf16.msra.mxu1 %v17488_v56  ;;  %v17543_v56 = vld [vmem:[#allocation19 + $0x930] ss:$8 sps:$4 sm:$0xff]  }
 0x49c   :  { %5483 = vmatprep.subr.bf16.mxu1 %v17493_v48  ;;  %v5579_v48 = vsel %vm20906_vm6, %v5577_v59, %v5578_v17 }
 0x49f   :  { %5484 = vmatpush1.bf16.msra.mxu1 %v17491_v9  ;;  %v17553_v9 = vld [vmem:[#allocation19 + $0x954] ss:$8 sps:$4 sm:$0xff]  }
 0x4a0   :  { %5485 = vmatprep.subr.bf16.mxu1 %v17496_v7  ;;  %v17560_v7 = vld [vmem:[#allocation19 + $0x980] ss:$8 sps:$4 sm:$0xff]  }
 0x4a3   :  { %5486 = vmatpush1.bf16.msra.mxu1 %v17494_v19  ;;  %v17565_v19 = vld [vmem:[#allocation19 + $0x994] ss:$8 sps:$4 sm:$0xff]  }
 0x4a4   :  { %5811 = vmatprep.subr.bf16.mxu1 %v17499_v39  ;;  %v5584_v39 = vrot.slane %v20277_v53, 3  ;;  %v17576_v53 = vld [vmem:[#allocation20 + $0x30] ss:$8 sps:$4 sm:$0xff]  }
 0x4a6   :  { %15214 = vmatmul.mubr.msk.bf16.vlgmr.msra.gmra.mrb[20].mxu1 %vm20911_vm0, %v5206_v49  ;;  %v5585_v54 = vsel %vm20906_vm6, %v5583_v23, %v5584_v39  ;;  %v17572_v49 = vld [vmem:[#allocation20 + $0x14] ss:$8 sps:$4 sm:$0xff]   ;;  %vm5977_vm6 = vmand %vm5975_vm14, %vm5976_vm15  ;;  %vm5987_vm14 = vcmask 1043840   ;;  %vm5988_vm15 = vcmask 1047556  }
 0x4a7   :  { %5812 = vmatpush1.bf16.msra.mxu1 %v17497_v27  ;;  %5843 = vmatprep.mubr.bf16.mxu1 %v5582_v50  ;;  %v17569_v27 = vld [vmem:[#allocation20 + $0x4] ss:$8 sps:$4 sm:$0xff]   ;;  %v17573_v50 = vld [vmem:[#allocation20 + $0x20] ss:$8 sps:$4 sm:$0xff]   ;;  %v5911_v23 = vld [vmem:[#allocation10 + $0x10] sm:$0xff] }
 0x4a8   :  { %5813 = vmatprep.subr.bf16.mxu1 %v17503_v52  ;;  %6304 = vmatprep.subr.bf16.mxu0 %v17569_v27  ;;  %v17570_v52 = vld [vmem:[#allocation20 + $0x10] ss:$8 sps:$4 sm:$0xff]  }
 0x4a9   :  { %6305 = vmatpush1.bf16.msra.mxu0 %v17567_v25 }
 0x4aa   :  { %6306 = vmatprep.subr.bf16.mxu0 %v17572_v49  ;;  %v5912_v49 = vld [vmem:[#allocation10 + $0x18] sm:$0xff] }
 0x4ab   :  { %5814 = vmatpush1.bf16.msra.mxu1 %v17501_v12  ;;  %v17578_v12 = vld [vmem:[#allocation20 + $0x34] ss:$8 sps:$4 sm:$0xff]  }
 0x4ac   :  { %5815 = vmatprep.subr.bf16.mxu1 %v17506_v32  ;;  %v17581_v32 = vld [vmem:[#allocation20 + $0x44] ss:$8 sps:$4 sm:$0xff]  }
 0x4ad   :  { %6307 = vmatpush1.bf16.msra.mxu0 %v17570_v52  ;;  %v17603_v52 = vld [vmem:[#allocation20 + $0xc0] ss:$8 sps:$4 sm:$0xff]  }
 0x4ae   :  { %6308 = vmatprep.subr.bf16.mxu0 %v17575_v45 }
 0x4af   :  { %5816 = vmatpush1.bf16.msra.mxu1 %v17504_v33  ;;  %v17579_v33 = vld [vmem:[#allocation20 + $0x40] ss:$8 sps:$4 sm:$0xff]  }
 0x4b0   :  { %5817 = vmatprep.subr.bf16.mxu1 %v17509_v57  ;;  %v17584_v57 = vld [vmem:[#allocation20 + $0x54] ss:$8 sps:$4 sm:$0xff]  }
 0x4b1   :  { %6309 = vmatpush1.bf16.msra.mxu0 %v17573_v50 }
 0x4b2   :  { %6310 = vmatprep.subr.bf16.mxu0 %v17578_v12 }
 0x4b3   :  { %5818 = vmatpush1.bf16.msra.mxu1 %v17507_v29  ;;  %v17582_v29 = vld [vmem:[#allocation20 + $0x50] ss:$8 sps:$4 sm:$0xff]  }
 0x4b4   :  { %5819 = vmatprep.subr.bf16.mxu1 %v17512_v2  ;;  %v17587_v2 = vld [vmem:[#allocation20 + $0x64] ss:$8 sps:$4 sm:$0xff]  }
 0x4b5   :  { %6311 = vmatpush1.bf16.msra.mxu0 %v17576_v53 }
 0x4b6   :  { %6312 = vmatprep.subr.bf16.mxu0 %v17581_v32 }
 0x4b7   :  { %5820 = vmatpush1.bf16.msra.mxu1 %v17510_v55  ;;  %v17585_v55 = vld [vmem:[#allocation20 + $0x60] ss:$8 sps:$4 sm:$0xff]  }
 0x4b8   :  { %5821 = vmatprep.subr.bf16.mxu1 %v17515_v16  ;;  %v17590_v16 = vld [vmem:[#allocation20 + $0x74] ss:$8 sps:$4 sm:$0xff]  }
 0x4b9   :  { %6313 = vmatpush1.bf16.msra.mxu0 %v17579_v33 }
 0x4ba   :  { %6314 = vmatprep.subr.bf16.mxu0 %v17584_v57  ;;  %v17608_v57 = vld [vmem:[#allocation20 + $0xd4] ss:$8 sps:$4 sm:$0xff]  }
 0x4bb   :  { %5822 = vmatpush1.bf16.msra.mxu1 %v17513_v44  ;;  %v17588_v44 = vld [vmem:[#allocation20 + $0x70] ss:$8 sps:$4 sm:$0xff]  }
 0x4bc   :  { %5823 = vmatprep.subr.bf16.mxu1 %v17518_v40  ;;  %v17593_v40 = vld [vmem:[#allocation20 + $0x84] ss:$8 sps:$4 sm:$0xff]  }
 0x4bd   :  { %6315 = vmatpush1.bf16.msra.mxu0 %v17582_v29 }
 0x4be   :  { %6316 = vmatprep.subr.bf16.mxu0 %v17587_v2  ;;  %v17606_v2 = vld [vmem:[#allocation20 + $0xd0] ss:$8 sps:$4 sm:$0xff]  }
 0x4bf   :  { %5824 = vmatpush1.bf16.msra.mxu1 %v17516_v8  ;;  %v17591_v8 = vld [vmem:[#allocation20 + $0x80] ss:$8 sps:$4 sm:$0xff]  }
 0x4c0   :  { %5825 = vmatprep.subr.bf16.mxu1 %v17521_v36  ;;  %v17596_v36 = vld [vmem:[#allocation20 + $0x94] ss:$8 sps:$4 sm:$0xff]  }
 0x4c1   :  { %6317 = vmatpush1.bf16.msra.mxu0 %v17585_v55 }
 0x4c2   :  { %6318 = vmatprep.subr.bf16.mxu0 %v17590_v16 }
 0x4c3   :  { %5826 = vmatpush1.bf16.msra.mxu1 %v17519_v3  ;;  %v17594_v3 = vld [vmem:[#allocation20 + $0x90] ss:$8 sps:$4 sm:$0xff]  }
 0x4c4   :  { %5827 = vmatprep.subr.bf16.mxu1 %v17524_v43  ;;  %v17599_v43 = vld [vmem:[#allocation20 + $0xa4] ss:$8 sps:$4 sm:$0xff]  }
 0x4c5   :  { %6319 = vmatpush1.bf16.msra.mxu0 %v17588_v44 }
 0x4c6   :  { %6320 = vmatprep.subr.bf16.mxu0 %v17593_v40 }
 0x4c7   :  { %5828 = vmatpush1.bf16.msra.mxu1 %v17522_v31  ;;  %v17597_v31 = vld [vmem:[#allocation20 + $0xa0] ss:$8 sps:$4 sm:$0xff]  }
 0x4c8   :  { %5829 = vmatprep.subr.bf16.mxu1 %v17527_v5  ;;  %v17602_v5 = vld [vmem:[#allocation20 + $0xb4] ss:$8 sps:$4 sm:$0xff]  }
 0x4c9   :  { %6321 = vmatpush1.bf16.msra.mxu0 %v17591_v8 }
 0x4ca   :  { %6322 = vmatprep.subr.bf16.mxu0 %v17596_v36  ;;  %v17611_v36 = vld [vmem:[#allocation20 + $0xe4] ss:$8 sps:$4 sm:$0xff]  }
 0x4cb   :  { %5830 = vmatpush1.bf16.msra.mxu1 %v17525_v42  ;;  %v17600_v42 = vld [vmem:[#allocation20 + $0xb0] ss:$8 sps:$4 sm:$0xff]  }
 0x4cc   :  { %5831 = vmatprep.subr.bf16.mxu1 %v17530_v4  ;;  %v3099_v4 = vld [vmem:[#allocation11] sm:$0xff] }
 0x4cd   :  { %6323 = vmatpush1.bf16.msra.mxu0 %v17594_v3  ;;  %v17609_v3 = vld [vmem:[#allocation20 + $0xe0] ss:$8 sps:$4 sm:$0xff]  }
 0x4ce   :  { %6324 = vmatprep.subr.bf16.mxu0 %v17599_v43 }
 0x4cf   :  { %5832 = vmatpush1.bf16.msra.mxu1 %v17528_v47  ;;  %v3111_v47 = vld [vmem:[#allocation26] sm:$0x3] }
 0x4d0   :  { %5833 = vmatprep.subr.bf16.mxu1 %v17533_v14  ;;  %v3100_v14 = vld [vmem:[#allocation11 + $0x8] sm:$0xff] }
 0x4d1   :  { %6325 = vmatpush1.bf16.msra.mxu0 %v17597_v31 }
 0x4d2   :  { %6326 = vmatprep.subr.bf16.mxu0 %v17602_v5 }
 0x4d3   :  { %5834 = vmatpush1.bf16.msra.mxu1 %v17531_v51  ;;  %v3101_v51 = vld [vmem:[#allocation11 + $0x10] sm:$0xff] }
 0x4d4   :  { %5835 = vmatprep.subr.bf16.mxu1 %v17536_v28  ;;  %v3103_v28 = vadd.f32 %v20171_v38, %v3099_v4  ;;  %v17614_v4 = vld [vmem:[#allocation20 + $0xf4] ss:$8 sps:$4 sm:$0xff]  }
 0x4d5   :  { %6327 = vmatpush1.bf16.msra.mxu0 %v17600_v42 }
 0x4d7   :  { %5836 = vmatpush1.bf16.msra.mxu1 %v17534_v58  ;;  %v3102_v58 = vld [vmem:[#allocation11 + $0x18] sm:$0xff] }
 0x4d8   :  { %5837 = vmatprep.subr.bf16.mxu1 %v17539_v6  ;;  %v3116_v6 = vrot.slane %v3111_v47, %v20013_v60  ;;  %v3106_v15 = vadd.f32 %v20178_v30, %v3102_v58  ;;  %v20924_v58 = vmov 0 }
 0x4d9   :  { %v20925_v58 = vsel %vm20310_vm11, 4294967295, %v20924_v58 }
 0x4db   :  { %5838 = vmatpush1.bf16.msra.mxu1 %v17537_v41  ;;  %v3104_v41 = vadd.f32 %v20174_v46, %v3100_v14 }
 0x4dc   :  { %5839 = vmatprep.subr.bf16.mxu1 %v17542_v24  ;;  %v3120_v24 = vrot.slane %v3111_v47, %v20015_v61  ;;  %v17612_v47 = vld [vmem:[#allocation20 + $0xf0] ss:$8 sps:$4 sm:$0xff]  }
 0x4df   :  { %5840 = vmatpush1.bf16.msra.mxu1 %v17540_v1  ;;  %v3105_v1 = vadd.f32 %v20176_v10, %v3101_v51 }
 0x4e0   :  { %5841 = vmatprep.subr.bf16.mxu1 %v17545_v35 }
 0x4e3   :  { %5842 = vmatpush1.bf16.msra.mxu1 %v17543_v56  ;;  %v3107_v56 = vmax.f32 %v3103_v28, 0.0 }
 0x4e4   :  { %5854 = vmatprep.subr.bf16.mxu1 %v17549_v20  ;;  %v3108_v20 = vmax.f32 %v3104_v41, 0.0 }
 0x4e6   :  { %5844 = vmatmul.mubr.bf16.vlgmr.msra.gmra.mrb[20].mxu1 %v5579_v48 }
 0x4e7   :  { %5855 = vmatpush1.bf16.msra.mxu1 %v17547_v0  ;;  %5886 = vmatprep.mubr.bf16.mxu1 %v20244_v37 }
 0x4e8   :  { %5856 = vmatprep.subr.bf16.mxu1 %v17553_v9  ;;  %v3109_v9 = vmax.f32 %v3105_v1, 0.0 }
 0x4eb   :  { %5857 = vmatpush1.bf16.msra.mxu1 %v17551_v11 }
 0x4ec   :  { %5858 = vmatprep.subr.bf16.mxu1 %v17556_v26 }
 0x4ef   :  { %5859 = vmatpush1.bf16.msra.mxu1 %v17554_v63 }
 0x4f0   :  { %5860 = vmatprep.subr.bf16.mxu1 %v17559_v18  ;;  %v3110_v18 = vmax.f32 %v3106_v15, 0.0  ;;  %v17618_v15 = vld [vmem:[#allocation20 + $0x104] ss:$8 sps:$4 sm:$0xff]  }
 0x4f3   :  { %5861 = vmatpush1.bf16.msra.mxu1 %v17557_v34  ;;  %v5909_v34 = vld [vmem:[#allocation10] sm:$0xff] }
 0x4f4   :  { %5862 = vmatprep.subr.bf16.mxu1 %v17562_v13 }
 0x4f7   :  { %5863 = vmatpush1.bf16.msra.mxu1 %v17560_v7 }
 0x4f8   :  { %5864 = vmatprep.subr.bf16.mxu1 %v17565_v19 }
 0x4fb   :  { %5865 = vmatpush1.bf16.msra.mxu1 %v17563_v21 }
 0x4fe   :  { %15262 = vmatmul.mubr.msk.bf16.vlgmr.msra.gmra.mrb[20].mxu1 %vm20911_vm0, %v5585_v54  ;;  %v17605_v54 = vld [vmem:[#allocation20 + $0xc4] ss:$8 sps:$4 sm:$0xff]   ;;  %vm5996_vm0 = vmand %vm5995_vm4, %vm2352_vm5 }
 0x4ff   :  { %6328 = vmatprep.subr.bf16.mxu0 %v17605_v54  ;;  %vm20332_vm13 = vmor %vm5996_vm0, %vm5994_vm2  ;;  %vm20936_vm2 = vcmask 785408  }
 0x500   :  { %6329 = vmatpush1.bf16.msra.mxu0 %v17603_v52  ;;  %vm20339_vm4 = vmand %vm6001_vm12, %vm5931_vm9  ;;  %v17616_v52 = vld [vmem:[#allocation20 + $0x100] ss:$8 sps:$4 sm:$0xff]   ;;  %vm20937_vm9 = vsmask.f32 7424  ;;  %vm20941_vm12 = vcmask 1046528  }
 0x501   :  { %6330 = vmatprep.subr.bf16.mxu0 %v17608_v57  ;;  %vm20344_vm0 = vmor %vm5988_vm15, %vm5987_vm14  ;;  %v17626_v57 = vld [vmem:[#allocation20 + $0x130] ss:$8 sps:$4 sm:$0xff]  }
 0x502   :  { %vm20938_vm7 = vmmov %vm20937_vm9 }
 0x503   :  { %vm20940_vm10 = vmmov %vm20936_vm2 }
 0x504   :  { %6331 = vmatpush1.bf16.msra.mxu0 %v17606_v2  ;;  %v17631_v2 = vld [vmem:[#allocation20 + $0x144] ss:$8 sps:$4 sm:$0xff]   ;;  %vm20942_vm14 = vmmov %vm20941_vm12 }
 0x505   :  { %6332 = vmatprep.subr.bf16.mxu0 %v17611_v36  ;;  %vm20943_vm15 = vmmov %vm20941_vm12 }
 0x508   :  { %6333 = vmatpush1.bf16.msra.mxu0 %v17609_v3  ;;  %v17632_v3 = vld [vmem:[#allocation20 + $0x150] ss:$8 sps:$4 sm:$0xff]  }
 0x509   :  { %6334 = vmatprep.subr.bf16.mxu0 %v17614_v4  ;;  %v17636_v4 = vld [vmem:[#allocation20 + $0x160] ss:$8 sps:$4 sm:$0xff]  }
 0x50c   :  { %6335 = vmatpush1.bf16.msra.mxu0 %v17612_v47 }
 0x50d   :  { %6347 = vmatprep.subr.bf16.mxu0 %v17618_v15  ;;  %v17651_v15 = vld [vmem:[#allocation20 + $0x1a4] ss:$8 sps:$4 sm:$0xff]  }
 0x5d1   :  { %v5888_v35 = vpop.f32.mrb[20].mxu1 }
 0x5d2   :  { %v16332_v59 = vadd.f32 %v5888_v35, %v3116_v6  ;;  %v5890_v17 = vpop.f32.mrb[21].mxu1 }
 0x5d3   :  { %v16333_v0 = vadd.f32 %v5890_v17, %v3120_v24  ;;  %v5892_v48 = vpop.f32.mrb[22].mxu1 }
 0x5d4   :  { %v5901_v11 = vadd.f32 %v16332_v59, %v3107_v56  ;;  %v16334_v26 = vadd.f32 %v5892_v48, %v3116_v6  ;;  %v5894_v63 = vpop.f32.mrb[23].mxu1  ;;  %v5984_v59 = vld [vmem:[#allocation2 + $0x8] sm:$0xe] }
 0x5d5   :  { %v5902_v13 = vadd.f32 %v16333_v0, %v3108_v20  ;;  %v16335_v62 = vadd.f32 %v5894_v63, %v3120_v24  ;;  %v5979_v0 = vld [vmem:[#allocation2] sm:$0xee] }
 0x5d6   :  { %v5905_v7 = vmax.f32 %v5901_v11, 0.0  ;;  %v5903_v19 = vadd.f32 %v16334_v26, %v3109_v9 }
 0x5d7   :  { %v5906_v21 = vmax.f32 %v5902_v13, 0.0  ;;  %v5904_v39 = vadd.f32 %v16335_v62, %v3110_v18 }
 0x5d8   :  { %v5913_v25 = vadd.f32 %v5909_v34, %v5905_v7  ;;  %v5907_v27 = vmax.f32 %v5903_v19, 0.0  ;;  %v6003_v34 = vld [vmem:[#allocation2 + $0x20] sm:$0x3]  ;;  %v5998_v7 = vld [vmem:[#allocation2 + $0x18] sm:$0x33] }
 0x5d9   :  { %v5914_v45 = vadd.f32 %v5910_v22, %v5906_v21  ;;  %v5908_v50 = vmax.f32 %v5904_v39, 0.0 }
 0x5da   :  { %v5917_v12 = vmax.f32 %v5913_v25, 0.0  ;;  %v5915_v53 = vadd.f32 %v5911_v23, %v5907_v27 }
 0x5db   :  { %v5918_v32 = vmax.f32 %v5914_v45, 0.0  ;;  %v5916_v33 = vadd.f32 %v5912_v49, %v5908_v50  ;;  %v17622_v50 = vld [vmem:[#allocation20 + $0x114] ss:$8 sps:$4 sm:$0xff]  }
 0x5dc   :  { %v5919_v29 = vmax.f32 %v5915_v53, 0.0  ;;  %v17625_v53 = vld [vmem:[#allocation20 + $0x124] ss:$8 sps:$4 sm:$0xff]  }
 0x5dd   :  { %v5920_v55 = vmax.f32 %v5916_v33, 0.0  ;;  %v16286_v16 = vpack.c.bf16 %v5918_v32, %v5917_v12  ;;  %v17620_v12 = vld [vmem:[#allocation20 + $0x110] ss:$8 sps:$4 sm:$0xff]   ;;  %v17623_v32 = vld [vmem:[#allocation20 + $0x120] ss:$8 sps:$4 sm:$0xff]  }
 0x5de   :  { %v17628_v33 = vld [vmem:[#allocation20 + $0x134] ss:$8 sps:$4 sm:$0xff]  }
 0x5df   :  { %v16287_v44 = vpack.c.bf16 %v5920_v55, %v5919_v29  ;;  %v5935_v40 = vshrl.u32 %v16286_v16, 16  ;;  %v5938_v8 = vshll.u32 %v16286_v16, 16 }
 0x5e1   :  { %v5937_v43 = vrot.slane %v5935_v40, 6  ;;  %v5940_v31 = vrot.slane %v5938_v8, 7  ;;  %v5944_v5 = vshrl.u32 %v16287_v44, 16  ;;  %v5947_v42 = vshll.u32 %v16287_v44, 16  ;;  %v17629_v44 = vld [vmem:[#allocation20 + $0x140] ss:$8 sps:$4 sm:$0xff]  }
 0x5e2   :  { %v17634_v40 = vld [vmem:[#allocation20 + $0x154] ss:$8 sps:$4 sm:$0xff]  }
 0x5e3   :  { %v5941_v14 = vor.u32 %v5940_v31, %v5937_v43  ;;  %v5946_v51 = vrot.slane %v5944_v5, 6  ;;  %v5949_v28 = vrot.slane %v5947_v42, 7  ;;  %v17638_v43 = vld [vmem:[#allocation20 + $0x164] ss:$8 sps:$4 sm:$0xff]  }
 0x5e5   :  { %5953 = vrot.lane.b32.xlu0 %v5941_v14, %s19488_s2  ;;  %v5942_v6 = vrot.slane %v5941_v14, 4  ;;  %v5950_v41 = vor.u32 %v5949_v28, %v5946_v51  ;;  %v17642_v14 = vld [vmem:[#allocation20 + $0x174] ss:$8 sps:$4 sm:$0xff]   ;;  %v17640_v28 = vld [vmem:[#allocation20 + $0x170] ss:$8 sps:$4 sm:$0xff]  }
 0x5e7   :  { %v5952_v24 = vrot.slane %v5950_v41, 4  ;;  %v5951_v1 = vsel %vm20310_vm11, %v5942_v6, %v5950_v41  ;;  %vm20325_vm11 = vmor %vm5977_vm6, %vm5974_vm8  ;;  %vm5991_vm6 = vcmask 388096   ;;  %v17645_v6 = vld [vmem:[#allocation20 + $0x184] ss:$8 sps:$4 sm:$0xff]   ;;  %v17643_v41 = vld [vmem:[#allocation20 + $0x180] ss:$8 sps:$4 sm:$0xff]  }
 0x5e8   :  { %vm20939_vm8 = vmmov %vm20938_vm7 }
 0x5e9   :  { %5957 = vrot.lane.b32.xlu1 %v5952_v24, %s19488_s2  ;;  %5955 = vrot.lane.b32.xlu0 %v5951_v1, %s19488_s2  ;;  %v17648_v24 = vld [vmem:[#allocation20 + $0x194] ss:$8 sps:$4 sm:$0xff]   ;;  %v17646_v1 = vld [vmem:[#allocation20 + $0x190] ss:$8 sps:$4 sm:$0xff]  }
 0x657   :  { %v5954_v56 = vpop.permute.xlu0 %5953 }
 0x658   :  { %v5959_v20 = vrot.slane %v5954_v56, 4 }
 0x65a   :  { %v5963_v48 = vsel %vm5962_vm1, %v5959_v20, %v5954_v56  ;;  %v5985_v9 = vsel %vm20319_vm3, %v5959_v20, %v5984_v59  ;;  %v17649_v56 = vld [vmem:[#allocation20 + $0x1a0] ss:$8 sps:$4 sm:$0xff]   ;;  %v17654_v59 = vld [vmem:[#allocation20 + $0x1b4] ss:$8 sps:$4 sm:$0xff]   ;;  %v17652_v20 = vld [vmem:[#allocation20 + $0x1b0] ss:$8 sps:$4 sm:$0xff]  }
 0x65b   :  { %v5980_v26 = vsel %vm20325_vm11, %v5963_v48, %v5979_v0  ;;  %5986 = vst [vmem:[#allocation2 + $0x8] sm:$0xe] %v5985_v9  ;;  %v5958_v18 = vpop.permute.xlu1 %5957  ;;  %v5956_v13 = vpop.permute.xlu0 %5955  ;;  %v17657_v0 = vld [vmem:[#allocation20 + $0x1c4] ss:$8 sps:$4 sm:$0xff]   ;;  %v17655_v48 = vld [vmem:[#allocation20 + $0x1c0] ss:$8 sps:$4 sm:$0xff]  }
 0x65c   :  { %5981 = vst [vmem:[#allocation2] sm:$0xee] %v5980_v26  ;;  %v5961_v62 = vrot.slane %v5958_v18, 4  ;;  %v5960_v19 = vrot.slane %v5956_v13, 4  ;;  %v17660_v9 = vld [vmem:[#allocation20 + $0x1d4] ss:$8 sps:$4 sm:$0xff]  }
 0x65d   :  { %v17658_v26 = vld [vmem:[#allocation20 + $0x1d0] ss:$8 sps:$4 sm:$0xff]  }
 0x65e   :  { %v5965_v21 = vsel %vm5962_vm1, %v5961_v62, %v5958_v18  ;;  %v6004_v23 = vsel %vm20339_vm4, %v5961_v62, %v6003_v34  ;;  %v5964_v39 = vsel %vm5962_vm1, %v5960_v19, %v5956_v13  ;;  %5992 = vst.msk [vmem:[#allocation2 + $0x14] sm:$0xf] %vm5991_vm6, %v5960_v19  ;;  %v17663_v18 = vld [vmem:[#allocation20 + $0x1e4] ss:$8 sps:$4 sm:$0xff]   ;;  %v17661_v34 = vld [vmem:[#allocation20 + $0x1e0] ss:$8 sps:$4 sm:$0xff]  }
 0x65f   :  { %v5999_v54 = vsel %vm20332_vm13, %v5965_v21, %v5998_v7  ;;  %6005 = vst [vmem:[#allocation2 + $0x20] sm:$0x3] %v6004_v23  ;;  %5990 = vst.msk [vmem:[#allocation2 + $0xc] sm:$0xff] %vm20344_vm0, %v5964_v39  ;;  %v17666_v13 = vld [vmem:[#allocation20 + $0x1f4] ss:$8 sps:$4 sm:$0xff]  }
 0x660   :  { %6000 = vst [vmem:[#allocation2 + $0x18] sm:$0x33] %v5999_v54  ;;  %v17664_v62 = vld [vmem:[#allocation20 + $0x1f0] ss:$8 sps:$4 sm:$0xff]   ;;  %v17669_v7 = vld [vmem:[#allocation20 + $0x204] ss:$8 sps:$4 sm:$0xff]  }
 0x661   :  { %v17667_v19 = vld [vmem:[#allocation20 + $0x200] ss:$8 sps:$4 sm:$0xff]   ;;  %v17672_v21 = vld [vmem:[#allocation20 + $0x214] ss:$8 sps:$4 sm:$0xff]   ;;  %v17670_v23 = vld [vmem:[#allocation20 + $0x210] ss:$8 sps:$4 sm:$0xff]  }
 0x662   :  { %v17675_v39 = vld [vmem:[#allocation20 + $0x224] ss:$8 sps:$4 sm:$0xff]   ;;  %v17673_v54 = vld [vmem:[#allocation20 + $0x220] ss:$8 sps:$4 sm:$0xff]  }
 0x663   :  { %v6018_v25 = vld [vmem:[#allocation2] sm:$0xff] }
 0x665   :  { %v17635_v47 = vld [vmem:[#allocation2 + $0x8] ss:$12 sps:$4 sm:$0xff]  }
 0x666   :  { %v20357_v27 = vld [vmem:[#allocation2 + $0xc] sm:$0xff] }
 0x667   :  { %v15266_v49 = vcombine.high %v6018_v25, %v20357_v27  ;;  %v20361_v45 = vcombine.low %v6018_v25, %v20357_v27  ;;  %v20365_v29 = vld [vmem:[#allocation2 + $0x18] sm:$0x11]  ;;  %v17678_v25 = vld [vmem:[#allocation20 + $0x234] ss:$8 sps:$4 sm:$0xff]  }
 0x668   :  { %v20369_v55 = vcombine.high %v20365_v29, %v20365_v29 }
 0x669   :  { %6336 = vmatprep.mubr.bf16.mxu0 %v15266_v49  ;;  %v6481_v16 = vshll.u32 %v15266_v49, 16  ;;  %v6479_v31 = vshrl.u32 %v15266_v49, 16  ;;  %v17676_v49 = vld [vmem:[#allocation20 + $0x230] ss:$8 sps:$4 sm:$0xff]  }
 0x66a   :  { %6337 = vmatmul.mubr.bf16.vlgmr.msra.gmra.mrb[20].mxu0 %v20361_v45  ;;  %v6486_v36 = vshll.u32 %v20369_v55, 16 }
 0x66b   :  { %6348 = vmatpush1.bf16.msra.mxu0 %v17616_v52  ;;  %6379 = vmatprep.mubr.bf16.mxu0 %v20244_v37  ;;  %v6483_v8 = vrot.slane %v6481_v16, 1  ;;  %v17681_v52 = vld [vmem:[#allocation20 + $0x244] ss:$8 sps:$4 sm:$0xff]   ;;  %v6467_v16 = vshrl.u32 %v20361_v45, 16 }
 0x66c   :  { %6349 = vmatprep.subr.bf16.mxu0 %v17622_v50  ;;  %v6488_v42 = vrot.slane %v6486_v36, 1  ;;  %v20376_v50 = vcombine.low %v20365_v29, %v20365_v29  ;;  %v17686_v29 = vld [vmem:[#allocation20 + $0x260] ss:$8 sps:$4 sm:$0xff]   ;;  %v17691_v36 = vld [vmem:[#allocation20 + $0x274] ss:$8 sps:$4 sm:$0xff]  }
 0x66d   :  { %v6484_v5 = vor.u32 %v6483_v8, %v6479_v31  ;;  %v17694_v31 = vld [vmem:[#allocation20 + $0x284] ss:$8 sps:$4 sm:$0xff]  }
 0x66f   :  { %6350 = vmatpush1.bf16.msra.mxu0 %v17620_v12  ;;  %v6489_v51 = vsel %vm20937_vm9, %v6484_v5, %v6488_v42  ;;  %v6469_v12 = vshll.u32 %v20361_v45, 16  ;;  %v20383_v5 = vld [vmem:[#allocation2 + $0x14] sm:$0xf]  ;;  %v17697_v42 = vld [vmem:[#allocation20 + $0x294] ss:$8 sps:$4 sm:$0xff]  }
 0x670   :  { %6351 = vmatprep.subr.bf16.mxu0 %v17625_v53  ;;  %v17679_v53 = vld [vmem:[#allocation20 + $0x240] ss:$8 sps:$4 sm:$0xff]   ;;  %vm20944_vm9 = vsmask.f32 6400 }
 0x671   :  { %v17692_v45 = vld [vmem:[#allocation20 + $0x280] ss:$8 sps:$4 sm:$0xff]  }
 0x673   :  { %6352 = vmatpush1.bf16.msra.mxu0 %v17623_v32  ;;  %v17684_v32 = vld [vmem:[#allocation20 + $0x254] ss:$8 sps:$4 sm:$0xff]  }
 0x674   :  { %6353 = vmatprep.subr.bf16.mxu0 %v17628_v33  ;;  %v6471_v33 = vrot.slane %v6469_v12, 1  ;;  %v17722_v12 = vld [vmem:[#allocation20 + $0x310] ss:$8 sps:$4 sm:$0xff]  }
 0x677   :  { %6354 = vmatpush1.bf16.msra.mxu0 %v17626_v57  ;;  %v6474_v57 = vshll.u32 %v20376_v50, 16 }
 0x678   :  { %6355 = vmatprep.subr.bf16.mxu0 %v17631_v2  ;;  %v17682_v2 = vld [vmem:[#allocation20 + $0x250] ss:$8 sps:$4 sm:$0xff]  }
 0x679   :  { %v6476_v8 = vrot.slane %v6474_v57, 1  ;;  %v17728_v57 = vld [vmem:[#allocation20 + $0x330] ss:$8 sps:$4 sm:$0xff]  }
 0x67b   :  { %6356 = vmatpush1.bf16.msra.mxu0 %v17629_v44  ;;  %v17688_v44 = vld [vmem:[#allocation20 + $0x264] ss:$8 sps:$4 sm:$0xff]  }
 0x67c   :  { %6357 = vmatprep.subr.bf16.mxu0 %v17634_v40  ;;  %v6472_v40 = vor.u32 %v6471_v33, %v6467_v16  ;;  %v17730_v33 = vld [vmem:[#allocation20 + $0x334] ss:$8 sps:$4 sm:$0xff]   ;;  %v17731_v16 = vld [vmem:[#allocation20 + $0x340] ss:$8 sps:$4 sm:$0xff]  }
 0x67f   :  { %6358 = vmatpush1.bf16.msra.mxu0 %v17632_v3  ;;  %v6477_v3 = vsel %vm20938_vm7, %v6472_v40, %v6476_v8  ;;  %v17734_v40 = vld [vmem:[#allocation20 + $0x350] ss:$8 sps:$4 sm:$0xff]   ;;  %v17739_v8 = vld [vmem:[#allocation20 + $0x364] ss:$8 sps:$4 sm:$0xff]   ;;  %vm20945_vm7 = vmmov %vm20944_vm9 }
 0x680   :  { %6727 = vmatprep.subr.bf16.mxu0 %v17638_v43  ;;  %v17689_v43 = vld [vmem:[#allocation20 + $0x270] ss:$8 sps:$4 sm:$0xff]  }
 0x682   :  { %15312 = vmatmul.mubr.msk.bf16.vlgmr.msra.gmra.mrb[20].mxu0 %vm20936_vm2, %v17635_v47 }
 0x683   :  { %6728 = vmatpush1.bf16.msra.mxu0 %v17636_v4  ;;  %6759 = vmatprep.mubr.bf16.mxu0 %v6489_v51  ;;  %v6395_v4 = vld [vmem:[#allocation2 + $0x8] sm:$0xf]  ;;  %v17700_v51 = vld [vmem:[#allocation20 + $0x2a4] ss:$8 sps:$4 sm:$0xff]  }
 0x684   :  { %6729 = vmatprep.subr.bf16.mxu0 %v17642_v14  ;;  %v15315_v47 = vcombine.low %v6395_v4, %v20383_v5  ;;  %v17695_v14 = vld [vmem:[#allocation20 + $0x290] ss:$8 sps:$4 sm:$0xff]   ;;  %v17751_v4 = vld [vmem:[#allocation20 + $0x3a4] ss:$8 sps:$4 sm:$0xff]  }
 0x687   :  { %6730 = vmatpush1.bf16.msra.mxu0 %v17640_v28  ;;  %v6493_v28 = vshll.u32 %v15315_v47, 16 }
 0x688   :  { %6731 = vmatprep.subr.bf16.mxu0 %v17645_v6  ;;  %v17698_v6 = vld [vmem:[#allocation20 + $0x2a0] ss:$8 sps:$4 sm:$0xff]  }
 0x68b   :  { %6732 = vmatpush1.bf16.msra.mxu0 %v17643_v41  ;;  %v20386_v41 = vld [vmem:[#allocation2 + $0x20] ss:$0 sps:$4 sm:$0x11]  }
 0x68c   :  { %6733 = vmatprep.subr.bf16.mxu0 %v17648_v24  ;;  %v17703_v24 = vld [vmem:[#allocation20 + $0x2b4] ss:$8 sps:$4 sm:$0xff]  }
 0x68f   :  { %6734 = vmatpush1.bf16.msra.mxu0 %v17646_v1  ;;  %v6495_v1 = vrot.slane %v6493_v28, 1  ;;  %v17752_v28 = vld [vmem:[#allocation20 + $0x3b0] ss:$8 sps:$4 sm:$0xff]  }
 0x690   :  { %6735 = vmatprep.subr.bf16.mxu0 %v17651_v15  ;;  %v20388_v15 = vld [vmem:[#allocation2] sm:$0xee] }
 0x693   :  { %6736 = vmatpush1.bf16.msra.mxu0 %v17649_v56  ;;  %v20392_v56 = vcombine.high %v20388_v15, %v20357_v27 }
 0x694   :  { %6737 = vmatprep.subr.bf16.mxu0 %v17654_v59  ;;  %v17701_v59 = vld [vmem:[#allocation20 + $0x2b0] ss:$8 sps:$4 sm:$0xff]  }
 0x697   :  { %6738 = vmatpush1.bf16.msra.mxu0 %v17652_v20  ;;  %v6491_v20 = vshrl.u32 %v15315_v47, 16  ;;  %v17749_v47 = vld [vmem:[#allocation20 + $0x3a0] ss:$8 sps:$4 sm:$0xff]  }
 0x698   :  { %6739 = vmatprep.subr.bf16.mxu0 %v17657_v0  ;;  %v6498_v0 = vshll.u32 %v20386_v41, 16 }
 0x69b   :  { %6740 = vmatpush1.bf16.msra.mxu0 %v17655_v48  ;;  %v17708_v48 = vld [vmem:[#allocation20 + $0x2c4] ss:$8 sps:$4 sm:$0xff]  }
 0x69c   :  { %6741 = vmatprep.subr.bf16.mxu0 %v17660_v9  ;;  %v6496_v9 = vor.u32 %v6495_v1, %v6491_v20  ;;  %v6873_v1 = vrot.slane %v20376_v50, 1  ;;  %v17761_v20 = vld [vmem:[#allocation20 + $0x3d4] ss:$8 sps:$4 sm:$0xff]  }
 0x69f   :  { %6742 = vmatpush1.bf16.msra.mxu0 %v17658_v26  ;;  %v6875_v26 = vrot.slane %v20392_v56, 1 }
 0x6a0   :  { %6743 = vmatprep.subr.bf16.mxu0 %v17663_v18  ;;  %v6876_v18 = vrot.slane %v20369_v55, 1  ;;  %v17718_v55 = vld [vmem:[#allocation20 + $0x2f4] ss:$8 sps:$4 sm:$0xff]  }
 0x6a3   :  { %6744 = vmatpush1.bf16.msra.mxu0 %v17661_v34  ;;  %v6500_v34 = vrot.slane %v6498_v0, 1 }
 0x6a4   :  { %6745 = vmatprep.subr.bf16.mxu0 %v17666_v13  ;;  %v17706_v13 = vld [vmem:[#allocation20 + $0x2c0] ss:$8 sps:$4 sm:$0xff]  }
 0x6a7   :  { %6746 = vmatpush1.bf16.msra.mxu0 %v17664_v62  ;;  %v17712_v62 = vld [vmem:[#allocation20 + $0x2d4] ss:$8 sps:$4 sm:$0xff]  }
 0x6a8   :  { %6747 = vmatprep.subr.bf16.mxu0 %v17669_v7  ;;  %v6501_v7 = vsel %vm20939_vm8, %v6496_v9, %v6500_v34  ;;  %v17762_v9 = vld [vmem:[#allocation20 + $0x3e0] ss:$8 sps:$4 sm:$0xff]   ;;  %v17765_v34 = vld [vmem:[#allocation20 + $0x3f0] ss:$8 sps:$4 sm:$0xff]   ;;  %vm20946_vm8 = vmmov %vm20945_vm7 }
 0x6ab   :  { %6748 = vmatpush1.bf16.msra.mxu0 %v17667_v19  ;;  %v6877_v19 = vsel %vm20941_vm12, %v6875_v26, %v6876_v18  ;;  %v20408_v26 = vld [vmem:[#allocation2 + $0x18] sm:$0x33]  ;;  %v17767_v18 = vld [vmem:[#allocation20 + $0x3f4] ss:$8 sps:$4 sm:$0xff]   ;;  %vm20948_vm12 = vcmask 1045504  }
 0x6ac   :  { %6749 = vmatprep.subr.bf16.mxu0 %v17672_v21  ;;  %v17710_v21 = vld [vmem:[#allocation20 + $0x2d0] ss:$8 sps:$4 sm:$0xff]   ;;  %v20412_v50 = vcombine.high %v20408_v26, %v20408_v26 }
 0x6af   :  { %6750 = vmatpush1.bf16.msra.mxu0 %v17670_v23  ;;  %v17715_v23 = vld [vmem:[#allocation20 + $0x2e4] ss:$8 sps:$4 sm:$0xff]  }
 0x6b0   :  { %6751 = vmatprep.subr.bf16.mxu0 %v17675_v39  ;;  %v17713_v39 = vld [vmem:[#allocation20 + $0x2e0] ss:$8 sps:$4 sm:$0xff]  }
 0x6b3   :  { %6752 = vmatpush1.bf16.msra.mxu0 %v17673_v54  ;;  %v17716_v54 = vld [vmem:[#allocation20 + $0x2f0] ss:$8 sps:$4 sm:$0xff]  }
 0x6b4   :  { %6753 = vmatprep.subr.bf16.mxu0 %v17678_v25  ;;  %v17721_v25 = vld [vmem:[#allocation20 + $0x304] ss:$8 sps:$4 sm:$0xff]  }
 0x6b7   :  { %6754 = vmatpush1.bf16.msra.mxu0 %v17676_v49  ;;  %v17719_v49 = vld [vmem:[#allocation20 + $0x300] ss:$8 sps:$4 sm:$0xff]  }
 0x6b8   :  { %6755 = vmatprep.subr.bf16.mxu0 %v17681_v52  ;;  %v17724_v52 = vld [vmem:[#allocation20 + $0x314] ss:$8 sps:$4 sm:$0xff]  }
 0x6bb   :  { %6756 = vmatpush1.bf16.msra.mxu0 %v17679_v53  ;;  %v17727_v53 = vld [vmem:[#allocation20 + $0x324] ss:$8 sps:$4 sm:$0xff]  }
 0x6bc   :  { %6757 = vmatprep.subr.bf16.mxu0 %v17684_v32  ;;  %v17725_v32 = vld [vmem:[#allocation20 + $0x320] ss:$8 sps:$4 sm:$0xff]  }
 0x6bf   :  { %6758 = vmatpush1.bf16.msra.mxu0 %v17682_v2  ;;  %v17733_v2 = vld [vmem:[#allocation20 + $0x344] ss:$8 sps:$4 sm:$0xff]  }
 0x6c0   :  { %6770 = vmatprep.subr.bf16.mxu0 %v17688_v44  ;;  %v17736_v44 = vld [vmem:[#allocation20 + $0x354] ss:$8 sps:$4 sm:$0xff]  }
 0x6c2   :  { %6760 = vmatmul.mubr.bf16.vlgmr.msra.gmra.mrb[20].mxu0 %v6477_v3  ;;  %v17740_v3 = vld [vmem:[#allocation20 + $0x370] ss:$8 sps:$4 sm:$0xff]  }
 0x6c3   :  { %6771 = vmatpush1.bf16.msra.mxu0 %v17686_v29  ;;  %6802 = vmatprep.mubr.bf16.mxu0 %v20244_v37  ;;  %v17737_v29 = vld [vmem:[#allocation20 + $0x360] ss:$8 sps:$4 sm:$0xff]  }
 0x6c4   :  { %6772 = vmatprep.subr.bf16.mxu0 %v17691_v36  ;;  %v17742_v36 = vld [vmem:[#allocation20 + $0x374] ss:$8 sps:$4 sm:$0xff]  }
 0x6c7   :  { %6773 = vmatpush1.bf16.msra.mxu0 %v17689_v43  ;;  %v17745_v43 = vld [vmem:[#allocation20 + $0x384] ss:$8 sps:$4 sm:$0xff]  }
 0x6c8   :  { %6774 = vmatprep.subr.bf16.mxu0 %v17694_v31  ;;  %v17743_v31 = vld [vmem:[#allocation20 + $0x380] ss:$8 sps:$4 sm:$0xff]  }
 0x6cb   :  { %6775 = vmatpush1.bf16.msra.mxu0 %v17692_v45  ;;  %v17748_v45 = vld [vmem:[#allocation20 + $0x394] ss:$8 sps:$4 sm:$0xff]  }
 0x6cc   :  { %6776 = vmatprep.subr.bf16.mxu0 %v17697_v42  ;;  %v17746_v42 = vld [vmem:[#allocation20 + $0x390] ss:$8 sps:$4 sm:$0xff]  }
 0x6cf   :  { %6777 = vmatpush1.bf16.msra.mxu0 %v17695_v14  ;;  %v17754_v14 = vld [vmem:[#allocation20 + $0x3b4] ss:$8 sps:$4 sm:$0xff]  }
 0x6d0   :  { %6778 = vmatprep.subr.bf16.mxu0 %v17700_v51  ;;  %v20402_v51 = vcombine.low %v20388_v15, %v20357_v27  ;;  %v17764_v15 = vld [vmem:[#allocation20 + $0x3e4] ss:$8 sps:$4 sm:$0xff]  }
 0x6d3   :  { %6779 = vmatpush1.bf16.msra.mxu0 %v17698_v6  ;;  %v17758_v6 = vld [vmem:[#allocation20 + $0x3c4] ss:$8 sps:$4 sm:$0xff]  }
 0x6d4   :  { %6780 = vmatprep.subr.bf16.mxu0 %v17703_v24  ;;  %v6872_v24 = vrot.slane %v20402_v51, 1 }
 0x6d6   :  { %v6874_v0 = vsel %vm20942_vm14, %v6872_v24, %v6873_v1  ;;  %v17802_v24 = vld [vmem:[#allocation20 + $0x4a4] ss:$8 sps:$4 sm:$0xff]   ;;  %v17800_v1 = vld [vmem:[#allocation20 + $0x4a0] ss:$8 sps:$4 sm:$0xff]   ;;  %vm20949_vm14 = vmmov %vm20948_vm12 }
 0x6d7   :  { %6781 = vmatpush1.bf16.msra.mxu0 %v17701_v59  ;;  %v17756_v59 = vld [vmem:[#allocation20 + $0x3c0] ss:$8 sps:$4 sm:$0xff]  }
 0x6d8   :  { %7106 = vmatprep.subr.bf16.mxu0 %v17708_v48  ;;  %v17759_v48 = vld [vmem:[#allocation20 + $0x3d0] ss:$8 sps:$4 sm:$0xff]  }
 0x6da   :  { %15363 = vmatmul.mubr.msk.bf16.vlgmr.msra.gmra.mrb[20].mxu0 %vm20940_vm10, %v6501_v7  ;;  %v7272_v7 = vshll.u32 %v20392_v56, 16  ;;  %vm20947_vm10 = vmmov %vm20936_vm2 }
 0x6db   :  { %7107 = vmatpush1.bf16.msra.mxu0 %v17706_v13  ;;  %7138 = vmatprep.mubr.bf16.mxu0 %v6877_v19  ;;  %v17770_v13 = vld [vmem:[#allocation20 + $0x404] ss:$8 sps:$4 sm:$0xff]   ;;  %v7277_v19 = vshrl.u32 %v20412_v50, 16 }
 0x6dc   :  { %7108 = vmatprep.subr.bf16.mxu0 %v17712_v62  ;;  %v7269_v62 = vshrl.u32 %v20392_v56, 16  ;;  %v17777_v56 = vld [vmem:[#allocation20 + $0x424] ss:$8 sps:$4 sm:$0xff]  }
 0x6df   :  { %7109 = vmatpush1.bf16.msra.mxu0 %v17710_v21  ;;  %v7280_v21 = vshll.u32 %v20412_v50, 16 }
 0x6e0   :  { %7110 = vmatprep.subr.bf16.mxu0 %v17715_v23  ;;  %v17768_v23 = vld [vmem:[#allocation20 + $0x400] ss:$8 sps:$4 sm:$0xff]  }
 0x6e3   :  { %7111 = vmatpush1.bf16.msra.mxu0 %v17713_v39  ;;  %v17773_v39 = vld [vmem:[#allocation20 + $0x414] ss:$8 sps:$4 sm:$0xff]  }
 0x6e4   :  { %7112 = vmatprep.subr.bf16.mxu0 %v17718_v55  ;;  %v6818_v55 = vld [vmem:[#allocation2 + $0x8] sm:$0xe] }
 0x6e7   :  { %7113 = vmatpush1.bf16.msra.mxu0 %v17716_v54  ;;  %v20419_v54 = vcombine.low %v6818_v55, %v20383_v5 }
 0x6e8   :  { %7114 = vmatprep.subr.bf16.mxu0 %v17721_v25  ;;  %v7271_v25 = vrot.slane %v7269_v62, 1  ;;  %v20428_v62 = vcombine.low %v20408_v26, %v20408_v26 }
 0x6ea   :  { %v7263_v55 = vshll.u32 %v20428_v62, 16 }
 0x6eb   :  { %7115 = vmatpush1.bf16.msra.mxu0 %v17719_v49  ;;  %v7274_v49 = vrot.slane %v7272_v7, 2  ;;  %v17815_v7 = vld [vmem:[#allocation20 + $0x4f0] ss:$8 sps:$4 sm:$0xff]  }
 0x6ec   :  { %7116 = vmatprep.subr.bf16.mxu0 %v17724_v52  ;;  %v7279_v52 = vrot.slane %v7277_v19, 1  ;;  %v17820_v19 = vld [vmem:[#allocation20 + $0x504] ss:$8 sps:$4 sm:$0xff]  }
 0x6ef   :  { %7117 = vmatpush1.bf16.msra.mxu0 %v17722_v12  ;;  %v7282_v12 = vrot.slane %v7280_v21, 2  ;;  %v7252_v21 = vshrl.u32 %v20402_v51, 16 }
 0x6f0   :  { %7118 = vmatprep.subr.bf16.mxu0 %v17727_v53  ;;  %v17771_v53 = vld [vmem:[#allocation20 + $0x410] ss:$8 sps:$4 sm:$0xff]  }
 0x6f3   :  { %7119 = vmatpush1.bf16.msra.mxu0 %v17725_v32  ;;  %v6878_v32 = vrot.slane %v20419_v54, 1 }
 0x6f4   :  { %7120 = vmatprep.subr.bf16.mxu0 %v17730_v33  ;;  %v6879_v33 = vrot.slane %v20386_v41, 1  ;;  %v17787_v41 = vld [vmem:[#allocation20 + $0x454] ss:$8 sps:$4 sm:$0xff]  }
 0x6f7   :  { %7121 = vmatpush1.bf16.msra.mxu0 %v17728_v57  ;;  %v7275_v57 = vor.u32 %v7274_v49, %v7271_v25  ;;  %v17818_v25 = vld [vmem:[#allocation20 + $0x500] ss:$8 sps:$4 sm:$0xff]   ;;  %v17823_v49 = vld [vmem:[#allocation20 + $0x514] ss:$8 sps:$4 sm:$0xff]  }
 0x6f8   :  { %7122 = vmatprep.subr.bf16.mxu0 %v17733_v2  ;;  %v7283_v2 = vor.u32 %v7282_v12, %v7279_v52  ;;  %v7254_v52 = vrot.slane %v7252_v21, 1  ;;  %v17853_v21 = vld [vmem:[#allocation20 + $0x5a4] ss:$8 sps:$4 sm:$0xff]  }
 0x6fb   :  { %7123 = vmatpush1.bf16.msra.mxu0 %v17731_v16  ;;  %v17775_v16 = vld [vmem:[#allocation20 + $0x420] ss:$8 sps:$4 sm:$0xff]  }
 0x6fc   :  { %7124 = vmatprep.subr.bf16.mxu0 %v17736_v44  ;;  %v17781_v44 = vld [vmem:[#allocation20 + $0x434] ss:$8 sps:$4 sm:$0xff]  }
 0x6ff   :  { %7125 = vmatpush1.bf16.msra.mxu0 %v17734_v40  ;;  %v6880_v40 = vsel %vm20943_vm15, %v6878_v32, %v6879_v33  ;;  %v17827_v32 = vld [vmem:[#allocation20 + $0x524] ss:$8 sps:$4 sm:$0xff]   ;;  %vm20950_vm15 = vmmov %vm20948_vm12 }
 0x700   :  { %7126 = vmatprep.subr.bf16.mxu0 %v17739_v8  ;;  %v7284_v8 = vsel %vm20944_vm9, %v7275_v57, %v7283_v2  ;;  %v17830_v2 = vld [vmem:[#allocation20 + $0x534] ss:$8 sps:$4 sm:$0xff]   ;;  %vm20951_vm9 = vmmov %vm20936_vm2 }
 0x703   :  { %7127 = vmatpush1.bf16.msra.mxu0 %v17737_v29  ;;  %v17779_v29 = vld [vmem:[#allocation20 + $0x430] ss:$8 sps:$4 sm:$0xff]  }
 0x704   :  { %7128 = vmatprep.subr.bf16.mxu0 %v17742_v36  ;;  %v17784_v36 = vld [vmem:[#allocation20 + $0x444] ss:$8 sps:$4 sm:$0xff]  }
 0x707   :  { %7129 = vmatpush1.bf16.msra.mxu0 %v17740_v3  ;;  %v17782_v3 = vld [vmem:[#allocation20 + $0x440] ss:$8 sps:$4 sm:$0xff]  }
 0x708   :  { %7130 = vmatprep.subr.bf16.mxu0 %v17745_v43  ;;  %v17785_v43 = vld [vmem:[#allocation20 + $0x450] ss:$8 sps:$4 sm:$0xff]  }
 0x70b   :  { %7131 = vmatpush1.bf16.msra.mxu0 %v17743_v31  ;;  %v17790_v31 = vld [vmem:[#allocation20 + $0x464] ss:$8 sps:$4 sm:$0xff]  }
 0x70c   :  { %7132 = vmatprep.subr.bf16.mxu0 %v17748_v45  ;;  %v17788_v45 = vld [vmem:[#allocation20 + $0x460] ss:$8 sps:$4 sm:$0xff]  }
 0x70f   :  { %7133 = vmatpush1.bf16.msra.mxu0 %v17746_v42  ;;  %v17793_v42 = vld [vmem:[#allocation20 + $0x474] ss:$8 sps:$4 sm:$0xff]  }
 0x710   :  { %7134 = vmatprep.subr.bf16.mxu0 %v17751_v4  ;;  %v17791_v4 = vld [vmem:[#allocation20 + $0x470] ss:$8 sps:$4 sm:$0xff]  }
 0x713   :  { %7135 = vmatpush1.bf16.msra.mxu0 %v17749_v47  ;;  %v17796_v47 = vld [vmem:[#allocation20 + $0x484] ss:$8 sps:$4 sm:$0xff]  }
 0x714   :  { %7136 = vmatprep.subr.bf16.mxu0 %v17754_v14  ;;  %v17794_v14 = vld [vmem:[#allocation20 + $0x480] ss:$8 sps:$4 sm:$0xff]  }
 0x717   :  { %7137 = vmatpush1.bf16.msra.mxu0 %v17752_v28  ;;  %v17799_v28 = vld [vmem:[#allocation20 + $0x494] ss:$8 sps:$4 sm:$0xff]  }
 0x718   :  { %7149 = vmatprep.subr.bf16.mxu0 %v17758_v6  ;;  %v17797_v6 = vld [vmem:[#allocation20 + $0x490] ss:$8 sps:$4 sm:$0xff]  }
 0x71a   :  { %7139 = vmatmul.mubr.bf16.vlgmr.msra.gmra.mrb[20].mxu0 %v6874_v0  ;;  %v17808_v0 = vld [vmem:[#allocation20 + $0x4c4] ss:$8 sps:$4 sm:$0xff]  }
 0x71b   :  { %7150 = vmatpush1.bf16.msra.mxu0 %v17756_v59  ;;  %7181 = vmatprep.mubr.bf16.mxu0 %v20244_v37  ;;  %v17805_v59 = vld [vmem:[#allocation20 + $0x4b4] ss:$8 sps:$4 sm:$0xff]  }
 0x71c   :  { %7151 = vmatprep.subr.bf16.mxu0 %v17761_v20  ;;  %v17803_v20 = vld [vmem:[#allocation20 + $0x4b0] ss:$8 sps:$4 sm:$0xff]  }
 0x71f   :  { %7152 = vmatpush1.bf16.msra.mxu0 %v17759_v48  ;;  %v17806_v48 = vld [vmem:[#allocation20 + $0x4c0] ss:$8 sps:$4 sm:$0xff]  }
 0x720   :  { %7153 = vmatprep.subr.bf16.mxu0 %v17764_v15  ;;  %v17811_v15 = vld [vmem:[#allocation20 + $0x4d4] ss:$8 sps:$4 sm:$0xff]  }
 0x723   :  { %7154 = vmatpush1.bf16.msra.mxu0 %v17762_v9  ;;  %v17809_v9 = vld [vmem:[#allocation20 + $0x4d0] ss:$8 sps:$4 sm:$0xff]  }
 0x724   :  { %7155 = vmatprep.subr.bf16.mxu0 %v17767_v18  ;;  %v17814_v18 = vld [vmem:[#allocation20 + $0x4e4] ss:$8 sps:$4 sm:$0xff]  }
 0x727   :  { %7156 = vmatpush1.bf16.msra.mxu0 %v17765_v34  ;;  %v17812_v34 = vld [vmem:[#allocation20 + $0x4e0] ss:$8 sps:$4 sm:$0xff]  }
 0x728   :  { %7157 = vmatprep.subr.bf16.mxu0 %v17770_v13  ;;  %v17817_v13 = vld [vmem:[#allocation20 + $0x4f4] ss:$8 sps:$4 sm:$0xff]  }
 0x72b   :  { %7158 = vmatpush1.bf16.msra.mxu0 %v17768_v23  ;;  %v7255_v23 = vshll.u32 %v20402_v51, 16  ;;  %v17825_v51 = vld [vmem:[#allocation20 + $0x520] ss:$8 sps:$4 sm:$0xff]  }
 0x72c   :  { %7159 = vmatprep.subr.bf16.mxu0 %v17773_v39  ;;  %v7260_v39 = vshrl.u32 %v20428_v62, 16 }
 0x72d   :  { %v7257_v12 = vrot.slane %v7255_v23, 2  ;;  %v17851_v23 = vld [vmem:[#allocation20 + $0x5a0] ss:$8 sps:$4 sm:$0xff]  }
 0x72e   :  { %v7262_v26 = vrot.slane %v7260_v39, 1  ;;  %v17856_v39 = vld [vmem:[#allocation20 + $0x5b4] ss:$8 sps:$4 sm:$0xff]  }
 0x72f   :  { %7160 = vmatpush1.bf16.msra.mxu0 %v17771_v53  ;;  %v7265_v53 = vrot.slane %v7263_v55, 2  ;;  %v7258_v33 = vor.u32 %v7257_v12, %v7254_v52  ;;  %v17859_v55 = vld [vmem:[#allocation20 + $0x5c4] ss:$8 sps:$4 sm:$0xff]   ;;  %v17860_v52 = vld [vmem:[#allocation20 + $0x5d0] ss:$8 sps:$4 sm:$0xff]  }
 0x730   :  { %7527 = vmatprep.subr.bf16.mxu0 %v17777_v56  ;;  %v17821_v56 = vld [vmem:[#allocation20 + $0x510] ss:$8 sps:$4 sm:$0xff]   ;;  %v17865_v12 = vld [vmem:[#allocation20 + $0x5e4] ss:$8 sps:$4 sm:$0xff]  }
 0x731   :  { %v7266_v57 = vor.u32 %v7265_v53, %v7262_v26  ;;  %v17863_v26 = vld [vmem:[#allocation20 + $0x5e0] ss:$8 sps:$4 sm:$0xff]   ;;  %v17868_v53 = vld [vmem:[#allocation20 + $0x5f4] ss:$8 sps:$4 sm:$0xff]  }
 0x732   :  { %15411 = vmatmul.mubr.msk.bf16.vlgmr.msra.gmra.mrb[20].mxu0 %vm20936_vm2, %v6880_v40  ;;  %v17833_v40 = vld [vmem:[#allocation20 + $0x544] ss:$8 sps:$4 sm:$0xff]  }
 0x733   :  { %7528 = vmatpush1.bf16.msra.mxu0 %v17775_v16  ;;  %7559 = vmatprep.mubr.bf16.mxu0 %v7284_v8  ;;  %v7267_v16 = vsel %vm20945_vm7, %v7258_v33, %v7266_v57  ;;  %v17831_v8 = vld [vmem:[#allocation20 + $0x540] ss:$8 sps:$4 sm:$0xff]   ;;  %v17874_v57 = vld [vmem:[#allocation20 + $0x614] ss:$8 sps:$4 sm:$0xff]   ;;  %vm20952_vm7 = vcmask 1044480  }
 0x734   :  { %7529 = vmatprep.subr.bf16.mxu0 %v17781_v44  ;;  %v17828_v44 = vld [vmem:[#allocation20 + $0x530] ss:$8 sps:$4 sm:$0xff]   ;;  %v17869_v33 = vld [vmem:[#allocation20 + $0x600] ss:$8 sps:$4 sm:$0xff]  }
 0x737   :  { %7530 = vmatpush1.bf16.msra.mxu0 %v17779_v29  ;;  %v17836_v29 = vld [vmem:[#allocation20 + $0x554] ss:$8 sps:$4 sm:$0xff]  }
 0x738   :  { %7531 = vmatprep.subr.bf16.mxu0 %v17784_v36  ;;  %v20436_v36 = vld [vmem:[#allocation2 + $0x20] ss:$0 sps:$4 sm:$0x33]  }
 0x73b   :  { %7532 = vmatpush1.bf16.msra.mxu0 %v17782_v3  ;;  %v17834_v3 = vld [vmem:[#allocation20 + $0x550] ss:$8 sps:$4 sm:$0xff]  }
 0x73c   :  { %7533 = vmatprep.subr.bf16.mxu0 %v17787_v41  ;;  %v17839_v41 = vld [vmem:[#allocation20 + $0x564] ss:$8 sps:$4 sm:$0xff]  }
 0x73f   :  { %7534 = vmatpush1.bf16.msra.mxu0 %v17785_v43  ;;  %v7286_v43 = vshrl.u32 %v20419_v54, 16 }
 0x740   :  { %7535 = vmatprep.subr.bf16.mxu0 %v17790_v31  ;;  %v7289_v31 = vshll.u32 %v20419_v54, 16  ;;  %v17840_v54 = vld [vmem:[#allocation20 + $0x570] ss:$8 sps:$4 sm:$0xff]  }
 0x743   :  { %7536 = vmatpush1.bf16.msra.mxu0 %v17788_v45  ;;  %v7294_v45 = vshrl.u32 %v20436_v36, 16 }
 0x744   :  { %7537 = vmatprep.subr.bf16.mxu0 %v17793_v42  ;;  %v7297_v42 = vshll.u32 %v20436_v36, 16 }
 0x747   :  { %7538 = vmatpush1.bf16.msra.mxu0 %v17791_v4  ;;  %v17837_v4 = vld [vmem:[#allocation20 + $0x560] ss:$8 sps:$4 sm:$0xff]  }
 0x748   :  { %7539 = vmatprep.subr.bf16.mxu0 %v17796_v47  ;;  %v17842_v47 = vld [vmem:[#allocation20 + $0x574] ss:$8 sps:$4 sm:$0xff]  }
 0x74b   :  { %7540 = vmatpush1.bf16.msra.mxu0 %v17794_v14  ;;  %v7288_v14 = vrot.slane %v7286_v43, 1  ;;  %v17889_v43 = vld [vmem:[#allocation20 + $0x664] ss:$8 sps:$4 sm:$0xff]  }
 0x74c   :  { %7541 = vmatprep.subr.bf16.mxu0 %v17799_v28  ;;  %v7291_v28 = vrot.slane %v7289_v31, 2  ;;  %v17887_v31 = vld [vmem:[#allocation20 + $0x660] ss:$8 sps:$4 sm:$0xff]  }
 0x74f   :  { %7542 = vmatpush1.bf16.msra.mxu0 %v17797_v6  ;;  %v7296_v6 = vrot.slane %v7294_v45, 1  ;;  %v17892_v45 = vld [vmem:[#allocation20 + $0x674] ss:$8 sps:$4 sm:$0xff]  }
 0x750   :  { %7543 = vmatprep.subr.bf16.mxu0 %v17802_v24  ;;  %v7299_v24 = vrot.slane %v7297_v42, 2 }
 0x753   :  { %7544 = vmatpush1.bf16.msra.mxu0 %v17800_v1  ;;  %v20442_v1 = vld [vmem:[#allocation2] sm:$0xcc] }
 0x754   :  { %7545 = vmatprep.subr.bf16.mxu0 %v17805_v59  ;;  %v20446_v59 = vcombine.high %v20442_v1, %v20357_v27  ;;  %v20455_v42 = vcombine.low %v20442_v1, %v20357_v27  ;;  %v17902_v27 = vld [vmem:[#allocation20 + $0x6a4] ss:$8 sps:$4 sm:$0xff]   ;;  %v17900_v1 = vld [vmem:[#allocation20 + $0x6a0] ss:$8 sps:$4 sm:$0xff]  }
 0x757   :  { %7546 = vmatpush1.bf16.msra.mxu0 %v17803_v20  ;;  %v17846_v20 = vld [vmem:[#allocation20 + $0x584] ss:$8 sps:$4 sm:$0xff]  }
 0x758   :  { %7547 = vmatprep.subr.bf16.mxu0 %v17808_v0  ;;  %v7292_v0 = vor.u32 %v7291_v28, %v7288_v14  ;;  %v7672_v14 = vrot.slane %v20455_v42, 2  ;;  %v7673_v28 = vrot.slane %v20428_v62, 2 }
 0x75b   :  { %7548 = vmatpush1.bf16.msra.mxu0 %v17806_v48  ;;  %v7300_v48 = vor.u32 %v7299_v24, %v7296_v6  ;;  %v17894_v6 = vld [vmem:[#allocation20 + $0x680] ss:$8 sps:$4 sm:$0xff]   ;;  %v17899_v24 = vld [vmem:[#allocation20 + $0x694] ss:$8 sps:$4 sm:$0xff]  }
 0x75c   :  { %7549 = vmatprep.subr.bf16.mxu0 %v17811_v15  ;;  %v7675_v15 = vrot.slane %v20446_v59, 2 }
 0x75f   :  { %7550 = vmatpush1.bf16.msra.mxu0 %v17809_v9  ;;  %v7676_v9 = vrot.slane %v20412_v50, 2  ;;  %v17854_v50 = vld [vmem:[#allocation20 + $0x5b0] ss:$8 sps:$4 sm:$0xff]  }
 0x760   :  { %7551 = vmatprep.subr.bf16.mxu0 %v17814_v18  ;;  %v17844_v18 = vld [vmem:[#allocation20 + $0x580] ss:$8 sps:$4 sm:$0xff]  }
 0x763   :  { %7552 = vmatpush1.bf16.msra.mxu0 %v17812_v34  ;;  %v17850_v34 = vld [vmem:[#allocation20 + $0x594] ss:$8 sps:$4 sm:$0xff]  }
 0x764   :  { %7553 = vmatprep.subr.bf16.mxu0 %v17817_v13  ;;  %v7301_v13 = vsel %vm20946_vm8, %v7292_v0, %v7300_v48  ;;  %v20461_v0 = vld [vmem:[#allocation2 + $0x18] sm:$0x77]  ;;  %v17905_v48 = vld [vmem:[#allocation20 + $0x6b4] ss:$8 sps:$4 sm:$0xff]   ;;  %vm20953_vm8 = vmmov %vm20952_vm7 }
 0x765   :  { %v20465_v62 = vcombine.high %v20461_v0, %v20461_v0 }
 0x767   :  { %7554 = vmatpush1.bf16.msra.mxu0 %v17815_v7  ;;  %v7677_v7 = vsel %vm20948_vm12, %v7675_v15, %v7676_v9  ;;  %v17903_v15 = vld [vmem:[#allocation20 + $0x6b0] ss:$8 sps:$4 sm:$0xff]   ;;  %v17908_v9 = vld [vmem:[#allocation20 + $0x6c4] ss:$8 sps:$4 sm:$0xff]   ;;  %vm20955_vm12 = vmmov %vm20936_vm2 }
 0x768   :  { %7555 = vmatprep.subr.bf16.mxu0 %v17820_v19  ;;  %v17848_v19 = vld [vmem:[#allocation20 + $0x590] ss:$8 sps:$4 sm:$0xff]  }
 0x76b   :  { %7556 = vmatpush1.bf16.msra.mxu0 %v17818_v25  ;;  %v17857_v25 = vld [vmem:[#allocation20 + $0x5c0] ss:$8 sps:$4 sm:$0xff]  }
 0x76c   :  { %7557 = vmatprep.subr.bf16.mxu0 %v17823_v49  ;;  %v17862_v49 = vld [vmem:[#allocation20 + $0x5d4] ss:$8 sps:$4 sm:$0xff]  }
 0x76f   :  { %7558 = vmatpush1.bf16.msra.mxu0 %v17821_v56  ;;  %v17866_v56 = vld [vmem:[#allocation20 + $0x5f0] ss:$8 sps:$4 sm:$0xff]  }
 0x770   :  { %7570 = vmatprep.subr.bf16.mxu0 %v17827_v32  ;;  %v17871_v32 = vld [vmem:[#allocation20 + $0x604] ss:$8 sps:$4 sm:$0xff]  }
 0x772   :  { %7560 = vmatmul.mubr.bf16.vlgmr.msra.gmra.mrb[20].mxu0 %v7267_v16  ;;  %v17875_v16 = vld [vmem:[#allocation20 + $0x620] ss:$8 sps:$4 sm:$0xff]  }
 0x773   :  { %7571 = vmatpush1.bf16.msra.mxu0 %v17825_v51  ;;  %7602 = vmatprep.mubr.bf16.mxu0 %v20244_v37  ;;  %v17872_v51 = vld [vmem:[#allocation20 + $0x610] ss:$8 sps:$4 sm:$0xff]  }
 0x774   :  { %7572 = vmatprep.subr.bf16.mxu0 %v17830_v2  ;;  %v17877_v2 = vld [vmem:[#allocation20 + $0x624] ss:$8 sps:$4 sm:$0xff]  }
 0x777   :  { %7573 = vmatpush1.bf16.msra.mxu0 %v17828_v44  ;;  %v17880_v44 = vld [vmem:[#allocation20 + $0x634] ss:$8 sps:$4 sm:$0xff]  }
 0x778   :  { %7574 = vmatprep.subr.bf16.mxu0 %v17833_v40  ;;  %v17878_v40 = vld [vmem:[#allocation20 + $0x630] ss:$8 sps:$4 sm:$0xff]  }
 0x77b   :  { %7575 = vmatpush1.bf16.msra.mxu0 %v17831_v8  ;;  %v17883_v8 = vld [vmem:[#allocation20 + $0x644] ss:$8 sps:$4 sm:$0xff]  }
 0x77c   :  { %7576 = vmatprep.subr.bf16.mxu0 %v17836_v29  ;;  %v17881_v29 = vld [vmem:[#allocation20 + $0x640] ss:$8 sps:$4 sm:$0xff]  }
 0x77f   :  { %7577 = vmatpush1.bf16.msra.mxu0 %v17834_v3  ;;  %v17886_v3 = vld [vmem:[#allocation20 + $0x654] ss:$8 sps:$4 sm:$0xff]  }
 0x780   :  { %7578 = vmatprep.subr.bf16.mxu0 %v17839_v41  ;;  %v17884_v41 = vld [vmem:[#allocation20 + $0x650] ss:$8 sps:$4 sm:$0xff]  }
 0x783   :  { %7579 = vmatpush1.bf16.msra.mxu0 %v17837_v4  ;;  %v17890_v4 = vld [vmem:[#allocation20 + $0x670] ss:$8 sps:$4 sm:$0xff]  }
 0x784   :  { %7580 = vmatprep.subr.bf16.mxu0 %v17842_v47  ;;  %v17896_v47 = vld [vmem:[#allocation20 + $0x684] ss:$8 sps:$4 sm:$0xff]  }
 0x787   :  { %7581 = vmatpush1.bf16.msra.mxu0 %v17840_v54  ;;  %v7674_v54 = vsel %vm20949_vm14, %v7672_v14, %v7673_v28  ;;  %v17943_v14 = vld [vmem:[#allocation20 + $0x774] ss:$8 sps:$4 sm:$0xff]   ;;  %v17941_v28 = vld [vmem:[#allocation20 + $0x770] ss:$8 sps:$4 sm:$0xff]   ;;  %vm20956_vm14 = vnez %v20925_v58 }
 0x788   :  { %7906 = vmatprep.subr.bf16.mxu0 %v17846_v20  ;;  %v17897_v20 = vld [vmem:[#allocation20 + $0x690] ss:$8 sps:$4 sm:$0xff]  }
 0x78a   :  { %15459 = vmatmul.mubr.msk.bf16.vlgmr.msra.gmra.mrb[20].mxu0 %vm20947_vm10, %v7301_v13  ;;  %v8077_v13 = vshrl.u32 %v20465_v62, 16  ;;  %vm20954_vm10 = vmmov %vm20952_vm7 }
 0x78b   :  { %7907 = vmatpush1.bf16.msra.mxu0 %v17844_v18  ;;  %7938 = vmatprep.mubr.bf16.mxu0 %v7677_v7  ;;  %v8069_v18 = vshrl.u32 %v20446_v59, 16  ;;  %v8080_v7 = vshll.u32 %v20465_v62, 16 }
 0x78c   :  { %7908 = vmatprep.subr.bf16.mxu0 %v17850_v34  ;;  %v8072_v34 = vshll.u32 %v20446_v59, 16  ;;  %v17915_v59 = vld [vmem:[#allocation20 + $0x6e4] ss:$8 sps:$4 sm:$0xff]  }
 0x78f   :  { %7909 = vmatpush1.bf16.msra.mxu0 %v17848_v19  ;;  %v17906_v19 = vld [vmem:[#allocation20 + $0x6c0] ss:$8 sps:$4 sm:$0xff]  }
 0x790   :  { %7910 = vmatprep.subr.bf16.mxu0 %v17853_v21  ;;  %v17911_v21 = vld [vmem:[#allocation20 + $0x6d4] ss:$8 sps:$4 sm:$0xff]  }
 0x793   :  { %7911 = vmatpush1.bf16.msra.mxu0 %v17851_v23  ;;  %v7618_v23 = vld [vmem:[#allocation2 + $0x8] sm:$0xc] }
 0x794   :  { %7912 = vmatprep.subr.bf16.mxu0 %v17856_v39  ;;  %v20472_v39 = vcombine.low %v7618_v23, %v20383_v5  ;;  %v17961_v23 = vld [vmem:[#allocation20 + $0x7d4] ss:$8 sps:$4 sm:$0xff]  }
 0x797   :  { %7913 = vmatpush1.bf16.msra.mxu0 %v17854_v50  ;;  %v8071_v50 = vrot.slane %v8069_v18, 2  ;;  %v17958_v18 = vld [vmem:[#allocation20 + $0x7c4] ss:$8 sps:$4 sm:$0xff]  }
 0x798   :  { %7914 = vmatprep.subr.bf16.mxu0 %v17859_v55  ;;  %v8074_v55 = vrot.slane %v8072_v34, 3  ;;  %v8052_v34 = vshrl.u32 %v20455_v42, 16 }
 0x79b   :  { %7915 = vmatpush1.bf16.msra.mxu0 %v17857_v25  ;;  %v8079_v25 = vrot.slane %v8077_v13, 2  ;;  %v8055_v13 = vshll.u32 %v20455_v42, 16  ;;  %v17963_v42 = vld [vmem:[#allocation20 + $0x7e0] ss:$8 sps:$4 sm:$0xff]  }
 0x79c   :  { %7916 = vmatprep.subr.bf16.mxu0 %v17862_v49  ;;  %v8082_v49 = vrot.slane %v8080_v7, 3 }
 0x79f   :  { %7917 = vmatpush1.bf16.msra.mxu0 %v17860_v52  ;;  %v17909_v52 = vld [vmem:[#allocation20 + $0x6d0] ss:$8 sps:$4 sm:$0xff]  }
 0x7a0   :  { %7918 = vmatprep.subr.bf16.mxu0 %v17865_v12  ;;  %v7678_v12 = vrot.slane %v20472_v39, 2 }
 0x7a3   :  { %7919 = vmatpush1.bf16.msra.mxu0 %v17863_v26  ;;  %v7679_v26 = vrot.slane %v20436_v36, 2  ;;  %v17925_v36 = vld [vmem:[#allocation20 + $0x714] ss:$8 sps:$4 sm:$0xff]  }
 0x7a4   :  { %7920 = vmatprep.subr.bf16.mxu0 %v17868_v53  ;;  %v8075_v53 = vor.u32 %v8074_v55, %v8071_v50  ;;  %v8054_v50 = vrot.slane %v8052_v34, 2  ;;  %v8057_v55 = vrot.slane %v8055_v13, 3  ;;  %v17989_v34 = vld [vmem:[#allocation20 + $0x860] ss:$8 sps:$4 sm:$0xff]   ;;  %v17994_v13 = vld [vmem:[#allocation20 + $0x874] ss:$8 sps:$4 sm:$0xff]  }
 0x7a5   :  { %v7680_v5 = vsel %vm20950_vm15, %v7678_v12, %v7679_v26  ;;  %v17968_v26 = vld [vmem:[#allocation20 + $0x7f4] ss:$8 sps:$4 sm:$0xff]   ;;  %vm20957_vm15 = vmmov %vm20936_vm2 }
 0x7a7   :  { %7921 = vmatpush1.bf16.msra.mxu0 %v17866_v56  ;;  %v8083_v56 = vor.u32 %v8082_v49, %v8079_v25  ;;  %v17959_v49 = vld [vmem:[#allocation20 + $0x7d0] ss:$8 sps:$4 sm:$0xff]  }
 0x7a8   :  { %7922 = vmatprep.subr.bf16.mxu0 %v17871_v32  ;;  %v17913_v32 = vld [vmem:[#allocation20 + $0x6e0] ss:$8 sps:$4 sm:$0xff]  }
 0x7ab   :  { %7923 = vmatpush1.bf16.msra.mxu0 %v17869_v33  ;;  %v17919_v33 = vld [vmem:[#allocation20 + $0x6f4] ss:$8 sps:$4 sm:$0xff]  }
 0x7ac   :  { %7924 = vmatprep.subr.bf16.mxu0 %v17874_v57  ;;  %v8084_v57 = vsel %vm2352_vm5, %v8075_v53, %v8083_v56  ;;  %v17966_v56 = vld [vmem:[#allocation20 + $0x7f0] ss:$8 sps:$4 sm:$0xff]  }
 0x7af   :  { %7925 = vmatpush1.bf16.msra.mxu0 %v17872_v51  ;;  %v17917_v51 = vld [vmem:[#allocation20 + $0x6f0] ss:$8 sps:$4 sm:$0xff]  }
 0x7b0   :  { %7926 = vmatprep.subr.bf16.mxu0 %v17877_v2  ;;  %v17922_v2 = vld [vmem:[#allocation20 + $0x704] ss:$8 sps:$4 sm:$0xff]  }
 0x7b3   :  { %7927 = vmatpush1.bf16.msra.mxu0 %v17875_v16  ;;  %v17920_v16 = vld [vmem:[#allocation20 + $0x700] ss:$8 sps:$4 sm:$0xff]  }
 0x7b4   :  { %7928 = vmatprep.subr.bf16.mxu0 %v17880_v44  ;;  %v17923_v44 = vld [vmem:[#allocation20 + $0x710] ss:$8 sps:$4 sm:$0xff]  }
 0x7b7   :  { %7929 = vmatpush1.bf16.msra.mxu0 %v17878_v40  ;;  %v17928_v40 = vld [vmem:[#allocation20 + $0x724] ss:$8 sps:$4 sm:$0xff]  }
 0x7b8   :  { %7930 = vmatprep.subr.bf16.mxu0 %v17883_v8  ;;  %v17926_v8 = vld [vmem:[#allocation20 + $0x720] ss:$8 sps:$4 sm:$0xff]  }
 0x7bb   :  { %7931 = vmatpush1.bf16.msra.mxu0 %v17881_v29  ;;  %v17931_v29 = vld [vmem:[#allocation20 + $0x734] ss:$8 sps:$4 sm:$0xff]  }
 0x7bc   :  { %7932 = vmatprep.subr.bf16.mxu0 %v17886_v3  ;;  %v17929_v3 = vld [vmem:[#allocation20 + $0x730] ss:$8 sps:$4 sm:$0xff]  }
 0x7bf   :  { %7933 = vmatpush1.bf16.msra.mxu0 %v17884_v41  ;;  %v17934_v41 = vld [vmem:[#allocation20 + $0x744] ss:$8 sps:$4 sm:$0xff]  }
 0x7c0   :  { %7934 = vmatprep.subr.bf16.mxu0 %v17889_v43  ;;  %v17932_v43 = vld [vmem:[#allocation20 + $0x740] ss:$8 sps:$4 sm:$0xff]  }
 0x7c3   :  { %7935 = vmatpush1.bf16.msra.mxu0 %v17887_v31  ;;  %v17937_v31 = vld [vmem:[#allocation20 + $0x754] ss:$8 sps:$4 sm:$0xff]  }
 0x7c4   :  { %7936 = vmatprep.subr.bf16.mxu0 %v17892_v45  ;;  %v17935_v45 = vld [vmem:[#allocation20 + $0x750] ss:$8 sps:$4 sm:$0xff]  }
 0x7c7   :  { %7937 = vmatpush1.bf16.msra.mxu0 %v17890_v4  ;;  %v17940_v4 = vld [vmem:[#allocation20 + $0x764] ss:$8 sps:$4 sm:$0xff]  }
 0x7c8   :  { %7949 = vmatprep.subr.bf16.mxu0 %v17896_v47  ;;  %v17938_v47 = vld [vmem:[#allocation20 + $0x760] ss:$8 sps:$4 sm:$0xff]  }
 0x7ca   :  { %7939 = vmatmul.mubr.bf16.vlgmr.msra.gmra.mrb[20].mxu0 %v7674_v54  ;;  %v17949_v54 = vld [vmem:[#allocation20 + $0x794] ss:$8 sps:$4 sm:$0xff]  }
 0x7cb   :  { %7950 = vmatpush1.bf16.msra.mxu0 %v17894_v6  ;;  %7981 = vmatprep.mubr.bf16.mxu0 %v20244_v37  ;;  %v17946_v6 = vld [vmem:[#allocation20 + $0x784] ss:$8 sps:$4 sm:$0xff]  }
 0x7cc   :  { %7951 = vmatprep.subr.bf16.mxu0 %v17899_v24  ;;  %v17944_v24 = vld [vmem:[#allocation20 + $0x780] ss:$8 sps:$4 sm:$0xff]  }
 0x7cf   :  { %7952 = vmatpush1.bf16.msra.mxu0 %v17897_v20  ;;  %v17947_v20 = vld [vmem:[#allocation20 + $0x790] ss:$8 sps:$4 sm:$0xff]  }
 0x7d0   :  { %7953 = vmatprep.subr.bf16.mxu0 %v17902_v27  ;;  %v17952_v27 = vld [vmem:[#allocation20 + $0x7a4] ss:$8 sps:$4 sm:$0xff]  }
 0x7d3   :  { %7954 = vmatpush1.bf16.msra.mxu0 %v17900_v1  ;;  %v17950_v1 = vld [vmem:[#allocation20 + $0x7a0] ss:$8 sps:$4 sm:$0xff]  }
 0x7d4   :  { %7955 = vmatprep.subr.bf16.mxu0 %v17905_v48  ;;  %v17955_v48 = vld [vmem:[#allocation20 + $0x7b4] ss:$8 sps:$4 sm:$0xff]  }
 0x7d7   :  { %7956 = vmatpush1.bf16.msra.mxu0 %v17903_v15  ;;  %v20481_v15 = vcombine.low %v20461_v0, %v20461_v0 }
 0x7d8   :  { %7957 = vmatprep.subr.bf16.mxu0 %v17908_v9  ;;  %v17953_v9 = vld [vmem:[#allocation20 + $0x7b0] ss:$8 sps:$4 sm:$0xff]  }
 0x7d9   :  { %v8060_v7 = vshrl.u32 %v20481_v15, 16 }
 0x7db   :  { %7958 = vmatpush1.bf16.msra.mxu0 %v17906_v19  ;;  %v8063_v19 = vshll.u32 %v20481_v15, 16  ;;  %v8062_v0 = vrot.slane %v8060_v7, 2  ;;  %v17997_v7 = vld [vmem:[#allocation20 + $0x884] ss:$8 sps:$4 sm:$0xff]  }
 0x7dc   :  { %7959 = vmatprep.subr.bf16.mxu0 %v17911_v21  ;;  %v17956_v21 = vld [vmem:[#allocation20 + $0x7c0] ss:$8 sps:$4 sm:$0xff]  }
 0x7dd   :  { %v8065_v25 = vrot.slane %v8063_v19, 3  ;;  %v17995_v19 = vld [vmem:[#allocation20 + $0x880] ss:$8 sps:$4 sm:$0xff]  }
 0x7df   :  { %7960 = vmatpush1.bf16.msra.mxu0 %v17909_v52  ;;  %v17965_v52 = vld [vmem:[#allocation20 + $0x7e4] ss:$8 sps:$4 sm:$0xff]   ;;  %v8066_v12 = vor.u32 %v8065_v25, %v8062_v0  ;;  %v18006_v0 = vld [vmem:[#allocation20 + $0x8b4] ss:$8 sps:$4 sm:$0xff]   ;;  %v18004_v25 = vld [vmem:[#allocation20 + $0x8b0] ss:$8 sps:$4 sm:$0xff]  }
 0x7e0   :  { %8327 = vmatprep.subr.bf16.mxu0 %v17915_v59  ;;  %v8058_v59 = vor.u32 %v8057_v55, %v8054_v50  ;;  %v18003_v50 = vld [vmem:[#allocation20 + $0x8a4] ss:$8 sps:$4 sm:$0xff]   ;;  %v18001_v55 = vld [vmem:[#allocation20 + $0x8a0] ss:$8 sps:$4 sm:$0xff]  }
 0x7e2   :  { %15507 = vmatmul.mubr.msk.bf16.vlgmr.msra.gmra.mrb[20].mxu0 %vm20936_vm2, %v7680_v5  ;;  %v8067_v53 = vsel %vm2352_vm5, %v8058_v59, %v8066_v12  ;;  %v17974_v5 = vld [vmem:[#allocation20 + $0x814] ss:$8 sps:$4 sm:$0xff]   ;;  %v18010_v12 = vld [vmem:[#allocation20 + $0x8d0] ss:$8 sps:$4 sm:$0xff]   ;;  %vm20958_vm2 = vsmask.f32 7424 }
 0x7e3   :  { %8328 = vmatpush1.bf16.msra.mxu0 %v17913_v32  ;;  %8359 = vmatprep.mubr.bf16.mxu0 %v8084_v57  ;;  %v17971_v32 = vld [vmem:[#allocation20 + $0x804] ss:$8 sps:$4 sm:$0xff]   ;;  %v20489_v57 = vld [vmem:[#allocation2 + $0x20] ss:$0 sps:$4 sm:$0x77]  }
 0x7e4   :  { %8329 = vmatprep.subr.bf16.mxu0 %v17919_v33  ;;  %v17969_v33 = vld [vmem:[#allocation20 + $0x800] ss:$8 sps:$4 sm:$0xff]   ;;  %v18012_v59 = vld [vmem:[#allocation20 + $0x8d4] ss:$8 sps:$4 sm:$0xff]  }
 0x7e7   :  { %8330 = vmatpush1.bf16.msra.mxu0 %v17917_v51  ;;  %v17972_v51 = vld [vmem:[#allocation20 + $0x810] ss:$8 sps:$4 sm:$0xff]  }
 0x7e8   :  { %8331 = vmatprep.subr.bf16.mxu0 %v17922_v2  ;;  %v17977_v2 = vld [vmem:[#allocation20 + $0x824] ss:$8 sps:$4 sm:$0xff]  }
 0x7eb   :  { %8332 = vmatpush1.bf16.msra.mxu0 %v17920_v16  ;;  %v8086_v16 = vshrl.u32 %v20472_v39, 16 }
 0x7ec   :  { %8333 = vmatprep.subr.bf16.mxu0 %v17925_v36  ;;  %v8089_v36 = vshll.u32 %v20472_v39, 16  ;;  %v17978_v39 = vld [vmem:[#allocation20 + $0x830] ss:$8 sps:$4 sm:$0xff]  }
 0x7ef   :  { %8334 = vmatpush1.bf16.msra.mxu0 %v17923_v44  ;;  %v8094_v44 = vshrl.u32 %v20489_v57, 16 }
 0x7f0   :  { %8335 = vmatprep.subr.bf16.mxu0 %v17928_v40  ;;  %v8097_v40 = vshll.u32 %v20489_v57, 16 }
 0x7f3   :  { %8336 = vmatpush1.bf16.msra.mxu0 %v17926_v8  ;;  %v17975_v8 = vld [vmem:[#allocation20 + $0x820] ss:$8 sps:$4 sm:$0xff]  }
 0x7f4   :  { %8337 = vmatprep.subr.bf16.mxu0 %v17931_v29  ;;  %v17980_v29 = vld [vmem:[#allocation20 + $0x834] ss:$8 sps:$4 sm:$0xff]  }
 0x7f7   :  { %8338 = vmatpush1.bf16.msra.mxu0 %v17929_v3  ;;  %v8088_v3 = vrot.slane %v8086_v16, 2  ;;  %v18025_v16 = vld [vmem:[#allocation20 + $0x920] ss:$8 sps:$4 sm:$0xff]  }
 0x7f8   :  { %8339 = vmatprep.subr.bf16.mxu0 %v17934_v41  ;;  %v8091_v41 = vrot.slane %v8089_v36, 3  ;;  %v18030_v36 = vld [vmem:[#allocation20 + $0x934] ss:$8 sps:$4 sm:$0xff]  }
 0x7fb   :  { %8340 = vmatpush1.bf16.msra.mxu0 %v17932_v43  ;;  %v8096_v43 = vrot.slane %v8094_v44, 2 }
 0x7fc   :  { %8341 = vmatprep.subr.bf16.mxu0 %v17937_v31  ;;  %v8099_v31 = vrot.slane %v8097_v40, 3  ;;  %v18028_v40 = vld [vmem:[#allocation20 + $0x930] ss:$8 sps:$4 sm:$0xff]  }
 0x7ff   :  { %8342 = vmatpush1.bf16.msra.mxu0 %v17935_v45  ;;  %v20495_v45 = vld [vmem:[#allocation2] sm:$0x88] }
 0x800   :  { %8343 = vmatprep.subr.bf16.mxu0 %v17940_v4  ;;  %v20497_v4 = vld [vmem:[#allocation2 + $0xc] sm:$0xff] }
 0x801   :  { %v15556_v44 = vcombine.low %v20495_v45, %v20497_v4 }
 0x803   :  { %8344 = vmatpush1.bf16.msra.mxu0 %v17938_v47  ;;  %v15557_v47 = vcombine.high %v20495_v45, %v20497_v4  ;;  %v18040_v45 = vld [vmem:[#allocation20 + $0x964] ss:$8 sps:$4 sm:$0xff]   ;;  %v18038_v4 = vld [vmem:[#allocation20 + $0x960] ss:$8 sps:$4 sm:$0xff]  }
 0x804   :  { %8345 = vmatprep.subr.bf16.mxu0 %v17943_v14  ;;  %v17984_v14 = vld [vmem:[#allocation20 + $0x844] ss:$8 sps:$4 sm:$0xff]  }
 0x807   :  { %8346 = vmatpush1.bf16.msra.mxu0 %v17941_v28  ;;  %v8092_v28 = vor.u32 %v8091_v41, %v8088_v3  ;;  %v8473_v3 = vrot.slane %v20481_v15, 3  ;;  %v18032_v41 = vld [vmem:[#allocation20 + $0x940] ss:$8 sps:$4 sm:$0xff]   ;;  %v18046_v15 = vld [vmem:[#allocation20 + $0x984] ss:$8 sps:$4 sm:$0xff]  }
 0x808   :  { %8347 = vmatprep.subr.bf16.mxu0 %v17946_v6  ;;  %v8100_v6 = vor.u32 %v8099_v31, %v8096_v43  ;;  %v18037_v43 = vld [vmem:[#allocation20 + $0x954] ss:$8 sps:$4 sm:$0xff]  }
 0x80b   :  { %8348 = vmatpush1.bf16.msra.mxu0 %v17944_v24  ;;  %v8475_v24 = vrot.slane %v15557_v47, 3  ;;  %v18035_v47 = vld [vmem:[#allocation20 + $0x950] ss:$8 sps:$4 sm:$0xff]  }
 0x80c   :  { %8349 = vmatprep.subr.bf16.mxu0 %v17949_v54  ;;  %v8476_v54 = vrot.slane %v20465_v62, 3  ;;  %v17992_v62 = vld [vmem:[#allocation20 + $0x870] ss:$8 sps:$4 sm:$0xff]  }
 0x80f   :  { %8350 = vmatpush1.bf16.msra.mxu0 %v17947_v20  ;;  %v17982_v20 = vld [vmem:[#allocation20 + $0x840] ss:$8 sps:$4 sm:$0xff]  }
 0x810   :  { %8351 = vmatprep.subr.bf16.mxu0 %v17952_v27  ;;  %v17988_v27 = vld [vmem:[#allocation20 + $0x854] ss:$8 sps:$4 sm:$0xff]  }
 0x813   :  { %8352 = vmatpush1.bf16.msra.mxu0 %v17950_v1  ;;  %v8101_v1 = vsel %vm2352_vm5, %v8092_v28, %v8100_v6  ;;  %v18044_v28 = vld [vmem:[#allocation20 + $0x980] ss:$8 sps:$4 sm:$0xff]   ;;  %v18049_v6 = vld [vmem:[#allocation20 + $0x994] ss:$8 sps:$4 sm:$0xff]  }
 0x814   :  { %8353 = vmatprep.subr.bf16.mxu0 %v17955_v48  ;;  %v8477_v48 = vsel %vm20952_vm7, %v8475_v24, %v8476_v54  ;;  %v8418_v24 = vld [vmem:[#allocation2 + $0x8] sm:$0x8]  ;;  %v19029_v54 = vld [vmem:[#allocation2 + $0x14] sm:$0xf]  ;;  %vm20960_vm7 = vmmov %vm20958_vm2 }
 0x817   :  { %8354 = vmatpush1.bf16.msra.mxu0 %v17953_v9  ;;  %v17986_v9 = vld [vmem:[#allocation20 + $0x850] ss:$8 sps:$4 sm:$0xff]  }
 0x818   :  { %8355 = vmatprep.subr.bf16.mxu0 %v17958_v18  ;;  %v17991_v18 = vld [vmem:[#allocation20 + $0x864] ss:$8 sps:$4 sm:$0xff]  }
 0x81b   :  { %8356 = vmatpush1.bf16.msra.mxu0 %v17956_v21  ;;  %v18000_v21 = vld [vmem:[#allocation20 + $0x894] ss:$8 sps:$4 sm:$0xff]  }
 0x81c   :  { %8357 = vmatprep.subr.bf16.mxu0 %v17961_v23  ;;  %v17998_v23 = vld [vmem:[#allocation20 + $0x890] ss:$8 sps:$4 sm:$0xff]  }
 0x81f   :  { %8358 = vmatpush1.bf16.msra.mxu0 %v17959_v49  ;;  %v18009_v49 = vld [vmem:[#allocation20 + $0x8c4] ss:$8 sps:$4 sm:$0xff]  }
 0x820   :  { %8370 = vmatprep.subr.bf16.mxu0 %v17965_v52  ;;  %v18007_v52 = vld [vmem:[#allocation20 + $0x8c0] ss:$8 sps:$4 sm:$0xff]  }
 0x822   :  { %8360 = vmatmul.mubr.bf16.vlgmr.msra.gmra.mrb[20].mxu0 %v8067_v53  ;;  %v18018_v53 = vld [vmem:[#allocation20 + $0x8f4] ss:$8 sps:$4 sm:$0xff]  }
 0x823   :  { %8371 = vmatpush1.bf16.msra.mxu0 %v17963_v42  ;;  %8402 = vmatprep.mubr.bf16.mxu0 %v20244_v37  ;;  %v18015_v42 = vld [vmem:[#allocation20 + $0x8e4] ss:$8 sps:$4 sm:$0xff]  }
 0x824   :  { %8372 = vmatprep.subr.bf16.mxu0 %v17968_v26  ;;  %v18013_v26 = vld [vmem:[#allocation20 + $0x8e0] ss:$8 sps:$4 sm:$0xff]  }
 0x827   :  { %8373 = vmatpush1.bf16.msra.mxu0 %v17966_v56  ;;  %v18016_v56 = vld [vmem:[#allocation20 + $0x8f0] ss:$8 sps:$4 sm:$0xff]  }
 0x828   :  { %8374 = vmatprep.subr.bf16.mxu0 %v17971_v32  ;;  %v18021_v32 = vld [vmem:[#allocation20 + $0x904] ss:$8 sps:$4 sm:$0xff]  }
 0x82b   :  { %8375 = vmatpush1.bf16.msra.mxu0 %v17969_v33  ;;  %v18019_v33 = vld [vmem:[#allocation20 + $0x900] ss:$8 sps:$4 sm:$0xff]  }
 0x82c   :  { %8376 = vmatprep.subr.bf16.mxu0 %v17974_v5  ;;  %v18024_v5 = vld [vmem:[#allocation20 + $0x914] ss:$8 sps:$4 sm:$0xff]  }
 0x82f   :  { %8377 = vmatpush1.bf16.msra.mxu0 %v17972_v51  ;;  %v18022_v51 = vld [vmem:[#allocation20 + $0x910] ss:$8 sps:$4 sm:$0xff]  }
 0x830   :  { %8378 = vmatprep.subr.bf16.mxu0 %v17977_v2  ;;  %v18027_v2 = vld [vmem:[#allocation20 + $0x924] ss:$8 sps:$4 sm:$0xff]  }
 0x833   :  { %8379 = vmatpush1.bf16.msra.mxu0 %v17975_v8  ;;  %v18034_v8 = vld [vmem:[#allocation20 + $0x944] ss:$8 sps:$4 sm:$0xff]  }
 0x834   :  { %8380 = vmatprep.subr.bf16.mxu0 %v17980_v29  ;;  %v8472_v29 = vrot.slane %v15556_v44, 3  ;;  %v8796_v44 = vld [vmem:[#allocation13] sm:$0xff] }
 0x836   :  { %v8474_v31 = vsel %vm20953_vm8, %v8472_v29, %v8473_v3  ;;  %v8797_v29 = vld [vmem:[#allocation13 + $0x8] sm:$0xff]  ;;  %vm20961_vm8 = vmmov %vm20955_vm12 }
 0x837   :  { %8381 = vmatpush1.bf16.msra.mxu0 %v17978_v39  ;;  %v18043_v39 = vld [vmem:[#allocation20 + $0x974] ss:$8 sps:$4 sm:$0xff]  }
 0x838   :  { %8706 = vmatprep.subr.bf16.mxu0 %v17984_v14  ;;  %v18041_v14 = vld [vmem:[#allocation20 + $0x970] ss:$8 sps:$4 sm:$0xff]  }
 0x83a   :  { %15555 = vmatmul.mubr.msk.bf16.vlgmr.msra.gmra.mrb[20].mxu0 %vm20951_vm9, %v8101_v1  ;;  %vm20959_vm9 = vmmov %vm20958_vm2 }
 0x83b   :  { %8707 = vmatpush1.bf16.msra.mxu0 %v17982_v20  ;;  %8738 = vmatprep.mubr.bf16.mxu0 %v8477_v48  ;;  %v15558_v20 = vcombine.low %v8418_v24, %v19029_v54  ;;  %v8479_v48 = vrot.slane %v20489_v57, 3  ;;  %v18065_v57 = vld [vmem:[#allocation22 + $0x44] ss:$8 sps:$4 sm:$0xff]  }
 0x83c   :  { %8708 = vmatprep.subr.bf16.mxu0 %v17988_v27  ;;  %v18047_v27 = vld [vmem:[#allocation20 + $0x990] ss:$8 sps:$4 sm:$0xff]  }
 0x83d   :  { %v8478_v1 = vrot.slane %v15558_v20, 3  ;;  %v18087_v20 = vld [vmem:[#allocation22 + $0xc0] ss:$8 sps:$4 sm:$0xff]  }
 0x83f   :  { %8709 = vmatpush1.bf16.msra.mxu0 %v17986_v9  ;;  %v8480_v9 = vsel %vm20954_vm10, %v8478_v1, %v8479_v48  ;;  %vm20962_vm10 = vcmask 1046528  }
 0x840   :  { %8710 = vmatprep.subr.bf16.mxu0 %v17991_v18  ;;  %v18051_v18 = vld [vmem:[#allocation22] ss:$8 sps:$4 sm:$0xff]  }
 0x843   :  { %8711 = vmatpush1.bf16.msra.mxu0 %v17989_v34  ;;  %v18053_v34 = vld [vmem:[#allocation22 + $0x4] ss:$8 sps:$4 sm:$0xff]  }
 0x844   :  { %8712 = vmatprep.subr.bf16.mxu0 %v17994_v13  ;;  %v18056_v13 = vld [vmem:[#allocation22 + $0x14] ss:$8 sps:$4 sm:$0xff]   ;;  %9166 = vmatprep.subr.bf16.mxu1 %v18053_v34 }
 0x845   :  { %9167 = vmatpush1.bf16.msra.mxu1 %v18051_v18 }
 0x846   :  { %9168 = vmatprep.subr.bf16.mxu1 %v18056_v13  ;;  %v18090_v13 = vld [vmem:[#allocation22 + $0xd0] ss:$8 sps:$4 sm:$0xff]  }
 0x847   :  { %8713 = vmatpush1.bf16.msra.mxu0 %v17992_v62  ;;  %v18054_v62 = vld [vmem:[#allocation22 + $0x10] ss:$8 sps:$4 sm:$0xff]  }
 0x848   :  { %8714 = vmatprep.subr.bf16.mxu0 %v17997_v7  ;;  %v18059_v7 = vld [vmem:[#allocation22 + $0x24] ss:$8 sps:$4 sm:$0xff]  }
 0x849   :  { %9169 = vmatpush1.bf16.msra.mxu1 %v18054_v62  ;;  %v18092_v62 = vld [vmem:[#allocation22 + $0xd4] ss:$8 sps:$4 sm:$0xff]  }
 0x84a   :  { %9170 = vmatprep.subr.bf16.mxu1 %v18059_v7 }
 0x84b   :  { %8715 = vmatpush1.bf16.msra.mxu0 %v17995_v19  ;;  %v18057_v19 = vld [vmem:[#allocation22 + $0x20] ss:$8 sps:$4 sm:$0xff]  }
 0x84c   :  { %8716 = vmatprep.subr.bf16.mxu0 %v18000_v21  ;;  %v18062_v21 = vld [vmem:[#allocation22 + $0x34] ss:$8 sps:$4 sm:$0xff]  }
 0x84d   :  { %9171 = vmatpush1.bf16.msra.mxu1 %v18057_v19 }
 0x84e   :  { %9172 = vmatprep.subr.bf16.mxu1 %v18062_v21 }
 0x84f   :  { %8717 = vmatpush1.bf16.msra.mxu0 %v17998_v23  ;;  %v18060_v23 = vld [vmem:[#allocation22 + $0x30] ss:$8 sps:$4 sm:$0xff]  }
 0x850   :  { %8718 = vmatprep.subr.bf16.mxu0 %v18003_v50  ;;  %v18063_v50 = vld [vmem:[#allocation22 + $0x40] ss:$8 sps:$4 sm:$0xff]  }
 0x851   :  { %9173 = vmatpush1.bf16.msra.mxu1 %v18060_v23 }
 0x852   :  { %9174 = vmatprep.subr.bf16.mxu1 %v18065_v57  ;;  %v18095_v57 = vld [vmem:[#allocation22 + $0xe4] ss:$8 sps:$4 sm:$0xff]  }
 0x853   :  { %8719 = vmatpush1.bf16.msra.mxu0 %v18001_v55  ;;  %v18068_v55 = vld [vmem:[#allocation22 + $0x54] ss:$8 sps:$4 sm:$0xff]  }
 0x854   :  { %8720 = vmatprep.subr.bf16.mxu0 %v18006_v0  ;;  %v18066_v0 = vld [vmem:[#allocation22 + $0x50] ss:$8 sps:$4 sm:$0xff]  }
 0x855   :  { %9175 = vmatpush1.bf16.msra.mxu1 %v18063_v50 }
 0x856   :  { %9176 = vmatprep.subr.bf16.mxu1 %v18068_v55 }
 0x857   :  { %8721 = vmatpush1.bf16.msra.mxu0 %v18004_v25  ;;  %v18071_v25 = vld [vmem:[#allocation22 + $0x64] ss:$8 sps:$4 sm:$0xff]  }
 0x858   :  { %8722 = vmatprep.subr.bf16.mxu0 %v18009_v49  ;;  %v18069_v49 = vld [vmem:[#allocation22 + $0x60] ss:$8 sps:$4 sm:$0xff]  }
 0x859   :  { %9177 = vmatpush1.bf16.msra.mxu1 %v18066_v0 }
 0x85a   :  { %9178 = vmatprep.subr.bf16.mxu1 %v18071_v25  ;;  %v18093_v25 = vld [vmem:[#allocation22 + $0xe0] ss:$8 sps:$4 sm:$0xff]  }
 0x85b   :  { %8723 = vmatpush1.bf16.msra.mxu0 %v18007_v52  ;;  %v18074_v52 = vld [vmem:[#allocation22 + $0x74] ss:$8 sps:$4 sm:$0xff]  }
 0x85c   :  { %8724 = vmatprep.subr.bf16.mxu0 %v18012_v59  ;;  %v18072_v59 = vld [vmem:[#allocation22 + $0x70] ss:$8 sps:$4 sm:$0xff]  }
 0x85d   :  { %9179 = vmatpush1.bf16.msra.mxu1 %v18069_v49  ;;  %v18098_v49 = vld [vmem:[#allocation22 + $0xf4] ss:$8 sps:$4 sm:$0xff]  }
 0x85e   :  { %9180 = vmatprep.subr.bf16.mxu1 %v18074_v52 }
 0x85f   :  { %8725 = vmatpush1.bf16.msra.mxu0 %v18010_v12  ;;  %v18077_v12 = vld [vmem:[#allocation22 + $0x84] ss:$8 sps:$4 sm:$0xff]  }
 0x860   :  { %8726 = vmatprep.subr.bf16.mxu0 %v18015_v42  ;;  %v18075_v42 = vld [vmem:[#allocation22 + $0x80] ss:$8 sps:$4 sm:$0xff]  }
 0x861   :  { %9181 = vmatpush1.bf16.msra.mxu1 %v18072_v59 }
 0x862   :  { %9182 = vmatprep.subr.bf16.mxu1 %v18077_v12 }
 0x863   :  { %8727 = vmatpush1.bf16.msra.mxu0 %v18013_v26  ;;  %v18080_v26 = vld [vmem:[#allocation22 + $0x94] ss:$8 sps:$4 sm:$0xff]  }
 0x864   :  { %8728 = vmatprep.subr.bf16.mxu0 %v18018_v53  ;;  %v18078_v53 = vld [vmem:[#allocation22 + $0x90] ss:$8 sps:$4 sm:$0xff]  }
 0x865   :  { %9183 = vmatpush1.bf16.msra.mxu1 %v18075_v42 }
 0x866   :  { %9184 = vmatprep.subr.bf16.mxu1 %v18080_v26  ;;  %v18096_v26 = vld [vmem:[#allocation22 + $0xf0] ss:$8 sps:$4 sm:$0xff]  }
 0x867   :  { %8729 = vmatpush1.bf16.msra.mxu0 %v18016_v56  ;;  %v18083_v56 = vld [vmem:[#allocation22 + $0xa4] ss:$8 sps:$4 sm:$0xff]  }
 0x868   :  { %8730 = vmatprep.subr.bf16.mxu0 %v18021_v32  ;;  %v18081_v32 = vld [vmem:[#allocation22 + $0xa0] ss:$8 sps:$4 sm:$0xff]  }
 0x869   :  { %9185 = vmatpush1.bf16.msra.mxu1 %v18078_v53  ;;  %v18102_v53 = vld [vmem:[#allocation22 + $0x104] ss:$8 sps:$4 sm:$0xff]  }
 0x86a   :  { %9186 = vmatprep.subr.bf16.mxu1 %v18083_v56 }
 0x86b   :  { %8731 = vmatpush1.bf16.msra.mxu0 %v18019_v33  ;;  %v18086_v33 = vld [vmem:[#allocation22 + $0xb4] ss:$8 sps:$4 sm:$0xff]  }
 0x86c   :  { %8732 = vmatprep.subr.bf16.mxu0 %v18024_v5  ;;  %v18084_v5 = vld [vmem:[#allocation22 + $0xb0] ss:$8 sps:$4 sm:$0xff]  }
 0x86d   :  { %9187 = vmatpush1.bf16.msra.mxu1 %v18081_v32 }
 0x86e   :  { %9188 = vmatprep.subr.bf16.mxu1 %v18086_v33  ;;  %v8857_v33 = vld [vmem:[#allocation2 + $0x8] sm:$0xe] }
 0x86f   :  { %8733 = vmatpush1.bf16.msra.mxu0 %v18022_v51  ;;  %v6006_v51 = vld [vmem:[#allocation28] sm:$0x3] }
 0x870   :  { %8734 = vmatprep.subr.bf16.mxu0 %v18027_v2  ;;  %v6011_v2 = vrot.slane %v6006_v51, %v20013_v60 }
 0x871   :  { %9189 = vmatpush1.bf16.msra.mxu1 %v18084_v5 }
 0x873   :  { %8735 = vmatpush1.bf16.msra.mxu0 %v18025_v16  ;;  %v6015_v16 = vrot.slane %v6006_v51, %v20015_v61 }
 0x874   :  { %8736 = vmatprep.subr.bf16.mxu0 %v18030_v36 }
 0x877   :  { %8737 = vmatpush1.bf16.msra.mxu0 %v18028_v40 }
 0x878   :  { %8749 = vmatprep.subr.bf16.mxu0 %v18034_v8 }
 0x87a   :  { %8739 = vmatmul.mubr.bf16.vlgmr.msra.gmra.mrb[20].mxu0 %v8474_v31 }
 0x87b   :  { %8750 = vmatpush1.bf16.msra.mxu0 %v18032_v41  ;;  %8781 = vmatprep.mubr.bf16.mxu0 %v20244_v37 }
 0x87c   :  { %8751 = vmatprep.subr.bf16.mxu0 %v18037_v43  ;;  %v8798_v43 = vld [vmem:[#allocation13 + $0x10] sm:$0xff] }
 0x87f   :  { %8752 = vmatpush1.bf16.msra.mxu0 %v18035_v47 }
 0x880   :  { %8753 = vmatprep.subr.bf16.mxu0 %v18040_v45 }
 0x883   :  { %8754 = vmatpush1.bf16.msra.mxu0 %v18038_v4  ;;  %v8799_v4 = vld [vmem:[#allocation13 + $0x18] sm:$0xff] }
 0x884   :  { %8755 = vmatprep.subr.bf16.mxu0 %v18043_v39 }
 0x887   :  { %8756 = vmatpush1.bf16.msra.mxu0 %v18041_v14 }
 0x888   :  { %8757 = vmatprep.subr.bf16.mxu0 %v18046_v15 }
 0x88b   :  { %8758 = vmatpush1.bf16.msra.mxu0 %v18044_v28 }
 0x88c   :  { %8759 = vmatprep.subr.bf16.mxu0 %v18049_v6 }
 0x88f   :  { %8760 = vmatpush1.bf16.msra.mxu0 %v18047_v27  ;;  %v18089_v27 = vld [vmem:[#allocation22 + $0xc4] ss:$8 sps:$4 sm:$0xff]  }
 0x890   :  { %9190 = vmatprep.subr.bf16.mxu1 %v18089_v27  ;;  %v18110_v27 = vld [vmem:[#allocation22 + $0x130] ss:$8 sps:$4 sm:$0xff]  }
 0x891   :  { %9191 = vmatpush1.bf16.msra.mxu1 %v18087_v20  ;;  %v18112_v20 = vld [vmem:[#allocation22 + $0x134] ss:$8 sps:$4 sm:$0xff]  }
 0x892   :  { %15603 = vmatmul.mubr.msk.bf16.vlgmr.msra.gmra.mrb[20].mxu0 %vm20955_vm12, %v8480_v9  ;;  %9192 = vmatprep.subr.bf16.mxu1 %v18092_v62  ;;  %vm20963_vm12 = vmmov %vm20962_vm10 }
 0x895   :  { %9193 = vmatpush1.bf16.msra.mxu1 %v18090_v13  ;;  %v18118_v13 = vld [vmem:[#allocation22 + $0x154] ss:$8 sps:$4 sm:$0xff]  }
 0x896   :  { %9194 = vmatprep.subr.bf16.mxu1 %v18095_v57 }
 0x899   :  { %9195 = vmatpush1.bf16.msra.mxu1 %v18093_v25  ;;  %v18126_v25 = vld [vmem:[#allocation22 + $0x174] ss:$8 sps:$4 sm:$0xff]  }
 0x89a   :  { %9196 = vmatprep.subr.bf16.mxu1 %v18098_v49 }
 0x89d   :  { %9197 = vmatpush1.bf16.msra.mxu1 %v18096_v26  ;;  %v18130_v26 = vld [vmem:[#allocation22 + $0x190] ss:$8 sps:$4 sm:$0xff]  }
 0x89e   :  { %9209 = vmatprep.subr.bf16.mxu1 %v18102_v53  ;;  %v18135_v53 = vld [vmem:[#allocation22 + $0x1a4] ss:$8 sps:$4 sm:$0xff]  }
 0x965   :  { %v8783_v36 = vpop.f32.mrb[20].mxu0 }
 0x966   :  { %v16336_v40 = vadd.f32 %v8783_v36, %v6011_v2  ;;  %v8785_v8 = vpop.f32.mrb[21].mxu0 }
 0x967   :  { %v16337_v3 = vadd.f32 %v8785_v8, %v6015_v16  ;;  %v8787_v41 = vpop.f32.mrb[22].mxu0 }
 0x968   :  { %v8800_v31 = vadd.f32 %v16336_v40, %v8796_v44  ;;  %v16338_v47 = vadd.f32 %v8787_v41, %v6011_v2  ;;  %v8789_v45 = vpop.f32.mrb[23].mxu0  ;;  %v8862_v41 = vld [vmem:[#allocation2 + $0x18] sm:$0x33] }
 0x969   :  { %v8801_v39 = vadd.f32 %v16337_v3, %v8797_v29  ;;  %v16339_v14 = vadd.f32 %v8789_v45, %v6015_v16  ;;  %v19030_v16 = vld [vmem:[#allocation2] sm:$0xee] }
 0x96a   :  { %v8804_v15 = vmax.f32 %v8800_v31, 0.0  ;;  %v8802_v28 = vadd.f32 %v16338_v47, %v8798_v43  ;;  %v8865_v3 = vld [vmem:[#allocation2 + $0x20] sm:$0x3] }
 0x96b   :  { %v8805_v6 = vmax.f32 %v8801_v39, 0.0  ;;  %v8803_v24 = vadd.f32 %v16339_v14, %v8799_v4  ;;  %v18100_v14 = vld [vmem:[#allocation22 + $0x100] ss:$8 sps:$4 sm:$0xff]  }
 0x96c   :  { %v8806_v54 = vmax.f32 %v8802_v28, 0.0  ;;  %v18106_v28 = vld [vmem:[#allocation22 + $0x114] ss:$8 sps:$4 sm:$0xff]  }
 0x96d   :  { %v16288_v1 = vpack.c.bf16 %v8805_v6, %v8804_v15  ;;  %v8807_v48 = vmax.f32 %v8803_v24, 0.0  ;;  %v18104_v6 = vld [vmem:[#allocation22 + $0x110] ss:$8 sps:$4 sm:$0xff]   ;;  %v18109_v24 = vld [vmem:[#allocation22 + $0x124] ss:$8 sps:$4 sm:$0xff]  }
 0x96f   :  { %v16289_v9 = vpack.c.bf16 %v8807_v48, %v8806_v54  ;;  %v8819_v18 = vshrl.u32 %v16288_v1, 16  ;;  %v8822_v34 = vshll.u32 %v16288_v1, 16  ;;  %v18107_v54 = vld [vmem:[#allocation22 + $0x120] ss:$8 sps:$4 sm:$0xff]   ;;  %v18115_v48 = vld [vmem:[#allocation22 + $0x144] ss:$8 sps:$4 sm:$0xff]  }
 0x971   :  { %v8828_v7 = vshrl.u32 %v16289_v9, 16  ;;  %v8831_v19 = vshll.u32 %v16289_v9, 16  ;;  %v8821_v21 = vrot.slane %v8819_v18, 6  ;;  %v8824_v23 = vrot.slane %v8822_v34, 7  ;;  %v18113_v34 = vld [vmem:[#allocation22 + $0x140] ss:$8 sps:$4 sm:$0xff]  }
 0x973   :  { %v8830_v50 = vrot.slane %v8828_v7, 6  ;;  %v8833_v55 = vrot.slane %v8831_v19, 7  ;;  %v8825_v0 = vor.u32 %v8824_v23, %v8821_v21  ;;  %v18116_v19 = vld [vmem:[#allocation22 + $0x150] ss:$8 sps:$4 sm:$0xff]   ;;  %v18122_v21 = vld [vmem:[#allocation22 + $0x164] ss:$8 sps:$4 sm:$0xff]  }
 0x975   :  { %8837 = vrot.lane.b32.xlu1 %v8825_v0, %s19488_s2  ;;  %v8826_v52 = vrot.slane %v8825_v0, 4  ;;  %v8834_v59 = vor.u32 %v8833_v55, %v8830_v50  ;;  %v18120_v55 = vld [vmem:[#allocation22 + $0x160] ss:$8 sps:$4 sm:$0xff]  }
 0x977   :  { %v8835_v12 = vsel %vm20956_vm14, %v8826_v52, %v8834_v59  ;;  %v8836_v42 = vrot.slane %v8834_v59, 4  ;;  %v18124_v52 = vld [vmem:[#allocation22 + $0x170] ss:$8 sps:$4 sm:$0xff]   ;;  %v18129_v59 = vld [vmem:[#allocation22 + $0x184] ss:$8 sps:$4 sm:$0xff]  }
 0x978   :  { %8839 = vrot.lane.b32.xlu0 %v8835_v12, %s19488_s2  ;;  %v18127_v12 = vld [vmem:[#allocation22 + $0x180] ss:$8 sps:$4 sm:$0xff]  }
 0x979   :  { %8841 = vrot.lane.b32.xlu1 %v8836_v42, %s19488_s2  ;;  %v18132_v42 = vld [vmem:[#allocation22 + $0x194] ss:$8 sps:$4 sm:$0xff]  }
 0x9e7   :  { %v8838_v56 = vpop.permute.xlu1 %8837 }
 0x9e8   :  { %v8843_v32 = vrot.slane %v8838_v56, 4 }
 0x9ea   :  { %v8846_v5 = vsel %vm5962_vm1, %v8843_v32, %v8838_v56  ;;  %v8858_v51 = vsel %vm20319_vm3, %v8843_v32, %v8857_v33  ;;  %v8840_v2 = vpop.permute.xlu0 %8839  ;;  %v18133_v56 = vld [vmem:[#allocation22 + $0x1a0] ss:$8 sps:$4 sm:$0xff]   ;;  %v18138_v32 = vld [vmem:[#allocation22 + $0x1b4] ss:$8 sps:$4 sm:$0xff]   ;;  %v18136_v33 = vld [vmem:[#allocation22 + $0x1b0] ss:$8 sps:$4 sm:$0xff]  }
 0x9eb   :  { %v8855_v36 = vsel %vm20325_vm11, %v8846_v5, %v19030_v16  ;;  %8859 = vst [vmem:[#allocation2 + $0x8] sm:$0xe] %v8858_v51  ;;  %v8844_v44 = vrot.slane %v8840_v2, 4  ;;  %v8842_v40 = vpop.permute.xlu1 %8841  ;;  %v18141_v5 = vld [vmem:[#allocation22 + $0x1c4] ss:$8 sps:$4 sm:$0xff]  }
 0x9ec   :  { %8856 = vst [vmem:[#allocation2] sm:$0xee] %v8855_v36  ;;  %v8845_v8 = vrot.slane %v8842_v40, 4  ;;  %v18139_v51 = vld [vmem:[#allocation22 + $0x1c0] ss:$8 sps:$4 sm:$0xff]  }
 0x9ed   :  { %v8847_v29 = vsel %vm5962_vm1, %v8844_v44, %v8840_v2  ;;  %8861 = vst.msk [vmem:[#allocation2 + $0x14] sm:$0xf] %vm5991_vm6, %v8844_v44  ;;  %v18144_v2 = vld [vmem:[#allocation22 + $0x1d4] ss:$8 sps:$4 sm:$0xff]   ;;  %v18142_v16 = vld [vmem:[#allocation22 + $0x1d0] ss:$8 sps:$4 sm:$0xff]  }
 0x9ee   :  { %8860 = vst.msk [vmem:[#allocation2 + $0xc] sm:$0xff] %vm20344_vm0, %v8847_v29  ;;  %v8848_v43 = vsel %vm5962_vm1, %v8845_v8, %v8842_v40  ;;  %v8866_v31 = vsel %vm20339_vm4, %v8845_v8, %v8865_v3  ;;  %v18147_v36 = vld [vmem:[#allocation22 + $0x1e4] ss:$8 sps:$4 sm:$0xff]   ;;  %v18145_v44 = vld [vmem:[#allocation22 + $0x1e0] ss:$8 sps:$4 sm:$0xff]  }
 0x9ef   :  { %v8863_v47 = vsel %vm20332_vm13, %v8848_v43, %v8862_v41  ;;  %8867 = vst [vmem:[#allocation2 + $0x20] sm:$0x3] %v8866_v31  ;;  %v18150_v40 = vld [vmem:[#allocation22 + $0x1f4] ss:$8 sps:$4 sm:$0xff]   ;;  %v18148_v8 = vld [vmem:[#allocation22 + $0x1f0] ss:$8 sps:$4 sm:$0xff]  }
 0x9f0   :  { %8864 = vst [vmem:[#allocation2 + $0x18] sm:$0x33] %v8863_v47  ;;  %v18153_v29 = vld [vmem:[#allocation22 + $0x204] ss:$8 sps:$4 sm:$0xff]   ;;  %v18151_v3 = vld [vmem:[#allocation22 + $0x200] ss:$8 sps:$4 sm:$0xff]  }
 0x9f1   :  { %v18156_v41 = vld [vmem:[#allocation22 + $0x214] ss:$8 sps:$4 sm:$0xff]   ;;  %v18154_v43 = vld [vmem:[#allocation22 + $0x210] ss:$8 sps:$4 sm:$0xff]   ;;  %v18159_v31 = vld [vmem:[#allocation22 + $0x224] ss:$8 sps:$4 sm:$0xff]  }
 0x9f2   :  { %v18157_v47 = vld [vmem:[#allocation22 + $0x220] ss:$8 sps:$4 sm:$0xff]  }
 0x9f3   :  { %v8880_v45 = vld [vmem:[#allocation2] sm:$0xff] }
 0x9f4   :  { %v18119_v0 = vld [vmem:[#allocation2 + $0x8] ss:$12 sps:$4 sm:$0xff]  }
 0x9f5   :  { %v20534_v4 = vld [vmem:[#allocation2 + $0xc] sm:$0xff] }
 0x9f6   :  { %v15607_v39 = vcombine.high %v8880_v45, %v20534_v4  ;;  %v20538_v15 = vcombine.low %v8880_v45, %v20534_v4  ;;  %v18162_v45 = vld [vmem:[#allocation22 + $0x234] ss:$8 sps:$4 sm:$0xff]  }
 0x9f7   :  { %v20542_v1 = vld [vmem:[#allocation2 + $0x18] sm:$0x11] }
 0x9f8   :  { %9198 = vmatprep.mubr.bf16.mxu1 %v15607_v39  ;;  %v20546_v9 = vcombine.high %v20542_v1, %v20542_v1  ;;  %v9343_v18 = vshll.u32 %v15607_v39, 16  ;;  %v9341_v23 = vshrl.u32 %v15607_v39, 16  ;;  %v18160_v39 = vld [vmem:[#allocation22 + $0x230] ss:$8 sps:$4 sm:$0xff]  }
 0x9f9   :  { %9199 = vmatmul.mubr.bf16.vlgmr.msra.gmra.mrb[24].mxu1 %v20538_v15  ;;  %v11734_v35 = vld [vmem:[#allocation2 + $0x18] sm:$0x33] }
 0x9fa   :  { %9210 = vmatpush1.bf16.msra.mxu1 %v18100_v14  ;;  %9241 = vmatprep.mubr.bf16.mxu1 %v20244_v37  ;;  %v9345_v62 = vrot.slane %v9343_v18, 1  ;;  %v9348_v7 = vshll.u32 %v20546_v9, 16  ;;  %v18165_v14 = vld [vmem:[#allocation22 + $0x244] ss:$8 sps:$4 sm:$0xff]   ;;  %v9329_v18 = vshrl.u32 %v20538_v15, 16 }
 0x9fb   :  { %9211 = vmatprep.subr.bf16.mxu1 %v18106_v28  ;;  %v20553_v28 = vcombine.low %v20542_v1, %v20542_v1  ;;  %v18170_v1 = vld [vmem:[#allocation22 + $0x260] ss:$8 sps:$4 sm:$0xff]  }
 0x9fc   :  { %v9346_v57 = vor.u32 %v9345_v62, %v9341_v23  ;;  %v9350_v50 = vrot.slane %v9348_v7, 1  ;;  %v18175_v7 = vld [vmem:[#allocation22 + $0x274] ss:$8 sps:$4 sm:$0xff]   ;;  %v18178_v23 = vld [vmem:[#allocation22 + $0x284] ss:$8 sps:$4 sm:$0xff]  }
 0x9fe   :  { %9212 = vmatpush1.bf16.msra.mxu1 %v18104_v6  ;;  %v9351_v49 = vsel %vm20958_vm2, %v9346_v57, %v9350_v50  ;;  %v9331_v6 = vshll.u32 %v20538_v15, 16  ;;  %v20560_v57 = vld [vmem:[#allocation2 + $0x14] sm:$0xf]  ;;  %v18181_v50 = vld [vmem:[#allocation22 + $0x294] ss:$8 sps:$4 sm:$0xff]   ;;  %vm20965_vm2 = vmmov %vm20961_vm8 }
 0x9ff   :  { %9213 = vmatprep.subr.bf16.mxu1 %v18109_v24  ;;  %v18163_v24 = vld [vmem:[#allocation22 + $0x240] ss:$8 sps:$4 sm:$0xff]  }
 0xa00   :  { %v18176_v15 = vld [vmem:[#allocation22 + $0x280] ss:$8 sps:$4 sm:$0xff]  }
 0xa02   :  { %9214 = vmatpush1.bf16.msra.mxu1 %v18107_v54  ;;  %v18168_v54 = vld [vmem:[#allocation22 + $0x254] ss:$8 sps:$4 sm:$0xff]  }
 0xa03   :  { %9215 = vmatprep.subr.bf16.mxu1 %v18112_v20  ;;  %v9333_v20 = vrot.slane %v9331_v6, 1  ;;  %v18206_v6 = vld [vmem:[#allocation22 + $0x310] ss:$8 sps:$4 sm:$0xff]  }
 0xa06   :  { %9216 = vmatpush1.bf16.msra.mxu1 %v18110_v27  ;;  %v9336_v27 = vshll.u32 %v20553_v28, 16 }
 0xa07   :  { %9217 = vmatprep.subr.bf16.mxu1 %v18115_v48  ;;  %v18166_v48 = vld [vmem:[#allocation22 + $0x250] ss:$8 sps:$4 sm:$0xff]  }
 0xa08   :  { %v9338_v62 = vrot.slane %v9336_v27, 1  ;;  %v18212_v27 = vld [vmem:[#allocation22 + $0x330] ss:$8 sps:$4 sm:$0xff]  }
 0xa0a   :  { %9218 = vmatpush1.bf16.msra.mxu1 %v18113_v34  ;;  %v18172_v34 = vld [vmem:[#allocation22 + $0x264] ss:$8 sps:$4 sm:$0xff]  }
 0xa0b   :  { %9219 = vmatprep.subr.bf16.mxu1 %v18118_v13  ;;  %v9334_v13 = vor.u32 %v9333_v20, %v9329_v18  ;;  %v18214_v20 = vld [vmem:[#allocation22 + $0x334] ss:$8 sps:$4 sm:$0xff]   ;;  %v18215_v18 = vld [vmem:[#allocation22 + $0x340] ss:$8 sps:$4 sm:$0xff]  }
 0xa0e   :  { %9220 = vmatpush1.bf16.msra.mxu1 %v18116_v19  ;;  %v9339_v19 = vsel %vm20959_vm9, %v9334_v13, %v9338_v62  ;;  %v18218_v13 = vld [vmem:[#allocation22 + $0x350] ss:$8 sps:$4 sm:$0xff]   ;;  %v18223_v62 = vld [vmem:[#allocation22 + $0x364] ss:$8 sps:$4 sm:$0xff]   ;;  %vm20966_vm9 = vsmask.f32 6400 }
 0xa0f   :  { %9589 = vmatprep.subr.bf16.mxu1 %v18122_v21  ;;  %v18173_v21 = vld [vmem:[#allocation22 + $0x270] ss:$8 sps:$4 sm:$0xff]  }
 0xa11   :  { %15653 = vmatmul.mubr.msk.bf16.vlgmr.msra.gmra.mrb[24].mxu1 %vm20957_vm15, %v18119_v0  ;;  %vm20964_vm15 = vmmov %vm20962_vm10 }
 0xa12   :  { %9590 = vmatpush1.bf16.msra.mxu1 %v18120_v55  ;;  %9621 = vmatprep.mubr.bf16.mxu1 %v9351_v49  ;;  %v9257_v55 = vld [vmem:[#allocation2 + $0x8] sm:$0xf]  ;;  %v18184_v49 = vld [vmem:[#allocation22 + $0x2a4] ss:$8 sps:$4 sm:$0xff]  }
 0xa13   :  { %9591 = vmatprep.subr.bf16.mxu1 %v18126_v25  ;;  %v15656_v0 = vcombine.low %v9257_v55, %v20560_v57  ;;  %v18179_v25 = vld [vmem:[#allocation22 + $0x290] ss:$8 sps:$4 sm:$0xff]   ;;  %v18235_v55 = vld [vmem:[#allocation22 + $0x3a4] ss:$8 sps:$4 sm:$0xff]  }
 0xa16   :  { %9592 = vmatpush1.bf16.msra.mxu1 %v18124_v52  ;;  %v20563_v52 = vld [vmem:[#allocation2 + $0x20] ss:$0 sps:$4 sm:$0x11]  }
 0xa17   :  { %9593 = vmatprep.subr.bf16.mxu1 %v18129_v59  ;;  %v9355_v59 = vshll.u32 %v15656_v0, 16 }
 0xa1a   :  { %9594 = vmatpush1.bf16.msra.mxu1 %v18127_v12  ;;  %v18182_v12 = vld [vmem:[#allocation22 + $0x2a0] ss:$8 sps:$4 sm:$0xff]  }
 0xa1b   :  { %9595 = vmatprep.subr.bf16.mxu1 %v18132_v42  ;;  %v18187_v42 = vld [vmem:[#allocation22 + $0x2b4] ss:$8 sps:$4 sm:$0xff]  }
 0xa1e   :  { %9596 = vmatpush1.bf16.msra.mxu1 %v18130_v26  ;;  %v9357_v26 = vrot.slane %v9355_v59, 1 }
 0xa1f   :  { %9597 = vmatprep.subr.bf16.mxu1 %v18135_v53  ;;  %v9360_v53 = vshll.u32 %v20563_v52, 16 }
 0xa22   :  { %9598 = vmatpush1.bf16.msra.mxu1 %v18133_v56  ;;  %v18185_v56 = vld [vmem:[#allocation22 + $0x2b0] ss:$8 sps:$4 sm:$0xff]  }
 0xa23   :  { %9599 = vmatprep.subr.bf16.mxu1 %v18138_v32  ;;  %v9353_v32 = vshrl.u32 %v15656_v0, 16  ;;  %v18233_v0 = vld [vmem:[#allocation22 + $0x3a0] ss:$8 sps:$4 sm:$0xff]  }
 0xa26   :  { %9600 = vmatpush1.bf16.msra.mxu1 %v18136_v33  ;;  %v20566_v33 = vld [vmem:[#allocation2] sm:$0xee] }
 0xa27   :  { %9601 = vmatprep.subr.bf16.mxu1 %v18141_v5  ;;  %v18192_v5 = vld [vmem:[#allocation22 + $0x2c4] ss:$8 sps:$4 sm:$0xff]   ;;  %v20579_v59 = vcombine.low %v20566_v33, %v20534_v4 }
 0xa2a   :  { %9602 = vmatpush1.bf16.msra.mxu1 %v18139_v51  ;;  %v20570_v51 = vcombine.high %v20566_v33, %v20534_v4  ;;  %v18248_v33 = vld [vmem:[#allocation22 + $0x3e4] ss:$8 sps:$4 sm:$0xff]  }
 0xa2b   :  { %9603 = vmatprep.subr.bf16.mxu1 %v18144_v2  ;;  %v9358_v2 = vor.u32 %v9357_v26, %v9353_v32  ;;  %v9734_v26 = vrot.slane %v20579_v59, 1 }
 0xa2e   :  { %9604 = vmatpush1.bf16.msra.mxu1 %v18142_v16  ;;  %v9362_v16 = vrot.slane %v9360_v53, 1  ;;  %v18240_v53 = vld [vmem:[#allocation22 + $0x3c0] ss:$8 sps:$4 sm:$0xff]  }
 0xa2f   :  { %9605 = vmatprep.subr.bf16.mxu1 %v18147_v36  ;;  %v9738_v36 = vrot.slane %v20546_v9, 1  ;;  %v18202_v9 = vld [vmem:[#allocation22 + $0x2f4] ss:$8 sps:$4 sm:$0xff]  }
 0xa32   :  { %9606 = vmatpush1.bf16.msra.mxu1 %v18145_v44  ;;  %v18190_v44 = vld [vmem:[#allocation22 + $0x2c0] ss:$8 sps:$4 sm:$0xff]  }
 0xa33   :  { %9607 = vmatprep.subr.bf16.mxu1 %v18150_v40  ;;  %v9737_v40 = vrot.slane %v20570_v51, 1 }
 0xa36   :  { %9608 = vmatpush1.bf16.msra.mxu1 %v18148_v8  ;;  %v18196_v8 = vld [vmem:[#allocation22 + $0x2d4] ss:$8 sps:$4 sm:$0xff]  }
 0xa37   :  { %9609 = vmatprep.subr.bf16.mxu1 %v18153_v29  ;;  %v9363_v29 = vsel %vm20960_vm7, %v9358_v2, %v9362_v16  ;;  %v18246_v2 = vld [vmem:[#allocation22 + $0x3e0] ss:$8 sps:$4 sm:$0xff]   ;;  %v20585_v16 = vld [vmem:[#allocation2 + $0x18] sm:$0x33]  ;;  %vm20967_vm7 = vmmov %vm20966_vm9 }
 0xa3a   :  { %9610 = vmatpush1.bf16.msra.mxu1 %v18151_v3  ;;  %v9739_v3 = vsel %vm20962_vm10, %v9737_v40, %v9738_v36  ;;  %v20589_v36 = vcombine.high %v20585_v16, %v20585_v16  ;;  %v18254_v40 = vld [vmem:[#allocation22 + $0x404] ss:$8 sps:$4 sm:$0xff]   ;;  %vm20969_vm10 = vmmov %vm20965_vm2 }
 0xa3b   :  { %9611 = vmatprep.subr.bf16.mxu1 %v18156_v41  ;;  %v18194_v41 = vld [vmem:[#allocation22 + $0x2d0] ss:$8 sps:$4 sm:$0xff]  }
 0xa3e   :  { %9612 = vmatpush1.bf16.msra.mxu1 %v18154_v43  ;;  %v18199_v43 = vld [vmem:[#allocation22 + $0x2e4] ss:$8 sps:$4 sm:$0xff]  }
 0xa3f   :  { %9613 = vmatprep.subr.bf16.mxu1 %v18159_v31  ;;  %v18197_v31 = vld [vmem:[#allocation22 + $0x2e0] ss:$8 sps:$4 sm:$0xff]  }
 0xa42   :  { %9614 = vmatpush1.bf16.msra.mxu1 %v18157_v47  ;;  %v18200_v47 = vld [vmem:[#allocation22 + $0x2f0] ss:$8 sps:$4 sm:$0xff]  }
 0xa43   :  { %9615 = vmatprep.subr.bf16.mxu1 %v18162_v45  ;;  %v18205_v45 = vld [vmem:[#allocation22 + $0x304] ss:$8 sps:$4 sm:$0xff]  }
 0xa46   :  { %9616 = vmatpush1.bf16.msra.mxu1 %v18160_v39  ;;  %v18203_v39 = vld [vmem:[#allocation22 + $0x300] ss:$8 sps:$4 sm:$0xff]  }
 0xa47   :  { %9617 = vmatprep.subr.bf16.mxu1 %v18165_v14  ;;  %v18208_v14 = vld [vmem:[#allocation22 + $0x314] ss:$8 sps:$4 sm:$0xff]  }
 0xa4a   :  { %9618 = vmatpush1.bf16.msra.mxu1 %v18163_v24  ;;  %v18211_v24 = vld [vmem:[#allocation22 + $0x324] ss:$8 sps:$4 sm:$0xff]  }
 0xa4b   :  { %9619 = vmatprep.subr.bf16.mxu1 %v18168_v54  ;;  %v18209_v54 = vld [vmem:[#allocation22 + $0x320] ss:$8 sps:$4 sm:$0xff]  }
 0xa4e   :  { %9620 = vmatpush1.bf16.msra.mxu1 %v18166_v48  ;;  %v18217_v48 = vld [vmem:[#allocation22 + $0x344] ss:$8 sps:$4 sm:$0xff]  }
 0xa4f   :  { %9632 = vmatprep.subr.bf16.mxu1 %v18172_v34  ;;  %v18220_v34 = vld [vmem:[#allocation22 + $0x354] ss:$8 sps:$4 sm:$0xff]  }
 0xa51   :  { %9622 = vmatmul.mubr.bf16.vlgmr.msra.gmra.mrb[24].mxu1 %v9339_v19  ;;  %v18224_v19 = vld [vmem:[#allocation22 + $0x370] ss:$8 sps:$4 sm:$0xff]  }
 0xa52   :  { %9633 = vmatpush1.bf16.msra.mxu1 %v18170_v1  ;;  %9664 = vmatprep.mubr.bf16.mxu1 %v20244_v37  ;;  %v18221_v1 = vld [vmem:[#allocation22 + $0x360] ss:$8 sps:$4 sm:$0xff]  }
 0xa53   :  { %9634 = vmatprep.subr.bf16.mxu1 %v18175_v7  ;;  %v18226_v7 = vld [vmem:[#allocation22 + $0x374] ss:$8 sps:$4 sm:$0xff]  }
 0xa56   :  { %9635 = vmatpush1.bf16.msra.mxu1 %v18173_v21  ;;  %v18229_v21 = vld [vmem:[#allocation22 + $0x384] ss:$8 sps:$4 sm:$0xff]  }
 0xa57   :  { %9636 = vmatprep.subr.bf16.mxu1 %v18178_v23  ;;  %v18227_v23 = vld [vmem:[#allocation22 + $0x380] ss:$8 sps:$4 sm:$0xff]  }
 0xa5a   :  { %9637 = vmatpush1.bf16.msra.mxu1 %v18176_v15  ;;  %v18232_v15 = vld [vmem:[#allocation22 + $0x394] ss:$8 sps:$4 sm:$0xff]  }
 0xa5b   :  { %9638 = vmatprep.subr.bf16.mxu1 %v18181_v50  ;;  %v18230_v50 = vld [vmem:[#allocation22 + $0x390] ss:$8 sps:$4 sm:$0xff]  }
 0xa5e   :  { %9639 = vmatpush1.bf16.msra.mxu1 %v18179_v25  ;;  %v18238_v25 = vld [vmem:[#allocation22 + $0x3b4] ss:$8 sps:$4 sm:$0xff]  }
 0xa5f   :  { %9640 = vmatprep.subr.bf16.mxu1 %v18184_v49  ;;  %v18236_v49 = vld [vmem:[#allocation22 + $0x3b0] ss:$8 sps:$4 sm:$0xff]  }
 0xa62   :  { %9641 = vmatpush1.bf16.msra.mxu1 %v18182_v12  ;;  %v18242_v12 = vld [vmem:[#allocation22 + $0x3c4] ss:$8 sps:$4 sm:$0xff]  }
 0xa63   :  { %9642 = vmatprep.subr.bf16.mxu1 %v18187_v42  ;;  %v9735_v42 = vrot.slane %v20553_v28, 1  ;;  %v18251_v28 = vld [vmem:[#allocation22 + $0x3f4] ss:$8 sps:$4 sm:$0xff]  }
 0xa65   :  { %v9736_v32 = vsel %vm20963_vm12, %v9734_v26, %v9735_v42  ;;  %v18286_v42 = vld [vmem:[#allocation22 + $0x4a4] ss:$8 sps:$4 sm:$0xff]   ;;  %v18284_v26 = vld [vmem:[#allocation22 + $0x4a0] ss:$8 sps:$4 sm:$0xff]   ;;  %vm20970_vm12 = vcmask 1045504  }
 0xa66   :  { %9643 = vmatpush1.bf16.msra.mxu1 %v18185_v56  ;;  %v18245_v56 = vld [vmem:[#allocation22 + $0x3d4] ss:$8 sps:$4 sm:$0xff]  }
 0xa67   :  { %9968 = vmatprep.subr.bf16.mxu1 %v18192_v5  ;;  %v18243_v5 = vld [vmem:[#allocation22 + $0x3d0] ss:$8 sps:$4 sm:$0xff]  }
 0xa69   :  { %15704 = vmatmul.mubr.msk.bf16.vlgmr.msra.gmra.mrb[24].mxu1 %vm20961_vm8, %v9363_v29  ;;  %v10142_v29 = vshll.u32 %v20589_v36, 16  ;;  %vm20968_vm8 = vmmov %vm20967_vm7 }
 0xa6a   :  { %9969 = vmatpush1.bf16.msra.mxu1 %v18190_v44  ;;  %10000 = vmatprep.mubr.bf16.mxu1 %v9739_v3  ;;  %v18249_v44 = vld [vmem:[#allocation22 + $0x3f0] ss:$8 sps:$4 sm:$0xff]   ;;  %v18252_v3 = vld [vmem:[#allocation22 + $0x400] ss:$8 sps:$4 sm:$0xff]  }
 0xa6b   :  { %9970 = vmatprep.subr.bf16.mxu1 %v18196_v8  ;;  %v10139_v8 = vshrl.u32 %v20589_v36, 16 }
 0xa6e   :  { %9971 = vmatpush1.bf16.msra.mxu1 %v18194_v41  ;;  %v18257_v41 = vld [vmem:[#allocation22 + $0x414] ss:$8 sps:$4 sm:$0xff]  }
 0xa6f   :  { %9972 = vmatprep.subr.bf16.mxu1 %v18199_v43  ;;  %v9680_v43 = vld [vmem:[#allocation2 + $0x8] sm:$0xe] }
 0xa72   :  { %9973 = vmatpush1.bf16.msra.mxu1 %v18197_v31  ;;  %v10131_v31 = vshrl.u32 %v20570_v51, 16 }
 0xa73   :  { %9974 = vmatprep.subr.bf16.mxu1 %v18202_v9  ;;  %v10134_v9 = vshll.u32 %v20570_v51, 16 }
 0xa76   :  { %9975 = vmatpush1.bf16.msra.mxu1 %v18200_v47  ;;  %v20596_v47 = vcombine.low %v9680_v43, %v20560_v57 }
 0xa77   :  { %9976 = vmatprep.subr.bf16.mxu1 %v18205_v45  ;;  %v10141_v45 = vrot.slane %v10139_v8, 1  ;;  %v20605_v8 = vcombine.low %v20585_v16, %v20585_v16  ;;  %v18305_v16 = vld [vmem:[#allocation22 + $0x510] ss:$8 sps:$4 sm:$0xff]  }
 0xa79   :  { %v10125_v43 = vshll.u32 %v20605_v8, 16 }
 0xa7a   :  { %9977 = vmatpush1.bf16.msra.mxu1 %v18203_v39  ;;  %v10144_v39 = vrot.slane %v10142_v29, 2  ;;  %v18299_v29 = vld [vmem:[#allocation22 + $0x4f0] ss:$8 sps:$4 sm:$0xff]  }
 0xa7b   :  { %9978 = vmatprep.subr.bf16.mxu1 %v18208_v14  ;;  %v18255_v14 = vld [vmem:[#allocation22 + $0x410] ss:$8 sps:$4 sm:$0xff]  }
 0xa7e   :  { %9979 = vmatpush1.bf16.msra.mxu1 %v18206_v6  ;;  %v18261_v6 = vld [vmem:[#allocation22 + $0x424] ss:$8 sps:$4 sm:$0xff]  }
 0xa7f   :  { %9980 = vmatprep.subr.bf16.mxu1 %v18211_v24  ;;  %v10133_v24 = vrot.slane %v10131_v31, 1  ;;  %v18302_v31 = vld [vmem:[#allocation22 + $0x500] ss:$8 sps:$4 sm:$0xff]  }
 0xa82   :  { %9981 = vmatpush1.bf16.msra.mxu1 %v18209_v54  ;;  %v10136_v54 = vrot.slane %v10134_v9, 2  ;;  %v10114_v9 = vshrl.u32 %v20579_v59, 16 }
 0xa83   :  { %9982 = vmatprep.subr.bf16.mxu1 %v18214_v20  ;;  %v9740_v20 = vrot.slane %v20596_v47, 1 }
 0xa84   :  { %v10137_v51 = vor.u32 %v10136_v54, %v10133_v24  ;;  %v10116_v24 = vrot.slane %v10114_v9, 1  ;;  %v18343_v9 = vld [vmem:[#allocation22 + $0x5c4] ss:$8 sps:$4 sm:$0xff]  }
 0xa86   :  { %9983 = vmatpush1.bf16.msra.mxu1 %v18212_v27  ;;  %v9741_v27 = vrot.slane %v20563_v52, 1  ;;  %v18271_v52 = vld [vmem:[#allocation22 + $0x454] ss:$8 sps:$4 sm:$0xff]  }
 0xa87   :  { %9984 = vmatprep.subr.bf16.mxu1 %v18217_v48  ;;  %v10145_v48 = vor.u32 %v10144_v39, %v10141_v45  ;;  %v10117_v45 = vshll.u32 %v20579_v59, 16  ;;  %v18307_v39 = vld [vmem:[#allocation22 + $0x514] ss:$8 sps:$4 sm:$0xff]   ;;  %v18312_v59 = vld [vmem:[#allocation22 + $0x530] ss:$8 sps:$4 sm:$0xff]  }
 0xa89   :  { %v10119_v54 = vrot.slane %v10117_v45, 2  ;;  %v18341_v45 = vld [vmem:[#allocation22 + $0x5c0] ss:$8 sps:$4 sm:$0xff]  }
 0xa8a   :  { %9985 = vmatpush1.bf16.msra.mxu1 %v18215_v18  ;;  %v18259_v18 = vld [vmem:[#allocation22 + $0x420] ss:$8 sps:$4 sm:$0xff]  }
 0xa8b   :  { %9986 = vmatprep.subr.bf16.mxu1 %v18220_v34  ;;  %v18265_v34 = vld [vmem:[#allocation22 + $0x434] ss:$8 sps:$4 sm:$0xff]  }
 0xa8e   :  { %9987 = vmatpush1.bf16.msra.mxu1 %v18218_v13  ;;  %v9742_v13 = vsel %vm20964_vm15, %v9740_v20, %v9741_v27  ;;  %v18311_v20 = vld [vmem:[#allocation22 + $0x524] ss:$8 sps:$4 sm:$0xff]   ;;  %vm20971_vm15 = vmmov %vm20970_vm12 }
 0xa8f   :  { %9988 = vmatprep.subr.bf16.mxu1 %v18223_v62  ;;  %v10146_v62 = vsel %vm20966_vm9, %v10137_v51, %v10145_v48  ;;  %v10120_v48 = vor.u32 %v10119_v54, %v10116_v24  ;;  %v18314_v51 = vld [vmem:[#allocation22 + $0x534] ss:$8 sps:$4 sm:$0xff]   ;;  %v18350_v54 = vld [vmem:[#allocation22 + $0x5f0] ss:$8 sps:$4 sm:$0xff]   ;;  %vm20973_vm9 = vmmov %vm20969_vm10 }
 0xa90   :  { %v18352_v24 = vld [vmem:[#allocation22 + $0x5f4] ss:$8 sps:$4 sm:$0xff]  }
 0xa92   :  { %9989 = vmatpush1.bf16.msra.mxu1 %v18221_v1  ;;  %v18263_v1 = vld [vmem:[#allocation22 + $0x430] ss:$8 sps:$4 sm:$0xff]  }
 0xa93   :  { %9990 = vmatprep.subr.bf16.mxu1 %v18226_v7  ;;  %v18268_v7 = vld [vmem:[#allocation22 + $0x444] ss:$8 sps:$4 sm:$0xff]  }
 0xa96   :  { %9991 = vmatpush1.bf16.msra.mxu1 %v18224_v19  ;;  %v18266_v19 = vld [vmem:[#allocation22 + $0x440] ss:$8 sps:$4 sm:$0xff]  }
 0xa97   :  { %9992 = vmatprep.subr.bf16.mxu1 %v18229_v21  ;;  %v18269_v21 = vld [vmem:[#allocation22 + $0x450] ss:$8 sps:$4 sm:$0xff]  }
 0xa9a   :  { %9993 = vmatpush1.bf16.msra.mxu1 %v18227_v23  ;;  %v18274_v23 = vld [vmem:[#allocation22 + $0x464] ss:$8 sps:$4 sm:$0xff]  }
 0xa9b   :  { %9994 = vmatprep.subr.bf16.mxu1 %v18232_v15  ;;  %v18272_v15 = vld [vmem:[#allocation22 + $0x460] ss:$8 sps:$4 sm:$0xff]  }
 0xa9e   :  { %9995 = vmatpush1.bf16.msra.mxu1 %v18230_v50  ;;  %v18277_v50 = vld [vmem:[#allocation22 + $0x474] ss:$8 sps:$4 sm:$0xff]  }
 0xa9f   :  { %9996 = vmatprep.subr.bf16.mxu1 %v18235_v55  ;;  %v18275_v55 = vld [vmem:[#allocation22 + $0x470] ss:$8 sps:$4 sm:$0xff]  }
 0xaa2   :  { %9997 = vmatpush1.bf16.msra.mxu1 %v18233_v0  ;;  %v18280_v0 = vld [vmem:[#allocation22 + $0x484] ss:$8 sps:$4 sm:$0xff]  }
 0xaa3   :  { %9998 = vmatprep.subr.bf16.mxu1 %v18238_v25  ;;  %v18278_v25 = vld [vmem:[#allocation22 + $0x480] ss:$8 sps:$4 sm:$0xff]  }
 0xaa6   :  { %9999 = vmatpush1.bf16.msra.mxu1 %v18236_v49  ;;  %v18283_v49 = vld [vmem:[#allocation22 + $0x494] ss:$8 sps:$4 sm:$0xff]  }
 0xaa7   :  { %10011 = vmatprep.subr.bf16.mxu1 %v18242_v12  ;;  %v18281_v12 = vld [vmem:[#allocation22 + $0x490] ss:$8 sps:$4 sm:$0xff]  }
 0xaa9   :  { %10001 = vmatmul.mubr.bf16.vlgmr.msra.gmra.mrb[24].mxu1 %v9736_v32  ;;  %v18292_v32 = vld [vmem:[#allocation22 + $0x4c4] ss:$8 sps:$4 sm:$0xff]  }
 0xaaa   :  { %10012 = vmatpush1.bf16.msra.mxu1 %v18240_v53  ;;  %10043 = vmatprep.mubr.bf16.mxu1 %v20244_v37  ;;  %v18289_v53 = vld [vmem:[#allocation22 + $0x4b4] ss:$8 sps:$4 sm:$0xff]  }
 0xaab   :  { %10013 = vmatprep.subr.bf16.mxu1 %v18245_v56  ;;  %v18287_v56 = vld [vmem:[#allocation22 + $0x4b0] ss:$8 sps:$4 sm:$0xff]  }
 0xaae   :  { %10014 = vmatpush1.bf16.msra.mxu1 %v18243_v5  ;;  %v18290_v5 = vld [vmem:[#allocation22 + $0x4c0] ss:$8 sps:$4 sm:$0xff]  }
 0xaaf   :  { %10015 = vmatprep.subr.bf16.mxu1 %v18248_v33  ;;  %v18295_v33 = vld [vmem:[#allocation22 + $0x4d4] ss:$8 sps:$4 sm:$0xff]  }
 0xab2   :  { %10016 = vmatpush1.bf16.msra.mxu1 %v18246_v2  ;;  %v18293_v2 = vld [vmem:[#allocation22 + $0x4d0] ss:$8 sps:$4 sm:$0xff]  }
 0xab3   :  { %10017 = vmatprep.subr.bf16.mxu1 %v18251_v28  ;;  %v18298_v28 = vld [vmem:[#allocation22 + $0x4e4] ss:$8 sps:$4 sm:$0xff]  }
 0xab6   :  { %10018 = vmatpush1.bf16.msra.mxu1 %v18249_v44  ;;  %v18296_v44 = vld [vmem:[#allocation22 + $0x4e0] ss:$8 sps:$4 sm:$0xff]  }
 0xab7   :  { %10019 = vmatprep.subr.bf16.mxu1 %v18254_v40  ;;  %v18301_v40 = vld [vmem:[#allocation22 + $0x4f4] ss:$8 sps:$4 sm:$0xff]  }
 0xaba   :  { %10020 = vmatpush1.bf16.msra.mxu1 %v18252_v3  ;;  %v18304_v3 = vld [vmem:[#allocation22 + $0x504] ss:$8 sps:$4 sm:$0xff]  }
 0xabb   :  { %10021 = vmatprep.subr.bf16.mxu1 %v18257_v41  ;;  %v10122_v41 = vshrl.u32 %v20605_v8, 16 }
 0xabe   :  { %10022 = vmatpush1.bf16.msra.mxu1 %v18255_v14  ;;  %v10124_v14 = vrot.slane %v10122_v41, 1  ;;  %v18337_v41 = vld [vmem:[#allocation22 + $0x5a4] ss:$8 sps:$4 sm:$0xff]  }
 0xabf   :  { %10389 = vmatprep.subr.bf16.mxu1 %v18261_v6  ;;  %v10127_v6 = vrot.slane %v10125_v43, 2  ;;  %v18335_v43 = vld [vmem:[#allocation22 + $0x5a0] ss:$8 sps:$4 sm:$0xff]  }
 0xac1   :  { %15752 = vmatmul.mubr.msk.bf16.vlgmr.msra.gmra.mrb[24].mxu1 %vm20965_vm2, %v9742_v13  ;;  %v10128_v27 = vor.u32 %v10127_v6, %v10124_v14  ;;  %v18317_v13 = vld [vmem:[#allocation22 + $0x544] ss:$8 sps:$4 sm:$0xff]   ;;  %v18344_v14 = vld [vmem:[#allocation22 + $0x5d0] ss:$8 sps:$4 sm:$0xff]   ;;  %vm20972_vm2 = vmmov %vm20970_vm12 }
 0xac2   :  { %10390 = vmatpush1.bf16.msra.mxu1 %v18259_v18  ;;  %10421 = vmatprep.mubr.bf16.mxu1 %v10146_v62  ;;  %v18309_v18 = vld [vmem:[#allocation22 + $0x520] ss:$8 sps:$4 sm:$0xff]   ;;  %v18349_v6 = vld [vmem:[#allocation22 + $0x5e4] ss:$8 sps:$4 sm:$0xff]  }
 0xac3   :  { %10391 = vmatprep.subr.bf16.mxu1 %v18265_v34  ;;  %v10129_v34 = vsel %vm20967_vm7, %v10120_v48, %v10128_v27  ;;  %v18315_v62 = vld [vmem:[#allocation22 + $0x540] ss:$8 sps:$4 sm:$0xff]   ;;  %v18358_v48 = vld [vmem:[#allocation22 + $0x614] ss:$8 sps:$4 sm:$0xff]   ;;  %vm20974_vm7 = vmmov %vm20973_vm9 }
 0xac4   :  { %v18353_v27 = vld [vmem:[#allocation22 + $0x600] ss:$8 sps:$4 sm:$0xff]  }
 0xac6   :  { %10392 = vmatpush1.bf16.msra.mxu1 %v18263_v1  ;;  %v18320_v1 = vld [vmem:[#allocation22 + $0x554] ss:$8 sps:$4 sm:$0xff]  }
 0xac7   :  { %10393 = vmatprep.subr.bf16.mxu1 %v18268_v7  ;;  %v20613_v7 = vld [vmem:[#allocation2 + $0x20] ss:$0 sps:$4 sm:$0x33]  }
 0xaca   :  { %10394 = vmatpush1.bf16.msra.mxu1 %v18266_v19  ;;  %v18318_v19 = vld [vmem:[#allocation22 + $0x550] ss:$8 sps:$4 sm:$0xff]  }
 0xacb   :  { %10395 = vmatprep.subr.bf16.mxu1 %v18271_v52  ;;  %v18323_v52 = vld [vmem:[#allocation22 + $0x564] ss:$8 sps:$4 sm:$0xff]  }
 0xace   :  { %10396 = vmatpush1.bf16.msra.mxu1 %v18269_v21  ;;  %v10148_v21 = vshrl.u32 %v20596_v47, 16 }
 0xacf   :  { %10397 = vmatprep.subr.bf16.mxu1 %v18274_v23  ;;  %v10151_v23 = vshll.u32 %v20596_v47, 16 }
 0xad2   :  { %10398 = vmatpush1.bf16.msra.mxu1 %v18272_v15  ;;  %v10156_v15 = vshrl.u32 %v20613_v7, 16 }
 0xad3   :  { %10399 = vmatprep.subr.bf16.mxu1 %v18277_v50  ;;  %v10159_v50 = vshll.u32 %v20613_v7, 16 }
 0xad6   :  { %10400 = vmatpush1.bf16.msra.mxu1 %v18275_v55  ;;  %v18321_v55 = vld [vmem:[#allocation22 + $0x560] ss:$8 sps:$4 sm:$0xff]  }
 0xad7   :  { %10401 = vmatprep.subr.bf16.mxu1 %v18280_v0  ;;  %v18326_v0 = vld [vmem:[#allocation22 + $0x574] ss:$8 sps:$4 sm:$0xff]  }
 0xada   :  { %10402 = vmatpush1.bf16.msra.mxu1 %v18278_v25  ;;  %v10150_v25 = vrot.slane %v10148_v21, 1  ;;  %v18373_v21 = vld [vmem:[#allocation22 + $0x664] ss:$8 sps:$4 sm:$0xff]  }
 0xadb   :  { %10403 = vmatprep.subr.bf16.mxu1 %v18283_v49  ;;  %v10153_v49 = vrot.slane %v10151_v23, 2  ;;  %v18371_v23 = vld [vmem:[#allocation22 + $0x660] ss:$8 sps:$4 sm:$0xff]  }
 0xade   :  { %10404 = vmatpush1.bf16.msra.mxu1 %v18281_v12  ;;  %v10158_v12 = vrot.slane %v10156_v15, 1  ;;  %v18376_v15 = vld [vmem:[#allocation22 + $0x674] ss:$8 sps:$4 sm:$0xff]  }
 0xadf   :  { %10405 = vmatprep.subr.bf16.mxu1 %v18286_v42  ;;  %v10161_v42 = vrot.slane %v10159_v50, 2  ;;  %v18374_v50 = vld [vmem:[#allocation22 + $0x670] ss:$8 sps:$4 sm:$0xff]  }
 0xae2   :  { %10406 = vmatpush1.bf16.msra.mxu1 %v18284_v26  ;;  %v18324_v26 = vld [vmem:[#allocation22 + $0x570] ss:$8 sps:$4 sm:$0xff]  }
 0xae3   :  { %10407 = vmatprep.subr.bf16.mxu1 %v18289_v53  ;;  %v20619_v53 = vld [vmem:[#allocation2] sm:$0xcc] }
 0xae4   :  { %v20623_v47 = vcombine.high %v20619_v53, %v20534_v4 }
 0xae6   :  { %10408 = vmatpush1.bf16.msra.mxu1 %v18287_v56  ;;  %v18330_v56 = vld [vmem:[#allocation22 + $0x584] ss:$8 sps:$4 sm:$0xff]  }
 0xae7   :  { %10409 = vmatprep.subr.bf16.mxu1 %v18292_v32  ;;  %v10154_v32 = vor.u32 %v10153_v49, %v10150_v25  ;;  %v10535_v25 = vrot.slane %v20605_v8, 2  ;;  %v18389_v8 = vld [vmem:[#allocation22 + $0x6b4] ss:$8 sps:$4 sm:$0xff]  }
 0xaea   :  { %10410 = vmatpush1.bf16.msra.mxu1 %v18290_v5  ;;  %v10162_v5 = vor.u32 %v10161_v42, %v10158_v12  ;;  %v18378_v12 = vld [vmem:[#allocation22 + $0x680] ss:$8 sps:$4 sm:$0xff]   ;;  %v18383_v42 = vld [vmem:[#allocation22 + $0x694] ss:$8 sps:$4 sm:$0xff]  }
 0xaeb   :  { %10411 = vmatprep.subr.bf16.mxu1 %v18295_v33  ;;  %v10538_v33 = vrot.slane %v20589_v36, 2  ;;  %v18340_v36 = vld [vmem:[#allocation22 + $0x5b4] ss:$8 sps:$4 sm:$0xff]  }
 0xaee   :  { %10412 = vmatpush1.bf16.msra.mxu1 %v18293_v2  ;;  %v18328_v2 = vld [vmem:[#allocation22 + $0x580] ss:$8 sps:$4 sm:$0xff]  }
 0xaef   :  { %10413 = vmatprep.subr.bf16.mxu1 %v18298_v28  ;;  %v10537_v28 = vrot.slane %v20623_v47, 2 }
 0xaf2   :  { %10414 = vmatpush1.bf16.msra.mxu1 %v18296_v44  ;;  %v18334_v44 = vld [vmem:[#allocation22 + $0x594] ss:$8 sps:$4 sm:$0xff]  }
 0xaf3   :  { %10415 = vmatprep.subr.bf16.mxu1 %v18301_v40  ;;  %v10163_v40 = vsel %vm20968_vm8, %v10154_v32, %v10162_v5  ;;  %v20638_v32 = vld [vmem:[#allocation2 + $0x18] sm:$0x77]  ;;  %vm20975_vm8 = vcmask 1044480  }
 0xaf4   :  { %v20642_v5 = vcombine.high %v20638_v32, %v20638_v32 }
 0xaf6   :  { %10416 = vmatpush1.bf16.msra.mxu1 %v18299_v29  ;;  %v10539_v29 = vsel %vm20970_vm12, %v10537_v28, %v10538_v33  ;;  %v18387_v33 = vld [vmem:[#allocation22 + $0x6b0] ss:$8 sps:$4 sm:$0xff]   ;;  %v10939_v28 = vshrl.u32 %v20642_v5, 16  ;;  %vm20977_vm12 = vmmov %vm20975_vm8 }
 0xaf7   :  { %10417 = vmatprep.subr.bf16.mxu1 %v18304_v3  ;;  %v18332_v3 = vld [vmem:[#allocation22 + $0x590] ss:$8 sps:$4 sm:$0xff]  }
 0xafa   :  { %10418 = vmatpush1.bf16.msra.mxu1 %v18302_v31  ;;  %v18338_v31 = vld [vmem:[#allocation22 + $0x5b0] ss:$8 sps:$4 sm:$0xff]  }
 0xafb   :  { %10419 = vmatprep.subr.bf16.mxu1 %v18307_v39  ;;  %v18346_v39 = vld [vmem:[#allocation22 + $0x5d4] ss:$8 sps:$4 sm:$0xff]  }
 0xafe   :  { %10420 = vmatpush1.bf16.msra.mxu1 %v18305_v16  ;;  %v18347_v16 = vld [vmem:[#allocation22 + $0x5e0] ss:$8 sps:$4 sm:$0xff]  }
 0xaff   :  { %10432 = vmatprep.subr.bf16.mxu1 %v18311_v20  ;;  %v18355_v20 = vld [vmem:[#allocation22 + $0x604] ss:$8 sps:$4 sm:$0xff]  }
 0xb01   :  { %10422 = vmatmul.mubr.bf16.vlgmr.msra.gmra.mrb[24].mxu1 %v10129_v34  ;;  %v18359_v34 = vld [vmem:[#allocation22 + $0x620] ss:$8 sps:$4 sm:$0xff]  }
 0xb02   :  { %10433 = vmatpush1.bf16.msra.mxu1 %v18309_v18  ;;  %10464 = vmatprep.mubr.bf16.mxu1 %v20244_v37  ;;  %v18356_v18 = vld [vmem:[#allocation22 + $0x610] ss:$8 sps:$4 sm:$0xff]  }
 0xb03   :  { %10434 = vmatprep.subr.bf16.mxu1 %v18314_v51  ;;  %v18361_v51 = vld [vmem:[#allocation22 + $0x624] ss:$8 sps:$4 sm:$0xff]  }
 0xb06   :  { %10435 = vmatpush1.bf16.msra.mxu1 %v18312_v59  ;;  %v18364_v59 = vld [vmem:[#allocation22 + $0x634] ss:$8 sps:$4 sm:$0xff]  }
 0xb07   :  { %10436 = vmatprep.subr.bf16.mxu1 %v18317_v13  ;;  %v18362_v13 = vld [vmem:[#allocation22 + $0x630] ss:$8 sps:$4 sm:$0xff]  }
 0xb0a   :  { %10437 = vmatpush1.bf16.msra.mxu1 %v18315_v62  ;;  %v18367_v62 = vld [vmem:[#allocation22 + $0x644] ss:$8 sps:$4 sm:$0xff]  }
 0xb0b   :  { %10438 = vmatprep.subr.bf16.mxu1 %v18320_v1  ;;  %v18365_v1 = vld [vmem:[#allocation22 + $0x640] ss:$8 sps:$4 sm:$0xff]  }
 0xb0e   :  { %10439 = vmatpush1.bf16.msra.mxu1 %v18318_v19  ;;  %v18370_v19 = vld [vmem:[#allocation22 + $0x654] ss:$8 sps:$4 sm:$0xff]  }
 0xb0f   :  { %10440 = vmatprep.subr.bf16.mxu1 %v18323_v52  ;;  %v18368_v52 = vld [vmem:[#allocation22 + $0x650] ss:$8 sps:$4 sm:$0xff]  }
 0xb12   :  { %10441 = vmatpush1.bf16.msra.mxu1 %v18321_v55  ;;  %v20632_v55 = vcombine.low %v20619_v53, %v20534_v4  ;;  %v18386_v4 = vld [vmem:[#allocation22 + $0x6a4] ss:$8 sps:$4 sm:$0xff]   ;;  %v18384_v53 = vld [vmem:[#allocation22 + $0x6a0] ss:$8 sps:$4 sm:$0xff]  }
 0xb13   :  { %10442 = vmatprep.subr.bf16.mxu1 %v18326_v0  ;;  %v18380_v0 = vld [vmem:[#allocation22 + $0x684] ss:$8 sps:$4 sm:$0xff]  }
 0xb14   :  { %v10534_v49 = vrot.slane %v20632_v55, 2 }
 0xb16   :  { %10443 = vmatpush1.bf16.msra.mxu1 %v18324_v26  ;;  %v10536_v26 = vsel %vm20971_vm15, %v10534_v49, %v10535_v25  ;;  %v18427_v25 = vld [vmem:[#allocation22 + $0x774] ss:$8 sps:$4 sm:$0xff]   ;;  %v18425_v49 = vld [vmem:[#allocation22 + $0x770] ss:$8 sps:$4 sm:$0xff]   ;;  %vm20978_vm15 = vmmov %vm20974_vm7 }
 0xb17   :  { %10768 = vmatprep.subr.bf16.mxu1 %v18330_v56  ;;  %v18381_v56 = vld [vmem:[#allocation22 + $0x690] ss:$8 sps:$4 sm:$0xff]  }
 0xb19   :  { %15800 = vmatmul.mubr.msk.bf16.vlgmr.msra.gmra.mrb[24].mxu1 %vm20969_vm10, %v10163_v40  ;;  %v18390_v40 = vld [vmem:[#allocation22 + $0x6c0] ss:$8 sps:$4 sm:$0xff]   ;;  %vm20976_vm10 = vmmov %vm20975_vm8 }
 0xb1a   :  { %10769 = vmatpush1.bf16.msra.mxu1 %v18328_v2  ;;  %10800 = vmatprep.mubr.bf16.mxu1 %v10539_v29  ;;  %v18392_v2 = vld [vmem:[#allocation22 + $0x6c4] ss:$8 sps:$4 sm:$0xff]   ;;  %v18395_v29 = vld [vmem:[#allocation22 + $0x6d4] ss:$8 sps:$4 sm:$0xff]  }
 0xb1b   :  { %10770 = vmatprep.subr.bf16.mxu1 %v18334_v44  ;;  %v10942_v44 = vshll.u32 %v20642_v5, 16 }
 0xb1e   :  { %10771 = vmatpush1.bf16.msra.mxu1 %v18332_v3  ;;  %v10480_v3 = vld [vmem:[#allocation2 + $0x8] sm:$0xc] }
 0xb1f   :  { %10772 = vmatprep.subr.bf16.mxu1 %v18337_v41  ;;  %v10931_v41 = vshrl.u32 %v20623_v47, 16 }
 0xb22   :  { %10773 = vmatpush1.bf16.msra.mxu1 %v18335_v43  ;;  %v10934_v43 = vshll.u32 %v20623_v47, 16 }
 0xb23   :  { %10774 = vmatprep.subr.bf16.mxu1 %v18340_v36  ;;  %v20649_v36 = vcombine.low %v10480_v3, %v20560_v57  ;;  %v10914_v3 = vshrl.u32 %v20632_v55, 16 }
 0xb26   :  { %10775 = vmatpush1.bf16.msra.mxu1 %v18338_v31  ;;  %v10941_v31 = vrot.slane %v10939_v28, 2  ;;  %v18442_v28 = vld [vmem:[#allocation22 + $0x7c4] ss:$8 sps:$4 sm:$0xff]  }
 0xb27   :  { %10776 = vmatprep.subr.bf16.mxu1 %v18343_v9  ;;  %v10944_v9 = vrot.slane %v10942_v44, 3 }
 0xb2a   :  { %10777 = vmatpush1.bf16.msra.mxu1 %v18341_v45  ;;  %v18393_v45 = vld [vmem:[#allocation22 + $0x6d0] ss:$8 sps:$4 sm:$0xff]  }
 0xb2b   :  { %10778 = vmatprep.subr.bf16.mxu1 %v18346_v39  ;;  %v18399_v39 = vld [vmem:[#allocation22 + $0x6e4] ss:$8 sps:$4 sm:$0xff]  }
 0xb2e   :  { %10779 = vmatpush1.bf16.msra.mxu1 %v18344_v14  ;;  %v10933_v14 = vrot.slane %v10931_v41, 2  ;;  %v10917_v41 = vshll.u32 %v20632_v55, 16  ;;  %v18450_v55 = vld [vmem:[#allocation22 + $0x7f0] ss:$8 sps:$4 sm:$0xff]  }
 0xb2f   :  { %10780 = vmatprep.subr.bf16.mxu1 %v18349_v6  ;;  %v10936_v6 = vrot.slane %v10934_v43, 3  ;;  %v18445_v43 = vld [vmem:[#allocation22 + $0x7d4] ss:$8 sps:$4 sm:$0xff]  }
 0xb31   :  { %v10937_v47 = vor.u32 %v10936_v6, %v10933_v14  ;;  %v18449_v14 = vld [vmem:[#allocation22 + $0x7e4] ss:$8 sps:$4 sm:$0xff]  }
 0xb32   :  { %10781 = vmatpush1.bf16.msra.mxu1 %v18347_v16  ;;  %v10540_v16 = vrot.slane %v20649_v36, 2 }
 0xb33   :  { %10782 = vmatprep.subr.bf16.mxu1 %v18352_v24  ;;  %v10541_v24 = vrot.slane %v20613_v7, 2  ;;  %v18409_v7 = vld [vmem:[#allocation22 + $0x714] ss:$8 sps:$4 sm:$0xff]  }
 0xb35   :  { %v10542_v57 = vsel %vm20972_vm2, %v10540_v16, %v10541_v24  ;;  %v18447_v24 = vld [vmem:[#allocation22 + $0x7e0] ss:$8 sps:$4 sm:$0xff]  }
 0xb36   :  { %10783 = vmatpush1.bf16.msra.mxu1 %v18350_v54  ;;  %v10945_v54 = vor.u32 %v10944_v9, %v10941_v31 }
 0xb37   :  { %10784 = vmatprep.subr.bf16.mxu1 %v18355_v20  ;;  %v18397_v20 = vld [vmem:[#allocation22 + $0x6e0] ss:$8 sps:$4 sm:$0xff]  }
 0xb3a   :  { %10785 = vmatpush1.bf16.msra.mxu1 %v18353_v27  ;;  %v18403_v27 = vld [vmem:[#allocation22 + $0x6f4] ss:$8 sps:$4 sm:$0xff]  }
 0xb3b   :  { %10786 = vmatprep.subr.bf16.mxu1 %v18358_v48  ;;  %v10946_v48 = vsel %vm2352_vm5, %v10937_v47, %v10945_v54  ;;  %v18452_v54 = vld [vmem:[#allocation22 + $0x7f4] ss:$8 sps:$4 sm:$0xff]   ;;  %v18455_v47 = vld [vmem:[#allocation22 + $0x804] ss:$8 sps:$4 sm:$0xff]  }
 0xb3e   :  { %10787 = vmatpush1.bf16.msra.mxu1 %v18356_v18  ;;  %v18401_v18 = vld [vmem:[#allocation22 + $0x6f0] ss:$8 sps:$4 sm:$0xff]  }
 0xb3f   :  { %10788 = vmatprep.subr.bf16.mxu1 %v18361_v51  ;;  %v18406_v51 = vld [vmem:[#allocation22 + $0x704] ss:$8 sps:$4 sm:$0xff]  }
 0xb42   :  { %10789 = vmatpush1.bf16.msra.mxu1 %v18359_v34  ;;  %v18404_v34 = vld [vmem:[#allocation22 + $0x700] ss:$8 sps:$4 sm:$0xff]  }
 0xb43   :  { %10790 = vmatprep.subr.bf16.mxu1 %v18364_v59  ;;  %v18407_v59 = vld [vmem:[#allocation22 + $0x710] ss:$8 sps:$4 sm:$0xff]  }
 0xb46   :  { %10791 = vmatpush1.bf16.msra.mxu1 %v18362_v13  ;;  %v18412_v13 = vld [vmem:[#allocation22 + $0x724] ss:$8 sps:$4 sm:$0xff]  }
 0xb47   :  { %10792 = vmatprep.subr.bf16.mxu1 %v18367_v62  ;;  %v18410_v62 = vld [vmem:[#allocation22 + $0x720] ss:$8 sps:$4 sm:$0xff]  }
 0xb4a   :  { %10793 = vmatpush1.bf16.msra.mxu1 %v18365_v1  ;;  %v18415_v1 = vld [vmem:[#allocation22 + $0x734] ss:$8 sps:$4 sm:$0xff]  }
 0xb4b   :  { %10794 = vmatprep.subr.bf16.mxu1 %v18370_v19  ;;  %v18413_v19 = vld [vmem:[#allocation22 + $0x730] ss:$8 sps:$4 sm:$0xff]  }
 0xb4e   :  { %10795 = vmatpush1.bf16.msra.mxu1 %v18368_v52  ;;  %v18418_v52 = vld [vmem:[#allocation22 + $0x744] ss:$8 sps:$4 sm:$0xff]  }
 0xb4f   :  { %10796 = vmatprep.subr.bf16.mxu1 %v18373_v21  ;;  %v18416_v21 = vld [vmem:[#allocation22 + $0x740] ss:$8 sps:$4 sm:$0xff]  }
 0xb52   :  { %10797 = vmatpush1.bf16.msra.mxu1 %v18371_v23  ;;  %v18421_v23 = vld [vmem:[#allocation22 + $0x754] ss:$8 sps:$4 sm:$0xff]  }
 0xb53   :  { %10798 = vmatprep.subr.bf16.mxu1 %v18376_v15  ;;  %v18419_v15 = vld [vmem:[#allocation22 + $0x750] ss:$8 sps:$4 sm:$0xff]  }
 0xb56   :  { %10799 = vmatpush1.bf16.msra.mxu1 %v18374_v50  ;;  %v18424_v50 = vld [vmem:[#allocation22 + $0x764] ss:$8 sps:$4 sm:$0xff]  }
 0xb57   :  { %10811 = vmatprep.subr.bf16.mxu1 %v18380_v0  ;;  %v18422_v0 = vld [vmem:[#allocation22 + $0x760] ss:$8 sps:$4 sm:$0xff]  }
 0xb59   :  { %10801 = vmatmul.mubr.bf16.vlgmr.msra.gmra.mrb[24].mxu1 %v10536_v26  ;;  %v18433_v26 = vld [vmem:[#allocation22 + $0x794] ss:$8 sps:$4 sm:$0xff]  }
 0xb5a   :  { %10812 = vmatpush1.bf16.msra.mxu1 %v18378_v12  ;;  %10843 = vmatprep.mubr.bf16.mxu1 %v20244_v37  ;;  %v18430_v12 = vld [vmem:[#allocation22 + $0x784] ss:$8 sps:$4 sm:$0xff]  }
 0xb5b   :  { %10813 = vmatprep.subr.bf16.mxu1 %v18383_v42  ;;  %v18428_v42 = vld [vmem:[#allocation22 + $0x780] ss:$8 sps:$4 sm:$0xff]  }
 0xb5e   :  { %10814 = vmatpush1.bf16.msra.mxu1 %v18381_v56  ;;  %v18431_v56 = vld [vmem:[#allocation22 + $0x790] ss:$8 sps:$4 sm:$0xff]  }
 0xb5f   :  { %10815 = vmatprep.subr.bf16.mxu1 %v18386_v4  ;;  %v18436_v4 = vld [vmem:[#allocation22 + $0x7a4] ss:$8 sps:$4 sm:$0xff]  }
 0xb62   :  { %10816 = vmatpush1.bf16.msra.mxu1 %v18384_v53  ;;  %v18434_v53 = vld [vmem:[#allocation22 + $0x7a0] ss:$8 sps:$4 sm:$0xff]  }
 0xb63   :  { %10817 = vmatprep.subr.bf16.mxu1 %v18389_v8  ;;  %v18439_v8 = vld [vmem:[#allocation22 + $0x7b4] ss:$8 sps:$4 sm:$0xff]  }
 0xb66   :  { %10818 = vmatpush1.bf16.msra.mxu1 %v18387_v33  ;;  %v20658_v33 = vcombine.low %v20638_v32, %v20638_v32  ;;  %v18443_v32 = vld [vmem:[#allocation22 + $0x7d0] ss:$8 sps:$4 sm:$0xff]  }
 0xb67   :  { %10819 = vmatprep.subr.bf16.mxu1 %v18392_v2  ;;  %v18437_v2 = vld [vmem:[#allocation22 + $0x7b0] ss:$8 sps:$4 sm:$0xff]  }
 0xb68   :  { %v10922_v44 = vshrl.u32 %v20658_v33, 16 }
 0xb6a   :  { %10820 = vmatpush1.bf16.msra.mxu1 %v18390_v40  ;;  %v10925_v40 = vshll.u32 %v20658_v33, 16  ;;  %v10924_v31 = vrot.slane %v10922_v44, 2  ;;  %v18473_v44 = vld [vmem:[#allocation22 + $0x860] ss:$8 sps:$4 sm:$0xff]  }
 0xb6b   :  { %10821 = vmatprep.subr.bf16.mxu1 %v18395_v29  ;;  %v18440_v29 = vld [vmem:[#allocation22 + $0x7c0] ss:$8 sps:$4 sm:$0xff]  }
 0xb6c   :  { %v10927_v9 = vrot.slane %v10925_v40, 3  ;;  %v18476_v40 = vld [vmem:[#allocation22 + $0x870] ss:$8 sps:$4 sm:$0xff]  }
 0xb6e   :  { %10822 = vmatpush1.bf16.msra.mxu1 %v18393_v45  ;;  %v10916_v45 = vrot.slane %v10914_v3, 2  ;;  %v10928_v6 = vor.u32 %v10927_v9, %v10924_v31  ;;  %v18479_v3 = vld [vmem:[#allocation22 + $0x880] ss:$8 sps:$4 sm:$0xff]   ;;  %v18487_v31 = vld [vmem:[#allocation22 + $0x8a4] ss:$8 sps:$4 sm:$0xff]  }
 0xb6f   :  { %11189 = vmatprep.subr.bf16.mxu1 %v18399_v39  ;;  %v10919_v39 = vrot.slane %v10917_v41, 3  ;;  %v18484_v41 = vld [vmem:[#allocation22 + $0x894] ss:$8 sps:$4 sm:$0xff]   ;;  %v18485_v9 = vld [vmem:[#allocation22 + $0x8a0] ss:$8 sps:$4 sm:$0xff]  }
 0xb71   :  { %15848 = vmatmul.mubr.msk.bf16.vlgmr.msra.gmra.mrb[24].mxu1 %vm20973_vm9, %v10542_v57  ;;  %v10920_v16 = vor.u32 %v10919_v39, %v10916_v45  ;;  %v18458_v57 = vld [vmem:[#allocation22 + $0x814] ss:$8 sps:$4 sm:$0xff]   ;;  %v18488_v45 = vld [vmem:[#allocation22 + $0x8b0] ss:$8 sps:$4 sm:$0xff]   ;;  %v18493_v39 = vld [vmem:[#allocation22 + $0x8c4] ss:$8 sps:$4 sm:$0xff]  }
 0xb72   :  { %11190 = vmatpush1.bf16.msra.mxu1 %v18397_v20  ;;  %11221 = vmatprep.mubr.bf16.mxu1 %v10946_v48  ;;  %v20666_v48 = vld [vmem:[#allocation2 + $0x20] ss:$0 sps:$4 sm:$0x77]  }
 0xb73   :  { %11191 = vmatprep.subr.bf16.mxu1 %v18403_v27  ;;  %v10929_v20 = vsel %vm2352_vm5, %v10920_v16, %v10928_v6  ;;  %v18453_v27 = vld [vmem:[#allocation22 + $0x800] ss:$8 sps:$4 sm:$0xff]   ;;  %v18496_v6 = vld [vmem:[#allocation22 + $0x8d4] ss:$8 sps:$4 sm:$0xff]   ;;  %v18494_v16 = vld [vmem:[#allocation22 + $0x8d0] ss:$8 sps:$4 sm:$0xff]  }
 0xb76   :  { %11192 = vmatpush1.bf16.msra.mxu1 %v18401_v18  ;;  %v18456_v18 = vld [vmem:[#allocation22 + $0x810] ss:$8 sps:$4 sm:$0xff]  }
 0xb77   :  { %11193 = vmatprep.subr.bf16.mxu1 %v18406_v51  ;;  %v18461_v51 = vld [vmem:[#allocation22 + $0x824] ss:$8 sps:$4 sm:$0xff]  }
 0xb7a   :  { %11194 = vmatpush1.bf16.msra.mxu1 %v18404_v34  ;;  %v10948_v34 = vshrl.u32 %v20649_v36, 16 }
 0xb7b   :  { %11195 = vmatprep.subr.bf16.mxu1 %v18409_v7  ;;  %v10951_v7 = vshll.u32 %v20649_v36, 16 }
 0xb7e   :  { %11196 = vmatpush1.bf16.msra.mxu1 %v18407_v59  ;;  %v10956_v59 = vshrl.u32 %v20666_v48, 16 }
 0xb7f   :  { %11197 = vmatprep.subr.bf16.mxu1 %v18412_v13  ;;  %v10959_v13 = vshll.u32 %v20666_v48, 16 }
 0xb82   :  { %11198 = vmatpush1.bf16.msra.mxu1 %v18410_v62  ;;  %v18459_v62 = vld [vmem:[#allocation22 + $0x820] ss:$8 sps:$4 sm:$0xff]  }
 0xb83   :  { %11199 = vmatprep.subr.bf16.mxu1 %v18415_v1  ;;  %v18464_v1 = vld [vmem:[#allocation22 + $0x834] ss:$8 sps:$4 sm:$0xff]  }
 0xb86   :  { %11200 = vmatpush1.bf16.msra.mxu1 %v18413_v19  ;;  %v10950_v19 = vrot.slane %v10948_v34, 2  ;;  %v18509_v34 = vld [vmem:[#allocation22 + $0x920] ss:$8 sps:$4 sm:$0xff]  }
 0xb87   :  { %11201 = vmatprep.subr.bf16.mxu1 %v18418_v52  ;;  %v10953_v52 = vrot.slane %v10951_v7, 3  ;;  %v18514_v7 = vld [vmem:[#allocation22 + $0x934] ss:$8 sps:$4 sm:$0xff]  }
 0xb8a   :  { %11202 = vmatpush1.bf16.msra.mxu1 %v18416_v21  ;;  %v10958_v21 = vrot.slane %v10956_v59, 2  ;;  %v18512_v59 = vld [vmem:[#allocation22 + $0x930] ss:$8 sps:$4 sm:$0xff]  }
 0xb8b   :  { %11203 = vmatprep.subr.bf16.mxu1 %v18421_v23  ;;  %v10961_v23 = vrot.slane %v10959_v13, 3 }
 0xb8e   :  { %11204 = vmatpush1.bf16.msra.mxu1 %v18419_v15  ;;  %v18462_v15 = vld [vmem:[#allocation22 + $0x830] ss:$8 sps:$4 sm:$0xff]  }
 0xb8f   :  { %11205 = vmatprep.subr.bf16.mxu1 %v18424_v50  ;;  %v20672_v50 = vld [vmem:[#allocation2] sm:$0x88] }
 0xb92   :  { %11206 = vmatpush1.bf16.msra.mxu1 %v18422_v0  ;;  %v18468_v0 = vld [vmem:[#allocation22 + $0x844] ss:$8 sps:$4 sm:$0xff]  }
 0xb93   :  { %11207 = vmatprep.subr.bf16.mxu1 %v18427_v25  ;;  %v20674_v25 = vld [vmem:[#allocation2 + $0xc] sm:$0xff] }
 0xb94   :  { %v15898_v36 = vcombine.high %v20672_v50, %v20674_v25  ;;  %v15897_v13 = vcombine.low %v20672_v50, %v20674_v25  ;;  %v18522_v50 = vld [vmem:[#allocation22 + $0x960] ss:$8 sps:$4 sm:$0xff]   ;;  %v18527_v25 = vld [vmem:[#allocation22 + $0x974] ss:$8 sps:$4 sm:$0xff]  }
 0xb96   :  { %11208 = vmatpush1.bf16.msra.mxu1 %v18425_v49  ;;  %v10954_v49 = vor.u32 %v10953_v52, %v10950_v19  ;;  %v11334_v19 = vrot.slane %v15897_v13, 3  ;;  %v18516_v52 = vld [vmem:[#allocation22 + $0x940] ss:$8 sps:$4 sm:$0xff]  }
 0xb97   :  { %11209 = vmatprep.subr.bf16.mxu1 %v18430_v12  ;;  %v10962_v12 = vor.u32 %v10961_v23, %v10958_v21  ;;  %v18521_v21 = vld [vmem:[#allocation22 + $0x954] ss:$8 sps:$4 sm:$0xff]  }
 0xb9a   :  { %11210 = vmatpush1.bf16.msra.mxu1 %v18428_v42  ;;  %v11338_v42 = vrot.slane %v20642_v5, 3  ;;  %v18478_v5 = vld [vmem:[#allocation22 + $0x874] ss:$8 sps:$4 sm:$0xff]  }
 0xb9b   :  { %11211 = vmatprep.subr.bf16.mxu1 %v18433_v26  ;;  %v18466_v26 = vld [vmem:[#allocation22 + $0x840] ss:$8 sps:$4 sm:$0xff]  }
 0xb9e   :  { %11212 = vmatpush1.bf16.msra.mxu1 %v18431_v56  ;;  %v11337_v56 = vrot.slane %v15898_v36, 3  ;;  %v18530_v36 = vld [vmem:[#allocation22 + $0x984] ss:$8 sps:$4 sm:$0xff]  }
 0xb9f   :  { %11213 = vmatprep.subr.bf16.mxu1 %v18436_v4  ;;  %v18472_v4 = vld [vmem:[#allocation22 + $0x854] ss:$8 sps:$4 sm:$0xff]  }
 0xba2   :  { %11214 = vmatpush1.bf16.msra.mxu1 %v18434_v53  ;;  %v10963_v53 = vsel %vm2352_vm5, %v10954_v49, %v10962_v12  ;;  %v18528_v49 = vld [vmem:[#allocation22 + $0x980] ss:$8 sps:$4 sm:$0xff]   ;;  %v18533_v12 = vld [vmem:[#allocation22 + $0x994] ss:$8 sps:$4 sm:$0xff]  }
 0xba3   :  { %11215 = vmatprep.subr.bf16.mxu1 %v18439_v8  ;;  %v11339_v8 = vsel %vm20975_vm8, %v11337_v56, %v11338_v42  ;;  %v11280_v42 = vld [vmem:[#allocation2 + $0x8] sm:$0x8] }
 0xba6   :  { %11216 = vmatpush1.bf16.msra.mxu1 %v18437_v2  ;;  %v18470_v2 = vld [vmem:[#allocation22 + $0x850] ss:$8 sps:$4 sm:$0xff]  }
 0xba7   :  { %11217 = vmatprep.subr.bf16.mxu1 %v18442_v28  ;;  %v18475_v28 = vld [vmem:[#allocation22 + $0x864] ss:$8 sps:$4 sm:$0xff]  }
 0xbaa   :  { %11218 = vmatpush1.bf16.msra.mxu1 %v18440_v29  ;;  %v18481_v29 = vld [vmem:[#allocation22 + $0x884] ss:$8 sps:$4 sm:$0xff]  }
 0xbab   :  { %11219 = vmatprep.subr.bf16.mxu1 %v18445_v43  ;;  %v18482_v43 = vld [vmem:[#allocation22 + $0x890] ss:$8 sps:$4 sm:$0xff]  }
 0xbae   :  { %11220 = vmatpush1.bf16.msra.mxu1 %v18443_v32  ;;  %v18490_v32 = vld [vmem:[#allocation22 + $0x8b4] ss:$8 sps:$4 sm:$0xff]  }
 0xbaf   :  { %11232 = vmatprep.subr.bf16.mxu1 %v18449_v14  ;;  %v18491_v14 = vld [vmem:[#allocation22 + $0x8c0] ss:$8 sps:$4 sm:$0xff]  }
 0xbb1   :  { %11222 = vmatmul.mubr.bf16.vlgmr.msra.gmra.mrb[24].mxu1 %v10929_v20  ;;  %v18502_v20 = vld [vmem:[#allocation22 + $0x8f4] ss:$8 sps:$4 sm:$0xff]  }
 0xbb2   :  { %11233 = vmatpush1.bf16.msra.mxu1 %v18447_v24  ;;  %11264 = vmatprep.mubr.bf16.mxu1 %v20244_v37  ;;  %v18499_v24 = vld [vmem:[#allocation22 + $0x8e4] ss:$8 sps:$4 sm:$0xff]  }
 0xbb3   :  { %11234 = vmatprep.subr.bf16.mxu1 %v18452_v54  ;;  %v18497_v54 = vld [vmem:[#allocation22 + $0x8e0] ss:$8 sps:$4 sm:$0xff]  }
 0xbb6   :  { %11235 = vmatpush1.bf16.msra.mxu1 %v18450_v55  ;;  %v18500_v55 = vld [vmem:[#allocation22 + $0x8f0] ss:$8 sps:$4 sm:$0xff]  }
 0xbb7   :  { %11236 = vmatprep.subr.bf16.mxu1 %v18455_v47  ;;  %v18505_v47 = vld [vmem:[#allocation22 + $0x904] ss:$8 sps:$4 sm:$0xff]  }
 0xbba   :  { %11237 = vmatpush1.bf16.msra.mxu1 %v18453_v27  ;;  %v18503_v27 = vld [vmem:[#allocation22 + $0x900] ss:$8 sps:$4 sm:$0xff]  }
 0xbbb   :  { %11238 = vmatprep.subr.bf16.mxu1 %v18458_v57  ;;  %v18508_v57 = vld [vmem:[#allocation22 + $0x914] ss:$8 sps:$4 sm:$0xff]  }
 0xbbe   :  { %11239 = vmatpush1.bf16.msra.mxu1 %v18456_v18  ;;  %v18506_v18 = vld [vmem:[#allocation22 + $0x910] ss:$8 sps:$4 sm:$0xff]  }
 0xbbf   :  { %11240 = vmatprep.subr.bf16.mxu1 %v18461_v51  ;;  %v18511_v51 = vld [vmem:[#allocation22 + $0x924] ss:$8 sps:$4 sm:$0xff]  }
 0xbc2   :  { %11241 = vmatpush1.bf16.msra.mxu1 %v18459_v62  ;;  %v18518_v62 = vld [vmem:[#allocation22 + $0x944] ss:$8 sps:$4 sm:$0xff]  }
 0xbc3   :  { %11242 = vmatprep.subr.bf16.mxu1 %v18464_v1  ;;  %v11335_v1 = vrot.slane %v20658_v33, 3  ;;  %v18525_v33 = vld [vmem:[#allocation22 + $0x970] ss:$8 sps:$4 sm:$0xff]  }
 0xbc5   :  { %v11336_v23 = vsel %vm20976_vm10, %v11334_v19, %v11335_v1 }
 0xbc6   :  { %11243 = vmatpush1.bf16.msra.mxu1 %v18462_v15  ;;  %v18519_v15 = vld [vmem:[#allocation22 + $0x950] ss:$8 sps:$4 sm:$0xff]  }
 0xbc7   :  { %11568 = vmatprep.subr.bf16.mxu1 %v18468_v0  ;;  %v18524_v0 = vld [vmem:[#allocation22 + $0x964] ss:$8 sps:$4 sm:$0xff]  }
 0xbc9   :  { %15896 = vmatmul.mubr.msk.bf16.vlgmr.msra.gmra.mrb[24].mxu1 %vm20974_vm7, %v10963_v53 }
 0xbca   :  { %11569 = vmatpush1.bf16.msra.mxu1 %v18466_v26  ;;  %11600 = vmatprep.mubr.bf16.mxu1 %v11339_v8  ;;  %v19032_v26 = vld [vmem:[#allocation2 + $0x14] sm:$0xf]  ;;  %v11341_v8 = vrot.slane %v20666_v48, 3  ;;  %v18549_v48 = vld [vmem:[#allocation23 + $0x44] ss:$8 sps:$4 sm:$0xff]  }
 0xbcb   :  { %11570 = vmatprep.subr.bf16.mxu1 %v18472_v4  ;;  %v15899_v56 = vcombine.low %v11280_v42, %v19032_v26  ;;  %v18531_v4 = vld [vmem:[#allocation22 + $0x990] ss:$8 sps:$4 sm:$0xff]  }
 0xbcd   :  { %v11340_v53 = vrot.slane %v15899_v56, 3 }
 0xbce   :  { %11571 = vmatpush1.bf16.msra.mxu1 %v18470_v2 }
 0xbcf   :  { %11572 = vmatprep.subr.bf16.mxu1 %v18475_v28  ;;  %v11342_v2 = vsel %vm20977_vm12, %v11340_v53, %v11341_v8  ;;  %v18535_v28 = vld [vmem:[#allocation23] ss:$8 sps:$4 sm:$0xff]  }
 0xbd2   :  { %11573 = vmatpush1.bf16.msra.mxu1 %v18473_v44  ;;  %v18537_v44 = vld [vmem:[#allocation23 + $0x4] ss:$8 sps:$4 sm:$0xff]  }
 0xbd3   :  { %11574 = vmatprep.subr.bf16.mxu1 %v18478_v5  ;;  %v18540_v5 = vld [vmem:[#allocation23 + $0x14] ss:$8 sps:$4 sm:$0xff]   ;;  %12038 = vmatprep.subr.bf16.mxu0 %v18537_v44 }
 0xbd4   :  { %12039 = vmatpush1.bf16.msra.mxu0 %v18535_v28 }
 0xbd5   :  { %12040 = vmatprep.subr.bf16.mxu0 %v18540_v5 }
 0xbd6   :  { %11575 = vmatpush1.bf16.msra.mxu1 %v18476_v40  ;;  %v18538_v40 = vld [vmem:[#allocation23 + $0x10] ss:$8 sps:$4 sm:$0xff]  }
 0xbd7   :  { %11576 = vmatprep.subr.bf16.mxu1 %v18481_v29  ;;  %v18543_v29 = vld [vmem:[#allocation23 + $0x24] ss:$8 sps:$4 sm:$0xff]  }
 0xbd8   :  { %12041 = vmatpush1.bf16.msra.mxu0 %v18538_v40 }
 0xbd9   :  { %12042 = vmatprep.subr.bf16.mxu0 %v18543_v29 }
 0xbda   :  { %11577 = vmatpush1.bf16.msra.mxu1 %v18479_v3  ;;  %v18541_v3 = vld [vmem:[#allocation23 + $0x20] ss:$8 sps:$4 sm:$0xff]  }
 0xbdb   :  { %11578 = vmatprep.subr.bf16.mxu1 %v18484_v41  ;;  %v18546_v41 = vld [vmem:[#allocation23 + $0x34] ss:$8 sps:$4 sm:$0xff]  }
 0xbdc   :  { %12043 = vmatpush1.bf16.msra.mxu0 %v18541_v3  ;;  %v18571_v3 = vld [vmem:[#allocation23 + $0xc0] ss:$8 sps:$4 sm:$0xff]  }
 0xbdd   :  { %12044 = vmatprep.subr.bf16.mxu0 %v18546_v41  ;;  %v18573_v41 = vld [vmem:[#allocation23 + $0xc4] ss:$8 sps:$4 sm:$0xff]  }
 0xbde   :  { %11579 = vmatpush1.bf16.msra.mxu1 %v18482_v43  ;;  %v18544_v43 = vld [vmem:[#allocation23 + $0x30] ss:$8 sps:$4 sm:$0xff]  }
 0xbdf   :  { %11580 = vmatprep.subr.bf16.mxu1 %v18487_v31  ;;  %v18547_v31 = vld [vmem:[#allocation23 + $0x40] ss:$8 sps:$4 sm:$0xff]  }
 0xbe0   :  { %12045 = vmatpush1.bf16.msra.mxu0 %v18544_v43 }
 0xbe1   :  { %12046 = vmatprep.subr.bf16.mxu0 %v18549_v48 }
 0xbe2   :  { %11581 = vmatpush1.bf16.msra.mxu1 %v18485_v9  ;;  %v18552_v9 = vld [vmem:[#allocation23 + $0x54] ss:$8 sps:$4 sm:$0xff]  }
 0xbe3   :  { %11582 = vmatprep.subr.bf16.mxu1 %v18490_v32  ;;  %v18550_v32 = vld [vmem:[#allocation23 + $0x50] ss:$8 sps:$4 sm:$0xff]  }
 0xbe4   :  { %12047 = vmatpush1.bf16.msra.mxu0 %v18547_v31 }
 0xbe5   :  { %12048 = vmatprep.subr.bf16.mxu0 %v18552_v9 }
 0xbe6   :  { %11583 = vmatpush1.bf16.msra.mxu1 %v18488_v45  ;;  %v18555_v45 = vld [vmem:[#allocation23 + $0x64] ss:$8 sps:$4 sm:$0xff]  }
 0xbe7   :  { %11584 = vmatprep.subr.bf16.mxu1 %v18493_v39  ;;  %v18553_v39 = vld [vmem:[#allocation23 + $0x60] ss:$8 sps:$4 sm:$0xff]  }
 0xbe8   :  { %12049 = vmatpush1.bf16.msra.mxu0 %v18550_v32 }
 0xbe9   :  { %12050 = vmatprep.subr.bf16.mxu0 %v18555_v45  ;;  %v18576_v45 = vld [vmem:[#allocation23 + $0xd4] ss:$8 sps:$4 sm:$0xff]  }
 0xbea   :  { %11585 = vmatpush1.bf16.msra.mxu1 %v18491_v14  ;;  %v18558_v14 = vld [vmem:[#allocation23 + $0x74] ss:$8 sps:$4 sm:$0xff]  }
 0xbeb   :  { %11586 = vmatprep.subr.bf16.mxu1 %v18496_v6  ;;  %v18556_v6 = vld [vmem:[#allocation23 + $0x70] ss:$8 sps:$4 sm:$0xff]  }
 0xbec   :  { %12051 = vmatpush1.bf16.msra.mxu0 %v18553_v39 }
 0xbed   :  { %12052 = vmatprep.subr.bf16.mxu0 %v18558_v14 }
 0xbee   :  { %11587 = vmatpush1.bf16.msra.mxu1 %v18494_v16  ;;  %v18561_v16 = vld [vmem:[#allocation23 + $0x84] ss:$8 sps:$4 sm:$0xff]  }
 0xbef   :  { %11588 = vmatprep.subr.bf16.mxu1 %v18499_v24  ;;  %v18559_v24 = vld [vmem:[#allocation23 + $0x80] ss:$8 sps:$4 sm:$0xff]  }
 0xbf0   :  { %12053 = vmatpush1.bf16.msra.mxu0 %v18556_v6 }
 0xbf1   :  { %12054 = vmatprep.subr.bf16.mxu0 %v18561_v16 }
 0xbf2   :  { %11589 = vmatpush1.bf16.msra.mxu1 %v18497_v54  ;;  %v18564_v54 = vld [vmem:[#allocation23 + $0x94] ss:$8 sps:$4 sm:$0xff]  }
 0xbf3   :  { %11590 = vmatprep.subr.bf16.mxu1 %v18502_v20  ;;  %v18562_v20 = vld [vmem:[#allocation23 + $0x90] ss:$8 sps:$4 sm:$0xff]  }
 0xbf4   :  { %12055 = vmatpush1.bf16.msra.mxu0 %v18559_v24 }
 0xbf5   :  { %12056 = vmatprep.subr.bf16.mxu0 %v18564_v54  ;;  %v18577_v54 = vld [vmem:[#allocation23 + $0xe0] ss:$8 sps:$4 sm:$0xff]  }
 0xbf6   :  { %11591 = vmatpush1.bf16.msra.mxu1 %v18500_v55  ;;  %v18567_v55 = vld [vmem:[#allocation23 + $0xa4] ss:$8 sps:$4 sm:$0xff]  }
 0xbf7   :  { %11592 = vmatprep.subr.bf16.mxu1 %v18505_v47  ;;  %v18565_v47 = vld [vmem:[#allocation23 + $0xa0] ss:$8 sps:$4 sm:$0xff]  }
 0xbf8   :  { %12057 = vmatpush1.bf16.msra.mxu0 %v18562_v20  ;;  %v18582_v20 = vld [vmem:[#allocation23 + $0xf4] ss:$8 sps:$4 sm:$0xff]  }
 0xbf9   :  { %12058 = vmatprep.subr.bf16.mxu0 %v18567_v55 }
 0xbfa   :  { %11593 = vmatpush1.bf16.msra.mxu1 %v18503_v27  ;;  %v18570_v27 = vld [vmem:[#allocation23 + $0xb4] ss:$8 sps:$4 sm:$0xff]  }
 0xbfb   :  { %11594 = vmatprep.subr.bf16.mxu1 %v18508_v57  ;;  %v18568_v57 = vld [vmem:[#allocation23 + $0xb0] ss:$8 sps:$4 sm:$0xff]  }
 0xbfc   :  { %12059 = vmatpush1.bf16.msra.mxu0 %v18565_v47 }
 0xbfd   :  { %12060 = vmatprep.subr.bf16.mxu0 %v18570_v27 }
 0xbfe   :  { %11595 = vmatpush1.bf16.msra.mxu1 %v18506_v18  ;;  %v8868_v18 = vld [vmem:[#allocation29] sm:$0x3] }
 0xbff   :  { %11596 = vmatprep.subr.bf16.mxu1 %v18511_v51  ;;  %v8873_v51 = vrot.slane %v8868_v18, %v20013_v60 }
 0xc00   :  { %12061 = vmatpush1.bf16.msra.mxu0 %v18568_v57 }
 0xc01   :  { %12062 = vmatprep.subr.bf16.mxu0 %v18573_v41 }
 0xc02   :  { %11597 = vmatpush1.bf16.msra.mxu1 %v18509_v34  ;;  %v8877_v34 = vrot.slane %v8868_v18, %v20015_v61  ;;  %v18580_v18 = vld [vmem:[#allocation23 + $0xf0] ss:$8 sps:$4 sm:$0xff]  }
 0xc03   :  { %11598 = vmatprep.subr.bf16.mxu1 %v18514_v7 }
 0xc04   :  { %12063 = vmatpush1.bf16.msra.mxu0 %v18571_v3 }
 0xc05   :  { %12064 = vmatprep.subr.bf16.mxu0 %v18576_v45 }
 0xc06   :  { %11599 = vmatpush1.bf16.msra.mxu1 %v18512_v59  ;;  %v11658_v59 = vstv %s292_s28 }
 0xc07   :  { %11611 = vmatprep.subr.bf16.mxu1 %v18518_v62 }
 0xc09   :  { %11601 = vmatmul.mubr.bf16.vlgmr.msra.gmra.mrb[24].mxu1 %v11336_v23 }
 0xc0a   :  { %11612 = vmatpush1.bf16.msra.mxu1 %v18516_v52  ;;  %11643 = vmatprep.mubr.bf16.mxu1 %v20244_v37 }
 0xc0b   :  { %11613 = vmatprep.subr.bf16.mxu1 %v18521_v21 }
 0xc0e   :  { %11614 = vmatpush1.bf16.msra.mxu1 %v18519_v15  ;;  %v11667_v15 = vstv %s14584_s7 }
 0xc0f   :  { %11615 = vmatprep.subr.bf16.mxu1 %v18524_v0 }
 0xc12   :  { %11616 = vmatpush1.bf16.msra.mxu1 %v18522_v50 }
 0xc13   :  { %11617 = vmatprep.subr.bf16.mxu1 %v18527_v25 }
 0xc16   :  { %11618 = vmatpush1.bf16.msra.mxu1 %v18525_v33 }
 0xc17   :  { %11619 = vmatprep.subr.bf16.mxu1 %v18530_v36 }
 0xc1a   :  { %11620 = vmatpush1.bf16.msra.mxu1 %v18528_v49 }
 0xc1b   :  { %11621 = vmatprep.subr.bf16.mxu1 %v18533_v12 }
 0xc1e   :  { %11622 = vmatpush1.bf16.msra.mxu1 %v18531_v4 }
 0xc21   :  { %15944 = vmatmul.mubr.msk.bf16.vlgmr.msra.gmra.mrb[24].mxu1 %vm20978_vm15, %v11342_v2 }
 0xcf4   :  { %v11645_v7 = vpop.f32.mrb[24].mxu1 }
 0xcf5   :  { %v16340_v13 = vadd.f32 %v11645_v7, %v8873_v51  ;;  %v11647_v62 = vpop.f32.mrb[25].mxu1 }
 0xcf6   :  { %v16341_v1 = vadd.f32 %v11647_v62, %v8877_v34  ;;  %v11649_v19 = vpop.f32.mrb[26].mxu1 }
 0xcf7   :  { %v11659_v52 = vadd.f32 %v16340_v13, %v11658_v59  ;;  %v16342_v21 = vadd.f32 %v11649_v19, %v8873_v51  ;;  %v11651_v23 = vpop.f32.mrb[27].mxu1  ;;  %v18587_v51 = vld [vmem:[#allocation23 + $0x104] ss:$8 sps:$4 sm:$0xff]  }
 0xcf8   :  { %v11660_v0 = vadd.f32 %v16341_v1, %v11658_v59  ;;  %v16343_v50 = vadd.f32 %v11651_v23, %v8877_v34  ;;  %v19033_v1 = vld [vmem:[#allocation2] sm:$0xee] }
 0xcf9   :  { %v11663_v25 = vmax.f32 %v11659_v52, 0.0  ;;  %v11661_v33 = vadd.f32 %v16342_v21, %v11658_v59 }
 0xcfa   :  { %v11664_v36 = vmax.f32 %v11660_v0, 0.0  ;;  %v11662_v49 = vadd.f32 %v16343_v50, %v11658_v59  ;;  %v11729_v59 = vld [vmem:[#allocation2 + $0x8] sm:$0xe]  ;;  %v11737_v0 = vld [vmem:[#allocation2 + $0x20] sm:$0x3] }
 0xcfb   :  { %v11668_v12 = vadd.f32 %v11667_v15, %v11663_v25  ;;  %v11665_v42 = vmax.f32 %v11661_v33, 0.0 }
 0xcfc   :  { %v11669_v26 = vadd.f32 %v11667_v15, %v11664_v36  ;;  %v11666_v56 = vmax.f32 %v11662_v49, 0.0 }
 0xcfd   :  { %v11672_v4 = vadd.f32 %v20171_v38, %v11668_v12  ;;  %v11670_v53 = vadd.f32 %v11667_v15, %v11665_v42  ;;  %v18574_v38 = vld [vmem:[#allocation23 + $0xd0] ss:$8 sps:$4 sm:$0xff]   ;;  %v18585_v12 = vld [vmem:[#allocation23 + $0x100] ss:$8 sps:$4 sm:$0xff]  }
 0xcfe   :  { %v11673_v8 = vadd.f32 %v20174_v46, %v11669_v26  ;;  %v11671_v2 = vadd.f32 %v11667_v15, %v11666_v56  ;;  %12065 = vmatpush1.bf16.msra.mxu0 %v18574_v38  ;;  %v18590_v26 = vld [vmem:[#allocation23 + $0x114] ss:$8 sps:$4 sm:$0xff]  }
 0xcff   :  { %v11676_v28 = vmax.f32 %v11672_v4, 0.0  ;;  %v11674_v44 = vadd.f32 %v20176_v10, %v11670_v53  ;;  %v18579_v10 = vld [vmem:[#allocation23 + $0xe4] ss:$8 sps:$4 sm:$0xff]   ;;  %v18596_v38 = vld [vmem:[#allocation23 + $0x134] ss:$8 sps:$4 sm:$0xff]  }
 0xd00   :  { %v11677_v5 = vmax.f32 %v11673_v8, 0.0  ;;  %v11675_v40 = vadd.f32 %v20178_v30, %v11671_v2  ;;  %12066 = vmatprep.subr.bf16.mxu0 %v18579_v10 }
 0xd01   :  { %v11678_v29 = vmax.f32 %v11674_v44, 0.0 }
 0xd02   :  { %v11679_v43 = vmax.f32 %v11675_v40, 0.0  ;;  %v16290_v48 = vpack.c.bf16 %v11677_v5, %v11676_v28  ;;  %12067 = vmatpush1.bf16.msra.mxu0 %v18577_v54  ;;  %v18588_v28 = vld [vmem:[#allocation23 + $0x110] ss:$8 sps:$4 sm:$0xff]   ;;  %v18593_v40 = vld [vmem:[#allocation23 + $0x124] ss:$8 sps:$4 sm:$0xff]  }
 0xd03   :  { %12068 = vmatprep.subr.bf16.mxu0 %v18582_v20 }
 0xd04   :  { %v16291_v31 = vpack.c.bf16 %v11679_v43, %v11678_v29  ;;  %v11691_v9 = vshrl.u32 %v16290_v48, 16  ;;  %v11694_v32 = vshll.u32 %v16290_v48, 16 }
 0xd06   :  { %v11693_v46 = vrot.slane %v11691_v9, 6  ;;  %v11696_v39 = vrot.slane %v11694_v32, 7  ;;  %v11700_v14 = vshrl.u32 %v16291_v31, 16  ;;  %v11703_v6 = vshll.u32 %v16291_v31, 16  ;;  %12069 = vmatpush1.bf16.msra.mxu0 %v18580_v18  ;;  %v18591_v31 = vld [vmem:[#allocation23 + $0x120] ss:$8 sps:$4 sm:$0xff]  }
 0xd07   :  { %12081 = vmatprep.subr.bf16.mxu0 %v18587_v51  ;;  %v18602_v18 = vld [vmem:[#allocation23 + $0x154] ss:$8 sps:$4 sm:$0xff]  }
 0xd08   :  { %v11697_v16 = vor.u32 %v11696_v39, %v11693_v46  ;;  %v11702_v30 = vrot.slane %v11700_v14, 6  ;;  %v11705_v24 = vrot.slane %v11703_v6, 7  ;;  %v18594_v14 = vld [vmem:[#allocation23 + $0x130] ss:$8 sps:$4 sm:$0xff]   ;;  %v18599_v6 = vld [vmem:[#allocation23 + $0x144] ss:$8 sps:$4 sm:$0xff]  }
 0xd0a   :  { %11709 = vrot.lane.b32.xlu0 %v11697_v16, %s19488_s2  ;;  %v11698_v55 = vrot.slane %v11697_v16, 4  ;;  %v11706_v47 = vor.u32 %v11705_v24, %v11702_v30 }
 0xd0c   :  { %v11707_v27 = vsel %vm20956_vm14, %v11698_v55, %v11706_v47  ;;  %v11708_v57 = vrot.slane %v11706_v47, 4  ;;  %vm20986_vm14 = vsmask.f32 7424 }
 0xd0d   :  { %11711 = vrot.lane.b32.xlu1 %v11707_v27, %s19488_s2 }
 0xd0e   :  { %11713 = vrot.lane.b32.xlu0 %v11708_v57, %s19488_s2  ;;  %v18597_v57 = vld [vmem:[#allocation23 + $0x140] ss:$8 sps:$4 sm:$0xff]  }
 0xd7c   :  { %v11710_v34 = vpop.permute.xlu0 %11709 }
 0xd7d   :  { %v11715_v7 = vrot.slane %v11710_v34, 4 }
 0xd7f   :  { %v11718_v13 = vsel %vm5962_vm1, %v11715_v7, %v11710_v34  ;;  %v11730_v58 = vsel %vm20319_vm3, %v11715_v7, %v11729_v59  ;;  %v11712_v62 = vpop.permute.xlu1 %11711 }
 0xd80   :  { %v11727_v19 = vsel %vm20325_vm11, %v11718_v13, %v19033_v1  ;;  %11731 = vst [vmem:[#allocation2 + $0x8] sm:$0xe] %v11730_v58  ;;  %v11716_v52 = vrot.slane %v11712_v62, 4  ;;  %v11714_v21 = vpop.permute.xlu0 %11713 }
 0xd81   :  { %11728 = vst [vmem:[#allocation2] sm:$0xee] %v11727_v19  ;;  %v11717_v23 = vrot.slane %v11714_v21, 4  ;;  %v18600_v19 = vld [vmem:[#allocation23 + $0x150] ss:$8 sps:$4 sm:$0xff]  }
 0xd82   :  { %v11719_v15 = vsel %vm5962_vm1, %v11716_v52, %v11712_v62  ;;  %11733 = vst.msk [vmem:[#allocation2 + $0x14] sm:$0xf] %vm5991_vm6, %v11716_v52  ;;  %vm20984_vm6 = vmmov %vm20972_vm2 }
 0xd83   :  { %11732 = vst.msk [vmem:[#allocation2 + $0xc] sm:$0xff] %vm20344_vm0, %v11719_v15  ;;  %v11720_v50 = vsel %vm5962_vm1, %v11717_v23, %v11714_v21  ;;  %v11738_v17 = vsel %vm20339_vm4, %v11717_v23, %v11737_v0  ;;  %vm20979_vm1 = vcmask 1046528   ;;  %vm20983_vm4 = vmmov %vm20972_vm2  ;;  %v18606_v23 = vld [vmem:[#allocation23 + $0x164] ss:$8 sps:$4 sm:$0xff]  }
 0xd84   :  { %v11735_v25 = vsel %vm20332_vm13, %v11720_v50, %v11734_v35  ;;  %11739 = vst [vmem:[#allocation2 + $0x20] sm:$0x3] %v11738_v17  ;;  %vm20980_vm3 = vmmov %vm20979_vm1 }
 0xd85   :  { %11736 = vst [vmem:[#allocation2 + $0x18] sm:$0x33] %v11735_v25  ;;  %vm20981_vm11 = vmmov %vm20979_vm1  ;;  %v18604_v25 = vld [vmem:[#allocation23 + $0x160] ss:$8 sps:$4 sm:$0xff]  }
 0xd86   :  { %vm20982_vm13 = vmmov %vm20972_vm2 }
 0xd87   :  { %v12552_v2 = vld [vmem:[#allocation2 + $0x8] sm:$0xe]  ;;  %vm20985_vm0 = vmmov %vm20974_vm7 }
 0xd88   :  { %v11752_v33 = vld [vmem:[#allocation2] sm:$0xff]  ;;  %v13352_v20 = vld [vmem:[#allocation2 + $0x8] sm:$0xc]  ;;  %vm20987_vm2 = vmmov %vm20975_vm8 }
 0xd89   :  { %v12551_v42 = vld [vmem:[#allocation2] sm:$0xee]  ;;  %v20723_v63 = vld [vmem:[#allocation2 + $0x14] sm:$0xf]  ;;  %vm20988_vm9 = vmmov %vm20987_vm2 }
 0xd8a   :  { %v20715_v36 = vld [vmem:[#allocation2 + $0xc] sm:$0xff]  ;;  %v20739_v5 = vcombine.low %v12552_v2, %v20723_v63  ;;  %v13351_v10 = vld [vmem:[#allocation2] sm:$0xcc]  ;;  %v20769_v27 = vcombine.low %v13352_v20, %v20723_v63  ;;  %vm20989_vm7 = vmmov %vm20987_vm2 }
 0xd8b   :  { %v20718_v49 = vcombine.low %v11752_v33, %v20715_v36  ;;  %v20721_v22 = vcombine.high %v11752_v33, %v20715_v36  ;;  %v20726_v11 = vcombine.high %v12551_v42, %v20715_v36  ;;  %v20733_v8 = vcombine.low %v12551_v42, %v20715_v36  ;;  %v20736_v44 = vld [vmem:[#allocation2 + $0x20] ss:$0 sps:$4 sm:$0x11]   ;;  %v14151_v33 = vld [vmem:[#allocation2] sm:$0x88]  ;;  %vm20990_vm8 = vmmov %vm20986_vm14 }
 0xd8c   :  { %v12132_v56 = vld [vmem:[#allocation2 + $0x18] sm:$0x11]  ;;  %v12612_v9 = vrot.slane %v20739_v5, 1  ;;  %v12613_v32 = vrot.slane %v20736_v44, 1  ;;  %v20760_v24 = vcombine.high %v13351_v10, %v20715_v36  ;;  %v20763_v54 = vcombine.low %v13351_v10, %v20715_v36  ;;  %v18610_v42 = vld [vmem:[#allocation23 + $0x174] ss:$8 sps:$4 sm:$0xff]   ;;  %vm20991_vm10 = vmmov %vm20990_vm8 }
 0xd8d   :  { %12070 = vmatprep.mubr.bf16.mxu0 %v20721_v22  ;;  %v15999_v4 = vcombine.high %v12132_v56, %v12132_v56  ;;  %v20730_v53 = vcombine.low %v12132_v56, %v12132_v56  ;;  %v12609_v29 = vrot.slane %v20726_v11, 1  ;;  %v12606_v43 = vrot.slane %v20733_v8, 1  ;;  %v12930_v39 = vld [vmem:[#allocation2 + $0x18] sm:$0x33]  ;;  %v18616_v10 = vld [vmem:[#allocation23 + $0x194] ss:$8 sps:$4 sm:$0xff]   ;;  %vm20992_vm12 = vmmov %vm20985_vm0 }
 0xd8e   :  { %12071 = vmatmul.mubr.bf16.vlgmr.msra.gmra.mrb[24].mxu0 %v20718_v49  ;;  %v20753_v46 = vsel %vm20981_vm11, %v12612_v9, %v12613_v32  ;;  %v20755_v16 = vcombine.high %v12930_v39, %v12930_v39  ;;  %v20757_v30 = vcombine.low %v12930_v39, %v12930_v39  ;;  %v12215_v55 = vshll.u32 %v20721_v22, 16  ;;  %v20766_v47 = vld [vmem:[#allocation2 + $0x20] ss:$0 sps:$4 sm:$0x33]   ;;  %v13730_v35 = vld [vmem:[#allocation2 + $0x18] sm:$0x77]  ;;  %vm20993_vm15 = vmmov %vm20985_vm0 }
 0xd8f   :  { %12082 = vmatpush1.bf16.msra.mxu0 %v18585_v12  ;;  %12113 = vmatprep.mubr.bf16.mxu0 %v20244_v37  ;;  %v12610_v3 = vrot.slane %v15999_v4, 1  ;;  %v12607_v48 = vrot.slane %v20730_v53, 1  ;;  %v13409_v51 = vrot.slane %v20760_v24, 2  ;;  %v13406_v7 = vrot.slane %v20763_v54, 2  ;;  %v18603_v12 = vld [vmem:[#allocation2 + $0x8] ss:$12 sps:$4 sm:$0xff]  }
 0xd90   :  { %12083 = vmatprep.subr.bf16.mxu0 %v18590_v26  ;;  %v13410_v34 = vrot.slane %v20755_v16, 2  ;;  %v13407_v59 = vrot.slane %v20757_v30, 2  ;;  %v12217_v13 = vrot.slane %v12215_v55, 1  ;;  %v12220_v58 = vshll.u32 %v15999_v4, 16  ;;  %v18614_v55 = vld [vmem:[#allocation23 + $0x190] ss:$8 sps:$4 sm:$0xff]  }
 0xd91   :  { %v20743_v41 = vsel %vm20979_vm1, %v12609_v29, %v12610_v3  ;;  %v20750_v45 = vsel %vm20980_vm3, %v12606_v43, %v12607_v48  ;;  %v13412_v62 = vrot.slane %v20769_v27, 2  ;;  %v13413_v1 = vrot.slane %v20766_v47, 2  ;;  %v18608_v29 = vld [vmem:[#allocation23 + $0x170] ss:$8 sps:$4 sm:$0xff]   ;;  %v18613_v43 = vld [vmem:[#allocation23 + $0x184] ss:$8 sps:$4 sm:$0xff]  }
 0xd92   :  { %v20778_v52 = vsel %vm20982_vm13, %v13409_v51, %v13410_v34  ;;  %v20781_v21 = vsel %vm20983_vm4, %v13406_v7, %v13407_v59  ;;  %v12213_v15 = vshrl.u32 %v20721_v22, 16  ;;  %v12222_v17 = vrot.slane %v12220_v58, 1  ;;  %v18622_v51 = vld [vmem:[#allocation23 + $0x1b4] ss:$8 sps:$4 sm:$0xff]   ;;  %v18620_v34 = vld [vmem:[#allocation23 + $0x1b0] ss:$8 sps:$4 sm:$0xff]   ;;  %vm20997_vm13 = vmmov %vm20985_vm0 }
 0xd93   :  { %12084 = vmatpush1.bf16.msra.mxu0 %v18588_v28  ;;  %v20785_v0 = vsel %vm20984_vm6, %v13412_v62, %v13413_v1  ;;  %v20787_v26 = vcombine.high %v13730_v35, %v13730_v35  ;;  %v16239_v56 = vcombine.high %v14151_v33, %v20715_v36  ;;  %v20790_v4 = vcombine.low %v13730_v35, %v13730_v35  ;;  %v18949_v28 = vld [vmem:[#allocation2 + $0x20] ss:$0 sps:$4 sm:$0x77]   ;;  %v18625_v7 = vld [vmem:[#allocation23 + $0x1c4] ss:$8 sps:$4 sm:$0xff]   ;;  %vm20998_vm4 = vmmov %vm20985_vm0 }
 0xd94   :  { %12085 = vmatprep.subr.bf16.mxu0 %v18593_v40  ;;  %v12218_v50 = vor.u32 %v12217_v13, %v12213_v15  ;;  %v16238_v22 = vcombine.low %v14151_v33, %v20715_v36  ;;  %v14152_v40 = vld [vmem:[#allocation2 + $0x8] sm:$0x8]  ;;  %v14213_v39 = vrot.slane %v18949_v28, 3  ;;  %v18623_v59 = vld [vmem:[#allocation23 + $0x1c0] ss:$8 sps:$4 sm:$0xff]   ;;  %vm20999_vm6 = vmmov %vm20985_vm0 }
 0xd95   :  { %v16240_v3 = vcombine.low %v14152_v40, %v20723_v63  ;;  %v14209_v48 = vrot.slane %v16239_v56, 3  ;;  %v14207_v32 = vrot.slane %v20790_v4, 3  ;;  %v18628_v13 = vld [vmem:[#allocation23 + $0x1d4] ss:$8 sps:$4 sm:$0xff]   ;;  %v18626_v58 = vld [vmem:[#allocation23 + $0x1d0] ss:$8 sps:$4 sm:$0xff]  }
 0xd96   :  { %v12223_v2 = vsel %vm20986_vm14, %v12218_v50, %v12222_v17  ;;  %v14206_v9 = vrot.slane %v16238_v22, 3  ;;  %v18631_v62 = vld [vmem:[#allocation23 + $0x1e4] ss:$8 sps:$4 sm:$0xff]   ;;  %v18629_v1 = vld [vmem:[#allocation23 + $0x1e0] ss:$8 sps:$4 sm:$0xff]   ;;  %v12203_v22 = vshll.u32 %v20718_v49, 16 }
 0xd97   :  { %12086 = vmatpush1.bf16.msra.mxu0 %v18591_v31  ;;  %v14210_v31 = vrot.slane %v20787_v26, 3  ;;  %v14212_v36 = vrot.slane %v16240_v3, 3  ;;  %v18637_v15 = vld [vmem:[#allocation23 + $0x204] ss:$8 sps:$4 sm:$0xff]   ;;  %v18635_v35 = vld [vmem:[#allocation23 + $0x200] ss:$8 sps:$4 sm:$0xff]  }
 0xd98   :  { %12087 = vmatprep.subr.bf16.mxu0 %v18596_v38  ;;  %v18640_v50 = vld [vmem:[#allocation23 + $0x214] ss:$8 sps:$4 sm:$0xff]   ;;  %v18638_v17 = vld [vmem:[#allocation23 + $0x210] ss:$8 sps:$4 sm:$0xff]   ;;  %v18641_v33 = vld [vmem:[#allocation23 + $0x220] ss:$8 sps:$4 sm:$0xff]  }
 0xd99   :  { %v20799_v38 = vsel %vm20987_vm2, %v14209_v48, %v14210_v31  ;;  %v20805_v20 = vsel %vm20989_vm7, %v14212_v36, %v14213_v39  ;;  %v18649_v56 = vld [vmem:[#allocation23 + $0x244] ss:$8 sps:$4 sm:$0xff]   ;;  %v18652_v28 = vld [vmem:[#allocation23 + $0x254] ss:$8 sps:$4 sm:$0xff]   ;;  %v12205_v40 = vrot.slane %v12203_v22, 1 }
 0xd9a   :  { %v18650_v3 = vld [vmem:[#allocation23 + $0x250] ss:$8 sps:$4 sm:$0xff]   ;;  %v18656_v48 = vld [vmem:[#allocation23 + $0x264] ss:$8 sps:$4 sm:$0xff]   ;;  %v18659_v36 = vld [vmem:[#allocation23 + $0x274] ss:$8 sps:$4 sm:$0xff]  }
 0xd9b   :  { %12088 = vmatpush1.bf16.msra.mxu0 %v18594_v14  ;;  %v18611_v14 = vld [vmem:[#allocation23 + $0x180] ss:$8 sps:$4 sm:$0xff]   ;;  %v18692_v22 = vld [vmem:[#allocation23 + $0x314] ss:$8 sps:$4 sm:$0xff]   ;;  %vm20994_vm1 = vsmask.f32 6400 }
 0xd9c   :  { %12089 = vmatprep.subr.bf16.mxu0 %v18599_v6  ;;  %v20802_v6 = vsel %vm20988_vm9, %v14206_v9, %v14207_v32  ;;  %v18654_v32 = vld [vmem:[#allocation23 + $0x260] ss:$8 sps:$4 sm:$0xff]   ;;  %vm20995_vm3 = vmmov %vm20994_vm1 }
 0xd9d   :  { %vm20996_vm11 = vmmov %vm20994_vm1 }
 0xd9f   :  { %12090 = vmatpush1.bf16.msra.mxu0 %v18597_v57  ;;  %v18619_v57 = vld [vmem:[#allocation23 + $0x1a4] ss:$8 sps:$4 sm:$0xff]  }
 0xda0   :  { %12091 = vmatprep.subr.bf16.mxu0 %v18602_v18  ;;  %v18617_v18 = vld [vmem:[#allocation23 + $0x1a0] ss:$8 sps:$4 sm:$0xff]  }
 0xda3   :  { %12092 = vmatpush1.bf16.msra.mxu0 %v18600_v19  ;;  %v18634_v19 = vld [vmem:[#allocation23 + $0x1f4] ss:$8 sps:$4 sm:$0xff]  }
 0xda4   :  { %12461 = vmatprep.subr.bf16.mxu0 %v18606_v23  ;;  %v18632_v23 = vld [vmem:[#allocation23 + $0x1f0] ss:$8 sps:$4 sm:$0xff]  }
 0xda6   :  { %15994 = vmatmul.mubr.msk.bf16.vlgmr.msra.gmra.mrb[24].mxu0 %vm20985_vm0, %v18603_v12  ;;  %v18646_v12 = vld [vmem:[#allocation23 + $0x234] ss:$8 sps:$4 sm:$0xff]  }
 0xda7   :  { %12462 = vmatpush1.bf16.msra.mxu0 %v18604_v25  ;;  %12493 = vmatprep.mubr.bf16.mxu0 %v12223_v2  ;;  %v18643_v25 = vld [vmem:[#allocation23 + $0x224] ss:$8 sps:$4 sm:$0xff]   ;;  %v18647_v2 = vld [vmem:[#allocation23 + $0x240] ss:$8 sps:$4 sm:$0xff]  }
 0xda8   :  { %12463 = vmatprep.subr.bf16.mxu0 %v18610_v42  ;;  %v18644_v42 = vld [vmem:[#allocation23 + $0x230] ss:$8 sps:$4 sm:$0xff]  }
 0xdab   :  { %12464 = vmatpush1.bf16.msra.mxu0 %v18608_v29  ;;  %v12208_v29 = vshll.u32 %v20730_v53, 16  ;;  %v18662_v53 = vld [vmem:[#allocation23 + $0x284] ss:$8 sps:$4 sm:$0xff]  }
 0xdac   :  { %12465 = vmatprep.subr.bf16.mxu0 %v18613_v43  ;;  %v12201_v43 = vshrl.u32 %v20718_v49, 16  ;;  %v18665_v49 = vld [vmem:[#allocation23 + $0x294] ss:$8 sps:$4 sm:$0xff]  }
 0xdad   :  { %v12210_v9 = vrot.slane %v12208_v29, 1  ;;  %v18696_v29 = vld [vmem:[#allocation23 + $0x330] ss:$8 sps:$4 sm:$0xff]  }
 0xdae   :  { %v12206_v31 = vor.u32 %v12205_v40, %v12201_v43  ;;  %v18698_v40 = vld [vmem:[#allocation23 + $0x334] ss:$8 sps:$4 sm:$0xff]   ;;  %v18699_v43 = vld [vmem:[#allocation23 + $0x340] ss:$8 sps:$4 sm:$0xff]  }
 0xdaf   :  { %12466 = vmatpush1.bf16.msra.mxu0 %v18611_v14  ;;  %v18657_v14 = vld [vmem:[#allocation23 + $0x270] ss:$8 sps:$4 sm:$0xff]  }
 0xdb0   :  { %12467 = vmatprep.subr.bf16.mxu0 %v18616_v10  ;;  %v12211_v39 = vsel %vm20990_vm8, %v12206_v31, %v12210_v9  ;;  %v18660_v10 = vld [vmem:[#allocation23 + $0x280] ss:$8 sps:$4 sm:$0xff]   ;;  %v18702_v31 = vld [vmem:[#allocation23 + $0x350] ss:$8 sps:$4 sm:$0xff]   ;;  %v18707_v9 = vld [vmem:[#allocation23 + $0x364] ss:$8 sps:$4 sm:$0xff]  }
 0xdb3   :  { %12468 = vmatpush1.bf16.msra.mxu0 %v18614_v55  ;;  %v12129_v55 = vld [vmem:[#allocation2 + $0x8] sm:$0xf] }
 0xdb4   :  { %12469 = vmatprep.subr.bf16.mxu0 %v18619_v57  ;;  %v15997_v57 = vcombine.low %v12129_v55, %v20723_v63  ;;  %v18674_v63 = vld [vmem:[#allocation23 + $0x2c0] ss:$8 sps:$4 sm:$0xff]   ;;  %v18719_v55 = vld [vmem:[#allocation23 + $0x3a4] ss:$8 sps:$4 sm:$0xff]  }
 0xdb7   :  { %12470 = vmatpush1.bf16.msra.mxu0 %v18617_v18  ;;  %v18663_v18 = vld [vmem:[#allocation23 + $0x290] ss:$8 sps:$4 sm:$0xff]  }
 0xdb8   :  { %12471 = vmatprep.subr.bf16.mxu0 %v18622_v51  ;;  %v18668_v51 = vld [vmem:[#allocation23 + $0x2a4] ss:$8 sps:$4 sm:$0xff]  }
 0xdbb   :  { %12472 = vmatpush1.bf16.msra.mxu0 %v18620_v34  ;;  %v12227_v34 = vshll.u32 %v15997_v57, 16 }
 0xdbc   :  { %12473 = vmatprep.subr.bf16.mxu0 %v18625_v7  ;;  %v18666_v7 = vld [vmem:[#allocation23 + $0x2a0] ss:$8 sps:$4 sm:$0xff]  }
 0xdbf   :  { %12474 = vmatpush1.bf16.msra.mxu0 %v18623_v59  ;;  %v18671_v59 = vld [vmem:[#allocation23 + $0x2b4] ss:$8 sps:$4 sm:$0xff]  }
 0xdc0   :  { %12475 = vmatprep.subr.bf16.mxu0 %v18628_v13  ;;  %v12229_v13 = vrot.slane %v12227_v34, 1  ;;  %v18726_v34 = vld [vmem:[#allocation23 + $0x3c4] ss:$8 sps:$4 sm:$0xff]  }
 0xdc3   :  { %12476 = vmatpush1.bf16.msra.mxu0 %v18626_v58  ;;  %v12232_v58 = vshll.u32 %v20736_v44, 16  ;;  %v18683_v44 = vld [vmem:[#allocation23 + $0x2e4] ss:$8 sps:$4 sm:$0xff]  }
 0xdc4   :  { %12477 = vmatprep.subr.bf16.mxu0 %v18631_v62  ;;  %v18669_v62 = vld [vmem:[#allocation23 + $0x2b0] ss:$8 sps:$4 sm:$0xff]  }
 0xdc7   :  { %12478 = vmatpush1.bf16.msra.mxu0 %v18629_v1  ;;  %v12225_v1 = vshrl.u32 %v15997_v57, 16  ;;  %v18717_v57 = vld [vmem:[#allocation23 + $0x3a0] ss:$8 sps:$4 sm:$0xff]  }
 0xdc8   :  { %12479 = vmatprep.subr.bf16.mxu0 %v18634_v19  ;;  %v18676_v19 = vld [vmem:[#allocation23 + $0x2c4] ss:$8 sps:$4 sm:$0xff]  }
 0xdcb   :  { %12480 = vmatpush1.bf16.msra.mxu0 %v18632_v23  ;;  %v12230_v23 = vor.u32 %v12229_v13, %v12225_v1  ;;  %v18727_v13 = vld [vmem:[#allocation23 + $0x3d0] ss:$8 sps:$4 sm:$0xff]   ;;  %v18735_v1 = vld [vmem:[#allocation23 + $0x3f4] ss:$8 sps:$4 sm:$0xff]  }
 0xdcc   :  { %12481 = vmatprep.subr.bf16.mxu0 %v18637_v15  ;;  %v12234_v15 = vrot.slane %v12232_v58, 1  ;;  %v18732_v58 = vld [vmem:[#allocation23 + $0x3e4] ss:$8 sps:$4 sm:$0xff]  }
 0xdcf   :  { %12482 = vmatpush1.bf16.msra.mxu0 %v18635_v35  ;;  %v18680_v35 = vld [vmem:[#allocation23 + $0x2d4] ss:$8 sps:$4 sm:$0xff]  }
 0xdd0   :  { %12483 = vmatprep.subr.bf16.mxu0 %v18640_v50  ;;  %v12235_v50 = vsel %vm20991_vm10, %v12230_v23, %v12234_v15  ;;  %v18738_v23 = vld [vmem:[#allocation23 + $0x404] ss:$8 sps:$4 sm:$0xff]   ;;  %v13011_v15 = vshrl.u32 %v20755_v16, 16 }
 0xdd3   :  { %12484 = vmatpush1.bf16.msra.mxu0 %v18638_v17  ;;  %v18678_v17 = vld [vmem:[#allocation23 + $0x2d0] ss:$8 sps:$4 sm:$0xff]  }
 0xdd4   :  { %12485 = vmatprep.subr.bf16.mxu0 %v18643_v25  ;;  %v18681_v25 = vld [vmem:[#allocation23 + $0x2e0] ss:$8 sps:$4 sm:$0xff]  }
 0xdd7   :  { %12486 = vmatpush1.bf16.msra.mxu0 %v18641_v33  ;;  %v18686_v33 = vld [vmem:[#allocation23 + $0x2f4] ss:$8 sps:$4 sm:$0xff]  }
 0xdd8   :  { %12487 = vmatprep.subr.bf16.mxu0 %v18646_v12  ;;  %v18684_v12 = vld [vmem:[#allocation23 + $0x2f0] ss:$8 sps:$4 sm:$0xff]  }
 0xddb   :  { %12488 = vmatpush1.bf16.msra.mxu0 %v18644_v42  ;;  %v18689_v42 = vld [vmem:[#allocation23 + $0x304] ss:$8 sps:$4 sm:$0xff]  }
 0xddc   :  { %12489 = vmatprep.subr.bf16.mxu0 %v18649_v56  ;;  %v18687_v56 = vld [vmem:[#allocation23 + $0x300] ss:$8 sps:$4 sm:$0xff]  }
 0xddf   :  { %12490 = vmatpush1.bf16.msra.mxu0 %v18647_v2  ;;  %v18690_v2 = vld [vmem:[#allocation23 + $0x310] ss:$8 sps:$4 sm:$0xff]  }
 0xde0   :  { %12491 = vmatprep.subr.bf16.mxu0 %v18652_v28  ;;  %v18695_v28 = vld [vmem:[#allocation23 + $0x324] ss:$8 sps:$4 sm:$0xff]  }
 0xde3   :  { %12492 = vmatpush1.bf16.msra.mxu0 %v18650_v3  ;;  %v18701_v3 = vld [vmem:[#allocation23 + $0x344] ss:$8 sps:$4 sm:$0xff]  }
 0xde4   :  { %12504 = vmatprep.subr.bf16.mxu0 %v18656_v48  ;;  %v18704_v48 = vld [vmem:[#allocation23 + $0x354] ss:$8 sps:$4 sm:$0xff]  }
 0xde6   :  { %12494 = vmatmul.mubr.bf16.vlgmr.msra.gmra.mrb[24].mxu0 %v12211_v39  ;;  %v18708_v39 = vld [vmem:[#allocation23 + $0x370] ss:$8 sps:$4 sm:$0xff]  }
 0xde7   :  { %12505 = vmatpush1.bf16.msra.mxu0 %v18654_v32  ;;  %12536 = vmatprep.mubr.bf16.mxu0 %v20244_v37  ;;  %v18705_v32 = vld [vmem:[#allocation23 + $0x360] ss:$8 sps:$4 sm:$0xff]  }
 0xde8   :  { %12506 = vmatprep.subr.bf16.mxu0 %v18659_v36  ;;  %v18710_v36 = vld [vmem:[#allocation23 + $0x374] ss:$8 sps:$4 sm:$0xff]  }
 0xdeb   :  { %12507 = vmatpush1.bf16.msra.mxu0 %v18657_v14  ;;  %v18713_v14 = vld [vmem:[#allocation23 + $0x384] ss:$8 sps:$4 sm:$0xff]  }
 0xdec   :  { %12508 = vmatprep.subr.bf16.mxu0 %v18662_v53  ;;  %v18711_v53 = vld [vmem:[#allocation23 + $0x380] ss:$8 sps:$4 sm:$0xff]  }
 0xdef   :  { %12509 = vmatpush1.bf16.msra.mxu0 %v18660_v10  ;;  %v18716_v10 = vld [vmem:[#allocation23 + $0x394] ss:$8 sps:$4 sm:$0xff]  }
 0xdf0   :  { %12510 = vmatprep.subr.bf16.mxu0 %v18665_v49  ;;  %v18714_v49 = vld [vmem:[#allocation23 + $0x390] ss:$8 sps:$4 sm:$0xff]  }
 0xdf3   :  { %12511 = vmatpush1.bf16.msra.mxu0 %v18663_v18  ;;  %v18722_v18 = vld [vmem:[#allocation23 + $0x3b4] ss:$8 sps:$4 sm:$0xff]  }
 0xdf4   :  { %12512 = vmatprep.subr.bf16.mxu0 %v18668_v51  ;;  %v18720_v51 = vld [vmem:[#allocation23 + $0x3b0] ss:$8 sps:$4 sm:$0xff]  }
 0xdf7   :  { %12513 = vmatpush1.bf16.msra.mxu0 %v18666_v7  ;;  %v18724_v7 = vld [vmem:[#allocation23 + $0x3c0] ss:$8 sps:$4 sm:$0xff]  }
 0xdf8   :  { %12514 = vmatprep.subr.bf16.mxu0 %v18671_v59  ;;  %v18729_v59 = vld [vmem:[#allocation23 + $0x3d4] ss:$8 sps:$4 sm:$0xff]  }
 0xdfb   :  { %12515 = vmatpush1.bf16.msra.mxu0 %v18669_v62  ;;  %v18730_v62 = vld [vmem:[#allocation23 + $0x3e0] ss:$8 sps:$4 sm:$0xff]  }
 0xdfc   :  { %12840 = vmatprep.subr.bf16.mxu0 %v18676_v19  ;;  %v18733_v19 = vld [vmem:[#allocation23 + $0x3f0] ss:$8 sps:$4 sm:$0xff]  }
 0xdfe   :  { %16045 = vmatmul.mubr.msk.bf16.vlgmr.msra.gmra.mrb[24].mxu0 %vm20992_vm12, %v12235_v50  ;;  %v13003_v50 = vshrl.u32 %v20726_v11, 16 }
 0xdff   :  { %12841 = vmatpush1.bf16.msra.mxu0 %v18674_v63  ;;  %12872 = vmatprep.mubr.bf16.mxu0 %v20743_v41  ;;  %v18693_v41 = vld [vmem:[#allocation23 + $0x320] ss:$8 sps:$4 sm:$0xff]   ;;  %v13014_v63 = vshll.u32 %v20755_v16, 16 }
 0xe00   :  { %12842 = vmatprep.subr.bf16.mxu0 %v18680_v35  ;;  %v18741_v35 = vld [vmem:[#allocation23 + $0x414] ss:$8 sps:$4 sm:$0xff]  }
 0xe03   :  { %12843 = vmatpush1.bf16.msra.mxu0 %v18678_v17  ;;  %v13006_v17 = vshll.u32 %v20726_v11, 16  ;;  %v18747_v11 = vld [vmem:[#allocation23 + $0x430] ss:$8 sps:$4 sm:$0xff]  }
 0xe04   :  { %12844 = vmatprep.subr.bf16.mxu0 %v18683_v44  ;;  %v13013_v44 = vrot.slane %v13011_v15, 1  ;;  %v12986_v15 = vshrl.u32 %v20733_v8, 16 }
 0xe07   :  { %12845 = vmatpush1.bf16.msra.mxu0 %v18681_v25  ;;  %v13016_v25 = vrot.slane %v13014_v63, 2  ;;  %v12989_v63 = vshll.u32 %v20733_v8, 16  ;;  %v18796_v8 = vld [vmem:[#allocation23 + $0x530] ss:$8 sps:$4 sm:$0xff]  }
 0xe08   :  { %12846 = vmatprep.subr.bf16.mxu0 %v18686_v33  ;;  %v18739_v33 = vld [vmem:[#allocation23 + $0x410] ss:$8 sps:$4 sm:$0xff]  }
 0xe0b   :  { %12847 = vmatpush1.bf16.msra.mxu0 %v18684_v12  ;;  %v18745_v12 = vld [vmem:[#allocation23 + $0x424] ss:$8 sps:$4 sm:$0xff]  }
 0xe0c   :  { %12848 = vmatprep.subr.bf16.mxu0 %v18689_v42  ;;  %v13005_v42 = vrot.slane %v13003_v50, 1 }
 0xe0f   :  { %12849 = vmatpush1.bf16.msra.mxu0 %v18687_v56  ;;  %v13008_v56 = vrot.slane %v13006_v17, 2  ;;  %v18789_v17 = vld [vmem:[#allocation23 + $0x510] ss:$8 sps:$4 sm:$0xff]  }
 0xe10   :  { %12850 = vmatprep.subr.bf16.mxu0 %v18692_v22  ;;  %v13017_v22 = vor.u32 %v13016_v25, %v13013_v44  ;;  %v12988_v44 = vrot.slane %v12986_v15, 1  ;;  %v12991_v25 = vrot.slane %v12989_v63, 2  ;;  %v18837_v15 = vld [vmem:[#allocation23 + $0x600] ss:$8 sps:$4 sm:$0xff]   ;;  %v18842_v63 = vld [vmem:[#allocation23 + $0x614] ss:$8 sps:$4 sm:$0xff]  }
 0xe11   :  { %v13009_v16 = vor.u32 %v13008_v56, %v13005_v42  ;;  %v18798_v56 = vld [vmem:[#allocation23 + $0x534] ss:$8 sps:$4 sm:$0xff]  }
 0xe12   :  { %v12992_v42 = vor.u32 %v12991_v25, %v12988_v44  ;;  %v18846_v44 = vld [vmem:[#allocation23 + $0x630] ss:$8 sps:$4 sm:$0xff]   ;;  %v18851_v25 = vld [vmem:[#allocation23 + $0x644] ss:$8 sps:$4 sm:$0xff]  }
 0xe13   :  { %12851 = vmatpush1.bf16.msra.mxu0 %v18690_v2  ;;  %v18743_v2 = vld [vmem:[#allocation23 + $0x420] ss:$8 sps:$4 sm:$0xff]  }
 0xe14   :  { %12852 = vmatprep.subr.bf16.mxu0 %v18695_v28  ;;  %v18749_v28 = vld [vmem:[#allocation23 + $0x434] ss:$8 sps:$4 sm:$0xff]  }
 0xe17   :  { %12853 = vmatpush1.bf16.msra.mxu0 %v18693_v41  ;;  %v13018_v41 = vsel %vm20994_vm1, %v13009_v16, %v13017_v22  ;;  %v18799_v16 = vld [vmem:[#allocation23 + $0x540] ss:$8 sps:$4 sm:$0xff]  }
 0xe18   :  { %12854 = vmatprep.subr.bf16.mxu0 %v18698_v40  ;;  %v18752_v40 = vld [vmem:[#allocation23 + $0x444] ss:$8 sps:$4 sm:$0xff]  }
 0xe1b   :  { %12855 = vmatpush1.bf16.msra.mxu0 %v18696_v29  ;;  %v18750_v29 = vld [vmem:[#allocation23 + $0x440] ss:$8 sps:$4 sm:$0xff]  }
 0xe1c   :  { %12856 = vmatprep.subr.bf16.mxu0 %v18701_v3  ;;  %v18755_v3 = vld [vmem:[#allocation23 + $0x454] ss:$8 sps:$4 sm:$0xff]  }
 0xe1f   :  { %12857 = vmatpush1.bf16.msra.mxu0 %v18699_v43  ;;  %v18753_v43 = vld [vmem:[#allocation23 + $0x450] ss:$8 sps:$4 sm:$0xff]  }
 0xe20   :  { %12858 = vmatprep.subr.bf16.mxu0 %v18704_v48  ;;  %v18758_v48 = vld [vmem:[#allocation23 + $0x464] ss:$8 sps:$4 sm:$0xff]  }
 0xe23   :  { %12859 = vmatpush1.bf16.msra.mxu0 %v18702_v31  ;;  %v18756_v31 = vld [vmem:[#allocation23 + $0x460] ss:$8 sps:$4 sm:$0xff]  }
 0xe24   :  { %12860 = vmatprep.subr.bf16.mxu0 %v18707_v9  ;;  %v18761_v9 = vld [vmem:[#allocation23 + $0x474] ss:$8 sps:$4 sm:$0xff]  }
 0xe27   :  { %12861 = vmatpush1.bf16.msra.mxu0 %v18705_v32  ;;  %v18764_v32 = vld [vmem:[#allocation23 + $0x484] ss:$8 sps:$4 sm:$0xff]  }
 0xe28   :  { %12862 = vmatprep.subr.bf16.mxu0 %v18710_v36  ;;  %v18762_v36 = vld [vmem:[#allocation23 + $0x480] ss:$8 sps:$4 sm:$0xff]  }
 0xe2b   :  { %12863 = vmatpush1.bf16.msra.mxu0 %v18708_v39  ;;  %v18767_v39 = vld [vmem:[#allocation23 + $0x494] ss:$8 sps:$4 sm:$0xff]  }
 0xe2c   :  { %12864 = vmatprep.subr.bf16.mxu0 %v18713_v14  ;;  %v18765_v14 = vld [vmem:[#allocation23 + $0x490] ss:$8 sps:$4 sm:$0xff]  }
 0xe2f   :  { %12865 = vmatpush1.bf16.msra.mxu0 %v18711_v53  ;;  %v18770_v53 = vld [vmem:[#allocation23 + $0x4a4] ss:$8 sps:$4 sm:$0xff]  }
 0xe30   :  { %12866 = vmatprep.subr.bf16.mxu0 %v18716_v10  ;;  %v18768_v10 = vld [vmem:[#allocation23 + $0x4a0] ss:$8 sps:$4 sm:$0xff]  }
 0xe33   :  { %12867 = vmatpush1.bf16.msra.mxu0 %v18714_v49  ;;  %v18773_v49 = vld [vmem:[#allocation23 + $0x4b4] ss:$8 sps:$4 sm:$0xff]  }
 0xe34   :  { %12868 = vmatprep.subr.bf16.mxu0 %v18719_v55  ;;  %v18771_v55 = vld [vmem:[#allocation23 + $0x4b0] ss:$8 sps:$4 sm:$0xff]  }
 0xe37   :  { %12869 = vmatpush1.bf16.msra.mxu0 %v18717_v57  ;;  %v18776_v57 = vld [vmem:[#allocation23 + $0x4c4] ss:$8 sps:$4 sm:$0xff]  }
 0xe38   :  { %12870 = vmatprep.subr.bf16.mxu0 %v18722_v18  ;;  %v18774_v18 = vld [vmem:[#allocation23 + $0x4c0] ss:$8 sps:$4 sm:$0xff]  }
 0xe3b   :  { %12871 = vmatpush1.bf16.msra.mxu0 %v18720_v51  ;;  %v18779_v51 = vld [vmem:[#allocation23 + $0x4d4] ss:$8 sps:$4 sm:$0xff]  }
 0xe3c   :  { %12883 = vmatprep.subr.bf16.mxu0 %v18726_v34  ;;  %v18777_v34 = vld [vmem:[#allocation23 + $0x4d0] ss:$8 sps:$4 sm:$0xff]  }
 0xe3e   :  { %12873 = vmatmul.mubr.bf16.vlgmr.msra.gmra.mrb[24].mxu0 %v20750_v45  ;;  %v18736_v45 = vld [vmem:[#allocation23 + $0x400] ss:$8 sps:$4 sm:$0xff]  }
 0xe3f   :  { %12884 = vmatpush1.bf16.msra.mxu0 %v18724_v7  ;;  %12915 = vmatprep.mubr.bf16.mxu0 %v20244_v37  ;;  %v18782_v7 = vld [vmem:[#allocation23 + $0x4e4] ss:$8 sps:$4 sm:$0xff]  }
 0xe40   :  { %12885 = vmatprep.subr.bf16.mxu0 %v18729_v59  ;;  %v18780_v59 = vld [vmem:[#allocation23 + $0x4e0] ss:$8 sps:$4 sm:$0xff]  }
 0xe43   :  { %12886 = vmatpush1.bf16.msra.mxu0 %v18727_v13  ;;  %v18785_v13 = vld [vmem:[#allocation23 + $0x4f4] ss:$8 sps:$4 sm:$0xff]  }
 0xe44   :  { %12887 = vmatprep.subr.bf16.mxu0 %v18732_v58  ;;  %v18783_v58 = vld [vmem:[#allocation23 + $0x4f0] ss:$8 sps:$4 sm:$0xff]  }
 0xe47   :  { %12888 = vmatpush1.bf16.msra.mxu0 %v18730_v62  ;;  %v18788_v62 = vld [vmem:[#allocation23 + $0x504] ss:$8 sps:$4 sm:$0xff]  }
 0xe48   :  { %12889 = vmatprep.subr.bf16.mxu0 %v18735_v1  ;;  %v12994_v1 = vshrl.u32 %v20757_v30, 16 }
 0xe4b   :  { %12890 = vmatpush1.bf16.msra.mxu0 %v18733_v19  ;;  %v12997_v19 = vshll.u32 %v20757_v30, 16  ;;  %v18793_v30 = vld [vmem:[#allocation23 + $0x520] ss:$8 sps:$4 sm:$0xff]  }
 0xe4c   :  { %12891 = vmatprep.subr.bf16.mxu0 %v18738_v23  ;;  %v18786_v23 = vld [vmem:[#allocation23 + $0x500] ss:$8 sps:$4 sm:$0xff]  }
 0xe4d   :  { %v12999_v50 = vrot.slane %v12997_v19, 2  ;;  %v18834_v19 = vld [vmem:[#allocation23 + $0x5f0] ss:$8 sps:$4 sm:$0xff]  }
 0xe4f   :  { %12892 = vmatpush1.bf16.msra.mxu0 %v18736_v45  ;;  %v18791_v45 = vld [vmem:[#allocation23 + $0x514] ss:$8 sps:$4 sm:$0xff]  }
 0xe50   :  { %12893 = vmatprep.subr.bf16.mxu0 %v18741_v35  ;;  %v12996_v35 = vrot.slane %v12994_v1, 1  ;;  %v18836_v1 = vld [vmem:[#allocation23 + $0x5f4] ss:$8 sps:$4 sm:$0xff]  }
 0xe53   :  { %12894 = vmatpush1.bf16.msra.mxu0 %v18739_v33  ;;  %v18795_v33 = vld [vmem:[#allocation23 + $0x524] ss:$8 sps:$4 sm:$0xff]  }
 0xe54   :  { %13261 = vmatprep.subr.bf16.mxu0 %v18745_v12  ;;  %v13000_v12 = vor.u32 %v12999_v50, %v12996_v35  ;;  %v18845_v35 = vld [vmem:[#allocation23 + $0x624] ss:$8 sps:$4 sm:$0xff]   ;;  %v18843_v50 = vld [vmem:[#allocation23 + $0x620] ss:$8 sps:$4 sm:$0xff]  }
 0xe56   :  { %16093 = vmatmul.mubr.msk.bf16.vlgmr.msra.gmra.mrb[24].mxu0 %vm20993_vm15, %v20753_v46  ;;  %v18759_v46 = vld [vmem:[#allocation23 + $0x470] ss:$8 sps:$4 sm:$0xff]   ;;  %v13001_v22 = vsel %vm20995_vm3, %v12992_v42, %v13000_v12  ;;  %v18854_v12 = vld [vmem:[#allocation23 + $0x654] ss:$8 sps:$4 sm:$0xff]  }
 0xe57   :  { %13262 = vmatpush1.bf16.msra.mxu0 %v18743_v2  ;;  %13293 = vmatprep.mubr.bf16.mxu0 %v13018_v41  ;;  %v18801_v2 = vld [vmem:[#allocation23 + $0x544] ss:$8 sps:$4 sm:$0xff]   ;;  %v18802_v41 = vld [vmem:[#allocation23 + $0x550] ss:$8 sps:$4 sm:$0xff]  }
 0xe58   :  { %13263 = vmatprep.subr.bf16.mxu0 %v18749_v28  ;;  %v18804_v28 = vld [vmem:[#allocation23 + $0x554] ss:$8 sps:$4 sm:$0xff]   ;;  %v18852_v42 = vld [vmem:[#allocation23 + $0x650] ss:$8 sps:$4 sm:$0xff]  }
 0xe5b   :  { %13264 = vmatpush1.bf16.msra.mxu0 %v18747_v11  ;;  %v18807_v11 = vld [vmem:[#allocation23 + $0x564] ss:$8 sps:$4 sm:$0xff]  }
 0xe5c   :  { %13265 = vmatprep.subr.bf16.mxu0 %v18752_v40  ;;  %v13020_v40 = vshrl.u32 %v20739_v5, 16 }
 0xe5f   :  { %13266 = vmatpush1.bf16.msra.mxu0 %v18750_v29  ;;  %v13023_v29 = vshll.u32 %v20739_v5, 16  ;;  %v18812_v5 = vld [vmem:[#allocation23 + $0x580] ss:$8 sps:$4 sm:$0xff]  }
 0xe60   :  { %13267 = vmatprep.subr.bf16.mxu0 %v18755_v3  ;;  %v13028_v3 = vshrl.u32 %v20766_v47, 16 }
 0xe63   :  { %13268 = vmatpush1.bf16.msra.mxu0 %v18753_v43  ;;  %v13031_v43 = vshll.u32 %v20766_v47, 16 }
 0xe64   :  { %13269 = vmatprep.subr.bf16.mxu0 %v18758_v48  ;;  %v18805_v48 = vld [vmem:[#allocation23 + $0x560] ss:$8 sps:$4 sm:$0xff]  }
 0xe67   :  { %13270 = vmatpush1.bf16.msra.mxu0 %v18756_v31  ;;  %v18810_v31 = vld [vmem:[#allocation23 + $0x574] ss:$8 sps:$4 sm:$0xff]  }
 0xe68   :  { %13271 = vmatprep.subr.bf16.mxu0 %v18761_v9  ;;  %v13022_v9 = vrot.slane %v13020_v40, 1  ;;  %v18868_v40 = vld [vmem:[#allocation23 + $0x6a0] ss:$8 sps:$4 sm:$0xff]  }
 0xe6b   :  { %13272 = vmatpush1.bf16.msra.mxu0 %v18759_v46  ;;  %v13025_v46 = vrot.slane %v13023_v29, 2  ;;  %v18873_v29 = vld [vmem:[#allocation23 + $0x6b4] ss:$8 sps:$4 sm:$0xff]  }
 0xe6c   :  { %13273 = vmatprep.subr.bf16.mxu0 %v18764_v32  ;;  %v13030_v32 = vrot.slane %v13028_v3, 1  ;;  %v18871_v3 = vld [vmem:[#allocation23 + $0x6b0] ss:$8 sps:$4 sm:$0xff]  }
 0xe6f   :  { %13274 = vmatpush1.bf16.msra.mxu0 %v18762_v36  ;;  %v13033_v36 = vrot.slane %v13031_v43, 2  ;;  %v18876_v43 = vld [vmem:[#allocation23 + $0x6c4] ss:$8 sps:$4 sm:$0xff]  }
 0xe70   :  { %13275 = vmatprep.subr.bf16.mxu0 %v18767_v39  ;;  %v18808_v39 = vld [vmem:[#allocation23 + $0x570] ss:$8 sps:$4 sm:$0xff]  }
 0xe73   :  { %13276 = vmatpush1.bf16.msra.mxu0 %v18765_v14  ;;  %v18814_v14 = vld [vmem:[#allocation23 + $0x584] ss:$8 sps:$4 sm:$0xff]  }
 0xe74   :  { %13277 = vmatprep.subr.bf16.mxu0 %v18770_v53  ;;  %v13026_v53 = vor.u32 %v13025_v46, %v13022_v9  ;;  %v18879_v9 = vld [vmem:[#allocation23 + $0x6d4] ss:$8 sps:$4 sm:$0xff]   ;;  %v13803_v46 = vshrl.u32 %v20760_v24, 16 }
 0xe77   :  { %13278 = vmatpush1.bf16.msra.mxu0 %v18768_v10  ;;  %v13034_v10 = vor.u32 %v13033_v36, %v13030_v32  ;;  %v13806_v32 = vshll.u32 %v20760_v24, 16  ;;  %v18885_v24 = vld [vmem:[#allocation23 + $0x6f0] ss:$8 sps:$4 sm:$0xff]  }
 0xe78   :  { %13279 = vmatprep.subr.bf16.mxu0 %v18773_v49  ;;  %v18818_v49 = vld [vmem:[#allocation23 + $0x594] ss:$8 sps:$4 sm:$0xff]  }
 0xe79   :  { %v13035_v47 = vsel %vm20996_vm11, %v13026_v53, %v13034_v10  ;;  %v18883_v53 = vld [vmem:[#allocation23 + $0x6e4] ss:$8 sps:$4 sm:$0xff]   ;;  %v13805_v10 = vrot.slane %v13803_v46, 2 }
 0xe7a   :  { %v18939_v46 = vld [vmem:[#allocation23 + $0x804] ss:$8 sps:$4 sm:$0xff]  }
 0xe7b   :  { %13280 = vmatpush1.bf16.msra.mxu0 %v18771_v55  ;;  %v18816_v55 = vld [vmem:[#allocation23 + $0x590] ss:$8 sps:$4 sm:$0xff]  }
 0xe7c   :  { %13281 = vmatprep.subr.bf16.mxu0 %v18776_v57  ;;  %v18821_v57 = vld [vmem:[#allocation23 + $0x5a4] ss:$8 sps:$4 sm:$0xff]  }
 0xe7f   :  { %13282 = vmatpush1.bf16.msra.mxu0 %v18774_v18  ;;  %v18819_v18 = vld [vmem:[#allocation23 + $0x5a0] ss:$8 sps:$4 sm:$0xff]  }
 0xe80   :  { %13283 = vmatprep.subr.bf16.mxu0 %v18779_v51  ;;  %v18824_v51 = vld [vmem:[#allocation23 + $0x5b4] ss:$8 sps:$4 sm:$0xff]  }
 0xe83   :  { %13284 = vmatpush1.bf16.msra.mxu0 %v18777_v34  ;;  %v18822_v34 = vld [vmem:[#allocation23 + $0x5b0] ss:$8 sps:$4 sm:$0xff]  }
 0xe84   :  { %13285 = vmatprep.subr.bf16.mxu0 %v18782_v7  ;;  %v18827_v7 = vld [vmem:[#allocation23 + $0x5c4] ss:$8 sps:$4 sm:$0xff]  }
 0xe87   :  { %13286 = vmatpush1.bf16.msra.mxu0 %v18780_v59  ;;  %v18825_v59 = vld [vmem:[#allocation23 + $0x5c0] ss:$8 sps:$4 sm:$0xff]  }
 0xe88   :  { %13287 = vmatprep.subr.bf16.mxu0 %v18785_v13  ;;  %v18830_v13 = vld [vmem:[#allocation23 + $0x5d4] ss:$8 sps:$4 sm:$0xff]  }
 0xe8b   :  { %13288 = vmatpush1.bf16.msra.mxu0 %v18783_v58  ;;  %v18828_v58 = vld [vmem:[#allocation23 + $0x5d0] ss:$8 sps:$4 sm:$0xff]  }
 0xe8c   :  { %13289 = vmatprep.subr.bf16.mxu0 %v18788_v62  ;;  %v18833_v62 = vld [vmem:[#allocation23 + $0x5e4] ss:$8 sps:$4 sm:$0xff]  }
 0xe8f   :  { %13290 = vmatpush1.bf16.msra.mxu0 %v18786_v23  ;;  %v18839_v23 = vld [vmem:[#allocation23 + $0x604] ss:$8 sps:$4 sm:$0xff]  }
 0xe90   :  { %13291 = vmatprep.subr.bf16.mxu0 %v18791_v45  ;;  %v18840_v45 = vld [vmem:[#allocation23 + $0x610] ss:$8 sps:$4 sm:$0xff]  }
 0xe93   :  { %13292 = vmatpush1.bf16.msra.mxu0 %v18789_v17  ;;  %v18848_v17 = vld [vmem:[#allocation23 + $0x634] ss:$8 sps:$4 sm:$0xff]  }
 0xe94   :  { %13304 = vmatprep.subr.bf16.mxu0 %v18795_v33  ;;  %v18849_v33 = vld [vmem:[#allocation23 + $0x640] ss:$8 sps:$4 sm:$0xff]  }
 0xe96   :  { %13294 = vmatmul.mubr.bf16.vlgmr.msra.gmra.mrb[24].mxu0 %v13001_v22  ;;  %v18860_v22 = vld [vmem:[#allocation23 + $0x674] ss:$8 sps:$4 sm:$0xff]  }
 0xe97   :  { %13305 = vmatpush1.bf16.msra.mxu0 %v18793_v30  ;;  %13336 = vmatprep.mubr.bf16.mxu0 %v20244_v37  ;;  %v18857_v30 = vld [vmem:[#allocation23 + $0x664] ss:$8 sps:$4 sm:$0xff]  }
 0xe98   :  { %13306 = vmatprep.subr.bf16.mxu0 %v18798_v56  ;;  %v18855_v56 = vld [vmem:[#allocation23 + $0x660] ss:$8 sps:$4 sm:$0xff]  }
 0xe9b   :  { %13307 = vmatpush1.bf16.msra.mxu0 %v18796_v8  ;;  %v18858_v8 = vld [vmem:[#allocation23 + $0x670] ss:$8 sps:$4 sm:$0xff]  }
 0xe9c   :  { %13308 = vmatprep.subr.bf16.mxu0 %v18801_v2  ;;  %v18864_v2 = vld [vmem:[#allocation23 + $0x684] ss:$8 sps:$4 sm:$0xff]  }
 0xe9f   :  { %13309 = vmatpush1.bf16.msra.mxu0 %v18799_v16  ;;  %v18862_v16 = vld [vmem:[#allocation23 + $0x680] ss:$8 sps:$4 sm:$0xff]  }
 0xea0   :  { %13310 = vmatprep.subr.bf16.mxu0 %v18804_v28  ;;  %v18867_v28 = vld [vmem:[#allocation23 + $0x694] ss:$8 sps:$4 sm:$0xff]  }
 0xea3   :  { %13311 = vmatpush1.bf16.msra.mxu0 %v18802_v41  ;;  %v18865_v41 = vld [vmem:[#allocation23 + $0x690] ss:$8 sps:$4 sm:$0xff]  }
 0xea4   :  { %13312 = vmatprep.subr.bf16.mxu0 %v18807_v11  ;;  %v18870_v11 = vld [vmem:[#allocation23 + $0x6a4] ss:$8 sps:$4 sm:$0xff]  }
 0xea7   :  { %13313 = vmatpush1.bf16.msra.mxu0 %v18805_v48  ;;  %v13811_v48 = vshrl.u32 %v20787_v26, 16 }
 0xea8   :  { %13314 = vmatprep.subr.bf16.mxu0 %v18810_v31  ;;  %v13814_v31 = vshll.u32 %v20787_v26, 16 }
 0xea9   :  { %v13813_v36 = vrot.slane %v13811_v48, 2 }
 0xeab   :  { %13315 = vmatpush1.bf16.msra.mxu0 %v18808_v39  ;;  %v13816_v39 = vrot.slane %v13814_v31, 3 }
 0xeac   :  { %13640 = vmatprep.subr.bf16.mxu0 %v18814_v14  ;;  %v18877_v14 = vld [vmem:[#allocation23 + $0x6d0] ss:$8 sps:$4 sm:$0xff]  }
 0xeae   :  { %16141 = vmatmul.mubr.msk.bf16.vlgmr.msra.gmra.mrb[24].mxu0 %vm20997_vm13, %v13035_v47  ;;  %v18881_v47 = vld [vmem:[#allocation23 + $0x6e0] ss:$8 sps:$4 sm:$0xff]  }
 0xeaf   :  { %13641 = vmatpush1.bf16.msra.mxu0 %v18812_v5  ;;  %13672 = vmatprep.mubr.bf16.mxu0 %v20778_v52  ;;  %v18831_v52 = vld [vmem:[#allocation23 + $0x5e0] ss:$8 sps:$4 sm:$0xff]   ;;  %v13808_v5 = vrot.slane %v13806_v32, 3 }
 0xeb0   :  { %13642 = vmatprep.subr.bf16.mxu0 %v18818_v49  ;;  %v13817_v49 = vor.u32 %v13816_v39, %v13813_v36  ;;  %v18937_v32 = vld [vmem:[#allocation23 + $0x800] ss:$8 sps:$4 sm:$0xff]   ;;  %v18942_v36 = vld [vmem:[#allocation23 + $0x814] ss:$8 sps:$4 sm:$0xff]   ;;  %v18940_v39 = vld [vmem:[#allocation23 + $0x810] ss:$8 sps:$4 sm:$0xff]  }
 0xeb1   :  { %v13809_v26 = vor.u32 %v13808_v5, %v13805_v10  ;;  %v13823_v10 = vshll.u32 %v20769_v27, 16  ;;  %v19034_v5 = vld [vmem:[#allocation2 + $0x20] ss:$0 sps:$4 sm:$0x77]  }
 0xeb3   :  { %13643 = vmatpush1.bf16.msra.mxu0 %v18816_v55  ;;  %v18887_v55 = vld [vmem:[#allocation23 + $0x6f4] ss:$8 sps:$4 sm:$0xff]  }
 0xeb4   :  { %13644 = vmatprep.subr.bf16.mxu0 %v18821_v57  ;;  %v13818_v57 = vsel %vm2352_vm5, %v13809_v26, %v13817_v49  ;;  %v13828_v49 = vshrl.u32 %v19034_v5, 16  ;;  %v18943_v26 = vld [vmem:[#allocation23 + $0x820] ss:$8 sps:$4 sm:$0xff]  }
 0xeb7   :  { %13645 = vmatpush1.bf16.msra.mxu0 %v18819_v18  ;;  %v18890_v18 = vld [vmem:[#allocation23 + $0x704] ss:$8 sps:$4 sm:$0xff]  }
 0xeb8   :  { %13646 = vmatprep.subr.bf16.mxu0 %v18824_v51  ;;  %v18888_v51 = vld [vmem:[#allocation23 + $0x700] ss:$8 sps:$4 sm:$0xff]  }
 0xebb   :  { %13647 = vmatpush1.bf16.msra.mxu0 %v18822_v34  ;;  %v18893_v34 = vld [vmem:[#allocation23 + $0x714] ss:$8 sps:$4 sm:$0xff]  }
 0xebc   :  { %13648 = vmatprep.subr.bf16.mxu0 %v18827_v7  ;;  %v18891_v7 = vld [vmem:[#allocation23 + $0x710] ss:$8 sps:$4 sm:$0xff]  }
 0xebf   :  { %13649 = vmatpush1.bf16.msra.mxu0 %v18825_v59  ;;  %v18896_v59 = vld [vmem:[#allocation23 + $0x724] ss:$8 sps:$4 sm:$0xff]  }
 0xec0   :  { %13650 = vmatprep.subr.bf16.mxu0 %v18830_v13  ;;  %v18894_v13 = vld [vmem:[#allocation23 + $0x720] ss:$8 sps:$4 sm:$0xff]  }
 0xec3   :  { %13651 = vmatpush1.bf16.msra.mxu0 %v18828_v58  ;;  %v18899_v58 = vld [vmem:[#allocation23 + $0x734] ss:$8 sps:$4 sm:$0xff]  }
 0xec4   :  { %13652 = vmatprep.subr.bf16.mxu0 %v18833_v62  ;;  %v18902_v62 = vld [vmem:[#allocation23 + $0x744] ss:$8 sps:$4 sm:$0xff]  }
 0xec7   :  { %13653 = vmatpush1.bf16.msra.mxu0 %v18831_v52  ;;  %v18900_v52 = vld [vmem:[#allocation23 + $0x740] ss:$8 sps:$4 sm:$0xff]  }
 0xec8   :  { %13654 = vmatprep.subr.bf16.mxu0 %v18836_v1  ;;  %v18905_v1 = vld [vmem:[#allocation23 + $0x754] ss:$8 sps:$4 sm:$0xff]  }
 0xecb   :  { %13655 = vmatpush1.bf16.msra.mxu0 %v18834_v19  ;;  %v18903_v19 = vld [vmem:[#allocation23 + $0x750] ss:$8 sps:$4 sm:$0xff]  }
 0xecc   :  { %13656 = vmatprep.subr.bf16.mxu0 %v18839_v23  ;;  %v18908_v23 = vld [vmem:[#allocation23 + $0x764] ss:$8 sps:$4 sm:$0xff]  }
 0xecf   :  { %13657 = vmatpush1.bf16.msra.mxu0 %v18837_v15  ;;  %v18906_v15 = vld [vmem:[#allocation23 + $0x760] ss:$8 sps:$4 sm:$0xff]  }
 0xed0   :  { %13658 = vmatprep.subr.bf16.mxu0 %v18842_v63  ;;  %v18911_v63 = vld [vmem:[#allocation23 + $0x774] ss:$8 sps:$4 sm:$0xff]  }
 0xed3   :  { %13659 = vmatpush1.bf16.msra.mxu0 %v18840_v45  ;;  %v18909_v45 = vld [vmem:[#allocation23 + $0x770] ss:$8 sps:$4 sm:$0xff]  }
 0xed4   :  { %13660 = vmatprep.subr.bf16.mxu0 %v18845_v35  ;;  %v18914_v35 = vld [vmem:[#allocation23 + $0x784] ss:$8 sps:$4 sm:$0xff]  }
 0xed7   :  { %13661 = vmatpush1.bf16.msra.mxu0 %v18843_v50  ;;  %v18912_v50 = vld [vmem:[#allocation23 + $0x780] ss:$8 sps:$4 sm:$0xff]  }
 0xed8   :  { %13662 = vmatprep.subr.bf16.mxu0 %v18848_v17  ;;  %v18917_v17 = vld [vmem:[#allocation23 + $0x794] ss:$8 sps:$4 sm:$0xff]  }
 0xedb   :  { %13663 = vmatpush1.bf16.msra.mxu0 %v18846_v44  ;;  %v18915_v44 = vld [vmem:[#allocation23 + $0x790] ss:$8 sps:$4 sm:$0xff]  }
 0xedc   :  { %13664 = vmatprep.subr.bf16.mxu0 %v18851_v25  ;;  %v18920_v25 = vld [vmem:[#allocation23 + $0x7a4] ss:$8 sps:$4 sm:$0xff]  }
 0xedf   :  { %13665 = vmatpush1.bf16.msra.mxu0 %v18849_v33  ;;  %v18918_v33 = vld [vmem:[#allocation23 + $0x7a0] ss:$8 sps:$4 sm:$0xff]  }
 0xee0   :  { %13666 = vmatprep.subr.bf16.mxu0 %v18854_v12  ;;  %v18923_v12 = vld [vmem:[#allocation23 + $0x7b4] ss:$8 sps:$4 sm:$0xff]  }
 0xee3   :  { %13667 = vmatpush1.bf16.msra.mxu0 %v18852_v42  ;;  %v18921_v42 = vld [vmem:[#allocation23 + $0x7b0] ss:$8 sps:$4 sm:$0xff]  }
 0xee4   :  { %13668 = vmatprep.subr.bf16.mxu0 %v18857_v30  ;;  %v18926_v30 = vld [vmem:[#allocation23 + $0x7c4] ss:$8 sps:$4 sm:$0xff]  }
 0xee7   :  { %13669 = vmatpush1.bf16.msra.mxu0 %v18855_v56  ;;  %v13794_v56 = vshrl.u32 %v20790_v4, 16 }
 0xee8   :  { %13670 = vmatprep.subr.bf16.mxu0 %v18860_v22  ;;  %v13797_v22 = vshll.u32 %v20790_v4, 16  ;;  %v18931_v4 = vld [vmem:[#allocation23 + $0x7e0] ss:$8 sps:$4 sm:$0xff]  }
 0xeeb   :  { %13671 = vmatpush1.bf16.msra.mxu0 %v18858_v8  ;;  %v18924_v8 = vld [vmem:[#allocation23 + $0x7c0] ss:$8 sps:$4 sm:$0xff]  }
 0xeec   :  { %13683 = vmatprep.subr.bf16.mxu0 %v18864_v2  ;;  %v13786_v2 = vshrl.u32 %v20763_v54, 16 }
 0xeee   :  { %13673 = vmatmul.mubr.bf16.vlgmr.msra.gmra.mrb[24].mxu0 %v20781_v21  ;;  %v18874_v21 = vld [vmem:[#allocation23 + $0x6c0] ss:$8 sps:$4 sm:$0xff]  }
 0xeef   :  { %13684 = vmatpush1.bf16.msra.mxu0 %v18862_v16  ;;  %13715 = vmatprep.mubr.bf16.mxu0 %v20244_v37  ;;  %v13789_v16 = vshll.u32 %v20763_v54, 16  ;;  %v18934_v54 = vld [vmem:[#allocation23 + $0x7f0] ss:$8 sps:$4 sm:$0xff]  }
 0xef0   :  { %13685 = vmatprep.subr.bf16.mxu0 %v18867_v28  ;;  %v18929_v28 = vld [vmem:[#allocation23 + $0x7d4] ss:$8 sps:$4 sm:$0xff]  }
 0xef3   :  { %13686 = vmatpush1.bf16.msra.mxu0 %v18865_v41  ;;  %v13796_v41 = vrot.slane %v13794_v56, 2  ;;  %v18981_v56 = vld [vmem:[#allocation23 + $0x8e0] ss:$8 sps:$4 sm:$0xff]  }
 0xef4   :  { %13687 = vmatprep.subr.bf16.mxu0 %v18870_v11  ;;  %v13799_v11 = vrot.slane %v13797_v22, 3  ;;  %v18986_v22 = vld [vmem:[#allocation23 + $0x8f4] ss:$8 sps:$4 sm:$0xff]  }
 0xef6   :  { %v13800_v48 = vor.u32 %v13799_v11, %v13796_v41  ;;  %v18990_v41 = vld [vmem:[#allocation23 + $0x910] ss:$8 sps:$4 sm:$0xff]   ;;  %v18995_v11 = vld [vmem:[#allocation23 + $0x924] ss:$8 sps:$4 sm:$0xff]  }
 0xef7   :  { %13688 = vmatpush1.bf16.msra.mxu0 %v18868_v40  ;;  %v18927_v40 = vld [vmem:[#allocation23 + $0x7d0] ss:$8 sps:$4 sm:$0xff]  }
 0xef8   :  { %13689 = vmatprep.subr.bf16.mxu0 %v18873_v29  ;;  %v13788_v29 = vrot.slane %v13786_v2, 2  ;;  %v18989_v2 = vld [vmem:[#allocation23 + $0x904] ss:$8 sps:$4 sm:$0xff]  }
 0xefb   :  { %13690 = vmatpush1.bf16.msra.mxu0 %v18871_v3  ;;  %v13791_v3 = vrot.slane %v13789_v16, 3  ;;  %v18987_v16 = vld [vmem:[#allocation23 + $0x900] ss:$8 sps:$4 sm:$0xff]  }
 0xefc   :  { %13691 = vmatprep.subr.bf16.mxu0 %v18876_v43  ;;  %v18933_v43 = vld [vmem:[#allocation23 + $0x7e4] ss:$8 sps:$4 sm:$0xff]  }
 0xefd   :  { %v13792_v31 = vor.u32 %v13791_v3, %v13788_v29  ;;  %v18998_v29 = vld [vmem:[#allocation23 + $0x934] ss:$8 sps:$4 sm:$0xff]   ;;  %v18996_v3 = vld [vmem:[#allocation23 + $0x930] ss:$8 sps:$4 sm:$0xff]  }
 0xeff   :  { %13692 = vmatpush1.bf16.msra.mxu0 %v18874_v21  ;;  %v18936_v21 = vld [vmem:[#allocation23 + $0x7f4] ss:$8 sps:$4 sm:$0xff]  }
 0xf00   :  { %13693 = vmatprep.subr.bf16.mxu0 %v18879_v9  ;;  %v13801_v9 = vsel %vm2352_vm5, %v13792_v31, %v13800_v48  ;;  %v19000_v48 = vld [vmem:[#allocation23 + $0x940] ss:$8 sps:$4 sm:$0xff]   ;;  %v19005_v31 = vld [vmem:[#allocation23 + $0x954] ss:$8 sps:$4 sm:$0xff]  }
 0xf03   :  { %13694 = vmatpush1.bf16.msra.mxu0 %v18877_v14  ;;  %v18945_v14 = vld [vmem:[#allocation23 + $0x824] ss:$8 sps:$4 sm:$0xff]  }
 0xf04   :  { %14061 = vmatprep.subr.bf16.mxu0 %v18883_v53  ;;  %v13820_v53 = vshrl.u32 %v20769_v27, 16  ;;  %v18956_v27 = vld [vmem:[#allocation23 + $0x854] ss:$8 sps:$4 sm:$0xff]  }
 0xf06   :  { %16189 = vmatmul.mubr.msk.bf16.vlgmr.msra.gmra.mrb[24].mxu0 %vm20998_vm4, %v20785_v0  ;;  %v18897_v0 = vld [vmem:[#allocation23 + $0x730] ss:$8 sps:$4 sm:$0xff]  }
 0xf07   :  { %14062 = vmatpush1.bf16.msra.mxu0 %v18881_v47  ;;  %14093 = vmatprep.mubr.bf16.mxu0 %v13818_v57  ;;  %v13831_v47 = vshll.u32 %v19034_v5, 16  ;;  %v13822_v57 = vrot.slane %v13820_v53, 2  ;;  %v14530_v5 = vld [vmem:[#allocation14] sm:$0xff] }
 0xf08   :  { %14063 = vmatprep.subr.bf16.mxu0 %v18887_v55  ;;  %v18948_v55 = vld [vmem:[#allocation23 + $0x834] ss:$8 sps:$4 sm:$0xff]  }
 0xf0b   :  { %14064 = vmatpush1.bf16.msra.mxu0 %v18885_v24  ;;  %v13825_v24 = vrot.slane %v13823_v10, 3 }
 0xf0c   :  { %14065 = vmatprep.subr.bf16.mxu0 %v18890_v18  ;;  %v13830_v18 = vrot.slane %v13828_v49, 2 }
 0xf0f   :  { %14066 = vmatpush1.bf16.msra.mxu0 %v18888_v51  ;;  %v13833_v51 = vrot.slane %v13831_v47, 3 }
 0xf10   :  { %14067 = vmatprep.subr.bf16.mxu0 %v18893_v34  ;;  %v18946_v34 = vld [vmem:[#allocation23 + $0x830] ss:$8 sps:$4 sm:$0xff]  }
 0xf13   :  { %14068 = vmatpush1.bf16.msra.mxu0 %v18891_v7  ;;  %v18952_v7 = vld [vmem:[#allocation23 + $0x844] ss:$8 sps:$4 sm:$0xff]  }
 0xf14   :  { %14069 = vmatprep.subr.bf16.mxu0 %v18896_v59  ;;  %v13826_v59 = vor.u32 %v13825_v24, %v13822_v57  ;;  %v14532_v24 = vld [vmem:[#allocation14 + $0x10] sm:$0xff] }
 0xf17   :  { %14070 = vmatpush1.bf16.msra.mxu0 %v18894_v13  ;;  %v13834_v13 = vor.u32 %v13833_v51, %v13830_v18 }
 0xf18   :  { %14071 = vmatprep.subr.bf16.mxu0 %v18899_v58  ;;  %v18950_v58 = vld [vmem:[#allocation23 + $0x840] ss:$8 sps:$4 sm:$0xff]  }
 0xf1b   :  { %14072 = vmatpush1.bf16.msra.mxu0 %v18897_v0  ;;  %v13835_v0 = vsel %vm2352_vm5, %v13826_v59, %v13834_v13  ;;  %vm21000_vm5 = vmmov %vm20985_vm0  ;;  %v14542_v59 = vld [vmem:[#allocation16] sm:$0xff] }
 0xf1c   :  { %14073 = vmatprep.subr.bf16.mxu0 %v18902_v62  ;;  %v18954_v62 = vld [vmem:[#allocation23 + $0x850] ss:$8 sps:$4 sm:$0xff]  }
 0xf1f   :  { %14074 = vmatpush1.bf16.msra.mxu0 %v18900_v52  ;;  %v18959_v52 = vld [vmem:[#allocation23 + $0x864] ss:$8 sps:$4 sm:$0xff]  }
 0xf20   :  { %14075 = vmatprep.subr.bf16.mxu0 %v18905_v1  ;;  %v18957_v1 = vld [vmem:[#allocation23 + $0x860] ss:$8 sps:$4 sm:$0xff]  }
 0xf23   :  { %14076 = vmatpush1.bf16.msra.mxu0 %v18903_v19  ;;  %v18962_v19 = vld [vmem:[#allocation23 + $0x874] ss:$8 sps:$4 sm:$0xff]  }
 0xf24   :  { %14077 = vmatprep.subr.bf16.mxu0 %v18908_v23  ;;  %v18960_v23 = vld [vmem:[#allocation23 + $0x870] ss:$8 sps:$4 sm:$0xff]  }
 0xf27   :  { %14078 = vmatpush1.bf16.msra.mxu0 %v18906_v15  ;;  %v18965_v15 = vld [vmem:[#allocation23 + $0x884] ss:$8 sps:$4 sm:$0xff]  }
 0xf28   :  { %14079 = vmatprep.subr.bf16.mxu0 %v18911_v63  ;;  %v18963_v63 = vld [vmem:[#allocation23 + $0x880] ss:$8 sps:$4 sm:$0xff]  }
 0xf2b   :  { %14080 = vmatpush1.bf16.msra.mxu0 %v18909_v45  ;;  %v18968_v45 = vld [vmem:[#allocation23 + $0x894] ss:$8 sps:$4 sm:$0xff]  }
 0xf2c   :  { %14081 = vmatprep.subr.bf16.mxu0 %v18914_v35  ;;  %v18966_v35 = vld [vmem:[#allocation23 + $0x890] ss:$8 sps:$4 sm:$0xff]  }
 0xf2f   :  { %14082 = vmatpush1.bf16.msra.mxu0 %v18912_v50  ;;  %v18971_v50 = vld [vmem:[#allocation23 + $0x8a4] ss:$8 sps:$4 sm:$0xff]  }
 0xf30   :  { %14083 = vmatprep.subr.bf16.mxu0 %v18917_v17  ;;  %v18974_v17 = vld [vmem:[#allocation23 + $0x8b4] ss:$8 sps:$4 sm:$0xff]  }
 0xf33   :  { %14084 = vmatpush1.bf16.msra.mxu0 %v18915_v44  ;;  %v18972_v44 = vld [vmem:[#allocation23 + $0x8b0] ss:$8 sps:$4 sm:$0xff]  }
 0xf34   :  { %14085 = vmatprep.subr.bf16.mxu0 %v18920_v25  ;;  %v18977_v25 = vld [vmem:[#allocation23 + $0x8c4] ss:$8 sps:$4 sm:$0xff]  }
 0xf37   :  { %14086 = vmatpush1.bf16.msra.mxu0 %v18918_v33  ;;  %v18975_v33 = vld [vmem:[#allocation23 + $0x8c0] ss:$8 sps:$4 sm:$0xff]  }
 0xf38   :  { %14087 = vmatprep.subr.bf16.mxu0 %v18923_v12  ;;  %v18980_v12 = vld [vmem:[#allocation23 + $0x8d4] ss:$8 sps:$4 sm:$0xff]  }
 0xf3b   :  { %14088 = vmatpush1.bf16.msra.mxu0 %v18921_v42  ;;  %v18978_v42 = vld [vmem:[#allocation23 + $0x8d0] ss:$8 sps:$4 sm:$0xff]  }
 0xf3c   :  { %14089 = vmatprep.subr.bf16.mxu0 %v18926_v30  ;;  %v18983_v30 = vld [vmem:[#allocation23 + $0x8e4] ss:$8 sps:$4 sm:$0xff]  }
 0xf3f   :  { %14090 = vmatpush1.bf16.msra.mxu0 %v18924_v8  ;;  %v18984_v8 = vld [vmem:[#allocation23 + $0x8f0] ss:$8 sps:$4 sm:$0xff]  }
 0xf40   :  { %14091 = vmatprep.subr.bf16.mxu0 %v18929_v28  ;;  %v18992_v28 = vld [vmem:[#allocation23 + $0x914] ss:$8 sps:$4 sm:$0xff]  }
 0xf43   :  { %14092 = vmatpush1.bf16.msra.mxu0 %v18927_v40  ;;  %v18993_v40 = vld [vmem:[#allocation23 + $0x920] ss:$8 sps:$4 sm:$0xff]  }
 0xf44   :  { %14104 = vmatprep.subr.bf16.mxu0 %v18933_v43  ;;  %v19002_v43 = vld [vmem:[#allocation23 + $0x944] ss:$8 sps:$4 sm:$0xff]  }
 0xf46   :  { %14094 = vmatmul.mubr.bf16.vlgmr.msra.gmra.mrb[24].mxu0 %v13801_v9  ;;  %v19006_v9 = vld [vmem:[#allocation23 + $0x960] ss:$8 sps:$4 sm:$0xff]  }
 0xf47   :  { %14105 = vmatpush1.bf16.msra.mxu0 %v18931_v4  ;;  %14136 = vmatprep.mubr.bf16.mxu0 %v20244_v37  ;;  %v19003_v4 = vld [vmem:[#allocation23 + $0x950] ss:$8 sps:$4 sm:$0xff]  }
 0xf48   :  { %14106 = vmatprep.subr.bf16.mxu0 %v18936_v21  ;;  %v19008_v21 = vld [vmem:[#allocation23 + $0x964] ss:$8 sps:$4 sm:$0xff]  }
 0xf4b   :  { %14107 = vmatpush1.bf16.msra.mxu0 %v18934_v54  ;;  %v19011_v54 = vld [vmem:[#allocation23 + $0x974] ss:$8 sps:$4 sm:$0xff]  }
 0xf4c   :  { %14108 = vmatprep.subr.bf16.mxu0 %v18939_v46  ;;  %v19009_v46 = vld [vmem:[#allocation23 + $0x970] ss:$8 sps:$4 sm:$0xff]  }
 0xf4f   :  { %14109 = vmatpush1.bf16.msra.mxu0 %v18937_v32  ;;  %v19014_v32 = vld [vmem:[#allocation23 + $0x984] ss:$8 sps:$4 sm:$0xff]  }
 0xf50   :  { %14110 = vmatprep.subr.bf16.mxu0 %v18942_v36  ;;  %v19012_v36 = vld [vmem:[#allocation23 + $0x980] ss:$8 sps:$4 sm:$0xff]  }
 0xf53   :  { %14111 = vmatpush1.bf16.msra.mxu0 %v18940_v39  ;;  %v19017_v39 = vld [vmem:[#allocation23 + $0x994] ss:$8 sps:$4 sm:$0xff]  }
 0xf54   :  { %14112 = vmatprep.subr.bf16.mxu0 %v18945_v14 }
 0xf57   :  { %14113 = vmatpush1.bf16.msra.mxu0 %v18943_v26  ;;  %v14531_v26 = vld [vmem:[#allocation14 + $0x8] sm:$0xff] }
 0xf58   :  { %14114 = vmatprep.subr.bf16.mxu0 %v18948_v55 }
 0xf5b   :  { %14115 = vmatpush1.bf16.msra.mxu0 %v18946_v34 }
 0xf5c   :  { %14440 = vmatprep.subr.bf16.mxu0 %v18952_v7  ;;  %v14533_v7 = vld [vmem:[#allocation14 + $0x18] sm:$0xff] }
 0xf5e   :  { %16237 = vmatmul.mubr.msk.bf16.vlgmr.msra.gmra.mrb[24].mxu0 %vm20999_vm6, %v13835_v0 }
 0xf5f   :  { %14441 = vmatpush1.bf16.msra.mxu0 %v18950_v58  ;;  %14472 = vmatprep.mubr.bf16.mxu0 %v20799_v38  ;;  %v18969_v38 = vld [vmem:[#allocation23 + $0x8a0] ss:$8 sps:$4 sm:$0xff]  }
 0xf60   :  { %14442 = vmatprep.subr.bf16.mxu0 %v18956_v27  ;;  %v14543_v27 = vld [vmem:[#allocation16 + $0x8] sm:$0xff] }
 0xf63   :  { %14443 = vmatpush1.bf16.msra.mxu0 %v18954_v62 }
 0xf64   :  { %14444 = vmatprep.subr.bf16.mxu0 %v18959_v52 }
 0xf67   :  { %14445 = vmatpush1.bf16.msra.mxu0 %v18957_v1 }
 0xf68   :  { %14446 = vmatprep.subr.bf16.mxu0 %v18962_v19  ;;  %v14545_v19 = vld [vmem:[#allocation16 + $0x18] sm:$0xff] }
 0xf6b   :  { %14447 = vmatpush1.bf16.msra.mxu0 %v18960_v23 }
 0xf6c   :  { %14448 = vmatprep.subr.bf16.mxu0 %v18965_v15 }
 0xf6f   :  { %14449 = vmatpush1.bf16.msra.mxu0 %v18963_v63 }
 0xf70   :  { %14450 = vmatprep.subr.bf16.mxu0 %v18968_v45 }
 0xf73   :  { %14451 = vmatpush1.bf16.msra.mxu0 %v18966_v35 }
 0xf74   :  { %14452 = vmatprep.subr.bf16.mxu0 %v18971_v50 }
 0xf77   :  { %14453 = vmatpush1.bf16.msra.mxu0 %v18969_v38 }
 0xf78   :  { %14454 = vmatprep.subr.bf16.mxu0 %v18974_v17 }
 0xf7b   :  { %14455 = vmatpush1.bf16.msra.mxu0 %v18972_v44 }
 0xf7c   :  { %14456 = vmatprep.subr.bf16.mxu0 %v18977_v25 }
 0xf7f   :  { %14457 = vmatpush1.bf16.msra.mxu0 %v18975_v33 }
 0xf80   :  { %14458 = vmatprep.subr.bf16.mxu0 %v18980_v12 }
 0xf83   :  { %14459 = vmatpush1.bf16.msra.mxu0 %v18978_v42 }
 0xf84   :  { %14460 = vmatprep.subr.bf16.mxu0 %v18983_v30 }
 0xf87   :  { %14461 = vmatpush1.bf16.msra.mxu0 %v18981_v56 }
 0xf88   :  { %14462 = vmatprep.subr.bf16.mxu0 %v18986_v22 }
 0xf8b   :  { %14463 = vmatpush1.bf16.msra.mxu0 %v18984_v8 }
 0xf8c   :  { %14464 = vmatprep.subr.bf16.mxu0 %v18989_v2 }
 0xf8f   :  { %14465 = vmatpush1.bf16.msra.mxu0 %v18987_v16 }
 0xf90   :  { %14466 = vmatprep.subr.bf16.mxu0 %v18992_v28 }
 0xf93   :  { %14467 = vmatpush1.bf16.msra.mxu0 %v18990_v41 }
 0xf94   :  { %14468 = vmatprep.subr.bf16.mxu0 %v18995_v11 }
 0xf97   :  { %14469 = vmatpush1.bf16.msra.mxu0 %v18993_v40 }
 0xf98   :  { %14470 = vmatprep.subr.bf16.mxu0 %v18998_v29 }
 0xf9b   :  { %14471 = vmatpush1.bf16.msra.mxu0 %v18996_v3 }
 0xf9c   :  { %14483 = vmatprep.subr.bf16.mxu0 %v19002_v43 }
 0xf9e   :  { %14473 = vmatmul.mubr.bf16.vlgmr.msra.gmra.mrb[24].mxu0 %v20802_v6  ;;  %v19015_v6 = vld [vmem:[#allocation23 + $0x990] ss:$8 sps:$4 sm:$0xff]  }
 0xf9f   :  { %14484 = vmatpush1.bf16.msra.mxu0 %v19000_v48  ;;  %14515 = vmatprep.mubr.bf16.mxu0 %v20244_v37  ;;  %v11740_v37 = vld [vmem:[#allocation31] sm:$0x3] }
 0xfa0   :  { %14485 = vmatprep.subr.bf16.mxu0 %v19005_v31  ;;  %v11745_v14 = vrot.slane %v11740_v37, %v20013_v60  ;;  %v11749_v53 = vrot.slane %v11740_v37, %v20015_v61  ;;  %v14544_v61 = vld [vmem:[#allocation16 + $0x10] sm:$0xff] }
 0xfa3   :  { %14486 = vmatpush1.bf16.msra.mxu0 %v19003_v4 }
 0xfa4   :  { %14487 = vmatprep.subr.bf16.mxu0 %v19008_v21 }
 0xfa7   :  { %14488 = vmatpush1.bf16.msra.mxu0 %v19006_v9 }
 0xfa8   :  { %14489 = vmatprep.subr.bf16.mxu0 %v19011_v54 }
 0xfab   :  { %14490 = vmatpush1.bf16.msra.mxu0 %v19009_v46 }
 0xfac   :  { %14491 = vmatprep.subr.bf16.mxu0 %v19014_v32 }
 0xfaf   :  { %14492 = vmatpush1.bf16.msra.mxu0 %v19012_v36 }
 0xfb0   :  { %14493 = vmatprep.subr.bf16.mxu0 %v19017_v39 }
 0xfb3   :  { %14494 = vmatpush1.bf16.msra.mxu0 %v19015_v6 }
 0xfb6   :  { %16285 = vmatmul.mubr.msk.bf16.vlgmr.msra.gmra.mrb[24].mxu0 %vm21000_vm5, %v20805_v20 }
0x1089   :  { %v14517_v10 = vpop.f32.mrb[24].mxu0 }
0x108a   :  { %v16344_v49 = vadd.f32 %v14517_v10, %v11745_v14  ;;  %v14519_v47 = vpop.f32.mrb[25].mxu0 }
0x108b   :  { %v16345_v55 = vadd.f32 %v14519_v47, %v11749_v53  ;;  %v14521_v57 = vpop.f32.mrb[26].mxu0 }
0x108c   :  { %v14534_v18 = vadd.f32 %v16344_v49, %v14530_v5  ;;  %v16346_v51 = vadd.f32 %v14521_v57, %v11745_v14  ;;  %v14523_v34 = vpop.f32.mrb[27].mxu0 }
0x108d   :  { %v14535_v13 = vadd.f32 %v16345_v55, %v14531_v26  ;;  %v16347_v20 = vadd.f32 %v14523_v34, %v11749_v53 }
0x108e   :  { %v14538_v58 = vmax.f32 %v14534_v18, 0.0  ;;  %v14536_v60 = vadd.f32 %v16346_v51, %v14532_v24 }
0x108f   :  { %v14539_v0 = vmax.f32 %v14535_v13, 0.0  ;;  %v14537_v62 = vadd.f32 %v16347_v20, %v14533_v7 }
0x1090   :  { %v14546_v52 = vadd.f32 %v14542_v59, %v14538_v58  ;;  %v14540_v1 = vmax.f32 %v14536_v60, 0.0 }
0x1091   :  { %v14547_v23 = vadd.f32 %v14543_v27, %v14539_v0  ;;  %v14541_v15 = vmax.f32 %v14537_v62, 0.0 }
0x1092   :  { %v14550_v63 = vmax.f32 %v14546_v52, 0.0  ;;  %v14548_v45 = vadd.f32 %v14544_v61, %v14540_v1 }
0x1093   :  { %v14551_v35 = vmax.f32 %v14547_v23, 0.0  ;;  %v14549_v50 = vadd.f32 %v14545_v19, %v14541_v15 }
0x1094   :  { %14554 = vst [vmem:[#allocation32] sm:$0xff] %v14550_v63  ;;  %v14552_v38 = vmax.f32 %v14548_v45, 0.0 }
0x1095   :  { %14555 = vst [vmem:[#allocation32 + $0x8] sm:$0xff] %v14551_v35  ;;  %v14553_v17 = vmax.f32 %v14549_v50, 0.0 }
0x1096   :  { %14556 = vst [vmem:[#allocation32 + $0x10] sm:$0xff] %v14552_v38 }
0x1097   :  { %14557 = vst [vmem:[#allocation32 + $0x18] sm:$0xff] %v14553_v17 }
0x1098   :  { %19430 = shalt.err (!%p19427_p3)
}
0x1099   :  { %s21001_s21 = sld [smem:[#allocation48_spill]] }
0x109f   :  { %s19431_s16 = scalar_lea.hbm %s21001_s21, 512 }
0x10a0   :  { %p19432_p4 = scmp.ne.s32.totalorder %s21001_s21, %s19431_s16  ;;  %p19435_p5 = scmp.lt.u32.totalorder %s19431_s16, %s21001_s21 }
0x10a2   :  { %p19437_p6 = pnand %p19435_p5, %p19432_p4 }
0x10a4   :  { %19440 = shalt.err (!%p19437_p6)
}
0x10a5   :  { %14569 = dma.vmem_to_hbm [thread:$0]  %s14564_s6, 512, %s21001_s21, [#allocation5], %s20922_s23, %s20922_s23, %s19469_s25  }
0x10a6   :  { %19461 = dma.done.wait [#allocation5], 512  }
0x10a7   :  { %19462 = vsyncadd [#allocation5], 4294966784 }
0x10a8   :  { %14573 = vsyncpa [#allocation4], 1 }
0x10a9   :  { %14574 = vsyncpa [#allocation9], 1 }
0x10aa   :  { %14575 = vsyncpa [#allocation12], 1 }
0x10ab   :  { %14576 = vsyncpa [#allocation15], 1 }
0x10ac   :  { %14577 = vsyncpa [#allocation18], 1 }
0x10ad   :  { %14578 = vsyncpa [#allocation21], 1 }
0x10ae   :  { %14579 = vsyncpa [#allocation24], 1 }
0x10af   :  { %14580 = vsyncpa [#allocation27], 1 }
0x10b0   :  { %14581 = vsyncpa [#allocation30], 1 }
0x10b1   :  { %14582 = vsyncpa [#allocation5], 1 }
0x10b2   :  { %14583 = vsyncpa [#allocation6], 1 }

</bundles_post_ra>
